<compile_context>
chip_gen: v7x
topology: tpu7x:2x2x1
jax: 0.10.0
libtpu: 0.0.40
codegen_flags: <defaults>
</compile_context>

<pallas_src>
import functools
import numpy as np
import jax
import jax.numpy as jnp
from jax.experimental import pallas as pl
from jax.experimental.pallas import tpu as pltpu

EPS = 1e-5  # PyTorch BatchNorm default eps


def _round_up(x, m):
    return (x + m - 1) // m * m


def _pick_tile(size, *, cap, quantum, max_waste=0.15):
    """Pick (tile, padded_size): tile multiple of `quantum`, <= cap, preferring
    large tiles as long as zero-padding overhead stays under `max_waste`."""
    base = _round_up(size, quantum)
    if base <= cap:
        return base, base
    best_t, best_p = quantum, _round_up(base, quantum)
    for t in range(cap, quantum - 1, -quantum):          # descending
        p = _round_up(base, t)
        if (p - base) / base <= max_waste:
            return t, p
        if p < best_p:
            best_t, best_p = t, p
    return best_t, best_p


def _pick_m_tile(m):
    if m < 128:
        t = _round_up(max(m, 1), 16)   # 16-row quantum (bf16 sublane packing)
        return t, t
    return _pick_tile(m, cap=256, quantum=128)


# ----------------------------------------------------------------------------
# Pallas kernel: tiled bf16 matmul with fused (scale, bias, optional ReLU)
# epilogue.  out = maybe_relu((A @ B) * scale + bias), f32 accumulation.
# ----------------------------------------------------------------------------
def _mm_epilogue_kernel(a_ref, b_ref, s_ref, c_ref, o_ref, acc_ref, *, relu):
    k = pl.program_id(2)

    @pl.when(k == 0)
    def _():
        acc_ref[...] = jnp.zeros_like(acc_ref)

    acc_ref[...] += jnp.dot(a_ref[...], b_ref[...],
                            preferred_element_type=jnp.float32)

    @pl.when(k == pl.num_programs(2) - 1)
    def _():
        y = acc_ref[...] * s_ref[...] + c_ref[...]
        if relu:
            y = jnp.maximum(y, 0.0)
        o_ref[...] = y.astype(o_ref.dtype)


def fused_matmul(a, lp, *, relu):
    """a: (M, K) activations (f32).  lp: prepared layer dict with pre-padded
    bf16 weight matrix 'b' (Kp, Np), f32 'ss'/'cc' (1, Np), tiles 'tk'/'tn',
    true output width 'n'."""
    M, K = a.shape
    Kp, Np = lp["b"].shape
    tk, tn = lp["tk"], lp["tn"]
    tm, Mp = _pick_m_tile(M)

    a_p = a
    if Mp != M or Kp != K:
        a_p = jnp.pad(a, ((0, Mp - M), (0, Kp - K)))
    a_p = a_p.astype(jnp.bfloat16)

    grid = (Mp // tm, Np // tn, Kp // tk)
    out = pl.pallas_call(
        functools.partial(_mm_epilogue_kernel, relu=relu),
        out_shape=jax.ShapeDtypeStruct((Mp, Np), jnp.float32),
        grid_spec=pltpu.PrefetchScalarGridSpec(
            num_scalar_prefetch=0,
            grid=grid,
            in_specs=[
                pl.BlockSpec((tm, tk), lambda i, j, k: (i, k)),
                pl.BlockSpec((tk, tn), lambda i, j, k: (k, j)),
                pl.BlockSpec((1, tn), lambda i, j, k: (0, j)),
                pl.BlockSpec((1, tn), lambda i, j, k: (0, j)),
            ],
            out_specs=pl.BlockSpec((tm, tn), lambda i, j, k: (i, j)),
            scratch_shapes=[pltpu.VMEM((tm, tn), jnp.float32)],
        ),
        compiler_params=pltpu.CompilerParams(
            dimension_semantics=("parallel", "parallel", "arbitrary")),
    )(a_p, lp["b"], lp["ss"], lp["cc"])
    return out[:M, :lp["n"]]


# ----------------------------------------------------------------------------
# Pallas kernel: row-wise L2 normalization (Normalize(power=2)) via rsqrt.
# ----------------------------------------------------------------------------
def _l2norm_kernel(x_ref, o_ref):
    x = x_ref[...]
    ssq = jnp.sum(x * x, axis=1, keepdims=True)
    o_ref[...] = x * jax.lax.rsqrt(ssq)


def l2_normalize(x):
    return pl.pallas_call(
        _l2norm_kernel,
        out_shape=jax.ShapeDtypeStruct(x.shape, x.dtype),
    )(x)


# ----------------------------------------------------------------------------
# im2col (NHWC, column order = (kh, kw, c)) and conv+BN+ReLU wrapper.
# ----------------------------------------------------------------------------
def _im2col_nhwc(x, kh, kw, stride, pad):
    N, H, W, C = x.shape
    xp = jnp.pad(x, ((0, 0), (pad, pad), (pad, pad), (0, 0)))
    OH = (H + 2 * pad - kh) // stride + 1
    OW = (W + 2 * pad - kw) // stride + 1
    patches = []
    for i in range(kh):
        for j in range(kw):
            patches.append(
                xp[:, i:i + stride * OH:stride, j:j + stride * OW:stride, :])
    cols = jnp.stack(patches, axis=3)                    # (N, OH, OW, kh*kw, C)
    cols = cols.reshape(N * OH * OW, kh * kw * C)
    return cols, OH, OW


def conv_bn_relu(x_nhwc, lp):
    N = x_nhwc.shape[0]
    cols, OH, OW = _im2col_nhwc(x_nhwc, lp["kh"], lp["kw"],
                                lp["stride"], lp["pad"])
    out = fused_matmul(cols, lp, relu=True)              # (N*OH*OW, OC)
    return out.reshape(N, OH, OW, lp["n"])


# ----------------------------------------------------------------------------
# AdaptiveMaxPool2d on NHWC (incremental max over static window offsets).
# ----------------------------------------------------------------------------
def adaptive_max_pool_nhwc(x, out_size):
    def pool_axis(arr, axis):
        in_size = arr.shape[axis]
        starts = [(i * in_size) // out_size for i in range(out_size)]
        ends = [-(-((i + 1) * in_size) // out_size) for i in range(out_size)]
        kmax = max(e - s for s, e in zip(starts, ends))
        out = None
        for j in range(kmax):
            idx = jnp.asarray(
                np.array([min(s + j, e - 1) for s, e in zip(starts, ends)],
                         dtype=np.int32))
            g = jnp.take(arr, idx, axis=axis)
            out = g if out is None else jnp.maximum(out, g)
        return out

    x = pool_axis(x, 1)
    x = pool_axis(x, 2)
    return x


# ----------------------------------------------------------------------------
# Parameters (deterministic init, shapes from alexnet_half).
# ----------------------------------------------------------------------------
CONV_SPECS = [  # (kernel, stride, pad, adaptive_pool_out)
    (11, 4, 2, 27), (5, 1, 2, 13), (3, 1, 1, None), (3, 1, 1, None), (3, 1, 1, 6)]


def init_half_params(key, in_channel=1, feat_dim=128):
    conv_cfg = [(in_channel, 48, 11), (48, 128, 5), (128, 192, 3),
                (192, 192, 3), (192, 128, 3)]
    fc_cfg = [(128 * 6 * 6, 2048), (2048, 2048), (2048, feat_dim)]
    keys = jax.random.split(key, 64)
    ki = [0]

    def nk():
        k = keys[ki[0]]
        ki[0] += 1
        return k

    p = {}
    for idx, (ic, oc, ks) in enumerate(conv_cfg, start=1):
        fan_in = ic * ks * ks
        p[f"conv{idx}_w"] = (jax.random.normal(nk(), (oc, ic, ks, ks),
                                               jnp.float32)
                             * np.sqrt(2.0 / fan_in))
        p[f"bn{idx}_gamma"] = 1.0 + 0.01 * jax.random.normal(nk(), (oc,), jnp.float32)
        p[f"bn{idx}_beta"] = 0.01 * jax.random.normal(nk(), (oc,), jnp.float32)
        p[f"bn{idx}_mean"] = 0.01 * jax.random.normal(nk(), (oc,), jnp.float32)
        p[f"bn{idx}_var"] = 1.0 + 0.01 * jnp.abs(jax.random.normal(nk(), (oc,), jnp.float32))
    for idx, (fin, fout) in enumerate(fc_cfg, start=6):
        p[f"fc{idx}_w"] = (jax.random.normal(nk(), (fout, fin), jnp.float32)
                           * np.sqrt(2.0 / fin))
        p[f"fc{idx}_b"] = 0.01 * jax.random.normal(nk(), (fout,), jnp.float32)
        if idx != 8:
            p[f"bn{idx}_gamma"] = 1.0 + 0.01 * jax.random.normal(nk(), (fout,), jnp.float32)
            p[f"bn{idx}_beta"] = 0.01 * jax.random.normal(nk(), (fout,), jnp.float32)
            p[f"bn{idx}_mean"] = 0.01 * jax.random.normal(nk(), (fout,), jnp.float32)
            p[f"bn{idx}_var"] = 1.0 + 0.01 * jnp.abs(jax.random.normal(nk(), (fout,), jnp.float32))
    return p


def _bn_fold(gamma, beta, mean, var):
    s = gamma / jnp.sqrt(var + EPS)
    c = beta - mean * s
    return s, c


def _prep_matmul_operands(b_mat, scale, bias):
    """Fold/pad/cast once: b_mat (K, N) -> bf16 (Kp, Np); scale/bias -> (1, Np)."""
    K, N = b_mat.shape
    tk, Kp = _pick_tile(K, cap=512, quantum=128)
    tn, Np = _pick_tile(N, cap=512, quantum=128)
    b_p = jnp.pad(b_mat, ((0, Kp - K), (0, Np - N))).astype(jnp.bfloat16)
    s_p = jnp.pad(scale.astype(jnp.float32).reshape(1, N), ((0, 0), (0, Np - N)))
    c_p = jnp.pad(bias.astype(jnp.float32).reshape(1, N), ((0, 0), (0, Np - N)))
    return {"b": b_p, "ss": s_p, "cc": c_p, "n": N, "tk": tk, "tn": tn}


def prepare_half_params(p):
    """One-time: fold BN, reorder weights for NHWC im2col, pad + cast to bf16."""
    conv = []
    for idx, (ks, stride, pad, pool) in enumerate(CONV_SPECS, start=1):
        w = p[f"conv{idx}_w"]                            # (OC, IC, KH, KW)
        OC, IC, KH, KW = w.shape
        b_mat = jnp.transpose(w, (2, 3, 1, 0)).reshape(KH * KW * IC, OC)
        s, c = _bn_fold(p[f"bn{idx}_gamma"], p[f"bn{idx}_beta"],
                        p[f"bn{idx}_mean"], p[f"bn{idx}_var"])
        lp = _prep_matmul_operands(b_mat, s, c)
        lp.update({"kh": KH, "kw": KW, "stride": stride, "pad": pad, "pool": pool})
        conv.append(lp)

    fc = []
    for idx in (6, 7, 8):
        w, b = p[f"fc{idx}_w"], p[f"fc{idx}_b"]          # (fout, fin), (fout,)
        if idx == 6:
            # fc6 consumes the flattened conv5 output; PyTorch flatten order is
            # (C=128, H=6, W=6) but we flatten NHWC, so permute the weight once.
            fout = w.shape[0]
            w = w.reshape(fout, 128, 6, 6).transpose(0, 2, 3, 1).reshape(fout, -1)
        if idx != 8:
            s, c = _bn_fold(p[f"bn{idx}_gamma"], p[f"bn{idx}_beta"],
                            p[f"bn{idx}_mean"], p[f"bn{idx}_var"])
            scale, bias = s, b * s + c                   # fold Linear bias into BN
        else:
            scale, bias = jnp.ones_like(b), b
        fc.append(_prep_matmul_operands(w.T, scale, bias))
    return {"conv": conv, "fc": fc}


# ----------------------------------------------------------------------------
# alexnet_half forward (layer gating identical to the PyTorch module).
# ----------------------------------------------------------------------------
def alexnet_half_forward(pp, x_nchw, layer=8):
    if layer <= 0:
        return x_nchw
    x = jnp.transpose(x_nchw.astype(jnp.float32), (0, 2, 3, 1))   # NHWC
    for idx, lp in enumerate(pp["conv"], start=1):
        x = conv_bn_relu(x, lp)
        if lp["pool"] is not None:
            x = adaptive_max_pool_nhwc(x, lp["pool"])
        if layer == idx:
            return jnp.transpose(x, (0, 3, 1, 2))        # NCHW for parity
    x = x.reshape(x.shape[0], -1)                        # NHWC flatten (fc6 w permuted)
    for idx in (6, 7):
        x = fused_matmul(x, pp["fc"][idx - 6], relu=True)
        if layer == idx:
            return x
    x = fused_matmul(x, pp["fc"][2], relu=False)         # fc8
    return l2_normalize(x)


def my_alexnet_cmc_forward(pp_l, pp_ab, x, layer=8):
    # torch.split(x, [1, 2], dim=1): L channel -> l_to_ab, ab channels -> ab_to_l.
    l = x[:, :1]
    ab = x[:, 1:3]
    feat_l = alexnet_half_forward(pp_l, l, layer)
    feat_ab = alexnet_half_forward(pp_ab, ab, layer)
    return feat_l, feat_ab


if __name__ == "__main__":
    key = jax.random.PRNGKey(0)
    kx, kl, kab = jax.random.split(key, 3)
    # Small NCHW input consistent with the module: 3 channels (1 L + 2 ab).
    x = jax.random.normal(kx, (2, 3, 64, 64), jnp.float32)

    params_l = init_half_params(kl, in_channel=1)        # l_to_ab
    params_ab = init_half_params(kab, in_channel=2)      # ab_to_l
    pp_l = prepare_half_params(params_l)                 # one-time fold/pad/cast
    pp_ab = prepare_half_params(params_ab)

    @functools.partial(jax.jit, static_argnames=("layer",))
    def fwd(x, layer=8):
        return my_alexnet_cmc_forward(pp_l, pp_ab, x, layer=layer)

    feat_l, feat_ab = fwd(x, layer=8)
    jax.block_until_ready((feat_l, feat_ab))

    assert feat_l.shape == (2, 128) and feat_ab.shape == (2, 128)
    assert bool(jnp.all(jnp.isfinite(feat_l))) and bool(jnp.all(jnp.isfinite(feat_ab)))
    # L2-normalized rows should have unit norm.
    assert bool(jnp.allclose(jnp.linalg.norm(feat_l, axis=1), 1.0, atol=1e-3))
    assert bool(jnp.allclose(jnp.linalg.norm(feat_ab, axis=1), 1.0, atol=1e-3))
    print("KERNEL_OK")
</pallas_src>

<mosaic_0001>
module attributes {stable_mosaic.version = 11 : i64} {
  func.func @_mm_epilogue_kernel(%arg0: i32, %arg1: i32, %arg2: i32, %arg3: memref<256x128xbf16, #tpu.memory_space<vmem>>, %arg4: memref<128x128xbf16, #tpu.memory_space<vmem>>, %arg5: memref<1x128xf32, #tpu.memory_space<vmem>>, %arg6: memref<1x128xf32, #tpu.memory_space<vmem>>, %arg7: memref<256x128xf32, #tpu.memory_space<vmem>>, %arg8: memref<256x128xf32, #tpu.memory_space<vmem>>) attributes {dimension_semantics = [#tpu.dimension_semantics<parallel>, #tpu.dimension_semantics<parallel>, #tpu.dimension_semantics<arbitrary>], iteration_bounds = array<i64: 2, 1, 1>, scalar_prefetch = 0 : i64, scratch_operands = 1 : i64, tpu.core_type = #tpu.core_type<tc>, window_params = [{transform_indices = @transform_0, window_bounds = array<i64: 256, 128>}, {transform_indices = @transform_1, window_bounds = array<i64: 128, 128>}, {transform_indices = @transform_2, window_bounds = array<i64: 1, 128>}, {transform_indices = @transform_3, window_bounds = array<i64: 1, 128>}, {transform_indices = @transform_4, window_bounds = array<i64: 256, 128>}]} {
    %c0_i32 = arith.constant 0 : i32
    %0 = arith.cmpi eq, %arg2, %c0_i32 : i32
    %1 = arith.extui %0 : i1 to i32
    %c0_i32_0 = arith.constant 0 : i32
    %2 = arith.cmpi ne, %1, %c0_i32_0 : i32
    scf.if %2 {
      %cst_10 = arith.constant 0.000000e+00 : f32
      %12 = vector.broadcast %cst_10 : f32 to vector<256x128xf32>
      %c0_11 = arith.constant 0 : index
      %c0_12 = arith.constant 0 : index
      %13 = vector.load %arg8[%c0_11, %c0_12] : memref<256x128xf32, #tpu.memory_space<vmem>>, vector<256x128xf32>
      tpu.vector_store %arg8[%c0_11, %c0_12], %12 {strides = array<i32>} : memref<256x128xf32, #tpu.memory_space<vmem>>, vector<256x128xf32>,
    } else {
    }
    %c0 = arith.constant 0 : index
    %c0_1 = arith.constant 0 : index
    %3 = vector.load %arg8[%c0, %c0_1] : memref<256x128xf32, #tpu.memory_space<vmem>>, vector<256x128xf32>
    %c0_2 = arith.constant 0 : index
    %c0_3 = arith.constant 0 : index
    %4 = vector.load %arg3[%c0_2, %c0_3] : memref<256x128xbf16, #tpu.memory_space<vmem>>, vector<256x128xbf16>
    %c0_4 = arith.constant 0 : index
    %c0_5 = arith.constant 0 : index
    %5 = vector.load %arg4[%c0_4, %c0_5] : memref<128x128xbf16, #tpu.memory_space<vmem>>, vector<128x128xbf16>
    %cst = arith.constant dense<0.000000e+00> : vector<256x128xf32>
    %6 = tpu.matmul %4, %5, %cst {dimension_numbers = #tpu.dot_dimension_numbers<[1], [0], [0], [1], [0, 0, 1, 1], [], []>} : vector<256x128xbf16>, vector<128x128xbf16>, vector<256x128xf32> -> vector<256x128xf32>
    %7 = arith.addf %3, %6 : vector<256x128xf32>
    %c0_6 = arith.constant 0 : index
    %c0_7 = arith.constant 0 : index
    %8 = vector.load %arg8[%c0_6, %c0_7] : memref<256x128xf32, #tpu.memory_space<vmem>>, vector<256x128xf32>
    tpu.vector_store %arg8[%c0_6, %c0_7], %7 {strides = array<i32>} : memref<256x128xf32, #tpu.memory_space<vmem>>, vector<256x128xf32>,
    %c0_i32_8 = arith.constant 0 : i32
    %9 = arith.cmpi eq, %arg2, %c0_i32_8 : i32
    %10 = arith.extui %9 : i1 to i32
    %c0_i32_9 = arith.constant 0 : i32
    %11 = arith.cmpi ne, %10, %c0_i32_9 : i32
    scf.if %11 {
      %c0_10 = arith.constant 0 : index
      %c0_11 = arith.constant 0 : index
      %12 = vector.load %arg8[%c0_10, %c0_11] : memref<256x128xf32, #tpu.memory_space<vmem>>, vector<256x128xf32>
      %c0_12 = arith.constant 0 : index
      %c0_13 = arith.constant 0 : index
      %13 = vector.load %arg5[%c0_12, %c0_13] : memref<1x128xf32, #tpu.memory_space<vmem>>, vector<1x128xf32>
      %14 = vector.broadcast %13 : vector<1x128xf32> to vector<256x128xf32>
      %15 = arith.mulf %12, %14 : vector<256x128xf32>
      %c0_14 = arith.constant 0 : index
      %c0_15 = arith.constant 0 : index
      %16 = vector.load %arg6[%c0_14, %c0_15] : memref<1x128xf32, #tpu.memory_space<vmem>>, vector<1x128xf32>
      %17 = vector.broadcast %16 : vector<1x128xf32> to vector<256x128xf32>
      %18 = arith.addf %15, %17 : vector<256x128xf32>
      %cst_16 = arith.constant 0.000000e+00 : f32
      %19 = vector.broadcast %cst_16 : f32 to vector<256x128xf32>
      %20 = arith.maximumf %18, %19 : vector<256x128xf32>
      %c0_17 = arith.constant 0 : index
      %c0_18 = arith.constant 0 : index
      %21 = vector.load %arg7[%c0_17, %c0_18] : memref<256x128xf32, #tpu.memory_space<vmem>>, vector<256x128xf32>
      tpu.vector_store %arg7[%c0_17, %c0_18], %20 {strides = array<i32>} : memref<256x128xf32, #tpu.memory_space<vmem>>, vector<256x128xf32>,
    } else {
    }
    return
  }
  func.func @transform_0(%arg0: i32, %arg1: i32, %arg2: i32) -> (i32, i32) {
    %c0_i32 = arith.constant 0 : i32
    return %arg0, %arg2 : i32, i32
  }
  func.func @transform_1(%arg0: i32, %arg1: i32, %arg2: i32) -> (i32, i32) {
    %c0_i32 = arith.constant 0 : i32
    return %arg2, %arg1 : i32, i32
  }
  func.func @transform_2(%arg0: i32, %arg1: i32, %arg2: i32) -> (i32, i32) {
    %c0_i32 = arith.constant 0 : i32
    %c0_i32_0 = arith.constant 0 : i32
    return %c0_i32, %arg1 : i32, i32
  }
  func.func @transform_3(%arg0: i32, %arg1: i32, %arg2: i32) -> (i32, i32) {
    %c0_i32 = arith.constant 0 : i32
    %c0_i32_0 = arith.constant 0 : i32
    return %c0_i32, %arg1 : i32, i32
  }
  func.func @transform_4(%arg0: i32, %arg1: i32, %arg2: i32) -> (i32, i32) {
    %c0_i32 = arith.constant 0 : i32
    return %arg0, %arg1 : i32, i32
  }
}

module attributes {stable_mosaic.version = 11 : i64} {
  func.func @_mm_epilogue_kernel(%arg0: i32, %arg1: i32, %arg2: i32, %arg3: memref<256x256xbf16, #tpu.memory_space<vmem>>, %arg4: memref<256x128xbf16, #tpu.memory_space<vmem>>, %arg5: memref<1x128xf32, #tpu.memory_space<vmem>>, %arg6: memref<1x128xf32, #tpu.memory_space<vmem>>, %arg7: memref<256x128xf32, #tpu.memory_space<vmem>>, %arg8: memref<256x128xf32, #tpu.memory_space<vmem>>) attributes {dimension_semantics = [#tpu.dimension_semantics<parallel>, #tpu.dimension_semantics<parallel>, #tpu.dimension_semantics<arbitrary>], iteration_bounds = array<i64: 6, 1, 5>, scalar_prefetch = 0 : i64, scratch_operands = 1 : i64, tpu.core_type = #tpu.core_type<tc>, window_params = [{transform_indices = @transform_0, window_bounds = array<i64: 256, 256>}, {transform_indices = @transform_1, window_bounds = array<i64: 256, 128>}, {transform_indices = @transform_2, window_bounds = array<i64: 1, 128>}, {transform_indices = @transform_3, window_bounds = array<i64: 1, 128>}, {transform_indices = @transform_4, window_bounds = array<i64: 256, 128>}]} {
    %c0_i32 = arith.constant 0 : i32
    %0 = arith.cmpi eq, %arg2, %c0_i32 : i32
    %1 = arith.extui %0 : i1 to i32
    %c0_i32_0 = arith.constant 0 : i32
    %2 = arith.cmpi ne, %1, %c0_i32_0 : i32
    scf.if %2 {
      %cst_9 = arith.constant 0.000000e+00 : f32
      %12 = vector.broadcast %cst_9 : f32 to vector<256x128xf32>
      %c0_10 = arith.constant 0 : index
      %c0_11 = arith.constant 0 : index
      %13 = vector.load %arg8[%c0_10, %c0_11] : memref<256x128xf32, #tpu.memory_space<vmem>>, vector<256x128xf32>
      tpu.vector_store %arg8[%c0_10, %c0_11], %12 {strides = array<i32>} : memref<256x128xf32, #tpu.memory_space<vmem>>, vector<256x128xf32>,
    } else {
    }
    %c0 = arith.constant 0 : index
    %c0_1 = arith.constant 0 : index
    %3 = vector.load %arg8[%c0, %c0_1] : memref<256x128xf32, #tpu.memory_space<vmem>>, vector<256x128xf32>
    %c0_2 = arith.constant 0 : index
    %c0_3 = arith.constant 0 : index
    %4 = vector.load %arg3[%c0_2, %c0_3] : memref<256x256xbf16, #tpu.memory_space<vmem>>, vector<256x256xbf16>
    %c0_4 = arith.constant 0 : index
    %c0_5 = arith.constant 0 : index
    %5 = vector.load %arg4[%c0_4, %c0_5] : memref<256x128xbf16, #tpu.memory_space<vmem>>, vector<256x128xbf16>
    %cst = arith.constant dense<0.000000e+00> : vector<256x128xf32>
    %6 = tpu.matmul %4, %5, %cst {dimension_numbers = #tpu.dot_dimension_numbers<[1], [0], [0], [1], [0, 0, 1, 1], [], []>} : vector<256x256xbf16>, vector<256x128xbf16>, vector<256x128xf32> -> vector<256x128xf32>
    %7 = arith.addf %3, %6 : vector<256x128xf32>
    %c0_6 = arith.constant 0 : index
    %c0_7 = arith.constant 0 : index
    %8 = vector.load %arg8[%c0_6, %c0_7] : memref<256x128xf32, #tpu.memory_space<vmem>>, vector<256x128xf32>
    tpu.vector_store %arg8[%c0_6, %c0_7], %7 {strides = array<i32>} : memref<256x128xf32, #tpu.memory_space<vmem>>, vector<256x128xf32>,
    %c4_i32 = arith.constant 4 : i32
    %9 = arith.cmpi eq, %arg2, %c4_i32 : i32
    %10 = arith.extui %9 : i1 to i32
    %c0_i32_8 = arith.constant 0 : i32
    %11 = arith.cmpi ne, %10, %c0_i32_8 : i32
    scf.if %11 {
      %c0_9 = arith.constant 0 : index
      %c0_10 = arith.constant 0 : index
      %12 = vector.load %arg8[%c0_9, %c0_10] : memref<256x128xf32, #tpu.memory_space<vmem>>, vector<256x128xf32>
      %c0_11 = arith.constant 0 : index
      %c0_12 = arith.constant 0 : index
      %13 = vector.load %arg5[%c0_11, %c0_12] : memref<1x128xf32, #tpu.memory_space<vmem>>, vector<1x128xf32>
      %14 = vector.broadcast %13 : vector<1x128xf32> to vector<256x128xf32>
      %15 = arith.mulf %12, %14 : vector<256x128xf32>
      %c0_13 = arith.constant 0 : index
      %c0_14 = arith.constant 0 : index
      %16 = vector.load %arg6[%c0_13, %c0_14] : memref<1x128xf32, #tpu.memory_space<vmem>>, vector<1x128xf32>
      %17 = vector.broadcast %16 : vector<1x128xf32> to vector<256x128xf32>
      %18 = arith.addf %15, %17 : vector<256x128xf32>
      %cst_15 = arith.constant 0.000000e+00 : f32
      %19 = vector.broadcast %cst_15 : f32 to vector<256x128xf32>
      %20 = arith.maximumf %18, %19 : vector<256x128xf32>
      %c0_16 = arith.constant 0 : index
      %c0_17 = arith.constant 0 : index
      %21 = vector.load %arg7[%c0_16, %c0_17] : memref<256x128xf32, #tpu.memory_space<vmem>>, vector<256x128xf32>
      tpu.vector_store %arg7[%c0_16, %c0_17], %20 {strides = array<i32>} : memref<256x128xf32, #tpu.memory_space<vmem>>, vector<256x128xf32>,
    } else {
    }
    return
  }
  func.func @transform_0(%arg0: i32, %arg1: i32, %arg2: i32) -> (i32, i32) {
    %c0_i32 = arith.constant 0 : i32
    return %arg0, %arg2 : i32, i32
  }
  func.func @transform_1(%arg0: i32, %arg1: i32, %arg2: i32) -> (i32, i32) {
    %c0_i32 = arith.constant 0 : i32
    return %arg2, %arg1 : i32, i32
  }
  func.func @transform_2(%arg0: i32, %arg1: i32, %arg2: i32) -> (i32, i32) {
    %c0_i32 = arith.constant 0 : i32
    %c0_i32_0 = arith.constant 0 : i32
    return %c0_i32, %arg1 : i32, i32
  }
  func.func @transform_3(%arg0: i32, %arg1: i32, %arg2: i32) -> (i32, i32) {
    %c0_i32 = arith.constant 0 : i32
    %c0_i32_0 = arith.constant 0 : i32
    return %c0_i32, %arg1 : i32, i32
  }
  func.func @transform_4(%arg0: i32, %arg1: i32, %arg2: i32) -> (i32, i32) {
    %c0_i32 = arith.constant 0 : i32
    return %arg0, %arg1 : i32, i32
  }
}

module attributes {stable_mosaic.version = 11 : i64} {
  func.func @_mm_epilogue_kernel(%arg0: i32, %arg1: i32, %arg2: i32, %arg3: memref<256x256xbf16, #tpu.memory_space<vmem>>, %arg4: memref<256x128xbf16, #tpu.memory_space<vmem>>, %arg5: memref<1x128xf32, #tpu.memory_space<vmem>>, %arg6: memref<1x128xf32, #tpu.memory_space<vmem>>, %arg7: memref<256x128xf32, #tpu.memory_space<vmem>>, %arg8: memref<256x128xf32, #tpu.memory_space<vmem>>) attributes {dimension_semantics = [#tpu.dimension_semantics<parallel>, #tpu.dimension_semantics<parallel>, #tpu.dimension_semantics<arbitrary>], iteration_bounds = array<i64: 2, 1, 1>, scalar_prefetch = 0 : i64, scratch_operands = 1 : i64, tpu.core_type = #tpu.core_type<tc>, window_params = [{transform_indices = @transform_0, window_bounds = array<i64: 256, 256>}, {transform_indices = @transform_1, window_bounds = array<i64: 256, 128>}, {transform_indices = @transform_2, window_bounds = array<i64: 1, 128>}, {transform_indices = @transform_3, window_bounds = array<i64: 1, 128>}, {transform_indices = @transform_4, window_bounds = array<i64: 256, 128>}]} {
    %c0_i32 = arith.constant 0 : i32
    %0 = arith.cmpi eq, %arg2, %c0_i32 : i32
    %1 = arith.extui %0 : i1 to i32
    %c0_i32_0 = arith.constant 0 : i32
    %2 = arith.cmpi ne, %1, %c0_i32_0 : i32
    scf.if %2 {
      %cst_10 = arith.constant 0.000000e+00 : f32
      %12 = vector.broadcast %cst_10 : f32 to vector<256x128xf32>
      %c0_11 = arith.constant 0 : index
      %c0_12 = arith.constant 0 : index
      %13 = vector.load %arg8[%c0_11, %c0_12] : memref<256x128xf32, #tpu.memory_space<vmem>>, vector<256x128xf32>
      tpu.vector_store %arg8[%c0_11, %c0_12], %12 {strides = array<i32>} : memref<256x128xf32, #tpu.memory_space<vmem>>, vector<256x128xf32>,
    } else {
    }
    %c0 = arith.constant 0 : index
    %c0_1 = arith.constant 0 : index
    %3 = vector.load %arg8[%c0, %c0_1] : memref<256x128xf32, #tpu.memory_space<vmem>>, vector<256x128xf32>
    %c0_2 = arith.constant 0 : index
    %c0_3 = arith.constant 0 : index
    %4 = vector.load %arg3[%c0_2, %c0_3] : memref<256x256xbf16, #tpu.memory_space<vmem>>, vector<256x256xbf16>
    %c0_4 = arith.constant 0 : index
    %c0_5 = arith.constant 0 : index
    %5 = vector.load %arg4[%c0_4, %c0_5] : memref<256x128xbf16, #tpu.memory_space<vmem>>, vector<256x128xbf16>
    %cst = arith.constant dense<0.000000e+00> : vector<256x128xf32>
    %6 = tpu.matmul %4, %5, %cst {dimension_numbers = #tpu.dot_dimension_numbers<[1], [0], [0], [1], [0, 0, 1, 1], [], []>} : vector<256x256xbf16>, vector<256x128xbf16>, vector<256x128xf32> -> vector<256x128xf32>
    %7 = arith.addf %3, %6 : vector<256x128xf32>
    %c0_6 = arith.constant 0 : index
    %c0_7 = arith.constant 0 : index
    %8 = vector.load %arg8[%c0_6, %c0_7] : memref<256x128xf32, #tpu.memory_space<vmem>>, vector<256x128xf32>
    tpu.vector_store %arg8[%c0_6, %c0_7], %7 {strides = array<i32>} : memref<256x128xf32, #tpu.memory_space<vmem>>, vector<256x128xf32>,
    %c0_i32_8 = arith.constant 0 : i32
    %9 = arith.cmpi eq, %arg2, %c0_i32_8 : i32
    %10 = arith.extui %9 : i1 to i32
    %c0_i32_9 = arith.constant 0 : i32
    %11 = arith.cmpi ne, %10, %c0_i32_9 : i32
    scf.if %11 {
      %c0_10 = arith.constant 0 : index
      %c0_11 = arith.constant 0 : index
      %12 = vector.load %arg8[%c0_10, %c0_11] : memref<256x128xf32, #tpu.memory_space<vmem>>, vector<256x128xf32>
      %c0_12 = arith.constant 0 : index
      %c0_13 = arith.constant 0 : index
      %13 = vector.load %arg5[%c0_12, %c0_13] : memref<1x128xf32, #tpu.memory_space<vmem>>, vector<1x128xf32>
      %14 = vector.broadcast %13 : vector<1x128xf32> to vector<256x128xf32>
      %15 = arith.mulf %12, %14 : vector<256x128xf32>
      %c0_14 = arith.constant 0 : index
      %c0_15 = arith.constant 0 : index
      %16 = vector.load %arg6[%c0_14, %c0_15] : memref<1x128xf32, #tpu.memory_space<vmem>>, vector<1x128xf32>
      %17 = vector.broadcast %16 : vector<1x128xf32> to vector<256x128xf32>
      %18 = arith.addf %15, %17 : vector<256x128xf32>
      %cst_16 = arith.constant 0.000000e+00 : f32
      %19 = vector.broadcast %cst_16 : f32 to vector<256x128xf32>
      %20 = arith.maximumf %18, %19 : vector<256x128xf32>
      %c0_17 = arith.constant 0 : index
      %c0_18 = arith.constant 0 : index
      %21 = vector.load %arg7[%c0_17, %c0_18] : memref<256x128xf32, #tpu.memory_space<vmem>>, vector<256x128xf32>
      tpu.vector_store %arg7[%c0_17, %c0_18], %20 {strides = array<i32>} : memref<256x128xf32, #tpu.memory_space<vmem>>, vector<256x128xf32>,
    } else {
    }
    return
  }
  func.func @transform_0(%arg0: i32, %arg1: i32, %arg2: i32) -> (i32, i32) {
    %c0_i32 = arith.constant 0 : i32
    return %arg0, %arg2 : i32, i32
  }
  func.func @transform_1(%arg0: i32, %arg1: i32, %arg2: i32) -> (i32, i32) {
    %c0_i32 = arith.constant 0 : i32
    return %arg2, %arg1 : i32, i32
  }
  func.func @transform_2(%arg0: i32, %arg1: i32, %arg2: i32) -> (i32, i32) {
    %c0_i32 = arith.constant 0 : i32
    %c0_i32_0 = arith.constant 0 : i32
    return %c0_i32, %arg1 : i32, i32
  }
  func.func @transform_3(%arg0: i32, %arg1: i32, %arg2: i32) -> (i32, i32) {
    %c0_i32 = arith.constant 0 : i32
    %c0_i32_0 = arith.constant 0 : i32
    return %c0_i32, %arg1 : i32, i32
  }
  func.func @transform_4(%arg0: i32, %arg1: i32, %arg2: i32) -> (i32, i32) {
    %c0_i32 = arith.constant 0 : i32
    return %arg0, %arg1 : i32, i32
  }
}

module attributes {stable_mosaic.version = 11 : i64} {
  func.func @_mm_epilogue_kernel(%arg0: i32, %arg1: i32, %arg2: i32, %arg3: memref<128x384xbf16, #tpu.memory_space<vmem>>, %arg4: memref<384x256xbf16, #tpu.memory_space<vmem>>, %arg5: memref<1x256xf32, #tpu.memory_space<vmem>>, %arg6: memref<1x256xf32, #tpu.memory_space<vmem>>, %arg7: memref<128x256xf32, #tpu.memory_space<vmem>>, %arg8: memref<128x256xf32, #tpu.memory_space<vmem>>) attributes {dimension_semantics = [#tpu.dimension_semantics<parallel>, #tpu.dimension_semantics<parallel>, #tpu.dimension_semantics<arbitrary>], iteration_bounds = array<i64: 3, 1, 3>, scalar_prefetch = 0 : i64, scratch_operands = 1 : i64, tpu.core_type = #tpu.core_type<tc>, window_params = [{transform_indices = @transform_0, window_bounds = array<i64: 128, 384>}, {transform_indices = @transform_1, window_bounds = array<i64: 384, 256>}, {transform_indices = @transform_2, window_bounds = array<i64: 1, 256>}, {transform_indices = @transform_3, window_bounds = array<i64: 1, 256>}, {transform_indices = @transform_4, window_bounds = array<i64: 128, 256>}]} {
    %c0_i32 = arith.constant 0 : i32
    %0 = arith.cmpi eq, %arg2, %c0_i32 : i32
    %1 = arith.extui %0 : i1 to i32
    %c0_i32_0 = arith.constant 0 : i32
    %2 = arith.cmpi ne, %1, %c0_i32_0 : i32
    scf.if %2 {
      %cst_9 = arith.constant 0.000000e+00 : f32
      %12 = vector.broadcast %cst_9 : f32 to vector<128x256xf32>
      %c0_10 = arith.constant 0 : index
      %c0_11 = arith.constant 0 : index
      %13 = vector.load %arg8[%c0_10, %c0_11] : memref<128x256xf32, #tpu.memory_space<vmem>>, vector<128x256xf32>
      tpu.vector_store %arg8[%c0_10, %c0_11], %12 {strides = array<i32>} : memref<128x256xf32, #tpu.memory_space<vmem>>, vector<128x256xf32>,
    } else {
    }
    %c0 = arith.constant 0 : index
    %c0_1 = arith.constant 0 : index
    %3 = vector.load %arg8[%c0, %c0_1] : memref<128x256xf32, #tpu.memory_space<vmem>>, vector<128x256xf32>
    %c0_2 = arith.constant 0 : index
    %c0_3 = arith.constant 0 : index
    %4 = vector.load %arg3[%c0_2, %c0_3] : memref<128x384xbf16, #tpu.memory_space<vmem>>, vector<128x384xbf16>
    %c0_4 = arith.constant 0 : index
    %c0_5 = arith.constant 0 : index
    %5 = vector.load %arg4[%c0_4, %c0_5] : memref<384x256xbf16, #tpu.memory_space<vmem>>, vector<384x256xbf16>
    %cst = arith.constant dense<0.000000e+00> : vector<128x256xf32>
    %6 = tpu.matmul %4, %5, %cst {dimension_numbers = #tpu.dot_dimension_numbers<[1], [0], [0], [1], [0, 0, 1, 1], [], []>} : vector<128x384xbf16>, vector<384x256xbf16>, vector<128x256xf32> -> vector<128x256xf32>
    %7 = arith.addf %3, %6 : vector<128x256xf32>
    %c0_6 = arith.constant 0 : index
    %c0_7 = arith.constant 0 : index
    %8 = vector.load %arg8[%c0_6, %c0_7] : memref<128x256xf32, #tpu.memory_space<vmem>>, vector<128x256xf32>
    tpu.vector_store %arg8[%c0_6, %c0_7], %7 {strides = array<i32>} : memref<128x256xf32, #tpu.memory_space<vmem>>, vector<128x256xf32>,
    %c2_i32 = arith.constant 2 : i32
    %9 = arith.cmpi eq, %arg2, %c2_i32 : i32
    %10 = arith.extui %9 : i1 to i32
    %c0_i32_8 = arith.constant 0 : i32
    %11 = arith.cmpi ne, %10, %c0_i32_8 : i32
    scf.if %11 {
      %c0_9 = arith.constant 0 : index
      %c0_10 = arith.constant 0 : index
      %12 = vector.load %arg8[%c0_9, %c0_10] : memref<128x256xf32, #tpu.memory_space<vmem>>, vector<128x256xf32>
      %c0_11 = arith.constant 0 : index
      %c0_12 = arith.constant 0 : index
      %13 = vector.load %arg5[%c0_11, %c0_12] : memref<1x256xf32, #tpu.memory_space<vmem>>, vector<1x256xf32>
      %14 = vector.broadcast %13 : vector<1x256xf32> to vector<128x256xf32>
      %15 = arith.mulf %12, %14 : vector<128x256xf32>
      %c0_13 = arith.constant 0 : index
      %c0_14 = arith.constant 0 : index
      %16 = vector.load %arg6[%c0_13, %c0_14] : memref<1x256xf32, #tpu.memory_space<vmem>>, vector<1x256xf32>
      %17 = vector.broadcast %16 : vector<1x256xf32> to vector<128x256xf32>
      %18 = arith.addf %15, %17 : vector<128x256xf32>
      %cst_15 = arith.constant 0.000000e+00 : f32
      %19 = vector.broadcast %cst_15 : f32 to vector<128x256xf32>
      %20 = arith.maximumf %18, %19 : vector<128x256xf32>
      %c0_16 = arith.constant 0 : index
      %c0_17 = arith.constant 0 : index
      %21 = vector.load %arg7[%c0_16, %c0_17] : memref<128x256xf32, #tpu.memory_space<vmem>>, vector<128x256xf32>
      tpu.vector_store %arg7[%c0_16, %c0_17], %20 {strides = array<i32>} : memref<128x256xf32, #tpu.memory_space<vmem>>, vector<128x256xf32>,
    } else {
    }
    return
  }
  func.func @transform_0(%arg0: i32, %arg1: i32, %arg2: i32) -> (i32, i32) {
    %c0_i32 = arith.constant 0 : i32
    return %arg0, %arg2 : i32, i32
  }
  func.func @transform_1(%arg0: i32, %arg1: i32, %arg2: i32) -> (i32, i32) {
    %c0_i32 = arith.constant 0 : i32
    return %arg2, %arg1 : i32, i32
  }
  func.func @transform_2(%arg0: i32, %arg1: i32, %arg2: i32) -> (i32, i32) {
    %c0_i32 = arith.constant 0 : i32
    %c0_i32_0 = arith.constant 0 : i32
    return %c0_i32, %arg1 : i32, i32
  }
  func.func @transform_3(%arg0: i32, %arg1: i32, %arg2: i32) -> (i32, i32) {
    %c0_i32 = arith.constant 0 : i32
    %c0_i32_0 = arith.constant 0 : i32
    return %c0_i32, %arg1 : i32, i32
  }
  func.func @transform_4(%arg0: i32, %arg1: i32, %arg2: i32) -> (i32, i32) {
    %c0_i32 = arith.constant 0 : i32
    return %arg0, %arg1 : i32, i32
  }
}

module attributes {stable_mosaic.version = 11 : i64} {
  func.func @_mm_epilogue_kernel(%arg0: i32, %arg1: i32, %arg2: i32, %arg3: memref<128x512xbf16, #tpu.memory_space<vmem>>, %arg4: memref<512x256xbf16, #tpu.memory_space<vmem>>, %arg5: memref<1x256xf32, #tpu.memory_space<vmem>>, %arg6: memref<1x256xf32, #tpu.memory_space<vmem>>, %arg7: memref<128x256xf32, #tpu.memory_space<vmem>>, %arg8: memref<128x256xf32, #tpu.memory_space<vmem>>) attributes {dimension_semantics = [#tpu.dimension_semantics<parallel>, #tpu.dimension_semantics<parallel>, #tpu.dimension_semantics<arbitrary>], iteration_bounds = array<i64: 3, 1, 4>, scalar_prefetch = 0 : i64, scratch_operands = 1 : i64, tpu.core_type = #tpu.core_type<tc>, window_params = [{transform_indices = @transform_0, window_bounds = array<i64: 128, 512>}, {transform_indices = @transform_1, window_bounds = array<i64: 512, 256>}, {transform_indices = @transform_2, window_bounds = array<i64: 1, 256>}, {transform_indices = @transform_3, window_bounds = array<i64: 1, 256>}, {transform_indices = @transform_4, window_bounds = array<i64: 128, 256>}]} {
    %c0_i32 = arith.constant 0 : i32
    %0 = arith.cmpi eq, %arg2, %c0_i32 : i32
    %1 = arith.extui %0 : i1 to i32
    %c0_i32_0 = arith.constant 0 : i32
    %2 = arith.cmpi ne, %1, %c0_i32_0 : i32
    scf.if %2 {
      %cst_9 = arith.constant 0.000000e+00 : f32
      %12 = vector.broadcast %cst_9 : f32 to vector<128x256xf32>
      %c0_10 = arith.constant 0 : index
      %c0_11 = arith.constant 0 : index
      %13 = vector.load %arg8[%c0_10, %c0_11] : memref<128x256xf32, #tpu.memory_space<vmem>>, vector<128x256xf32>
      tpu.vector_store %arg8[%c0_10, %c0_11], %12 {strides = array<i32>} : memref<128x256xf32, #tpu.memory_space<vmem>>, vector<128x256xf32>,
    } else {
    }
    %c0 = arith.constant 0 : index
    %c0_1 = arith.constant 0 : index
    %3 = vector.load %arg8[%c0, %c0_1] : memref<128x256xf32, #tpu.memory_space<vmem>>, vector<128x256xf32>
    %c0_2 = arith.constant 0 : index
    %c0_3 = arith.constant 0 : index
    %4 = vector.load %arg3[%c0_2, %c0_3] : memref<128x512xbf16, #tpu.memory_space<vmem>>, vector<128x512xbf16>
    %c0_4 = arith.constant 0 : index
    %c0_5 = arith.constant 0 : index
    %5 = vector.load %arg4[%c0_4, %c0_5] : memref<512x256xbf16, #tpu.memory_space<vmem>>, vector<512x256xbf16>
    %cst = arith.constant dense<0.000000e+00> : vector<128x256xf32>
    %6 = tpu.matmul %4, %5, %cst {dimension_numbers = #tpu.dot_dimension_numbers<[1], [0], [0], [1], [0, 0, 1, 1], [], []>} : vector<128x512xbf16>, vector<512x256xbf16>, vector<128x256xf32> -> vector<128x256xf32>
    %7 = arith.addf %3, %6 : vector<128x256xf32>
    %c0_6 = arith.constant 0 : index
    %c0_7 = arith.constant 0 : index
    %8 = vector.load %arg8[%c0_6, %c0_7] : memref<128x256xf32, #tpu.memory_space<vmem>>, vector<128x256xf32>
    tpu.vector_store %arg8[%c0_6, %c0_7], %7 {strides = array<i32>} : memref<128x256xf32, #tpu.memory_space<vmem>>, vector<128x256xf32>,
    %c3_i32 = arith.constant 3 : i32
    %9 = arith.cmpi eq, %arg2, %c3_i32 : i32
    %10 = arith.extui %9 : i1 to i32
    %c0_i32_8 = arith.constant 0 : i32
    %11 = arith.cmpi ne, %10, %c0_i32_8 : i32
    scf.if %11 {
      %c0_9 = arith.constant 0 : index
      %c0_10 = arith.constant 0 : index
      %12 = vector.load %arg8[%c0_9, %c0_10] : memref<128x256xf32, #tpu.memory_space<vmem>>, vector<128x256xf32>
      %c0_11 = arith.constant 0 : index
      %c0_12 = arith.constant 0 : index
      %13 = vector.load %arg5[%c0_11, %c0_12] : memref<1x256xf32, #tpu.memory_space<vmem>>, vector<1x256xf32>
      %14 = vector.broadcast %13 : vector<1x256xf32> to vector<128x256xf32>
      %15 = arith.mulf %12, %14 : vector<128x256xf32>
      %c0_13 = arith.constant 0 : index
      %c0_14 = arith.constant 0 : index
      %16 = vector.load %arg6[%c0_13, %c0_14] : memref<1x256xf32, #tpu.memory_space<vmem>>, vector<1x256xf32>
      %17 = vector.broadcast %16 : vector<1x256xf32> to vector<128x256xf32>
      %18 = arith.addf %15, %17 : vector<128x256xf32>
      %cst_15 = arith.constant 0.000000e+00 : f32
      %19 = vector.broadcast %cst_15 : f32 to vector<128x256xf32>
      %20 = arith.maximumf %18, %19 : vector<128x256xf32>
      %c0_16 = arith.constant 0 : index
      %c0_17 = arith.constant 0 : index
      %21 = vector.load %arg7[%c0_16, %c0_17] : memref<128x256xf32, #tpu.memory_space<vmem>>, vector<128x256xf32>
      tpu.vector_store %arg7[%c0_16, %c0_17], %20 {strides = array<i32>} : memref<128x256xf32, #tpu.memory_space<vmem>>, vector<128x256xf32>,
    } else {
    }
    return
  }
  func.func @transform_0(%arg0: i32, %arg1: i32, %arg2: i32) -> (i32, i32) {
    %c0_i32 = arith.constant 0 : i32
    return %arg0, %arg2 : i32, i32
  }
  func.func @transform_1(%arg0: i32, %arg1: i32, %arg2: i32) -> (i32, i32) {
    %c0_i32 = arith.constant 0 : i32
    return %arg2, %arg1 : i32, i32
  }
  func.func @transform_2(%arg0: i32, %arg1: i32, %arg2: i32) -> (i32, i32) {
    %c0_i32 = arith.constant 0 : i32
    %c0_i32_0 = arith.constant 0 : i32
    return %c0_i32, %arg1 : i32, i32
  }
  func.func @transform_3(%arg0: i32, %arg1: i32, %arg2: i32) -> (i32, i32) {
    %c0_i32 = arith.constant 0 : i32
    %c0_i32_0 = arith.constant 0 : i32
    return %c0_i32, %arg1 : i32, i32
  }
  func.func @transform_4(%arg0: i32, %arg1: i32, %arg2: i32) -> (i32, i32) {
    %c0_i32 = arith.constant 0 : i32
    return %arg0, %arg1 : i32, i32
  }
}

module attributes {stable_mosaic.version = 11 : i64} {
  func.func @_mm_epilogue_kernel(%arg0: i32, %arg1: i32, %arg2: i32, %arg3: memref<128x512xbf16, #tpu.memory_space<vmem>>, %arg4: memref<512x128xbf16, #tpu.memory_space<vmem>>, %arg5: memref<1x128xf32, #tpu.memory_space<vmem>>, %arg6: memref<1x128xf32, #tpu.memory_space<vmem>>, %arg7: memref<128x128xf32, #tpu.memory_space<vmem>>, %arg8: memref<128x128xf32, #tpu.memory_space<vmem>>) attributes {dimension_semantics = [#tpu.dimension_semantics<parallel>, #tpu.dimension_semantics<parallel>, #tpu.dimension_semantics<arbitrary>], iteration_bounds = array<i64: 3, 1, 4>, scalar_prefetch = 0 : i64, scratch_operands = 1 : i64, tpu.core_type = #tpu.core_type<tc>, window_params = [{transform_indices = @transform_0, window_bounds = array<i64: 128, 512>}, {transform_indices = @transform_1, window_bounds = array<i64: 512, 128>}, {transform_indices = @transform_2, window_bounds = array<i64: 1, 128>}, {transform_indices = @transform_3, window_bounds = array<i64: 1, 128>}, {transform_indices = @transform_4, window_bounds = array<i64: 128, 128>}]} {
    %c0_i32 = arith.constant 0 : i32
    %0 = arith.cmpi eq, %arg2, %c0_i32 : i32
    %1 = arith.extui %0 : i1 to i32
    %c0_i32_0 = arith.constant 0 : i32
    %2 = arith.cmpi ne, %1, %c0_i32_0 : i32
    scf.if %2 {
      %cst_9 = arith.constant 0.000000e+00 : f32
      %12 = vector.broadcast %cst_9 : f32 to vector<128x128xf32>
      %c0_10 = arith.constant 0 : index
      %c0_11 = arith.constant 0 : index
      %13 = vector.load %arg8[%c0_10, %c0_11] : memref<128x128xf32, #tpu.memory_space<vmem>>, vector<128x128xf32>
      tpu.vector_store %arg8[%c0_10, %c0_11], %12 {strides = array<i32>} : memref<128x128xf32, #tpu.memory_space<vmem>>, vector<128x128xf32>,
    } else {
    }
    %c0 = arith.constant 0 : index
    %c0_1 = arith.constant 0 : index
    %3 = vector.load %arg8[%c0, %c0_1] : memref<128x128xf32, #tpu.memory_space<vmem>>, vector<128x128xf32>
    %c0_2 = arith.constant 0 : index
    %c0_3 = arith.constant 0 : index
    %4 = vector.load %arg3[%c0_2, %c0_3] : memref<128x512xbf16, #tpu.memory_space<vmem>>, vector<128x512xbf16>
    %c0_4 = arith.constant 0 : index
    %c0_5 = arith.constant 0 : index
    %5 = vector.load %arg4[%c0_4, %c0_5] : memref<512x128xbf16, #tpu.memory_space<vmem>>, vector<512x128xbf16>
    %cst = arith.constant dense<0.000000e+00> : vector<128x128xf32>
    %6 = tpu.matmul %4, %5, %cst {dimension_numbers = #tpu.dot_dimension_numbers<[1], [0], [0], [1], [0, 0, 1, 1], [], []>} : vector<128x512xbf16>, vector<512x128xbf16>, vector<128x128xf32> -> vector<128x128xf32>
    %7 = arith.addf %3, %6 : vector<128x128xf32>
    %c0_6 = arith.constant 0 : index
    %c0_7 = arith.constant 0 : index
    %8 = vector.load %arg8[%c0_6, %c0_7] : memref<128x128xf32, #tpu.memory_space<vmem>>, vector<128x128xf32>
    tpu.vector_store %arg8[%c0_6, %c0_7], %7 {strides = array<i32>} : memref<128x128xf32, #tpu.memory_space<vmem>>, vector<128x128xf32>,
    %c3_i32 = arith.constant 3 : i32
    %9 = arith.cmpi eq, %arg2, %c3_i32 : i32
    %10 = arith.extui %9 : i1 to i32
    %c0_i32_8 = arith.constant 0 : i32
    %11 = arith.cmpi ne, %10, %c0_i32_8 : i32
    scf.if %11 {
      %c0_9 = arith.constant 0 : index
      %c0_10 = arith.constant 0 : index
      %12 = vector.load %arg8[%c0_9, %c0_10] : memref<128x128xf32, #tpu.memory_space<vmem>>, vector<128x128xf32>
      %c0_11 = arith.constant 0 : index
      %c0_12 = arith.constant 0 : index
      %13 = vector.load %arg5[%c0_11, %c0_12] : memref<1x128xf32, #tpu.memory_space<vmem>>, vector<1x128xf32>
      %14 = vector.broadcast %13 : vector<1x128xf32> to vector<128x128xf32>
      %15 = arith.mulf %12, %14 : vector<128x128xf32>
      %c0_13 = arith.constant 0 : index
      %c0_14 = arith.constant 0 : index
      %16 = vector.load %arg6[%c0_13, %c0_14] : memref<1x128xf32, #tpu.memory_space<vmem>>, vector<1x128xf32>
      %17 = vector.broadcast %16 : vector<1x128xf32> to vector<128x128xf32>
      %18 = arith.addf %15, %17 : vector<128x128xf32>
      %cst_15 = arith.constant 0.000000e+00 : f32
      %19 = vector.broadcast %cst_15 : f32 to vector<128x128xf32>
      %20 = arith.maximumf %18, %19 : vector<128x128xf32>
      %c0_16 = arith.constant 0 : index
      %c0_17 = arith.constant 0 : index
      %21 = vector.load %arg7[%c0_16, %c0_17] : memref<128x128xf32, #tpu.memory_space<vmem>>, vector<128x128xf32>
      tpu.vector_store %arg7[%c0_16, %c0_17], %20 {strides = array<i32>} : memref<128x128xf32, #tpu.memory_space<vmem>>, vector<128x128xf32>,
    } else {
    }
    return
  }
  func.func @transform_0(%arg0: i32, %arg1: i32, %arg2: i32) -> (i32, i32) {
    %c0_i32 = arith.constant 0 : i32
    return %arg0, %arg2 : i32, i32
  }
  func.func @transform_1(%arg0: i32, %arg1: i32, %arg2: i32) -> (i32, i32) {
    %c0_i32 = arith.constant 0 : i32
    return %arg2, %arg1 : i32, i32
  }
  func.func @transform_2(%arg0: i32, %arg1: i32, %arg2: i32) -> (i32, i32) {
    %c0_i32 = arith.constant 0 : i32
    %c0_i32_0 = arith.constant 0 : i32
    return %c0_i32, %arg1 : i32, i32
  }
  func.func @transform_3(%arg0: i32, %arg1: i32, %arg2: i32) -> (i32, i32) {
    %c0_i32 = arith.constant 0 : i32
    %c0_i32_0 = arith.constant 0 : i32
    return %c0_i32, %arg1 : i32, i32
  }
  func.func @transform_4(%arg0: i32, %arg1: i32, %arg2: i32) -> (i32, i32) {
    %c0_i32 = arith.constant 0 : i32
    return %arg0, %arg1 : i32, i32
  }
}

module attributes {stable_mosaic.version = 11 : i64} {
  func.func @_mm_epilogue_kernel(%arg0: i32, %arg1: i32, %arg2: i32, %arg3: memref<16x512xbf16, #tpu.memory_space<vmem>>, %arg4: memref<512x512xbf16, #tpu.memory_space<vmem>>, %arg5: memref<1x512xf32, #tpu.memory_space<vmem>>, %arg6: memref<1x512xf32, #tpu.memory_space<vmem>>, %arg7: memref<16x512xf32, #tpu.memory_space<vmem>>, %arg8: memref<16x512xf32, #tpu.memory_space<vmem>>) attributes {dimension_semantics = [#tpu.dimension_semantics<parallel>, #tpu.dimension_semantics<parallel>, #tpu.dimension_semantics<arbitrary>], iteration_bounds = array<i64: 1, 4, 9>, scalar_prefetch = 0 : i64, scratch_operands = 1 : i64, tpu.core_type = #tpu.core_type<tc>, window_params = [{transform_indices = @transform_0, window_bounds = array<i64: 16, 512>}, {transform_indices = @transform_1, window_bounds = array<i64: 512, 512>}, {transform_indices = @transform_2, window_bounds = array<i64: 1, 512>}, {transform_indices = @transform_3, window_bounds = array<i64: 1, 512>}, {transform_indices = @transform_4, window_bounds = array<i64: 16, 512>}]} {
    %c0_i32 = arith.constant 0 : i32
    %0 = arith.cmpi eq, %arg2, %c0_i32 : i32
    %1 = arith.extui %0 : i1 to i32
    %c0_i32_0 = arith.constant 0 : i32
    %2 = arith.cmpi ne, %1, %c0_i32_0 : i32
    scf.if %2 {
      %cst_9 = arith.constant 0.000000e+00 : f32
      %12 = vector.broadcast %cst_9 : f32 to vector<16x512xf32>
      %c0_10 = arith.constant 0 : index
      %c0_11 = arith.constant 0 : index
      %13 = vector.load %arg8[%c0_10, %c0_11] : memref<16x512xf32, #tpu.memory_space<vmem>>, vector<16x512xf32>
      tpu.vector_store %arg8[%c0_10, %c0_11], %12 {strides = array<i32>} : memref<16x512xf32, #tpu.memory_space<vmem>>, vector<16x512xf32>,
    } else {
    }
    %c0 = arith.constant 0 : index
    %c0_1 = arith.constant 0 : index
    %3 = vector.load %arg8[%c0, %c0_1] : memref<16x512xf32, #tpu.memory_space<vmem>>, vector<16x512xf32>
    %c0_2 = arith.constant 0 : index
    %c0_3 = arith.constant 0 : index
    %4 = vector.load %arg3[%c0_2, %c0_3] : memref<16x512xbf16, #tpu.memory_space<vmem>>, vector<16x512xbf16>
    %c0_4 = arith.constant 0 : index
    %c0_5 = arith.constant 0 : index
    %5 = vector.load %arg4[%c0_4, %c0_5] : memref<512x512xbf16, #tpu.memory_space<vmem>>, vector<512x512xbf16>
    %cst = arith.constant dense<0.000000e+00> : vector<16x512xf32>
    %6 = tpu.matmul %4, %5, %cst {dimension_numbers = #tpu.dot_dimension_numbers<[1], [0], [0], [1], [0, 0, 1, 1], [], []>} : vector<16x512xbf16>, vector<512x512xbf16>, vector<16x512xf32> -> vector<16x512xf32>
    %7 = arith.addf %3, %6 : vector<16x512xf32>
    %c0_6 = arith.constant 0 : index
    %c0_7 = arith.constant 0 : index
    %8 = vector.load %arg8[%c0_6, %c0_7] : memref<16x512xf32, #tpu.memory_space<vmem>>, vector<16x512xf32>
    tpu.vector_store %arg8[%c0_6, %c0_7], %7 {strides = array<i32>} : memref<16x512xf32, #tpu.memory_space<vmem>>, vector<16x512xf32>,
    %c8_i32 = arith.constant 8 : i32
    %9 = arith.cmpi eq, %arg2, %c8_i32 : i32
    %10 = arith.extui %9 : i1 to i32
    %c0_i32_8 = arith.constant 0 : i32
    %11 = arith.cmpi ne, %10, %c0_i32_8 : i32
    scf.if %11 {
      %c0_9 = arith.constant 0 : index
      %c0_10 = arith.constant 0 : index
      %12 = vector.load %arg8[%c0_9, %c0_10] : memref<16x512xf32, #tpu.memory_space<vmem>>, vector<16x512xf32>
      %c0_11 = arith.constant 0 : index
      %c0_12 = arith.constant 0 : index
      %13 = vector.load %arg5[%c0_11, %c0_12] : memref<1x512xf32, #tpu.memory_space<vmem>>, vector<1x512xf32>
      %14 = vector.broadcast %13 : vector<1x512xf32> to vector<16x512xf32>
      %15 = arith.mulf %12, %14 : vector<16x512xf32>
      %c0_13 = arith.constant 0 : index
      %c0_14 = arith.constant 0 : index
      %16 = vector.load %arg6[%c0_13, %c0_14] : memref<1x512xf32, #tpu.memory_space<vmem>>, vector<1x512xf32>
      %17 = vector.broadcast %16 : vector<1x512xf32> to vector<16x512xf32>
      %18 = arith.addf %15, %17 : vector<16x512xf32>
      %cst_15 = arith.constant 0.000000e+00 : f32
      %19 = vector.broadcast %cst_15 : f32 to vector<16x512xf32>
      %20 = arith.maximumf %18, %19 : vector<16x512xf32>
      %c0_16 = arith.constant 0 : index
      %c0_17 = arith.constant 0 : index
      %21 = vector.load %arg7[%c0_16, %c0_17] : memref<16x512xf32, #tpu.memory_space<vmem>>, vector<16x512xf32>
      tpu.vector_store %arg7[%c0_16, %c0_17], %20 {strides = array<i32>} : memref<16x512xf32, #tpu.memory_space<vmem>>, vector<16x512xf32>,
    } else {
    }
    return
  }
  func.func @transform_0(%arg0: i32, %arg1: i32, %arg2: i32) -> (i32, i32) {
    %c0_i32 = arith.constant 0 : i32
    return %arg0, %arg2 : i32, i32
  }
  func.func @transform_1(%arg0: i32, %arg1: i32, %arg2: i32) -> (i32, i32) {
    %c0_i32 = arith.constant 0 : i32
    return %arg2, %arg1 : i32, i32
  }
  func.func @transform_2(%arg0: i32, %arg1: i32, %arg2: i32) -> (i32, i32) {
    %c0_i32 = arith.constant 0 : i32
    %c0_i32_0 = arith.constant 0 : i32
    return %c0_i32, %arg1 : i32, i32
  }
  func.func @transform_3(%arg0: i32, %arg1: i32, %arg2: i32) -> (i32, i32) {
    %c0_i32 = arith.constant 0 : i32
    %c0_i32_0 = arith.constant 0 : i32
    return %c0_i32, %arg1 : i32, i32
  }
  func.func @transform_4(%arg0: i32, %arg1: i32, %arg2: i32) -> (i32, i32) {
    %c0_i32 = arith.constant 0 : i32
    return %arg0, %arg1 : i32, i32
  }
}

module attributes {stable_mosaic.version = 11 : i64} {
  func.func @_mm_epilogue_kernel(%arg0: i32, %arg1: i32, %arg2: i32, %arg3: memref<16x512xbf16, #tpu.memory_space<vmem>>, %arg4: memref<512x512xbf16, #tpu.memory_space<vmem>>, %arg5: memref<1x512xf32, #tpu.memory_space<vmem>>, %arg6: memref<1x512xf32, #tpu.memory_space<vmem>>, %arg7: memref<16x512xf32, #tpu.memory_space<vmem>>, %arg8: memref<16x512xf32, #tpu.memory_space<vmem>>) attributes {dimension_semantics = [#tpu.dimension_semantics<parallel>, #tpu.dimension_semantics<parallel>, #tpu.dimension_semantics<arbitrary>], iteration_bounds = array<i64: 1, 4, 4>, scalar_prefetch = 0 : i64, scratch_operands = 1 : i64, tpu.core_type = #tpu.core_type<tc>, window_params = [{transform_indices = @transform_0, window_bounds = array<i64: 16, 512>}, {transform_indices = @transform_1, window_bounds = array<i64: 512, 512>}, {transform_indices = @transform_2, window_bounds = array<i64: 1, 512>}, {transform_indices = @transform_3, window_bounds = array<i64: 1, 512>}, {transform_indices = @transform_4, window_bounds = array<i64: 16, 512>}]} {
    %c0_i32 = arith.constant 0 : i32
    %0 = arith.cmpi eq, %arg2, %c0_i32 : i32
    %1 = arith.extui %0 : i1 to i32
    %c0_i32_0 = arith.constant 0 : i32
    %2 = arith.cmpi ne, %1, %c0_i32_0 : i32
    scf.if %2 {
      %cst_9 = arith.constant 0.000000e+00 : f32
      %12 = vector.broadcast %cst_9 : f32 to vector<16x512xf32>
      %c0_10 = arith.constant 0 : index
      %c0_11 = arith.constant 0 : index
      %13 = vector.load %arg8[%c0_10, %c0_11] : memref<16x512xf32, #tpu.memory_space<vmem>>, vector<16x512xf32>
      tpu.vector_store %arg8[%c0_10, %c0_11], %12 {strides = array<i32>} : memref<16x512xf32, #tpu.memory_space<vmem>>, vector<16x512xf32>,
    } else {
    }
    %c0 = arith.constant 0 : index
    %c0_1 = arith.constant 0 : index
    %3 = vector.load %arg8[%c0, %c0_1] : memref<16x512xf32, #tpu.memory_space<vmem>>, vector<16x512xf32>
    %c0_2 = arith.constant 0 : index
    %c0_3 = arith.constant 0 : index
    %4 = vector.load %arg3[%c0_2, %c0_3] : memref<16x512xbf16, #tpu.memory_space<vmem>>, vector<16x512xbf16>
    %c0_4 = arith.constant 0 : index
    %c0_5 = arith.constant 0 : index
    %5 = vector.load %arg4[%c0_4, %c0_5] : memref<512x512xbf16, #tpu.memory_space<vmem>>, vector<512x512xbf16>
    %cst = arith.constant dense<0.000000e+00> : vector<16x512xf32>
    %6 = tpu.matmul %4, %5, %cst {dimension_numbers = #tpu.dot_dimension_numbers<[1], [0], [0], [1], [0, 0, 1, 1], [], []>} : vector<16x512xbf16>, vector<512x512xbf16>, vector<16x512xf32> -> vector<16x512xf32>
    %7 = arith.addf %3, %6 : vector<16x512xf32>
    %c0_6 = arith.constant 0 : index
    %c0_7 = arith.constant 0 : index
    %8 = vector.load %arg8[%c0_6, %c0_7] : memref<16x512xf32, #tpu.memory_space<vmem>>, vector<16x512xf32>
    tpu.vector_store %arg8[%c0_6, %c0_7], %7 {strides = array<i32>} : memref<16x512xf32, #tpu.memory_space<vmem>>, vector<16x512xf32>,
    %c3_i32 = arith.constant 3 : i32
    %9 = arith.cmpi eq, %arg2, %c3_i32 : i32
    %10 = arith.extui %9 : i1 to i32
    %c0_i32_8 = arith.constant 0 : i32
    %11 = arith.cmpi ne, %10, %c0_i32_8 : i32
    scf.if %11 {
      %c0_9 = arith.constant 0 : index
      %c0_10 = arith.constant 0 : index
      %12 = vector.load %arg8[%c0_9, %c0_10] : memref<16x512xf32, #tpu.memory_space<vmem>>, vector<16x512xf32>
      %c0_11 = arith.constant 0 : index
      %c0_12 = arith.constant 0 : index
      %13 = vector.load %arg5[%c0_11, %c0_12] : memref<1x512xf32, #tpu.memory_space<vmem>>, vector<1x512xf32>
      %14 = vector.broadcast %13 : vector<1x512xf32> to vector<16x512xf32>
      %15 = arith.mulf %12, %14 : vector<16x512xf32>
      %c0_13 = arith.constant 0 : index
      %c0_14 = arith.constant 0 : index
      %16 = vector.load %arg6[%c0_13, %c0_14] : memref<1x512xf32, #tpu.memory_space<vmem>>, vector<1x512xf32>
      %17 = vector.broadcast %16 : vector<1x512xf32> to vector<16x512xf32>
      %18 = arith.addf %15, %17 : vector<16x512xf32>
      %cst_15 = arith.constant 0.000000e+00 : f32
      %19 = vector.broadcast %cst_15 : f32 to vector<16x512xf32>
      %20 = arith.maximumf %18, %19 : vector<16x512xf32>
      %c0_16 = arith.constant 0 : index
      %c0_17 = arith.constant 0 : index
      %21 = vector.load %arg7[%c0_16, %c0_17] : memref<16x512xf32, #tpu.memory_space<vmem>>, vector<16x512xf32>
      tpu.vector_store %arg7[%c0_16, %c0_17], %20 {strides = array<i32>} : memref<16x512xf32, #tpu.memory_space<vmem>>, vector<16x512xf32>,
    } else {
    }
    return
  }
  func.func @transform_0(%arg0: i32, %arg1: i32, %arg2: i32) -> (i32, i32) {
    %c0_i32 = arith.constant 0 : i32
    return %arg0, %arg2 : i32, i32
  }
  func.func @transform_1(%arg0: i32, %arg1: i32, %arg2: i32) -> (i32, i32) {
    %c0_i32 = arith.constant 0 : i32
    return %arg2, %arg1 : i32, i32
  }
  func.func @transform_2(%arg0: i32, %arg1: i32, %arg2: i32) -> (i32, i32) {
    %c0_i32 = arith.constant 0 : i32
    %c0_i32_0 = arith.constant 0 : i32
    return %c0_i32, %arg1 : i32, i32
  }
  func.func @transform_3(%arg0: i32, %arg1: i32, %arg2: i32) -> (i32, i32) {
    %c0_i32 = arith.constant 0 : i32
    %c0_i32_0 = arith.constant 0 : i32
    return %c0_i32, %arg1 : i32, i32
  }
  func.func @transform_4(%arg0: i32, %arg1: i32, %arg2: i32) -> (i32, i32) {
    %c0_i32 = arith.constant 0 : i32
    return %arg0, %arg1 : i32, i32
  }
}

module attributes {stable_mosaic.version = 11 : i64} {
  func.func @_mm_epilogue_kernel(%arg0: i32, %arg1: i32, %arg2: i32, %arg3: memref<16x512xbf16, #tpu.memory_space<vmem>>, %arg4: memref<512x128xbf16, #tpu.memory_space<vmem>>, %arg5: memref<1x128xf32, #tpu.memory_space<vmem>>, %arg6: memref<1x128xf32, #tpu.memory_space<vmem>>, %arg7: memref<16x128xf32, #tpu.memory_space<vmem>>, %arg8: memref<16x128xf32, #tpu.memory_space<vmem>>) attributes {dimension_semantics = [#tpu.dimension_semantics<parallel>, #tpu.dimension_semantics<parallel>, #tpu.dimension_semantics<arbitrary>], iteration_bounds = array<i64: 1, 1, 4>, scalar_prefetch = 0 : i64, scratch_operands = 1 : i64, tpu.core_type = #tpu.core_type<tc>, window_params = [{transform_indices = @transform_0, window_bounds = array<i64: 16, 512>}, {transform_indices = @transform_1, window_bounds = array<i64: 512, 128>}, {transform_indices = @transform_2, window_bounds = array<i64: 1, 128>}, {transform_indices = @transform_3, window_bounds = array<i64: 1, 128>}, {transform_indices = @transform_4, window_bounds = array<i64: 16, 128>}]} {
    %c0_i32 = arith.constant 0 : i32
    %0 = arith.cmpi eq, %arg2, %c0_i32 : i32
    %1 = arith.extui %0 : i1 to i32
    %c0_i32_0 = arith.constant 0 : i32
    %2 = arith.cmpi ne, %1, %c0_i32_0 : i32
    scf.if %2 {
      %cst_9 = arith.constant 0.000000e+00 : f32
      %12 = vector.broadcast %cst_9 : f32 to vector<16x128xf32>
      %c0_10 = arith.constant 0 : index
      %c0_11 = arith.constant 0 : index
      %13 = vector.load %arg8[%c0_10, %c0_11] : memref<16x128xf32, #tpu.memory_space<vmem>>, vector<16x128xf32>
      tpu.vector_store %arg8[%c0_10, %c0_11], %12 {strides = array<i32>} : memref<16x128xf32, #tpu.memory_space<vmem>>, vector<16x128xf32>,
    } else {
    }
    %c0 = arith.constant 0 : index
    %c0_1 = arith.constant 0 : index
    %3 = vector.load %arg8[%c0, %c0_1] : memref<16x128xf32, #tpu.memory_space<vmem>>, vector<16x128xf32>
    %c0_2 = arith.constant 0 : index
    %c0_3 = arith.constant 0 : index
    %4 = vector.load %arg3[%c0_2, %c0_3] : memref<16x512xbf16, #tpu.memory_space<vmem>>, vector<16x512xbf16>
    %c0_4 = arith.constant 0 : index
    %c0_5 = arith.constant 0 : index
    %5 = vector.load %arg4[%c0_4, %c0_5] : memref<512x128xbf16, #tpu.memory_space<vmem>>, vector<512x128xbf16>
    %cst = arith.constant dense<0.000000e+00> : vector<16x128xf32>
    %6 = tpu.matmul %4, %5, %cst {dimension_numbers = #tpu.dot_dimension_numbers<[1], [0], [0], [1], [0, 0, 1, 1], [], []>} : vector<16x512xbf16>, vector<512x128xbf16>, vector<16x128xf32> -> vector<16x128xf32>
    %7 = arith.addf %3, %6 : vector<16x128xf32>
    %c0_6 = arith.constant 0 : index
    %c0_7 = arith.constant 0 : index
    %8 = vector.load %arg8[%c0_6, %c0_7] : memref<16x128xf32, #tpu.memory_space<vmem>>, vector<16x128xf32>
    tpu.vector_store %arg8[%c0_6, %c0_7], %7 {strides = array<i32>} : memref<16x128xf32, #tpu.memory_space<vmem>>, vector<16x128xf32>,
    %c3_i32 = arith.constant 3 : i32
    %9 = arith.cmpi eq, %arg2, %c3_i32 : i32
    %10 = arith.extui %9 : i1 to i32
    %c0_i32_8 = arith.constant 0 : i32
    %11 = arith.cmpi ne, %10, %c0_i32_8 : i32
    scf.if %11 {
      %c0_9 = arith.constant 0 : index
      %c0_10 = arith.constant 0 : index
      %12 = vector.load %arg8[%c0_9, %c0_10] : memref<16x128xf32, #tpu.memory_space<vmem>>, vector<16x128xf32>
      %c0_11 = arith.constant 0 : index
      %c0_12 = arith.constant 0 : index
      %13 = vector.load %arg5[%c0_11, %c0_12] : memref<1x128xf32, #tpu.memory_space<vmem>>, vector<1x128xf32>
      %14 = vector.broadcast %13 : vector<1x128xf32> to vector<16x128xf32>
      %15 = arith.mulf %12, %14 : vector<16x128xf32>
      %c0_13 = arith.constant 0 : index
      %c0_14 = arith.constant 0 : index
      %16 = vector.load %arg6[%c0_13, %c0_14] : memref<1x128xf32, #tpu.memory_space<vmem>>, vector<1x128xf32>
      %17 = vector.broadcast %16 : vector<1x128xf32> to vector<16x128xf32>
      %18 = arith.addf %15, %17 : vector<16x128xf32>
      %c0_15 = arith.constant 0 : index
      %c0_16 = arith.constant 0 : index
      %19 = vector.load %arg7[%c0_15, %c0_16] : memref<16x128xf32, #tpu.memory_space<vmem>>, vector<16x128xf32>
      tpu.vector_store %arg7[%c0_15, %c0_16], %18 {strides = array<i32>} : memref<16x128xf32, #tpu.memory_space<vmem>>, vector<16x128xf32>,
    } else {
    }
    return
  }
  func.func @transform_0(%arg0: i32, %arg1: i32, %arg2: i32) -> (i32, i32) {
    %c0_i32 = arith.constant 0 : i32
    return %arg0, %arg2 : i32, i32
  }
  func.func @transform_1(%arg0: i32, %arg1: i32, %arg2: i32) -> (i32, i32) {
    %c0_i32 = arith.constant 0 : i32
    return %arg2, %arg1 : i32, i32
  }
  func.func @transform_2(%arg0: i32, %arg1: i32, %arg2: i32) -> (i32, i32) {
    %c0_i32 = arith.constant 0 : i32
    %c0_i32_0 = arith.constant 0 : i32
    return %c0_i32, %arg1 : i32, i32
  }
  func.func @transform_3(%arg0: i32, %arg1: i32, %arg2: i32) -> (i32, i32) {
    %c0_i32 = arith.constant 0 : i32
    %c0_i32_0 = arith.constant 0 : i32
    return %c0_i32, %arg1 : i32, i32
  }
  func.func @transform_4(%arg0: i32, %arg1: i32, %arg2: i32) -> (i32, i32) {
    %c0_i32 = arith.constant 0 : i32
    return %arg0, %arg1 : i32, i32
  }
}

module attributes {stable_mosaic.version = 11 : i64} {
  func.func @_l2norm_kernel(%arg0: memref<2x128xf32, #tpu.memory_space<vmem>>, %arg1: memref<2x128xf32, #tpu.memory_space<vmem>>) attributes {dimension_semantics = [], scalar_prefetch = 0 : i64, scratch_operands = 0 : i64, tpu.core_type = #tpu.core_type<tc>} {
    %c0 = arith.constant 0 : index
    %c0_0 = arith.constant 0 : index
    %0 = vector.load %arg0[%c0, %c0_0] : memref<2x128xf32, #tpu.memory_space<vmem>>, vector<2x128xf32>
    %1 = arith.mulf %0, %0 : vector<2x128xf32>
    %cst = arith.constant dense<0.000000e+00> : vector<2xf32>
    %2 = vector.multi_reduction <add>, %1, %cst [1] : vector<2x128xf32> to vector<2xf32>
    %3 = vector.shape_cast %2 : vector<2xf32> to vector<2x1xf32>
    %4 = math.rsqrt %3 : vector<2x1xf32>
    %5 = vector.broadcast %4 : vector<2x1xf32> to vector<2x128xf32>
    %6 = arith.mulf %0, %5 : vector<2x128xf32>
    %c0_1 = arith.constant 0 : index
    %c0_2 = arith.constant 0 : index
    %7 = vector.load %arg1[%c0_1, %c0_2] : memref<2x128xf32, #tpu.memory_space<vmem>>, vector<2x128xf32>
    tpu.vector_store %arg1[%c0_1, %c0_2], %6 {strides = array<i32>} : memref<2x128xf32, #tpu.memory_space<vmem>>, vector<2x128xf32>,
    return
  }
}

</mosaic_0001>

<bundles_post_ra>
// kernel: fwd.18
= control target key start
LH: loop header
LB: loop body
LE: loop exit
PB: predicated region body
PF: predicated region fallthrough
CT: control target
= control target key end

     0   :  { %s1311_s15 = smov 0   ;;  %s1313_s16 = smov 0   ;;  %s1498_s0 = inlined_call_operand.vmem [shape: bf16[512,128], index: 0, kind: input, shape index: {}]   ;;  %s1499_s1 = inlined_call_operand.vmem [shape: bf16[128,128], index: 1, kind: input, shape index: {}]   ;;  %s1500_s2 = inlined_call_operand.vmem [shape: f32[1,128], index: 2, kind: input, shape index: {}]   ;;  %s1501_s3 = inlined_call_operand.vmem [shape: f32[1,128], index: 3, kind: input, shape index: {}]   ;;  %s1502_s4 = inlined_call_operand.vmem [shape: f32[512,128], index: 4, kind: output, shape index: {}]  }
   0x1   :  { %s1315_s17 = smov 0  }
   0x2 LB: > { %s33_s18 = sadd.s32 1, %s1280_s16  ;;  %p1093_p0 = scmp.ge.s32.totalorder %s1284_s17, 1  ;;  %s1284_s17 = sphi %s1315_s17, %s14_s17   ;;  %s1280_s16 = sphi %s1313_s16, %s1504_s16   ;;  %s1276_s15 = sphi %s1311_s15, %s1503_s15  }
   0x3   : > { %p35_p1 = scmp.ge.s32.totalorder %s33_s18, 2  ;;  %p221_p2 = scmp.lt.s32.totalorder %s1284_s17, 3 }
   0x5   : > { %s1506_s18 = smov (%p35_p1, %s33_s18), 0  ;;  %p222_p3 = pnand %p1093_p0, %p221_p2 }
   0x6   : > { %v1238_v0 = vld [vmem:[%s1499_s1] sm:$0xff] (!%p222_p3)   ;;  %s1094_s21 = sshll.u32 (!%p222_p3), %s1276_s15, 5  ;;  %v1239_v1 = vld [vmem:[%s1499_s1 + $0x8] sm:$0xff] (!%p222_p3)   ;;  %v1240_v2 = vld [vmem:[%s1499_s1 + $0x10] sm:$0xff] (!%p222_p3)  }
   0x7   : > { %225 = sbr.rel (%p222_p3) target bundleno = 285 (0x11d), region = 36  ;;  %p268_p4 = scmp.lt.s32.totalorder (!%p222_p3), %s1094_s21, 63  ;;  %1150 = vmatprep.subr.bf16.mxu0 (!%p222_p3), %v1238_v0  ;;  %1198 = vmatprep.subr.bf16.mxu1 (!%p222_p3), %v1238_v0  ;;  %v1241_v3 = vld [vmem:[%s1499_s1 + $0x18] sm:$0xff] (!%p222_p3)   ;;  %v1242_v6 = vld [vmem:[%s1499_s1 + $0x20] sm:$0xff] (!%p222_p3)   ;;  %v1243_v7 = vld [vmem:[%s1499_s1 + $0x28] sm:$0xff] (!%p222_p3)  }
   0x8   : > { %1151 = vmatpush3.bf16.msra.mxu0 (!%p222_p3), %v1238_v0  ;;  %1206 = vmatpush3.bf16.msra.mxu1 (!%p222_p3), %v1238_v0  ;;  %v1244_v8 = vld [vmem:[%s1499_s1 + $0x30] sm:$0xff] (!%p222_p3)   ;;  %v1245_v9 = vld [vmem:[%s1499_s1 + $0x38] sm:$0xff] (!%p222_p3)   ;;  %v1380_v24 = vld [vmem:[%s1500_s2] ss:$0 sm:$0xff] (!%p222_p3) }
   0x9   : > { %1152 = vmatprep.subr.bf16.mxu0 (!%p222_p3), %v1239_v1  ;;  %1199 = vmatprep.subr.bf16.mxu1 (!%p222_p3), %v1239_v1  ;;  %v1385_v26 = vld [vmem:[%s1501_s3] ss:$0 sm:$0xff] (!%p222_p3) }
   0xc   : > { %1153 = vmatpush3.bf16.msra.mxu0 (!%p222_p3), %v1239_v1  ;;  %1207 = vmatpush3.bf16.msra.mxu1 (!%p222_p3), %v1239_v1 }
   0xd   : > { %1154 = vmatprep.subr.bf16.mxu0 (!%p222_p3), %v1240_v2  ;;  %1200 = vmatprep.subr.bf16.mxu1 (!%p222_p3), %v1240_v2 }
   0xe   : > { %s1508_s21 = smov (!%p268_p4, %s1094_s21), 63 }
   0xf   : > { %s1095_s26 = sshll.u32 %s1508_s21, 2  ;;  %s1097_s22 = sshll.u32 %s1508_s21, 3 }
  0x10   : > { %s1344_s29 = scalar_lea.vmem %s1498_s0, %s1095_s26  ;;  %1155 = vmatpush3.bf16.msra.mxu0 %v1240_v2  ;;  %1208 = vmatpush3.bf16.msra.mxu1 %v1240_v2  ;;  %s1399_s24 = scalar_lea.vmem %s1502_s4, %s1097_s22 }
  0x11   : > { %v1246_v4 = vld [vmem:[%s1344_s29] sm:$0xff]   ;;  %1156 = vmatprep.subr.bf16.mxu0 %v1241_v3  ;;  %1201 = vmatprep.subr.bf16.mxu1 %v1241_v3  ;;  %v1248_v10 = vld [vmem:[%s1344_s29 + $0x8] sm:$0xff]   ;;  %v1250_v12 = vld [vmem:[%s1344_s29 + $0x10] sm:$0xff]  }
  0x12   : > { %v1247_v5 = vld [vmem:[%s1344_s29 + $0x40] sm:$0xff]   ;;  %1166 = vmatprep.mubr.bf16.mxu0 %v1246_v4  ;;  %v1249_v11 = vld [vmem:[%s1344_s29 + $0x48] sm:$0xff]   ;;  %v1251_v13 = vld [vmem:[%s1344_s29 + $0x50] sm:$0xff]  }
  0x13   : > { %1182 = vmatprep.mubr.bf16.mxu1 %v1247_v5  ;;  %v1252_v14 = vld [vmem:[%s1344_s29 + $0x18] sm:$0xff]   ;;  %v1254_v16 = vld [vmem:[%s1344_s29 + $0x20] sm:$0xff]   ;;  %v1256_v18 = vld [vmem:[%s1344_s29 + $0x28] sm:$0xff]  }
  0x14   : > { %1157 = vmatpush3.bf16.msra.mxu0 %v1241_v3  ;;  %1209 = vmatpush3.bf16.msra.mxu1 %v1241_v3  ;;  %v1253_v15 = vld [vmem:[%s1344_s29 + $0x58] sm:$0xff]   ;;  %v1255_v17 = vld [vmem:[%s1344_s29 + $0x60] sm:$0xff]   ;;  %v1257_v19 = vld [vmem:[%s1344_s29 + $0x68] sm:$0xff]  }
  0x15   : > { %1158 = vmatprep.subr.bf16.mxu0 %v1242_v6  ;;  %1202 = vmatprep.subr.bf16.mxu1 %v1242_v6  ;;  %v1258_v20 = vld [vmem:[%s1344_s29 + $0x30] sm:$0xff]   ;;  %v1260_v22 = vld [vmem:[%s1344_s29 + $0x38] sm:$0xff]  }
  0x16   : > { %v1259_v21 = vld [vmem:[%s1344_s29 + $0x70] sm:$0xff]   ;;  %v1261_v23 = vld [vmem:[%s1344_s29 + $0x78] sm:$0xff]  }
  0x18   : > { %1159 = vmatpush3.bf16.msra.mxu0 %v1242_v6  ;;  %1210 = vmatpush3.bf16.msra.mxu1 %v1242_v6 }
  0x19   : > { %1160 = vmatprep.subr.bf16.mxu0 %v1243_v7  ;;  %1203 = vmatprep.subr.bf16.mxu1 %v1243_v7 }
  0x1c   : > { %1161 = vmatpush3.bf16.msra.mxu0 %v1243_v7  ;;  %1211 = vmatpush3.bf16.msra.mxu1 %v1243_v7 }
  0x1d   : > { %1162 = vmatprep.subr.bf16.mxu0 %v1244_v8  ;;  %1204 = vmatprep.subr.bf16.mxu1 %v1244_v8 }
  0x20   : > { %1163 = vmatpush3.bf16.msra.mxu0 %v1244_v8  ;;  %1212 = vmatpush3.bf16.msra.mxu1 %v1244_v8 }
  0x21   : > { %1164 = vmatprep.subr.bf16.mxu0 %v1245_v9  ;;  %1205 = vmatprep.subr.bf16.mxu1 %v1245_v9 }
  0x24   : > { %1165 = vmatpush3.bf16.msra.mxu0 %v1245_v9  ;;  %1213 = vmatpush3.bf16.msra.mxu1 %v1245_v9 }
  0x27   : > { %1167 = vmatmul.mubr.bf16.vlgmr.msra.gmra.mrb[0].mxu0 %v1248_v10  ;;  %1183 = vmatmul.mubr.bf16.vlgmr.msra.gmra.mrb[0].mxu1 %v1249_v11 }
  0x28   : > { %1170 = vmatprep.mubr.bf16.mxu0 %v1250_v12  ;;  %1186 = vmatprep.mubr.bf16.mxu1 %v1251_v13 }
  0x2f   : > { %1171 = vmatmul.mubr.bf16.gmra.mrb[4].mxu0 %v1252_v14  ;;  %1187 = vmatmul.mubr.bf16.gmra.mrb[4].mxu1 %v1253_v15 }
  0x30   : > { %1174 = vmatprep.mubr.bf16.mxu0 %v1254_v16  ;;  %1190 = vmatprep.mubr.bf16.mxu1 %v1255_v17 }
  0x37   : > { %1175 = vmatmul.mubr.bf16.gmra.mrb[8].mxu0 %v1256_v18  ;;  %1191 = vmatmul.mubr.bf16.gmra.mrb[8].mxu1 %v1257_v19 }
  0x38   : > { %1178 = vmatprep.mubr.bf16.mxu0 %v1258_v20  ;;  %1194 = vmatprep.mubr.bf16.mxu1 %v1259_v21 }
  0x3f   : > { %1179 = vmatmul.mubr.bf16.gmra.mrb[12].mxu0 %v1260_v22  ;;  %1195 = vmatmul.mubr.bf16.gmra.mrb[12].mxu1 %v1261_v23 }
  0xfa   : > { %v1168_v25 = vpop.f32.mrb[0].mxu0  ;;  %v1184_v27 = vpop.f32.mrb[0].mxu1 }
  0xfb   : > { %v830_v28 = vmul.f32 %v1168_v25, %v1380_v24  ;;  %v846_v29 = vmul.f32 %v1184_v27, %v1380_v24  ;;  %v595_v30 = vpop.f32.mrb[1].mxu0  ;;  %v659_v31 = vpop.f32.mrb[1].mxu1 }
  0xfc   : > { %v828_v32 = vmul.f32 %v1380_v24, %v595_v30  ;;  %v844_v33 = vmul.f32 %v1380_v24, %v659_v31  ;;  %v1169_v34 = vpop.f32.mrb[2].mxu0  ;;  %v1185_v35 = vpop.f32.mrb[2].mxu1 }
  0xfd   : > { %v869_v36 = vadd.f32 %v1385_v26, %v830_v28  ;;  %v885_v37 = vadd.f32 %v1385_v26, %v846_v29  ;;  %v831_v38 = vmul.f32 %v1169_v34, %v1380_v24  ;;  %v847_v39 = vmul.f32 %v1185_v35, %v1380_v24  ;;  %v598_v40 = vpop.f32.mrb[3].mxu0  ;;  %v662_v41 = vpop.f32.mrb[3].mxu1 }
  0xfe   : > { %v867_v42 = vadd.f32 %v1385_v26, %v828_v32  ;;  %v883_v43 = vadd.f32 %v1385_v26, %v844_v33  ;;  %v829_v44 = vmul.f32 %v1380_v24, %v598_v40  ;;  %v845_v45 = vmul.f32 %v1380_v24, %v662_v41 }
  0xff   : > { %v901_v46 = vmax.f32 %v869_v36, 0.0  ;;  %v917_v47 = vmax.f32 %v885_v37, 0.0  ;;  %v870_v48 = vadd.f32 %v1385_v26, %v831_v38  ;;  %v886_v49 = vadd.f32 %v1385_v26, %v847_v39 }
 0x100   : > { %v899_v50 = vmax.f32 %v867_v42, 0.0  ;;  %v915_v51 = vmax.f32 %v883_v43, 0.0  ;;  %v868_v52 = vadd.f32 %v1385_v26, %v829_v44  ;;  %v884_v53 = vadd.f32 %v1385_v26, %v845_v45 }
 0x101   : > { %933 = vst [vmem:[%s1399_s24 + $0x10] sm:$0xff] %v901_v46  ;;  %949 = vst [vmem:[%s1399_s24 + $0x90] sm:$0xff] %v917_v47  ;;  %v902_v54 = vmax.f32 %v870_v48, 0.0  ;;  %v918_v55 = vmax.f32 %v886_v49, 0.0 }
 0x102   : > { %931 = vst [vmem:[%s1399_s24] sm:$0xff] %v899_v50  ;;  %947 = vst [vmem:[%s1399_s24 + $0x80] sm:$0xff] %v915_v51  ;;  %v900_v56 = vmax.f32 %v868_v52, 0.0  ;;  %v916_v57 = vmax.f32 %v884_v53, 0.0  ;;  %v1172_v58 = vpop.f32.mrb[4].mxu0  ;;  %v1188_v59 = vpop.f32.mrb[4].mxu1 }
 0x103   : > { %934 = vst [vmem:[%s1399_s24 + $0x18] sm:$0xff] %v902_v54  ;;  %950 = vst [vmem:[%s1399_s24 + $0x98] sm:$0xff] %v918_v55  ;;  %v834_v60 = vmul.f32 %v1172_v58, %v1380_v24  ;;  %v850_v61 = vmul.f32 %v1188_v59, %v1380_v24  ;;  %v611_v62 = vpop.f32.mrb[5].mxu0  ;;  %v675_v63 = vpop.f32.mrb[5].mxu1 }
 0x104   : > { %932 = vst [vmem:[%s1399_s24 + $0x8] sm:$0xff] %v900_v56  ;;  %948 = vst [vmem:[%s1399_s24 + $0x88] sm:$0xff] %v916_v57  ;;  %v832_v0 = vmul.f32 %v1380_v24, %v611_v62  ;;  %v848_v1 = vmul.f32 %v1380_v24, %v675_v63  ;;  %v1173_v2 = vpop.f32.mrb[6].mxu0  ;;  %v1189_v3 = vpop.f32.mrb[6].mxu1 }
 0x105   : > { %v873_v4 = vadd.f32 %v1385_v26, %v834_v60  ;;  %v889_v5 = vadd.f32 %v1385_v26, %v850_v61  ;;  %v835_v6 = vmul.f32 %v1173_v2, %v1380_v24  ;;  %v851_v7 = vmul.f32 %v1189_v3, %v1380_v24  ;;  %v614_v8 = vpop.f32.mrb[7].mxu0  ;;  %v678_v9 = vpop.f32.mrb[7].mxu1 }
 0x106   : > { %v871_v10 = vadd.f32 %v1385_v26, %v832_v0  ;;  %v887_v11 = vadd.f32 %v1385_v26, %v848_v1  ;;  %v833_v12 = vmul.f32 %v1380_v24, %v614_v8  ;;  %v849_v13 = vmul.f32 %v1380_v24, %v678_v9 }
 0x107   : > { %v905_v14 = vmax.f32 %v873_v4, 0.0  ;;  %v921_v15 = vmax.f32 %v889_v5, 0.0  ;;  %v874_v16 = vadd.f32 %v1385_v26, %v835_v6  ;;  %v890_v17 = vadd.f32 %v1385_v26, %v851_v7 }
 0x108   : > { %v903_v18 = vmax.f32 %v871_v10, 0.0  ;;  %v919_v19 = vmax.f32 %v887_v11, 0.0  ;;  %v872_v20 = vadd.f32 %v1385_v26, %v833_v12  ;;  %v888_v21 = vadd.f32 %v1385_v26, %v849_v13 }
 0x109   : > { %937 = vst [vmem:[%s1399_s24 + $0x30] sm:$0xff] %v905_v14  ;;  %953 = vst [vmem:[%s1399_s24 + $0xb0] sm:$0xff] %v921_v15  ;;  %v906_v22 = vmax.f32 %v874_v16, 0.0  ;;  %v922_v23 = vmax.f32 %v890_v17, 0.0 }
 0x10a   : > { %935 = vst [vmem:[%s1399_s24 + $0x20] sm:$0xff] %v903_v18  ;;  %951 = vst [vmem:[%s1399_s24 + $0xa0] sm:$0xff] %v919_v19  ;;  %v904_v25 = vmax.f32 %v872_v20, 0.0  ;;  %v920_v27 = vmax.f32 %v888_v21, 0.0  ;;  %v1176_v28 = vpop.f32.mrb[8].mxu0  ;;  %v1192_v29 = vpop.f32.mrb[8].mxu1 }
 0x10b   : > { %938 = vst [vmem:[%s1399_s24 + $0x38] sm:$0xff] %v906_v22  ;;  %954 = vst [vmem:[%s1399_s24 + $0xb8] sm:$0xff] %v922_v23  ;;  %v838_v30 = vmul.f32 %v1176_v28, %v1380_v24  ;;  %v854_v31 = vmul.f32 %v1192_v29, %v1380_v24  ;;  %v627_v32 = vpop.f32.mrb[9].mxu0  ;;  %v691_v33 = vpop.f32.mrb[9].mxu1 }
 0x10c   : > { %936 = vst [vmem:[%s1399_s24 + $0x28] sm:$0xff] %v904_v25  ;;  %952 = vst [vmem:[%s1399_s24 + $0xa8] sm:$0xff] %v920_v27  ;;  %v836_v34 = vmul.f32 %v1380_v24, %v627_v32  ;;  %v852_v35 = vmul.f32 %v1380_v24, %v691_v33  ;;  %v1177_v36 = vpop.f32.mrb[10].mxu0  ;;  %v1193_v37 = vpop.f32.mrb[10].mxu1 }
 0x10d   : > { %v877_v38 = vadd.f32 %v1385_v26, %v838_v30  ;;  %v893_v39 = vadd.f32 %v1385_v26, %v854_v31  ;;  %v839_v40 = vmul.f32 %v1177_v36, %v1380_v24  ;;  %v855_v41 = vmul.f32 %v1193_v37, %v1380_v24  ;;  %v630_v42 = vpop.f32.mrb[11].mxu0  ;;  %v694_v43 = vpop.f32.mrb[11].mxu1 }
 0x10e   : > { %v875_v44 = vadd.f32 %v1385_v26, %v836_v34  ;;  %v891_v45 = vadd.f32 %v1385_v26, %v852_v35  ;;  %v837_v46 = vmul.f32 %v1380_v24, %v630_v42  ;;  %v853_v47 = vmul.f32 %v1380_v24, %v694_v43 }
 0x10f   : > { %v909_v48 = vmax.f32 %v877_v38, 0.0  ;;  %v925_v49 = vmax.f32 %v893_v39, 0.0  ;;  %v878_v50 = vadd.f32 %v1385_v26, %v839_v40  ;;  %v894_v51 = vadd.f32 %v1385_v26, %v855_v41 }
 0x110   : > { %v907_v52 = vmax.f32 %v875_v44, 0.0  ;;  %v923_v53 = vmax.f32 %v891_v45, 0.0  ;;  %v876_v54 = vadd.f32 %v1385_v26, %v837_v46  ;;  %v892_v55 = vadd.f32 %v1385_v26, %v853_v47 }
 0x111   : > { %941 = vst [vmem:[%s1399_s24 + $0x50] sm:$0xff] %v909_v48  ;;  %957 = vst [vmem:[%s1399_s24 + $0xd0] sm:$0xff] %v925_v49  ;;  %v910_v56 = vmax.f32 %v878_v50, 0.0  ;;  %v926_v57 = vmax.f32 %v894_v51, 0.0 }
 0x112   : > { %939 = vst [vmem:[%s1399_s24 + $0x40] sm:$0xff] %v907_v52  ;;  %955 = vst [vmem:[%s1399_s24 + $0xc0] sm:$0xff] %v923_v53  ;;  %v908_v58 = vmax.f32 %v876_v54, 0.0  ;;  %v924_v59 = vmax.f32 %v892_v55, 0.0  ;;  %v1180_v60 = vpop.f32.mrb[12].mxu0  ;;  %v1196_v61 = vpop.f32.mrb[12].mxu1 }
 0x113   : > { %942 = vst [vmem:[%s1399_s24 + $0x58] sm:$0xff] %v910_v56  ;;  %958 = vst [vmem:[%s1399_s24 + $0xd8] sm:$0xff] %v926_v57  ;;  %v842_v62 = vmul.f32 %v1180_v60, %v1380_v24  ;;  %v858_v63 = vmul.f32 %v1196_v61, %v1380_v24  ;;  %v643_v0 = vpop.f32.mrb[13].mxu0  ;;  %v707_v1 = vpop.f32.mrb[13].mxu1 }
 0x114   : > { %940 = vst [vmem:[%s1399_s24 + $0x48] sm:$0xff] %v908_v58  ;;  %956 = vst [vmem:[%s1399_s24 + $0xc8] sm:$0xff] %v924_v59  ;;  %v840_v2 = vmul.f32 %v1380_v24, %v643_v0  ;;  %v856_v3 = vmul.f32 %v1380_v24, %v707_v1  ;;  %v1181_v4 = vpop.f32.mrb[14].mxu0  ;;  %v1197_v5 = vpop.f32.mrb[14].mxu1 }
 0x115   : > { %v881_v6 = vadd.f32 %v1385_v26, %v842_v62  ;;  %v897_v7 = vadd.f32 %v1385_v26, %v858_v63  ;;  %v843_v8 = vmul.f32 %v1181_v4, %v1380_v24  ;;  %v859_v9 = vmul.f32 %v1197_v5, %v1380_v24  ;;  %v646_v10 = vpop.f32.mrb[15].mxu0  ;;  %v710_v11 = vpop.f32.mrb[15].mxu1 }
 0x116   : > { %v879_v12 = vadd.f32 %v1385_v26, %v840_v2  ;;  %v895_v13 = vadd.f32 %v1385_v26, %v856_v3  ;;  %v841_v14 = vmul.f32 %v1380_v24, %v646_v10  ;;  %v857_v15 = vmul.f32 %v1380_v24, %v710_v11 }
 0x117   : > { %v913_v16 = vmax.f32 %v881_v6, 0.0  ;;  %v929_v17 = vmax.f32 %v897_v7, 0.0  ;;  %v882_v18 = vadd.f32 %v1385_v26, %v843_v8  ;;  %v898_v19 = vadd.f32 %v1385_v26, %v859_v9 }
 0x118   : > { %v911_v20 = vmax.f32 %v879_v12, 0.0  ;;  %v927_v21 = vmax.f32 %v895_v13, 0.0  ;;  %v880_v22 = vadd.f32 %v1385_v26, %v841_v14  ;;  %v896_v23 = vadd.f32 %v1385_v26, %v857_v15 }
 0x119   : > { %945 = vst [vmem:[%s1399_s24 + $0x70] sm:$0xff] %v913_v16  ;;  %961 = vst [vmem:[%s1399_s24 + $0xf0] sm:$0xff] %v929_v17  ;;  %v914_v25 = vmax.f32 %v882_v18, 0.0  ;;  %v930_v24 = vmax.f32 %v898_v19, 0.0 }
 0x11a   : > { %943 = vst [vmem:[%s1399_s24 + $0x60] sm:$0xff] %v911_v20  ;;  %959 = vst [vmem:[%s1399_s24 + $0xe0] sm:$0xff] %v927_v21  ;;  %v912_v27 = vmax.f32 %v880_v22, 0.0  ;;  %v928_v28 = vmax.f32 %v896_v23, 0.0 }
 0x11b   : > { %946 = vst [vmem:[%s1399_s24 + $0x78] sm:$0xff] %v914_v25  ;;  %962 = vst [vmem:[%s1399_s24 + $0xf8] sm:$0xff] %v930_v24 }
 0x11c   : > { %944 = vst [vmem:[%s1399_s24 + $0x68] sm:$0xff] %v912_v27  ;;  %960 = vst [vmem:[%s1399_s24 + $0xe8] sm:$0xff] %v928_v28 }
 0x11d PF: > { %s14_s17 = sadd.s32 1, %s1284_s17   ;;  %s1503_s15 = smov %s1280_s16 }
 0x11e   : > { %p11_p5 = scmp.ge.s32.totalorder %s14_s17, 4   ;;  %s1504_s16 = smov %s1506_s18 }
 0x120   :  { %13 = sbr.rel (!%p11_p5) target bundleno = 2 (0x2), region = 83 }

// kernel: fwd.19
= control target key start
LH: loop header
LB: loop body
LE: loop exit
PB: predicated region body
PF: predicated region fallthrough
CT: control target
= control target key end

     0   :  { %s1777_s15 = smov 0   ;;  %s1779_s16 = smov 0   ;;  %s2099_s0 = inlined_call_operand.vmem [shape: bf16[1536,1280], index: 0, kind: input, shape index: {}]   ;;  %s2100_s1 = inlined_call_operand.vmem [shape: bf16[1280,128], index: 1, kind: input, shape index: {}]   ;;  %s2101_s2 = inlined_call_operand.vmem [shape: f32[1,128], index: 2, kind: input, shape index: {}]   ;;  %s2102_s3 = inlined_call_operand.vmem [shape: f32[1,128], index: 3, kind: input, shape index: {}]   ;;  %s2103_s4 = inlined_call_operand.vmem [shape: f32[1536,128], index: 4, kind: output, shape index: {}]  }
   0x1   :  { %s1781_s17 = smov 0   ;;  %s1783_s18 = smov 0  }
   0x2   :  { %s1785_s19 = smov 0   ;;  %s1787_s20 = smov 0  }
   0x3   :  { %s1789_s21 = smov 0  }
   0x4 LB: > { %s26_s22 = sadd.s32 1, %s1741_s19  ;;  %s33_s23 = sadd.s32 1, %s1745_s20  ;;  %s1749_s21 = sphi %s1789_s21, %s14_s21   ;;  %s1745_s20 = sphi %s1787_s20, %s2109_s20   ;;  %s1741_s19 = sphi %s1785_s19, %s2108_s19   ;;  %s1737_s18 = sphi %s1783_s18, %s2107_s18   ;;  %s1733_s17 = sphi %s1781_s17, %s2106_s17   ;;  %s1729_s16 = sphi %s1779_s16, %s2105_s16   ;;  %s1725_s15 = sphi %s1777_s15, %s2104_s15  }
   0x5   : > { %p27_p0 = scmp.ge.s32.totalorder %s26_s22, 5  ;;  %p49_p1 = scmp.ne.s32.totalorder %s1729_s16, %s1725_s15 }
   0x6   : > { %p50_p2 = scmp.eq.s32.totalorder %s1749_s21, 0  ;;  %s42_s27 = sadd.s32 1, %s1729_s16 }
   0x7   : > { %s2111_s22 = smov (%p27_p0, %s26_s22), 0  ;;  %s2113_s23 = smov (!%p27_p0, %s33_s23), %s1745_s20 }
   0x8   : > { %p51_p3 = por %p50_p2, %p49_p1  ;;  %p35_p4 = scmp.ge.s32.totalorder %s2113_s23, 6 }
   0x9   : > { %s38_s24 = ssub.s32 %s1741_s19, %s2111_s22  ;;  %p1379_p6 = scmp.ge.s32.totalorder %s1749_s21, 30 }
   0xa   : > { %s2115_s23 = smov (%p35_p4, %s2113_s23), 0 }
   0xb   : > { %s37_s25 = ssub.s32 %s1745_s20, %s2115_s23  ;;  %195 = sbr.rel (%p1379_p6) target bundleno = 42 (0x2a), region = 24 }
   0xc   : > { %s39_s26 = sor.u32 %s38_s24, %s37_s25 }
   0xd   : > { %p40_p5 = scmp.eq.s32.totalorder %s39_s26, 0 }
   0xf   : > { %s1828_s28 = scalar_select %p40_p5, %s1729_s16, %s42_s27  }
  0x12   : > { %198 = sbr.rel (!%p51_p3) target bundleno = 42 (0x2a), region = 28  ;;  %s200_s29 = sand.u32 (%p51_p3), 1, %s1729_s16  }
  0x13   : > { %s1382_s30 = sshll.u32 (%p51_p3), %s1741_s19, 1  ;;  %s1380_s5 = sshll.u32 (%p51_p3), %s200_s29, 8 }
  0x14   : > { %s1573_s6 = smul.u32 (%p51_p3), 320, %s1745_s20  ;;  %s1842_s12 = scalar_lea.vmem (%p51_p3), [#allocation3], %s1380_s5 }
  0x16   : > { %s206_s7 = sadd.s32 (%p51_p3), %s1573_s6, %s1382_s30 }
  0x17   : > { %s1384_s8 = sshll.u32 (%p51_p3), %s206_s7, 2 }
  0x18   : > { %s1837_s11 = scalar_lea.vmem (%p51_p3), %s2099_s0, %s1384_s8 }
  0x19   : > { %v298_v0 = vld [vmem:[%s1837_s11] sm:$0xff]  ;;  %v300_v1 = vld [vmem:[%s1837_s11 + $0x28] sm:$0xff]  ;;  %v302_v2 = vld [vmem:[%s1837_s11 + $0x50] sm:$0xff] }
  0x1a   : > { %299 = vst [vmem:[%s1842_s12] sm:$0xff] %v298_v0  ;;  %301 = vst [vmem:[%s1842_s12 + $0x8] sm:$0xff] %v300_v1  ;;  %v304_v3 = vld [vmem:[%s1837_s11 + $0x78] sm:$0xff]  ;;  %v306_v4 = vld [vmem:[%s1837_s11 + $0xa0] sm:$0xff] }
  0x1b   : > { %303 = vst [vmem:[%s1842_s12 + $0x10] sm:$0xff] %v302_v2  ;;  %v308_v5 = vld [vmem:[%s1837_s11 + $0xc8] sm:$0xff]  ;;  %305 = vst [vmem:[%s1842_s12 + $0x18] sm:$0xff] %v304_v3  ;;  %v310_v6 = vld [vmem:[%s1837_s11 + $0xf0] sm:$0xff] }
  0x1c   : > { %307 = vst [vmem:[%s1842_s12 + $0x20] sm:$0xff] %v306_v4  ;;  %309 = vst [vmem:[%s1842_s12 + $0x28] sm:$0xff] %v308_v5  ;;  %v312_v7 = vld [vmem:[%s1837_s11 + $0x118] sm:$0xff]  ;;  %v314_v8 = vld [vmem:[%s1837_s11 + $0x140] sm:$0xff] }
  0x1d   : > { %311 = vst [vmem:[%s1842_s12 + $0x30] sm:$0xff] %v310_v6  ;;  %313 = vst [vmem:[%s1842_s12 + $0x38] sm:$0xff] %v312_v7  ;;  %v316_v9 = vld [vmem:[%s1837_s11 + $0x168] sm:$0xff]  ;;  %v318_v10 = vld [vmem:[%s1837_s11 + $0x190] sm:$0xff] }
  0x1e   : > { %315 = vst [vmem:[%s1842_s12 + $0x40] sm:$0xff] %v314_v8  ;;  %v320_v11 = vld [vmem:[%s1837_s11 + $0x1b8] sm:$0xff]  ;;  %317 = vst [vmem:[%s1842_s12 + $0x48] sm:$0xff] %v316_v9  ;;  %v322_v12 = vld [vmem:[%s1837_s11 + $0x1e0] sm:$0xff] }
  0x1f   : > { %319 = vst [vmem:[%s1842_s12 + $0x50] sm:$0xff] %v318_v10  ;;  %321 = vst [vmem:[%s1842_s12 + $0x58] sm:$0xff] %v320_v11  ;;  %v324_v13 = vld [vmem:[%s1837_s11 + $0x208] sm:$0xff]  ;;  %v326_v14 = vld [vmem:[%s1837_s11 + $0x230] sm:$0xff] }
  0x20   : > { %323 = vst [vmem:[%s1842_s12 + $0x60] sm:$0xff] %v322_v12  ;;  %325 = vst [vmem:[%s1842_s12 + $0x68] sm:$0xff] %v324_v13  ;;  %v328_v15 = vld [vmem:[%s1837_s11 + $0x258] sm:$0xff]  ;;  %v330_v16 = vld [vmem:[%s1837_s11 + $0x280] sm:$0xff] }
  0x21   : > { %327 = vst [vmem:[%s1842_s12 + $0x70] sm:$0xff] %v326_v14  ;;  %v332_v17 = vld [vmem:[%s1837_s11 + $0x2a8] sm:$0xff]  ;;  %329 = vst [vmem:[%s1842_s12 + $0x78] sm:$0xff] %v328_v15  ;;  %v334_v18 = vld [vmem:[%s1837_s11 + $0x2d0] sm:$0xff] }
  0x22   : > { %331 = vst [vmem:[%s1842_s12 + $0x80] sm:$0xff] %v330_v16  ;;  %333 = vst [vmem:[%s1842_s12 + $0x88] sm:$0xff] %v332_v17  ;;  %v336_v19 = vld [vmem:[%s1837_s11 + $0x2f8] sm:$0xff]  ;;  %v338_v20 = vld [vmem:[%s1837_s11 + $0x320] sm:$0xff] }
  0x23   : > { %335 = vst [vmem:[%s1842_s12 + $0x90] sm:$0xff] %v334_v18  ;;  %337 = vst [vmem:[%s1842_s12 + $0x98] sm:$0xff] %v336_v19  ;;  %v340_v21 = vld [vmem:[%s1837_s11 + $0x348] sm:$0xff]  ;;  %v342_v22 = vld [vmem:[%s1837_s11 + $0x370] sm:$0xff] }
  0x24   : > { %339 = vst [vmem:[%s1842_s12 + $0xa0] sm:$0xff] %v338_v20  ;;  %v344_v23 = vld [vmem:[%s1837_s11 + $0x398] sm:$0xff]  ;;  %341 = vst [vmem:[%s1842_s12 + $0xa8] sm:$0xff] %v340_v21  ;;  %v346_v24 = vld [vmem:[%s1837_s11 + $0x3c0] sm:$0xff] }
  0x25   : > { %343 = vst [vmem:[%s1842_s12 + $0xb0] sm:$0xff] %v342_v22  ;;  %345 = vst [vmem:[%s1842_s12 + $0xb8] sm:$0xff] %v344_v23  ;;  %v348_v25 = vld [vmem:[%s1837_s11 + $0x3e8] sm:$0xff]  ;;  %v350_v26 = vld [vmem:[%s1837_s11 + $0x410] sm:$0xff] }
  0x26   : > { %347 = vst [vmem:[%s1842_s12 + $0xc0] sm:$0xff] %v346_v24  ;;  %349 = vst [vmem:[%s1842_s12 + $0xc8] sm:$0xff] %v348_v25  ;;  %v352_v27 = vld [vmem:[%s1837_s11 + $0x438] sm:$0xff]  ;;  %v354_v28 = vld [vmem:[%s1837_s11 + $0x460] sm:$0xff] }
  0x27   : > { %351 = vst [vmem:[%s1842_s12 + $0xd0] sm:$0xff] %v350_v26  ;;  %v356_v29 = vld [vmem:[%s1837_s11 + $0x488] sm:$0xff]  ;;  %353 = vst [vmem:[%s1842_s12 + $0xd8] sm:$0xff] %v352_v27  ;;  %v358_v30 = vld [vmem:[%s1837_s11 + $0x4b0] sm:$0xff] }
  0x28   : > { %355 = vst [vmem:[%s1842_s12 + $0xe0] sm:$0xff] %v354_v28  ;;  %357 = vst [vmem:[%s1842_s12 + $0xe8] sm:$0xff] %v356_v29  ;;  %v360_v31 = vld [vmem:[%s1837_s11 + $0x4d8] sm:$0xff] }
  0x29   : > { %359 = vst [vmem:[%s1842_s12 + $0xf0] sm:$0xff] %v358_v30  ;;  %361 = vst [vmem:[%s1842_s12 + $0xf8] sm:$0xff] %v360_v31 }
  0x2a PF: > { %p1385_p7 = scmp.ge.s32.totalorder %s1749_s21, 1  ;;  %p378_p8 = scmp.lt.s32.totalorder %s1749_s21, 31 }
  0x2c   : > { %p379_p9 = pnand %p1385_p7, %p378_p8 }
  0x2d   : > { %s385_s13 = sand.u32 (!%p379_p9), 1, %s1725_s15   ;;  %s1387_s14 = sshll.u32 (!%p379_p9), %s1733_s17, 5 }
  0x2e   : > { %382 = sbr.rel (%p379_p9) target bundleno = 396 (0x18c), region = 70  ;;  %s1386_s24 = sshll.u32 (!%p379_p9), %s385_s13, 8 }
  0x2f   : > { %p430_p10 = scmp.lt.s32.totalorder (!%p379_p9), %s1387_s14, 159  ;;  %s1389_s25 = sshll.u32 (!%p379_p9), %s1737_s18, 5 }
  0x30   : > { %p445_p11 = scmp.lt.s32.totalorder (!%p379_p9), %s1389_s25, 191  ;;  %s1920_s15 = scalar_lea.vmem (!%p379_p9), [#allocation3], %s1386_s24 }
  0x31   : > { %p1391_p12 = scmp.ne.s32.totalorder (!%p379_p9), %s1733_s17, 0 }
  0x35   : > { %s2117_s14 = smov (!%p430_p10, %s1387_s14), 159  ;;  %s2119_s25 = smov (!%p445_p11, %s1389_s25), 191 }
  0x36   : > { %s1388_s26 = sshll.u32 %s2117_s14, 2  ;;  %s1390_s5 = sshll.u32 %s2119_s25, 3  ;;  %v1751_v32 = vmov (!%p1391_p12), 0.0  }
  0x37   : > { %s1913_s30 = scalar_lea.vmem %s2100_s1, %s1388_s26  ;;  %s1918_s8 = scalar_lea.vmem %s2103_s4, %s1390_s5  ;;  %458 = vst [vmem:[#allocation2] sm:$0xff] (!%p1391_p12), %v1751_v32  ;;  %459 = vst [vmem:[#allocation2 + $0x8] sm:$0xff] (!%p1391_p12), %v1751_v32 }
  0x38   : > { %457 = sbr.rel (%p1391_p12) target bundleno = 71 (0x47), region = 78  ;;  %460 = vst [vmem:[#allocation2 + $0x10] sm:$0xff] (!%p1391_p12), %v1751_v32  ;;  %461 = vst [vmem:[#allocation2 + $0x18] sm:$0xff] (!%p1391_p12), %v1751_v32 }
  0x39   : > { %462 = vst [vmem:[#allocation2 + $0x20] sm:$0xff] (!%p1391_p12), %v1751_v32  ;;  %463 = vst [vmem:[#allocation2 + $0x28] sm:$0xff] (!%p1391_p12), %v1751_v32 }
  0x3a   : > { %464 = vst [vmem:[#allocation2 + $0x30] sm:$0xff] (!%p1391_p12), %v1751_v32  ;;  %465 = vst [vmem:[#allocation2 + $0x38] sm:$0xff] (!%p1391_p12), %v1751_v32 }
  0x3b   : > { %466 = vst [vmem:[#allocation2 + $0x40] sm:$0xff] (!%p1391_p12), %v1751_v32  ;;  %467 = vst [vmem:[#allocation2 + $0x48] sm:$0xff] (!%p1391_p12), %v1751_v32 }
  0x3c   : > { %468 = vst [vmem:[#allocation2 + $0x50] sm:$0xff] (!%p1391_p12), %v1751_v32  ;;  %469 = vst [vmem:[#allocation2 + $0x58] sm:$0xff] (!%p1391_p12), %v1751_v32 }
  0x3d   : > { %470 = vst [vmem:[#allocation2 + $0x60] sm:$0xff] (!%p1391_p12), %v1751_v32  ;;  %471 = vst [vmem:[#allocation2 + $0x68] sm:$0xff] (!%p1391_p12), %v1751_v32 }
  0x3e   : > { %472 = vst [vmem:[#allocation2 + $0x70] sm:$0xff] (!%p1391_p12), %v1751_v32  ;;  %473 = vst [vmem:[#allocation2 + $0x78] sm:$0xff] (!%p1391_p12), %v1751_v32 }
  0x3f   : > { %474 = vst [vmem:[#allocation2 + $0x80] sm:$0xff] %v1751_v32  ;;  %475 = vst [vmem:[#allocation2 + $0x88] sm:$0xff] %v1751_v32 }
  0x40   : > { %476 = vst [vmem:[#allocation2 + $0x90] sm:$0xff] %v1751_v32  ;;  %477 = vst [vmem:[#allocation2 + $0x98] sm:$0xff] %v1751_v32 }
  0x41   : > { %478 = vst [vmem:[#allocation2 + $0xa0] sm:$0xff] %v1751_v32  ;;  %479 = vst [vmem:[#allocation2 + $0xa8] sm:$0xff] %v1751_v32 }
  0x42   : > { %480 = vst [vmem:[#allocation2 + $0xb0] sm:$0xff] %v1751_v32  ;;  %481 = vst [vmem:[#allocation2 + $0xb8] sm:$0xff] %v1751_v32 }
  0x43   : > { %482 = vst [vmem:[#allocation2 + $0xc0] sm:$0xff] %v1751_v32  ;;  %483 = vst [vmem:[#allocation2 + $0xc8] sm:$0xff] %v1751_v32 }
  0x44   : > { %484 = vst [vmem:[#allocation2 + $0xd0] sm:$0xff] %v1751_v32  ;;  %485 = vst [vmem:[#allocation2 + $0xd8] sm:$0xff] %v1751_v32 }
  0x45   : > { %486 = vst [vmem:[#allocation2 + $0xe0] sm:$0xff] %v1751_v32  ;;  %487 = vst [vmem:[#allocation2 + $0xe8] sm:$0xff] %v1751_v32 }
  0x46   : > { %488 = vst [vmem:[#allocation2 + $0xf0] sm:$0xff] %v1751_v32  ;;  %489 = vst [vmem:[#allocation2 + $0xf8] sm:$0xff] %v1751_v32 }
  0x47 PF: > { %v1631_v33 = vld [vmem:[%s1913_s30 + $0x40] sm:$0xff]   ;;  %v1633_v35 = vld [vmem:[%s1913_s30 + $0x48] sm:$0xff]   ;;  %v1635_v37 = vld [vmem:[%s1913_s30 + $0x50] sm:$0xff]   ;;  %p1440_p13 = scmp.ne.s32.totalorder %s1733_s17, 4 }
  0x48   : > { %v1632_v34 = vld [vmem:[%s1913_s30] sm:$0xff]   ;;  %1445 = vmatprep.subr.bf16.mxu0 %v1631_v33  ;;  %1557 = vmatprep.subr.bf16.mxu1 %v1631_v33  ;;  %v1634_v36 = vld [vmem:[%s1913_s30 + $0x8] sm:$0xff]   ;;  %v1636_v38 = vld [vmem:[%s1913_s30 + $0x10] sm:$0xff]  }
  0x49   : > { %1446 = vmatpush3.bf16.msra.mxu0 %v1632_v34  ;;  %1565 = vmatpush3.bf16.msra.mxu1 %v1632_v34  ;;  %v1637_v39 = vld [vmem:[%s1913_s30 + $0x58] sm:$0xff]   ;;  %v1639_v41 = vld [vmem:[%s1913_s30 + $0x60] sm:$0xff]   ;;  %v1641_v43 = vld [vmem:[%s1913_s30 + $0x68] sm:$0xff]  }
  0x4a   : > { %1447 = vmatprep.subr.bf16.mxu0 %v1633_v35  ;;  %1558 = vmatprep.subr.bf16.mxu1 %v1633_v35  ;;  %v1638_v40 = vld [vmem:[%s1913_s30 + $0x18] sm:$0xff]   ;;  %v1640_v42 = vld [vmem:[%s1913_s30 + $0x20] sm:$0xff]   ;;  %v1642_v46 = vld [vmem:[%s1913_s30 + $0x28] sm:$0xff]  }
  0x4b   : > { %v1649_v44 = vld [vmem:[%s1920_s15 + $0x4] ss:$8 sps:$4 sm:$0xff]   ;;  %v1643_v47 = vld [vmem:[%s1913_s30 + $0x70] sm:$0xff]   ;;  %v1645_v49 = vld [vmem:[%s1913_s30 + $0x78] sm:$0xff]  }
  0x4c   : > { %v1652_v45 = vld [vmem:[%s1920_s15 + $0x84] ss:$8 sps:$4 sm:$0xff]   ;;  %874 = vmatprep.mubr.bf16.mxu0 %v1649_v44  ;;  %v1644_v48 = vld [vmem:[%s1913_s30 + $0x30] sm:$0xff]   ;;  %v1646_v50 = vld [vmem:[%s1913_s30 + $0x38] sm:$0xff]  }
  0x4d   : > { %1448 = vmatpush3.bf16.msra.mxu0 %v1634_v36  ;;  %1566 = vmatpush3.bf16.msra.mxu1 %v1634_v36  ;;  %v1647_v51 = vld [vmem:[%s1920_s15] ss:$8 sps:$4 sm:$0xff]   ;;  %v1653_v53 = vld [vmem:[%s1920_s15 + $0x14] ss:$8 sps:$4 sm:$0xff]   ;;  %v1657_v55 = vld [vmem:[%s1920_s15 + $0x10] ss:$8 sps:$4 sm:$0xff]  }
  0x4e   : > { %1449 = vmatprep.subr.bf16.mxu0 %v1635_v37  ;;  %1559 = vmatprep.subr.bf16.mxu1 %v1635_v37  ;;  %v1650_v52 = vld [vmem:[%s1920_s15 + $0x80] ss:$8 sps:$4 sm:$0xff]   ;;  %v1655_v54 = vld [vmem:[%s1920_s15 + $0x94] ss:$8 sps:$4 sm:$0xff]   ;;  %v1658_v56 = vld [vmem:[%s1920_s15 + $0x90] ss:$8 sps:$4 sm:$0xff]  }
  0x4f   : > { %938 = vmatprep.mubr.bf16.mxu1 %v1652_v45  ;;  %v1659_v57 = vld [vmem:[%s1920_s15 + $0x24] ss:$8 sps:$4 sm:$0xff]   ;;  %v1663_v59 = vld [vmem:[%s1920_s15 + $0x20] ss:$8 sps:$4 sm:$0xff]   ;;  %v1665_v61 = vld [vmem:[%s1920_s15 + $0x34] ss:$8 sps:$4 sm:$0xff]  }
  0x50   : > { %v1661_v58 = vld [vmem:[%s1920_s15 + $0xa4] ss:$8 sps:$4 sm:$0xff]   ;;  %v1664_v60 = vld [vmem:[%s1920_s15 + $0xa0] ss:$8 sps:$4 sm:$0xff]   ;;  %v1667_v62 = vld [vmem:[%s1920_s15 + $0xb4] ss:$8 sps:$4 sm:$0xff]  }
  0x51   : > { %1450 = vmatpush3.bf16.msra.mxu0 %v1636_v38  ;;  %1567 = vmatpush3.bf16.msra.mxu1 %v1636_v38  ;;  %v1669_v63 = vld [vmem:[%s1920_s15 + $0x30] ss:$8 sps:$4 sm:$0xff]   ;;  %v1671_v1 = vld [vmem:[%s1920_s15 + $0x44] ss:$8 sps:$4 sm:$0xff]   ;;  %v1675_v3 = vld [vmem:[%s1920_s15 + $0x40] ss:$8 sps:$4 sm:$0xff]  }
  0x52   : > { %1451 = vmatprep.subr.bf16.mxu0 %v1637_v39  ;;  %1560 = vmatprep.subr.bf16.mxu1 %v1637_v39  ;;  %v1670_v0 = vld [vmem:[%s1920_s15 + $0xb0] ss:$8 sps:$4 sm:$0xff]   ;;  %v1673_v2 = vld [vmem:[%s1920_s15 + $0xc4] ss:$8 sps:$4 sm:$0xff]   ;;  %v1676_v4 = vld [vmem:[%s1920_s15 + $0xc0] ss:$8 sps:$4 sm:$0xff]  }
  0x53   : > { %v1677_v5 = vld [vmem:[%s1920_s15 + $0x54] ss:$8 sps:$4 sm:$0xff]   ;;  %v1681_v7 = vld [vmem:[%s1920_s15 + $0x50] ss:$8 sps:$4 sm:$0xff]   ;;  %v1683_v9 = vld [vmem:[%s1920_s15 + $0x64] ss:$8 sps:$4 sm:$0xff]  }
  0x54   : > { %v1679_v6 = vld [vmem:[%s1920_s15 + $0xd4] ss:$8 sps:$4 sm:$0xff]   ;;  %v1682_v8 = vld [vmem:[%s1920_s15 + $0xd0] ss:$8 sps:$4 sm:$0xff]   ;;  %v1685_v10 = vld [vmem:[%s1920_s15 + $0xe4] ss:$8 sps:$4 sm:$0xff]  }
  0x55   : > { %1452 = vmatpush3.bf16.msra.mxu0 %v1638_v40  ;;  %1568 = vmatpush3.bf16.msra.mxu1 %v1638_v40  ;;  %v1687_v11 = vld [vmem:[%s1920_s15 + $0x60] ss:$8 sps:$4 sm:$0xff]   ;;  %v1689_v13 = vld [vmem:[%s1920_s15 + $0x74] ss:$8 sps:$4 sm:$0xff]   ;;  %v1693_v15 = vld [vmem:[%s1920_s15 + $0x70] ss:$8 sps:$4 sm:$0xff]  }
  0x56   : > { %1453 = vmatprep.subr.bf16.mxu0 %v1639_v41  ;;  %1561 = vmatprep.subr.bf16.mxu1 %v1639_v41  ;;  %v1688_v12 = vld [vmem:[%s1920_s15 + $0xe0] ss:$8 sps:$4 sm:$0xff]   ;;  %v1691_v14 = vld [vmem:[%s1920_s15 + $0xf4] ss:$8 sps:$4 sm:$0xff]   ;;  %v1694_v16 = vld [vmem:[%s1920_s15 + $0xf0] ss:$8 sps:$4 sm:$0xff]  }
  0x57   : > { %v490_v19 = vld [vmem:[#allocation2] sm:$0xff]  ;;  %v491_v27 = vld [vmem:[#allocation2 + $0x8] sm:$0xff]  ;;  %v492_v39 = vld [vmem:[#allocation2 + $0x10] sm:$0xff] }
  0x58   : > { %v506_v21 = vld [vmem:[#allocation2 + $0x80] sm:$0xff]  ;;  %v507_v29 = vld [vmem:[#allocation2 + $0x88] sm:$0xff]  ;;  %v508_v41 = vld [vmem:[#allocation2 + $0x90] sm:$0xff] }
  0x59   : > { %1454 = vmatpush3.bf16.msra.mxu0 %v1640_v42  ;;  %1569 = vmatpush3.bf16.msra.mxu1 %v1640_v42 }
  0x5a   : > { %1455 = vmatprep.subr.bf16.mxu0 %v1641_v43  ;;  %1562 = vmatprep.subr.bf16.mxu1 %v1641_v43 }
  0x5d   : > { %1456 = vmatpush3.bf16.msra.mxu0 %v1642_v46  ;;  %1570 = vmatpush3.bf16.msra.mxu1 %v1642_v46 }
  0x5e   : > { %1457 = vmatprep.subr.bf16.mxu0 %v1643_v47  ;;  %1563 = vmatprep.subr.bf16.mxu1 %v1643_v47  ;;  %v493_v47 = vld [vmem:[#allocation2 + $0x18] sm:$0xff] }
  0x61   : > { %1458 = vmatpush3.bf16.msra.mxu0 %v1644_v48  ;;  %1571 = vmatpush3.bf16.msra.mxu1 %v1644_v48 }
  0x62   : > { %1459 = vmatprep.subr.bf16.mxu0 %v1645_v49  ;;  %1564 = vmatprep.subr.bf16.mxu1 %v1645_v49  ;;  %v509_v49 = vld [vmem:[#allocation2 + $0x98] sm:$0xff] }
  0x65   : > { %1460 = vmatpush3.bf16.msra.mxu0 %v1646_v50  ;;  %1572 = vmatpush3.bf16.msra.mxu1 %v1646_v50 }
  0x68   : > { %875 = vmatmul.mubr.bf16.vlgmr.msra.gmra.mrb[0].mxu0 %v1647_v51  ;;  %939 = vmatmul.mubr.bf16.vlgmr.msra.gmra.mrb[0].mxu1 %v1650_v52 }
  0x69   : > { %882 = vmatprep.mubr.bf16.mxu0 %v1653_v53  ;;  %946 = vmatprep.mubr.bf16.mxu1 %v1655_v54 }
  0x70   : > { %883 = vmatmul.mubr.bf16.gmra.mrb[4].mxu0 %v1657_v55  ;;  %947 = vmatmul.mubr.bf16.gmra.mrb[4].mxu1 %v1658_v56 }
  0x71   : > { %890 = vmatprep.mubr.bf16.mxu0 %v1659_v57  ;;  %954 = vmatprep.mubr.bf16.mxu1 %v1661_v58 }
  0x78   : > { %891 = vmatmul.mubr.bf16.gmra.mrb[8].mxu0 %v1663_v59  ;;  %955 = vmatmul.mubr.bf16.gmra.mrb[8].mxu1 %v1664_v60  ;;  %v494_v59 = vld [vmem:[#allocation2 + $0x20] sm:$0xff] }
  0x79   : > { %898 = vmatprep.mubr.bf16.mxu0 %v1665_v61  ;;  %962 = vmatprep.mubr.bf16.mxu1 %v1667_v62  ;;  %v510_v61 = vld [vmem:[#allocation2 + $0xa0] sm:$0xff] }
  0x80   : > { %899 = vmatmul.mubr.bf16.gmra.mrb[12].mxu0 %v1669_v63  ;;  %963 = vmatmul.mubr.bf16.gmra.mrb[12].mxu1 %v1670_v0 }
  0x81   : > { %906 = vmatprep.mubr.bf16.mxu0 %v1671_v1  ;;  %970 = vmatprep.mubr.bf16.mxu1 %v1673_v2 }
  0x88   : > { %907 = vmatmul.mubr.bf16.gmra.mrb[16].mxu0 %v1675_v3  ;;  %971 = vmatmul.mubr.bf16.gmra.mrb[16].mxu1 %v1676_v4  ;;  %v495_v3 = vld [vmem:[#allocation2 + $0x28] sm:$0xff] }
  0x89   : > { %914 = vmatprep.mubr.bf16.mxu0 %v1677_v5  ;;  %978 = vmatprep.mubr.bf16.mxu1 %v1679_v6  ;;  %v511_v5 = vld [vmem:[#allocation2 + $0xa8] sm:$0xff] }
  0x90   : > { %915 = vmatmul.mubr.bf16.gmra.mrb[20].mxu0 %v1681_v7  ;;  %979 = vmatmul.mubr.bf16.gmra.mrb[20].mxu1 %v1682_v8 }
  0x91   : > { %922 = vmatprep.mubr.bf16.mxu0 %v1683_v9  ;;  %986 = vmatprep.mubr.bf16.mxu1 %v1685_v10 }
  0x98   : > { %923 = vmatmul.mubr.bf16.gmra.mrb[24].mxu0 %v1687_v11  ;;  %987 = vmatmul.mubr.bf16.gmra.mrb[24].mxu1 %v1688_v12 }
  0x99   : > { %930 = vmatprep.mubr.bf16.mxu0 %v1689_v13  ;;  %994 = vmatprep.mubr.bf16.mxu1 %v1691_v14 }
  0xa0   : > { %931 = vmatmul.mubr.bf16.gmra.mrb[28].mxu0 %v1693_v15  ;;  %995 = vmatmul.mubr.bf16.gmra.mrb[28].mxu1 %v1694_v16  ;;  %v496_v15 = vld [vmem:[#allocation2 + $0x30] sm:$0xff] }
 0x13b   : > { %v1461_v17 = vpop.f32.mrb[0].mxu0  ;;  %v1509_v18 = vpop.f32.mrb[0].mxu1 }
 0x13c   : > { %v1462_v20 = vpop.f32.mrb[1].mxu0  ;;  %v1510_v22 = vpop.f32.mrb[1].mxu1 }
 0x13d   : > { %v1463_v23 = vadd.f32 %v1462_v20, %v1461_v17  ;;  %v1511_v24 = vadd.f32 %v1510_v22, %v1509_v18  ;;  %v1464_v25 = vpop.f32.mrb[2].mxu0  ;;  %v1512_v26 = vpop.f32.mrb[2].mxu1  ;;  %v512_v17 = vld [vmem:[#allocation2 + $0xb0] sm:$0xff] }
 0x13e   : > { %v1465_v28 = vpop.f32.mrb[3].mxu0  ;;  %v1513_v30 = vpop.f32.mrb[3].mxu1 }
 0x13f   : > { %v1003_v31 = vadd.f32 %v1463_v23, %v490_v19  ;;  %v1019_v32 = vadd.f32 %v1511_v24, %v506_v21  ;;  %v1466_v33 = vadd.f32 %v1465_v28, %v1464_v25  ;;  %v1514_v34 = vadd.f32 %v1513_v30, %v1512_v26  ;;  %v497_v23 = vld [vmem:[#allocation2 + $0x38] sm:$0xff] }
 0x140   : > { %v513_v25 = vld [vmem:[#allocation2 + $0xb8] sm:$0xff] }
 0x141   : > { %1035 = vst [vmem:[#allocation2] sm:$0xff] %v1003_v31  ;;  %1051 = vst [vmem:[#allocation2 + $0x80] sm:$0xff] %v1019_v32  ;;  %v1004_v35 = vadd.f32 %v1466_v33, %v491_v27  ;;  %v1020_v36 = vadd.f32 %v1514_v34, %v507_v29 }
 0x143   : > { %1036 = vst [vmem:[#allocation2 + $0x8] sm:$0xff] %v1004_v35  ;;  %1052 = vst [vmem:[#allocation2 + $0x88] sm:$0xff] %v1020_v36  ;;  %v1467_v37 = vpop.f32.mrb[4].mxu0  ;;  %v1515_v38 = vpop.f32.mrb[4].mxu1  ;;  %v498_v35 = vld [vmem:[#allocation2 + $0x40] sm:$0xff] }
 0x144   : > { %v1468_v40 = vpop.f32.mrb[5].mxu0  ;;  %v1516_v42 = vpop.f32.mrb[5].mxu1 }
 0x145   : > { %v1469_v43 = vadd.f32 %v1468_v40, %v1467_v37  ;;  %v1517_v44 = vadd.f32 %v1516_v42, %v1515_v38  ;;  %v1470_v45 = vpop.f32.mrb[6].mxu0  ;;  %v1518_v46 = vpop.f32.mrb[6].mxu1  ;;  %v514_v37 = vld [vmem:[#allocation2 + $0xc0] sm:$0xff] }
 0x146   : > { %v1471_v48 = vpop.f32.mrb[7].mxu0  ;;  %v1519_v50 = vpop.f32.mrb[7].mxu1 }
 0x147   : > { %v1005_v51 = vadd.f32 %v1469_v43, %v492_v39  ;;  %v1021_v52 = vadd.f32 %v1517_v44, %v508_v41  ;;  %v1472_v53 = vadd.f32 %v1471_v48, %v1470_v45  ;;  %v1520_v54 = vadd.f32 %v1519_v50, %v1518_v46  ;;  %v499_v43 = vld [vmem:[#allocation2 + $0x48] sm:$0xff] }
 0x148   : > { %v515_v45 = vld [vmem:[#allocation2 + $0xc8] sm:$0xff] }
 0x149   : > { %1037 = vst [vmem:[#allocation2 + $0x10] sm:$0xff] %v1005_v51  ;;  %1053 = vst [vmem:[#allocation2 + $0x90] sm:$0xff] %v1021_v52  ;;  %v1006_v55 = vadd.f32 %v1472_v53, %v493_v47  ;;  %v1022_v56 = vadd.f32 %v1520_v54, %v509_v49 }
 0x14b   : > { %1038 = vst [vmem:[#allocation2 + $0x18] sm:$0xff] %v1006_v55  ;;  %1054 = vst [vmem:[#allocation2 + $0x98] sm:$0xff] %v1022_v56  ;;  %v1473_v57 = vpop.f32.mrb[8].mxu0  ;;  %v1521_v58 = vpop.f32.mrb[8].mxu1  ;;  %v500_v55 = vld [vmem:[#allocation2 + $0x50] sm:$0xff] }
 0x14c   : > { %v1474_v60 = vpop.f32.mrb[9].mxu0  ;;  %v1522_v62 = vpop.f32.mrb[9].mxu1 }
 0x14d   : > { %v1475_v63 = vadd.f32 %v1474_v60, %v1473_v57  ;;  %v1523_v0 = vadd.f32 %v1522_v62, %v1521_v58  ;;  %v1476_v1 = vpop.f32.mrb[10].mxu0  ;;  %v1524_v2 = vpop.f32.mrb[10].mxu1  ;;  %v516_v57 = vld [vmem:[#allocation2 + $0xd0] sm:$0xff] }
 0x14e   : > { %v1477_v4 = vpop.f32.mrb[11].mxu0  ;;  %v1525_v6 = vpop.f32.mrb[11].mxu1 }
 0x14f   : > { %v1007_v7 = vadd.f32 %v1475_v63, %v494_v59  ;;  %v1023_v8 = vadd.f32 %v1523_v0, %v510_v61  ;;  %v1478_v9 = vadd.f32 %v1477_v4, %v1476_v1  ;;  %v1526_v10 = vadd.f32 %v1525_v6, %v1524_v2  ;;  %v501_v63 = vld [vmem:[#allocation2 + $0x58] sm:$0xff] }
 0x150   : > { %v517_v1 = vld [vmem:[#allocation2 + $0xd8] sm:$0xff] }
 0x151   : > { %1039 = vst [vmem:[#allocation2 + $0x20] sm:$0xff] %v1007_v7  ;;  %1055 = vst [vmem:[#allocation2 + $0xa0] sm:$0xff] %v1023_v8  ;;  %v1008_v11 = vadd.f32 %v1478_v9, %v495_v3  ;;  %v1024_v12 = vadd.f32 %v1526_v10, %v511_v5 }
 0x153   : > { %1040 = vst [vmem:[#allocation2 + $0x28] sm:$0xff] %v1008_v11  ;;  %1056 = vst [vmem:[#allocation2 + $0xa8] sm:$0xff] %v1024_v12  ;;  %v1479_v13 = vpop.f32.mrb[12].mxu0  ;;  %v1527_v14 = vpop.f32.mrb[12].mxu1  ;;  %v502_v11 = vld [vmem:[#allocation2 + $0x60] sm:$0xff] }
 0x154   : > { %v1480_v16 = vpop.f32.mrb[13].mxu0  ;;  %v1528_v18 = vpop.f32.mrb[13].mxu1 }
 0x155   : > { %v1481_v19 = vadd.f32 %v1480_v16, %v1479_v13  ;;  %v1529_v20 = vadd.f32 %v1528_v18, %v1527_v14  ;;  %v1482_v21 = vpop.f32.mrb[14].mxu0  ;;  %v1530_v22 = vpop.f32.mrb[14].mxu1  ;;  %v518_v13 = vld [vmem:[#allocation2 + $0xe0] sm:$0xff] }
 0x156   : > { %v1483_v24 = vpop.f32.mrb[15].mxu0  ;;  %v1531_v26 = vpop.f32.mrb[15].mxu1 }
 0x157   : > { %v1009_v27 = vadd.f32 %v1481_v19, %v496_v15  ;;  %v1025_v28 = vadd.f32 %v1529_v20, %v512_v17  ;;  %v1484_v29 = vadd.f32 %v1483_v24, %v1482_v21  ;;  %v1532_v30 = vadd.f32 %v1531_v26, %v1530_v22  ;;  %v503_v19 = vld [vmem:[#allocation2 + $0x68] sm:$0xff] }
 0x158   : > { %v519_v21 = vld [vmem:[#allocation2 + $0xe8] sm:$0xff] }
 0x159   : > { %1041 = vst [vmem:[#allocation2 + $0x30] sm:$0xff] %v1009_v27  ;;  %1057 = vst [vmem:[#allocation2 + $0xb0] sm:$0xff] %v1025_v28  ;;  %v1010_v31 = vadd.f32 %v1484_v29, %v497_v23  ;;  %v1026_v32 = vadd.f32 %v1532_v30, %v513_v25 }
 0x15b   : > { %1042 = vst [vmem:[#allocation2 + $0x38] sm:$0xff] %v1010_v31  ;;  %1058 = vst [vmem:[#allocation2 + $0xb8] sm:$0xff] %v1026_v32  ;;  %v1485_v33 = vpop.f32.mrb[16].mxu0  ;;  %v1533_v34 = vpop.f32.mrb[16].mxu1  ;;  %v504_v31 = vld [vmem:[#allocation2 + $0x70] sm:$0xff] }
 0x15c   : > { %v1486_v36 = vpop.f32.mrb[17].mxu0  ;;  %v1534_v38 = vpop.f32.mrb[17].mxu1 }
 0x15d   : > { %v1487_v39 = vadd.f32 %v1486_v36, %v1485_v33  ;;  %v1535_v40 = vadd.f32 %v1534_v38, %v1533_v34  ;;  %v1488_v41 = vpop.f32.mrb[18].mxu0  ;;  %v1536_v42 = vpop.f32.mrb[18].mxu1  ;;  %v520_v33 = vld [vmem:[#allocation2 + $0xf0] sm:$0xff] }
 0x15e   : > { %v1489_v44 = vpop.f32.mrb[19].mxu0  ;;  %v1537_v46 = vpop.f32.mrb[19].mxu1 }
 0x15f   : > { %v1011_v47 = vadd.f32 %v1487_v39, %v498_v35  ;;  %v1027_v48 = vadd.f32 %v1535_v40, %v514_v37  ;;  %v1490_v49 = vadd.f32 %v1489_v44, %v1488_v41  ;;  %v1538_v50 = vadd.f32 %v1537_v46, %v1536_v42  ;;  %v505_v39 = vld [vmem:[#allocation2 + $0x78] sm:$0xff] }
 0x160   : > { %v521_v41 = vld [vmem:[#allocation2 + $0xf8] sm:$0xff] }
 0x161   : > { %1043 = vst [vmem:[#allocation2 + $0x40] sm:$0xff] %v1011_v47  ;;  %1059 = vst [vmem:[#allocation2 + $0xc0] sm:$0xff] %v1027_v48  ;;  %v1012_v51 = vadd.f32 %v1490_v49, %v499_v43  ;;  %v1028_v52 = vadd.f32 %v1538_v50, %v515_v45  ;;  %v1071_v49 = vld [vmem:[#allocation2] sm:$0xff] (!%p1440_p13) }
 0x162   : > { %v1975_v50 = vld [vmem:[%s2101_s2] ss:$0 sm:$0xff] (!%p1440_p13) }
 0x163   : > { %1044 = vst [vmem:[#allocation2 + $0x48] sm:$0xff] %v1012_v51  ;;  %1060 = vst [vmem:[#allocation2 + $0xc8] sm:$0xff] %v1028_v52  ;;  %v1491_v53 = vpop.f32.mrb[20].mxu0  ;;  %v1539_v54 = vpop.f32.mrb[20].mxu1  ;;  %v1980_v51 = vld [vmem:[%s2102_s3] ss:$0 sm:$0xff] (!%p1440_p13)  ;;  %v1110_v52 = vmul.f32 (!%p1440_p13), %v1975_v50, %v1071_v49 }
 0x164   : > { %v1492_v56 = vpop.f32.mrb[21].mxu0  ;;  %v1540_v58 = vpop.f32.mrb[21].mxu1 }
 0x165   : > { %v1493_v59 = vadd.f32 %v1492_v56, %v1491_v53  ;;  %v1541_v60 = vadd.f32 %v1540_v58, %v1539_v54  ;;  %v1494_v61 = vpop.f32.mrb[22].mxu0  ;;  %v1542_v62 = vpop.f32.mrb[22].mxu1  ;;  %v1072_v53 = vld [vmem:[#allocation2 + $0x8] sm:$0xff] (!%p1440_p13)  ;;  %v1073_v54 = vld [vmem:[#allocation2 + $0x10] sm:$0xff] (!%p1440_p13) }
 0x166   : > { %v1495_v0 = vpop.f32.mrb[23].mxu0  ;;  %v1543_v2 = vpop.f32.mrb[23].mxu1  ;;  %v1111_v56 = vmul.f32 (!%p1440_p13), %v1975_v50, %v1072_v53  ;;  %v1091_v53 = vld [vmem:[#allocation2 + $0xa0] sm:$0xff] (!%p1440_p13) }
 0x167   : > { %v1013_v3 = vadd.f32 %v1493_v59, %v500_v55  ;;  %v1029_v4 = vadd.f32 %v1541_v60, %v516_v57  ;;  %v1496_v5 = vadd.f32 %v1495_v0, %v1494_v61  ;;  %v1544_v6 = vadd.f32 %v1543_v2, %v1542_v62  ;;  %v1074_v55 = vld [vmem:[#allocation2 + $0x18] sm:$0xff] (!%p1440_p13)  ;;  %v1075_v59 = vld [vmem:[#allocation2 + $0x20] sm:$0xff] (!%p1440_p13)  ;;  %v1076_v60 = vld [vmem:[#allocation2 + $0x28] sm:$0xff] (!%p1440_p13) }
 0x168   : > { %v1112_v57 = vmul.f32 (!%p1440_p13), %v1975_v50, %v1073_v54  ;;  %v1113_v58 = vmul.f32 (!%p1440_p13), %v1975_v50, %v1074_v55  ;;  %v1077_v61 = vld [vmem:[#allocation2 + $0x30] sm:$0xff] (!%p1440_p13)  ;;  %v1149_v62 = vadd.f32 (!%p1440_p13), %v1980_v51, %v1110_v52  ;;  %v1115_v0 = vmul.f32 (!%p1440_p13), %v1975_v50, %v1076_v60  ;;  %v1078_v2 = vld [vmem:[#allocation2 + $0x38] sm:$0xff] (!%p1440_p13)  ;;  %v1092_v54 = vld [vmem:[#allocation2 + $0xa8] sm:$0xff] (!%p1440_p13) }
 0x169   : > { %1045 = vst [vmem:[#allocation2 + $0x50] sm:$0xff] %v1013_v3  ;;  %1061 = vst [vmem:[#allocation2 + $0xd0] sm:$0xff] %v1029_v4  ;;  %v1014_v7 = vadd.f32 %v1496_v5, %v501_v63  ;;  %v1030_v8 = vadd.f32 %v1544_v6, %v517_v1  ;;  %v1114_v63 = vmul.f32 (!%p1440_p13), %v1975_v50, %v1075_v59  ;;  %v1093_v55 = vld [vmem:[#allocation2 + $0xb0] sm:$0xff] (!%p1440_p13)  ;;  %v1094_v60 = vld [vmem:[#allocation2 + $0xb8] sm:$0xff] (!%p1440_p13) }
 0x16a   : > { %v1116_v1 = vmul.f32 (!%p1440_p13), %v1975_v50, %v1077_v61  ;;  %v1150_v3 = vadd.f32 (!%p1440_p13), %v1980_v51, %v1111_v56  ;;  %v1151_v4 = vadd.f32 (!%p1440_p13), %v1980_v51, %v1112_v57  ;;  %v1152_v5 = vadd.f32 (!%p1440_p13), %v1980_v51, %v1113_v58 }
 0x16b   : > { %1046 = vst [vmem:[#allocation2 + $0x58] sm:$0xff] %v1014_v7  ;;  %1062 = vst [vmem:[#allocation2 + $0xd8] sm:$0xff] %v1030_v8  ;;  %v1497_v9 = vpop.f32.mrb[24].mxu0  ;;  %v1545_v10 = vpop.f32.mrb[24].mxu1  ;;  %v1117_v6 = vmul.f32 (!%p1440_p13), %v1975_v50, %v1078_v2  ;;  %v1079_v7 = vld [vmem:[#allocation2 + $0x40] sm:$0xff] (!%p1440_p13)  ;;  %v1181_v8 = vmax.f32 (!%p1440_p13), %v1149_v62, 0.0  ;;  %v1130_v2 = vmul.f32 (!%p1440_p13), %v1975_v50, %v1091_v53 }
 0x16c   : > { %v1498_v12 = vpop.f32.mrb[25].mxu0  ;;  %v1546_v14 = vpop.f32.mrb[25].mxu1 }
 0x16d   : > { %v1499_v15 = vadd.f32 %v1498_v12, %v1497_v9  ;;  %v1547_v16 = vadd.f32 %v1546_v14, %v1545_v10  ;;  %v1500_v17 = vpop.f32.mrb[26].mxu0  ;;  %v1548_v18 = vpop.f32.mrb[26].mxu1  ;;  %v1153_v9 = vadd.f32 (!%p1440_p13), %v1980_v51, %v1114_v63  ;;  %v1154_v10 = vadd.f32 (!%p1440_p13), %v1980_v51, %v1115_v0  ;;  %v1080_v12 = vld [vmem:[#allocation2 + $0x48] sm:$0xff] (!%p1440_p13)  ;;  %1213 = vst [vmem:[%s1918_s8] sm:$0xff] (!%p1440_p13), %v1181_v8 }
 0x16e   : > { %v1501_v20 = vpop.f32.mrb[27].mxu0  ;;  %v1549_v22 = vpop.f32.mrb[27].mxu1  ;;  %v1133_v8 = vmul.f32 (!%p1440_p13), %v1975_v50, %v1094_v60 }
 0x16f   : > { %v1015_v23 = vadd.f32 %v1499_v15, %v502_v11  ;;  %v1031_v24 = vadd.f32 %v1547_v16, %v518_v13  ;;  %v1502_v25 = vadd.f32 %v1501_v20, %v1500_v17  ;;  %v1550_v26 = vadd.f32 %v1549_v22, %v1548_v18 }
 0x170   : > { %v1155_v11 = vadd.f32 (!%p1440_p13), %v1980_v51, %v1116_v1  ;;  %v1081_v13 = vld [vmem:[#allocation2 + $0x50] sm:$0xff] (!%p1440_p13)  ;;  %v1182_v15 = vmax.f32 (!%p1440_p13), %v1150_v3, 0.0  ;;  %v1183_v16 = vmax.f32 (!%p1440_p13), %v1151_v4, 0.0  ;;  %v1184_v17 = vmax.f32 (!%p1440_p13), %v1152_v5, 0.0 }
 0x171   : > { %1047 = vst [vmem:[#allocation2 + $0x60] sm:$0xff] %v1015_v23  ;;  %1063 = vst [vmem:[#allocation2 + $0xe0] sm:$0xff] %v1031_v24  ;;  %v1016_v27 = vadd.f32 %v1502_v25, %v503_v19  ;;  %v1032_v28 = vadd.f32 %v1550_v26, %v519_v21  ;;  %v1156_v18 = vadd.f32 (!%p1440_p13), %v1980_v51, %v1117_v6  ;;  %v1185_v22 = vmax.f32 (!%p1440_p13), %v1153_v9, 0.0  ;;  %v1095_v9 = vld [vmem:[#allocation2 + $0xc0] sm:$0xff] (!%p1440_p13) }
 0x172   : > { %v1082_v14 = vld [vmem:[#allocation2 + $0x58] sm:$0xff] (!%p1440_p13)  ;;  %v1186_v23 = vmax.f32 (!%p1440_p13), %v1154_v10, 0.0  ;;  %v1187_v24 = vmax.f32 (!%p1440_p13), %v1155_v11, 0.0  ;;  %v1118_v25 = vmul.f32 (!%p1440_p13), %v1975_v50, %v1079_v7  ;;  %1214 = vst [vmem:[%s1918_s8 + $0x8] sm:$0xff] (!%p1440_p13), %v1182_v15  ;;  %1215 = vst [vmem:[%s1918_s8 + $0x10] sm:$0xff] (!%p1440_p13), %v1183_v16  ;;  %v1131_v3 = vmul.f32 (!%p1440_p13), %v1975_v50, %v1092_v54  ;;  %v1097_v15 = vld [vmem:[#allocation2 + $0xd0] sm:$0xff] (!%p1440_p13) }
 0x173   : > { %1048 = vst [vmem:[#allocation2 + $0x68] sm:$0xff] %v1016_v27  ;;  %1064 = vst [vmem:[#allocation2 + $0xe8] sm:$0xff] %v1032_v28  ;;  %v1503_v29 = vpop.f32.mrb[28].mxu0  ;;  %v1551_v30 = vpop.f32.mrb[28].mxu1  ;;  %v1188_v27 = vmax.f32 (!%p1440_p13), %v1156_v18, 0.0  ;;  %v1119_v28 = vmul.f32 (!%p1440_p13), %v1975_v50, %v1080_v12  ;;  %v1132_v4 = vmul.f32 (!%p1440_p13), %v1975_v50, %v1093_v55  ;;  %v1169_v11 = vadd.f32 (!%p1440_p13), %v1980_v51, %v1130_v2  ;;  %v1098_v16 = vld [vmem:[#allocation2 + $0xd8] sm:$0xff] (!%p1440_p13) }
 0x174   : > { %v1504_v32 = vpop.f32.mrb[29].mxu0  ;;  %v1552_v34 = vpop.f32.mrb[29].mxu1  ;;  %1216 = vst [vmem:[%s1918_s8 + $0x18] sm:$0xff] (!%p1440_p13), %v1184_v17  ;;  %1217 = vst [vmem:[%s1918_s8 + $0x20] sm:$0xff] (!%p1440_p13), %v1185_v22  ;;  %v1170_v12 = vadd.f32 (!%p1440_p13), %v1980_v51, %v1131_v3 }
 0x175   : > { %v1505_v35 = vadd.f32 %v1504_v32, %v1503_v29  ;;  %v1553_v36 = vadd.f32 %v1552_v34, %v1551_v30  ;;  %v1506_v37 = vpop.f32.mrb[30].mxu0  ;;  %v1554_v38 = vpop.f32.mrb[30].mxu1  ;;  %1070 = sbr.rel (%p1440_p13) target bundleno = 396 (0x18c), region = 82  ;;  %v1120_v29 = vmul.f32 (!%p1440_p13), %v1975_v50, %v1081_v13  ;;  %v1121_v30 = vmul.f32 (!%p1440_p13), %v1975_v50, %v1082_v14  ;;  %1218 = vst [vmem:[%s1918_s8 + $0x28] sm:$0xff] (!%p1440_p13), %v1186_v23  ;;  %v1096_v14 = vld [vmem:[#allocation2 + $0xc8] sm:$0xff] (!%p1440_p13) }
 0x176   : > { %v1507_v40 = vpop.f32.mrb[31].mxu0  ;;  %v1555_v42 = vpop.f32.mrb[31].mxu1  ;;  %1219 = vst [vmem:[%s1918_s8 + $0x30] sm:$0xff] (!%p1440_p13), %v1187_v24  ;;  %1220 = vst [vmem:[%s1918_s8 + $0x38] sm:$0xff] (!%p1440_p13), %v1188_v27  ;;  %v1171_v13 = vadd.f32 (!%p1440_p13), %v1980_v51, %v1132_v4  ;;  %v1201_v24 = vmax.f32 (!%p1440_p13), %v1169_v11, 0.0  ;;  %v1134_v27 = vmul.f32 (!%p1440_p13), %v1975_v50, %v1095_v9 }
 0x177   : > { %v1017_v43 = vadd.f32 %v1505_v35, %v504_v31  ;;  %v1033_v44 = vadd.f32 %v1553_v36, %v520_v33  ;;  %v1508_v45 = vadd.f32 %v1507_v40, %v1506_v37  ;;  %v1556_v46 = vadd.f32 %v1555_v42, %v1554_v38 }
 0x178   : > { %v1083_v19 = vld [vmem:[#allocation2 + $0x60] sm:$0xff] (!%p1440_p13)  ;;  %v1157_v31 = vadd.f32 (!%p1440_p13), %v1980_v51, %v1118_v25  ;;  %v1158_v35 = vadd.f32 (!%p1440_p13), %v1980_v51, %v1119_v28  ;;  %v1159_v36 = vadd.f32 (!%p1440_p13), %v1980_v51, %v1120_v29  ;;  %v1160_v37 = vadd.f32 (!%p1440_p13), %v1980_v51, %v1121_v30  ;;  %1233 = vst [vmem:[%s1918_s8 + $0xa0] sm:$0xff] (!%p1440_p13), %v1201_v24 }
 0x179   : > { %1049 = vst [vmem:[#allocation2 + $0x70] sm:$0xff] %v1017_v43  ;;  %1065 = vst [vmem:[#allocation2 + $0xf0] sm:$0xff] %v1033_v44  ;;  %v1018_v47 = vadd.f32 %v1508_v45, %v505_v39  ;;  %v1034_v48 = vadd.f32 %v1556_v46, %v521_v41  ;;  %v1122_v32 = vmul.f32 (!%p1440_p13), %v1975_v50, %v1083_v19  ;;  %v1087_v39 = vld [vmem:[#allocation2 + $0x80] sm:$0xff] (!%p1440_p13)  ;;  %v1088_v44 = vld [vmem:[#allocation2 + $0x88] sm:$0xff] (!%p1440_p13)  ;;  %v1202_v25 = vmax.f32 (!%p1440_p13), %v1170_v12, 0.0 }
 0x17a   : > { %v1084_v20 = vld [vmem:[#allocation2 + $0x68] sm:$0xff] (!%p1440_p13)  ;;  %v1189_v40 = vmax.f32 (!%p1440_p13), %v1157_v31, 0.0  ;;  %v1089_v45 = vld [vmem:[#allocation2 + $0x90] sm:$0xff] (!%p1440_p13)  ;;  %v1090_v46 = vld [vmem:[#allocation2 + $0x98] sm:$0xff] (!%p1440_p13)  ;;  %v1192_v49 = vmax.f32 (!%p1440_p13), %v1160_v37, 0.0  ;;  %v1126_v59 = vmul.f32 (!%p1440_p13), %v1975_v50, %v1087_v39  ;;  %v1127_v62 = vmul.f32 (!%p1440_p13), %v1975_v50, %v1088_v44 }
 0x17b   : > { %1050 = vst [vmem:[#allocation2 + $0x78] sm:$0xff] %v1018_v47  ;;  %1066 = vst [vmem:[#allocation2 + $0xf8] sm:$0xff] %v1034_v48  ;;  %v1123_v33 = vmul.f32 (!%p1440_p13), %v1975_v50, %v1084_v20  ;;  %v1161_v41 = vadd.f32 (!%p1440_p13), %v1980_v51, %v1122_v32  ;;  %v1190_v47 = vmax.f32 (!%p1440_p13), %v1158_v35, 0.0  ;;  %v1191_v48 = vmax.f32 (!%p1440_p13), %v1159_v36, 0.0  ;;  %v1100_v22 = vld [vmem:[#allocation2 + $0xe8] sm:$0xff] (!%p1440_p13) }
 0x17c   : > { %1221 = vst [vmem:[%s1918_s8 + $0x40] sm:$0xff] %v1189_v40  ;;  %1224 = vst [vmem:[%s1918_s8 + $0x58] sm:$0xff] %v1192_v49  ;;  %v1128_v63 = vmul.f32 %v1975_v50, %v1089_v45  ;;  %v1129_v0 = vmul.f32 %v1975_v50, %v1090_v46  ;;  %v1165_v1 = vadd.f32 %v1980_v51, %v1126_v59 }
 0x17d   : > { %v1162_v42 = vadd.f32 %v1980_v51, %v1123_v33  ;;  %v1193_v56 = vmax.f32 %v1161_v41, 0.0  ;;  %1222 = vst [vmem:[%s1918_s8 + $0x48] sm:$0xff] %v1190_v47  ;;  %1223 = vst [vmem:[%s1918_s8 + $0x50] sm:$0xff] %v1191_v48  ;;  %v1166_v5 = vadd.f32 %v1980_v51, %v1127_v62  ;;  %v1172_v20 = vadd.f32 %v1980_v51, %v1133_v8 }
 0x17e   : > { %v1167_v6 = vadd.f32 %v1980_v51, %v1128_v63  ;;  %v1168_v7 = vadd.f32 %v1980_v51, %v1129_v0  ;;  %v1197_v10 = vmax.f32 %v1165_v1, 0.0  ;;  %v1135_v30 = vmul.f32 %v1975_v50, %v1096_v14  ;;  %1234 = vst [vmem:[%s1918_s8 + $0xa8] sm:$0xff] %v1202_v25 }
 0x17f   : > { %v1194_v57 = vmax.f32 %v1162_v42, 0.0  ;;  %1225 = vst [vmem:[%s1918_s8 + $0x60] sm:$0xff] %v1193_v56  ;;  %v1198_v17 = vmax.f32 %v1166_v5, 0.0  ;;  %v1204_v29 = vmax.f32 %v1172_v20, 0.0  ;;  %v1136_v31 = vmul.f32 %v1975_v50, %v1097_v15 }
 0x180   : > { %v1085_v21 = vld [vmem:[#allocation2 + $0x70] sm:$0xff]  ;;  %v1199_v18 = vmax.f32 %v1167_v6, 0.0  ;;  %v1200_v19 = vmax.f32 %v1168_v7, 0.0  ;;  %1229 = vst [vmem:[%s1918_s8 + $0x80] sm:$0xff] %v1197_v10  ;;  %v1137_v32 = vmul.f32 %v1975_v50, %v1098_v16  ;;  %v1173_v33 = vadd.f32 %v1980_v51, %v1134_v27 }
 0x181   : > { %v1124_v34 = vmul.f32 %v1975_v50, %v1085_v21  ;;  %1226 = vst [vmem:[%s1918_s8 + $0x68] sm:$0xff] %v1194_v57  ;;  %v1099_v21 = vld [vmem:[#allocation2 + $0xe0] sm:$0xff]  ;;  %v1101_v23 = vld [vmem:[#allocation2 + $0xf0] sm:$0xff]  ;;  %1230 = vst [vmem:[%s1918_s8 + $0x88] sm:$0xff] %v1198_v17  ;;  %v1139_v35 = vmul.f32 %v1975_v50, %v1100_v22  ;;  %v1174_v37 = vadd.f32 %v1980_v51, %v1135_v30 }
 0x182   : > { %v1086_v26 = vld [vmem:[#allocation2 + $0x78] sm:$0xff]  ;;  %1231 = vst [vmem:[%s1918_s8 + $0x90] sm:$0xff] %v1199_v18  ;;  %1232 = vst [vmem:[%s1918_s8 + $0x98] sm:$0xff] %v1200_v19  ;;  %v1140_v36 = vmul.f32 %v1975_v50, %v1101_v23  ;;  %v1176_v39 = vadd.f32 %v1980_v51, %v1137_v32  ;;  %v1205_v41 = vmax.f32 %v1173_v33, 0.0 }
 0x183   : > { %v1125_v38 = vmul.f32 %v1975_v50, %v1086_v26  ;;  %v1163_v43 = vadd.f32 %v1980_v51, %v1124_v34  ;;  %v1203_v26 = vmax.f32 %v1171_v13, 0.0  ;;  %v1102_v28 = vld [vmem:[#allocation2 + $0xf8] sm:$0xff]  ;;  %v1138_v34 = vmul.f32 %v1975_v50, %v1099_v21  ;;  %1236 = vst [vmem:[%s1918_s8 + $0xb8] sm:$0xff] %v1204_v29 }
 0x184   : > { %v1141_v40 = vmul.f32 %v1975_v50, %v1102_v28  ;;  %v1179_v44 = vadd.f32 %v1980_v51, %v1140_v36  ;;  %v1206_v45 = vmax.f32 %v1174_v37, 0.0  ;;  %v1208_v47 = vmax.f32 %v1176_v39, 0.0  ;;  %1237 = vst [vmem:[%s1918_s8 + $0xc0] sm:$0xff] %v1205_v41 }
 0x185   : > { %v1164_v52 = vadd.f32 %v1980_v51, %v1125_v38  ;;  %v1195_v58 = vmax.f32 %v1163_v43, 0.0  ;;  %1235 = vst [vmem:[%s1918_s8 + $0xb0] sm:$0xff] %v1203_v26  ;;  %v1175_v38 = vadd.f32 %v1980_v51, %v1136_v31  ;;  %v1177_v42 = vadd.f32 %v1980_v51, %v1138_v34 }
 0x186   : > { %v1178_v43 = vadd.f32 %v1980_v51, %v1139_v35  ;;  %v1180_v48 = vadd.f32 %v1980_v51, %v1141_v40  ;;  %v1211_v50 = vmax.f32 %v1179_v44, 0.0  ;;  %1238 = vst [vmem:[%s1918_s8 + $0xc8] sm:$0xff] %v1206_v45  ;;  %1240 = vst [vmem:[%s1918_s8 + $0xd8] sm:$0xff] %v1208_v47 }
 0x187   : > { %v1196_v61 = vmax.f32 %v1164_v52, 0.0  ;;  %1227 = vst [vmem:[%s1918_s8 + $0x70] sm:$0xff] %v1195_v58  ;;  %v1207_v46 = vmax.f32 %v1175_v38, 0.0  ;;  %v1209_v49 = vmax.f32 %v1177_v42, 0.0 }
 0x188   : > { %v1210_v52 = vmax.f32 %v1178_v43, 0.0  ;;  %v1212_v53 = vmax.f32 %v1180_v48, 0.0  ;;  %1243 = vst [vmem:[%s1918_s8 + $0xf0] sm:$0xff] %v1211_v50 }
 0x189   : > { %1228 = vst [vmem:[%s1918_s8 + $0x78] sm:$0xff] %v1196_v61  ;;  %1239 = vst [vmem:[%s1918_s8 + $0xd0] sm:$0xff] %v1207_v46 }
 0x18a   : > { %1241 = vst [vmem:[%s1918_s8 + $0xe0] sm:$0xff] %v1209_v49  ;;  %1242 = vst [vmem:[%s1918_s8 + $0xe8] sm:$0xff] %v1210_v52 }
 0x18b   : > { %1244 = vst [vmem:[%s1918_s8 + $0xf8] sm:$0xff] %v1212_v53 }
 0x18c PF: > { %s14_s21 = sadd.s32 1, %s1749_s21   ;;  %s2104_s15 = smov %s1729_s16 }
 0x18d   : > { %p11_p0 = scmp.ge.s32.totalorder %s14_s21, 32   ;;  %s2105_s16 = smov %s1828_s28 }
 0x18e   : > { %s2106_s17 = smov %s1741_s19  ;;  %s2107_s18 = smov %s1745_s20 }
 0x18f   : > { %s2108_s19 = smov %s2111_s22  ;;  %s2109_s20 = smov %s2115_s23 }
 0x190   :  { %13 = sbr.rel (!%p11_p0) target bundleno = 4 (0x4), region = 126 }

// kernel: fwd.27
= control target key start
LH: loop header
LB: loop body
LE: loop exit
PB: predicated region body
PF: predicated region fallthrough
CT: control target
= control target key end

     0   :  { %s1556_s15 = smov 0   ;;  %s1558_s16 = smov 0   ;;  %s1786_s0 = inlined_call_operand.vmem [shape: bf16[512,256], index: 0, kind: input, shape index: {}]   ;;  %s1787_s1 = inlined_call_operand.vmem [shape: bf16[256,128], index: 1, kind: input, shape index: {}]   ;;  %s1788_s2 = inlined_call_operand.vmem [shape: f32[1,128], index: 2, kind: input, shape index: {}]   ;;  %s1789_s3 = inlined_call_operand.vmem [shape: f32[1,128], index: 3, kind: input, shape index: {}]   ;;  %s1790_s4 = inlined_call_operand.vmem [shape: f32[512,128], index: 4, kind: output, shape index: {}]  }
   0x1   :  { %s1560_s17 = smov 0  }
   0x2 LB: > { %s33_s18 = sadd.s32 1, %s1525_s16  ;;  %p1232_p0 = scmp.ge.s32.totalorder %s1529_s17, 1  ;;  %s1529_s17 = sphi %s1560_s17, %s14_s17   ;;  %s1525_s16 = sphi %s1558_s16, %s1792_s16   ;;  %s1521_s15 = sphi %s1556_s15, %s1791_s15  }
   0x3   : > { %p35_p1 = scmp.ge.s32.totalorder %s33_s18, 2  ;;  %p224_p2 = scmp.lt.s32.totalorder %s1529_s17, 3 }
   0x5   : > { %s1794_s18 = smov (%p35_p1, %s33_s18), 0  ;;  %p225_p3 = pnand %p1232_p0, %p224_p2 }
   0x6   : > { %v1443_v0 = vld [vmem:[%s1787_s1 + $0x40] sm:$0xff] (!%p225_p3)   ;;  %s1233_s21 = sshll.u32 (!%p225_p3), %s1521_s15, 5  ;;  %v1445_v2 = vld [vmem:[%s1787_s1 + $0x48] sm:$0xff] (!%p225_p3)   ;;  %v1447_v4 = vld [vmem:[%s1787_s1 + $0x50] sm:$0xff] (!%p225_p3)  }
   0x7   : > { %228 = sbr.rel (%p225_p3) target bundleno = 320 (0x140), region = 36  ;;  %v1444_v1 = vld [vmem:[%s1787_s1] sm:$0xff] (!%p225_p3)   ;;  %1291 = vmatprep.subr.bf16.mxu0 (!%p225_p3), %v1443_v0  ;;  %1403 = vmatprep.subr.bf16.mxu1 (!%p225_p3), %v1443_v0  ;;  %v1446_v3 = vld [vmem:[%s1787_s1 + $0x8] sm:$0xff] (!%p225_p3)   ;;  %p274_p4 = scmp.lt.s32.totalorder (!%p225_p3), %s1233_s21, 63  ;;  %v1448_v5 = vld [vmem:[%s1787_s1 + $0x10] sm:$0xff] (!%p225_p3)  }
   0x8   : > { %1292 = vmatpush3.bf16.msra.mxu0 (!%p225_p3), %v1444_v1  ;;  %1411 = vmatpush3.bf16.msra.mxu1 (!%p225_p3), %v1444_v1  ;;  %v1449_v6 = vld [vmem:[%s1787_s1 + $0x58] sm:$0xff] (!%p225_p3)   ;;  %v1451_v8 = vld [vmem:[%s1787_s1 + $0x60] sm:$0xff] (!%p225_p3)   ;;  %v1453_v10 = vld [vmem:[%s1787_s1 + $0x68] sm:$0xff] (!%p225_p3)  }
   0x9   : > { %1293 = vmatprep.subr.bf16.mxu0 (!%p225_p3), %v1445_v2  ;;  %1404 = vmatprep.subr.bf16.mxu1 (!%p225_p3), %v1445_v2  ;;  %v1450_v7 = vld [vmem:[%s1787_s1 + $0x18] sm:$0xff] (!%p225_p3)   ;;  %v1452_v9 = vld [vmem:[%s1787_s1 + $0x20] sm:$0xff] (!%p225_p3)   ;;  %v1454_v13 = vld [vmem:[%s1787_s1 + $0x28] sm:$0xff] (!%p225_p3)  }
   0xa   : > { %v1455_v14 = vld [vmem:[%s1787_s1 + $0x70] sm:$0xff] (!%p225_p3)   ;;  %v1457_v16 = vld [vmem:[%s1787_s1 + $0x78] sm:$0xff] (!%p225_p3)   ;;  %v1667_v51 = vld [vmem:[%s1788_s2] ss:$0 sm:$0xff] (!%p225_p3) }
   0xb   : > { %v1456_v15 = vld [vmem:[%s1787_s1 + $0x30] sm:$0xff] (!%p225_p3)   ;;  %v1458_v17 = vld [vmem:[%s1787_s1 + $0x38] sm:$0xff] (!%p225_p3)   ;;  %v1672_v57 = vld [vmem:[%s1789_s3] ss:$0 sm:$0xff] (!%p225_p3) }
   0xc   : > { %1294 = vmatpush3.bf16.msra.mxu0 (!%p225_p3), %v1446_v3  ;;  %1412 = vmatpush3.bf16.msra.mxu1 (!%p225_p3), %v1446_v3 }
   0xd   : > { %1295 = vmatprep.subr.bf16.mxu0 (!%p225_p3), %v1447_v4  ;;  %1405 = vmatprep.subr.bf16.mxu1 (!%p225_p3), %v1447_v4 }
   0xe   : > { %s1796_s21 = smov (!%p274_p4, %s1233_s21), 63 }
   0xf   : > { %s1290_s10 = sshll.u32 %s1796_s21, 3 }
  0x10   : > { %1296 = vmatpush3.bf16.msra.mxu0 %v1448_v5  ;;  %1413 = vmatpush3.bf16.msra.mxu1 %v1448_v5  ;;  %s1609_s15 = scalar_lea.vmem %s1786_s0, %s1290_s10 }
  0x11   : > { %1297 = vmatprep.subr.bf16.mxu0 %v1449_v6  ;;  %1406 = vmatprep.subr.bf16.mxu1 %v1449_v6  ;;  %v1461_v11 = vld [vmem:[%s1609_s15 + $0x4] ss:$8 sps:$4 sm:$0xff]   ;;  %v1459_v18 = vld [vmem:[%s1609_s15] ss:$8 sps:$4 sm:$0xff]   ;;  %v1465_v20 = vld [vmem:[%s1609_s15 + $0x14] ss:$8 sps:$4 sm:$0xff]  }
  0x12   : > { %v1464_v12 = vld [vmem:[%s1609_s15 + $0x84] ss:$8 sps:$4 sm:$0xff]   ;;  %729 = vmatprep.mubr.bf16.mxu0 %v1461_v11  ;;  %v1462_v19 = vld [vmem:[%s1609_s15 + $0x80] ss:$8 sps:$4 sm:$0xff]   ;;  %v1467_v21 = vld [vmem:[%s1609_s15 + $0x94] ss:$8 sps:$4 sm:$0xff]  }
  0x13   : > { %793 = vmatprep.mubr.bf16.mxu1 %v1464_v12  ;;  %v1469_v22 = vld [vmem:[%s1609_s15 + $0x10] ss:$8 sps:$4 sm:$0xff]   ;;  %v1471_v24 = vld [vmem:[%s1609_s15 + $0x24] ss:$8 sps:$4 sm:$0xff]   ;;  %v1475_v26 = vld [vmem:[%s1609_s15 + $0x20] ss:$8 sps:$4 sm:$0xff]  }
  0x14   : > { %1298 = vmatpush3.bf16.msra.mxu0 %v1450_v7  ;;  %1414 = vmatpush3.bf16.msra.mxu1 %v1450_v7  ;;  %v1470_v23 = vld [vmem:[%s1609_s15 + $0x90] ss:$8 sps:$4 sm:$0xff]   ;;  %v1473_v25 = vld [vmem:[%s1609_s15 + $0xa4] ss:$8 sps:$4 sm:$0xff]   ;;  %v1476_v27 = vld [vmem:[%s1609_s15 + $0xa0] ss:$8 sps:$4 sm:$0xff]  }
  0x15   : > { %1299 = vmatprep.subr.bf16.mxu0 %v1451_v8  ;;  %1407 = vmatprep.subr.bf16.mxu1 %v1451_v8  ;;  %v1477_v28 = vld [vmem:[%s1609_s15 + $0x34] ss:$8 sps:$4 sm:$0xff]   ;;  %v1481_v30 = vld [vmem:[%s1609_s15 + $0x30] ss:$8 sps:$4 sm:$0xff]   ;;  %v1483_v32 = vld [vmem:[%s1609_s15 + $0x44] ss:$8 sps:$4 sm:$0xff]  }
  0x16   : > { %v1479_v29 = vld [vmem:[%s1609_s15 + $0xb4] ss:$8 sps:$4 sm:$0xff]   ;;  %v1482_v31 = vld [vmem:[%s1609_s15 + $0xb0] ss:$8 sps:$4 sm:$0xff]   ;;  %v1485_v33 = vld [vmem:[%s1609_s15 + $0xc4] ss:$8 sps:$4 sm:$0xff]  }
  0x17   : > { %v1487_v34 = vld [vmem:[%s1609_s15 + $0x40] ss:$8 sps:$4 sm:$0xff]   ;;  %v1489_v36 = vld [vmem:[%s1609_s15 + $0x54] ss:$8 sps:$4 sm:$0xff]   ;;  %v1493_v38 = vld [vmem:[%s1609_s15 + $0x50] ss:$8 sps:$4 sm:$0xff]  }
  0x18   : > { %1300 = vmatpush3.bf16.msra.mxu0 %v1452_v9  ;;  %1415 = vmatpush3.bf16.msra.mxu1 %v1452_v9  ;;  %v1488_v35 = vld [vmem:[%s1609_s15 + $0xc0] ss:$8 sps:$4 sm:$0xff]   ;;  %v1491_v37 = vld [vmem:[%s1609_s15 + $0xd4] ss:$8 sps:$4 sm:$0xff]   ;;  %v1494_v39 = vld [vmem:[%s1609_s15 + $0xd0] ss:$8 sps:$4 sm:$0xff]  }
  0x19   : > { %1301 = vmatprep.subr.bf16.mxu0 %v1453_v10  ;;  %1408 = vmatprep.subr.bf16.mxu1 %v1453_v10  ;;  %v1495_v40 = vld [vmem:[%s1609_s15 + $0x64] ss:$8 sps:$4 sm:$0xff]   ;;  %v1499_v42 = vld [vmem:[%s1609_s15 + $0x60] ss:$8 sps:$4 sm:$0xff]   ;;  %v1501_v44 = vld [vmem:[%s1609_s15 + $0x74] ss:$8 sps:$4 sm:$0xff]  }
  0x1a   : > { %v1497_v41 = vld [vmem:[%s1609_s15 + $0xe4] ss:$8 sps:$4 sm:$0xff]   ;;  %v1500_v43 = vld [vmem:[%s1609_s15 + $0xe0] ss:$8 sps:$4 sm:$0xff]   ;;  %v1503_v45 = vld [vmem:[%s1609_s15 + $0xf4] ss:$8 sps:$4 sm:$0xff]  }
  0x1b   : > { %v1505_v46 = vld [vmem:[%s1609_s15 + $0x70] ss:$8 sps:$4 sm:$0xff]  }
  0x1c   : > { %1302 = vmatpush3.bf16.msra.mxu0 %v1454_v13  ;;  %1416 = vmatpush3.bf16.msra.mxu1 %v1454_v13  ;;  %v1506_v47 = vld [vmem:[%s1609_s15 + $0xf0] ss:$8 sps:$4 sm:$0xff]   ;;  %s1685_s15 = scalar_lea.vmem %s1790_s4, %s1290_s10 }
  0x1d   : > { %1303 = vmatprep.subr.bf16.mxu0 %v1455_v14  ;;  %1409 = vmatprep.subr.bf16.mxu1 %v1455_v14 }
  0x20   : > { %1304 = vmatpush3.bf16.msra.mxu0 %v1456_v15  ;;  %1417 = vmatpush3.bf16.msra.mxu1 %v1456_v15 }
  0x21   : > { %1305 = vmatprep.subr.bf16.mxu0 %v1457_v16  ;;  %1410 = vmatprep.subr.bf16.mxu1 %v1457_v16 }
  0x24   : > { %1306 = vmatpush3.bf16.msra.mxu0 %v1458_v17  ;;  %1418 = vmatpush3.bf16.msra.mxu1 %v1458_v17 }
  0x27   : > { %730 = vmatmul.mubr.bf16.vlgmr.msra.gmra.mrb[0].mxu0 %v1459_v18  ;;  %794 = vmatmul.mubr.bf16.vlgmr.msra.gmra.mrb[0].mxu1 %v1462_v19 }
  0x28   : > { %737 = vmatprep.mubr.bf16.mxu0 %v1465_v20  ;;  %801 = vmatprep.mubr.bf16.mxu1 %v1467_v21 }
  0x2f   : > { %738 = vmatmul.mubr.bf16.gmra.mrb[4].mxu0 %v1469_v22  ;;  %802 = vmatmul.mubr.bf16.gmra.mrb[4].mxu1 %v1470_v23 }
  0x30   : > { %745 = vmatprep.mubr.bf16.mxu0 %v1471_v24  ;;  %809 = vmatprep.mubr.bf16.mxu1 %v1473_v25 }
  0x37   : > { %746 = vmatmul.mubr.bf16.gmra.mrb[8].mxu0 %v1475_v26  ;;  %810 = vmatmul.mubr.bf16.gmra.mrb[8].mxu1 %v1476_v27 }
  0x38   : > { %753 = vmatprep.mubr.bf16.mxu0 %v1477_v28  ;;  %817 = vmatprep.mubr.bf16.mxu1 %v1479_v29 }
  0x3f   : > { %754 = vmatmul.mubr.bf16.gmra.mrb[12].mxu0 %v1481_v30  ;;  %818 = vmatmul.mubr.bf16.gmra.mrb[12].mxu1 %v1482_v31 }
  0x40   : > { %761 = vmatprep.mubr.bf16.mxu0 %v1483_v32  ;;  %825 = vmatprep.mubr.bf16.mxu1 %v1485_v33 }
  0x47   : > { %762 = vmatmul.mubr.bf16.gmra.mrb[16].mxu0 %v1487_v34  ;;  %826 = vmatmul.mubr.bf16.gmra.mrb[16].mxu1 %v1488_v35 }
  0x48   : > { %769 = vmatprep.mubr.bf16.mxu0 %v1489_v36  ;;  %833 = vmatprep.mubr.bf16.mxu1 %v1491_v37 }
  0x4f   : > { %770 = vmatmul.mubr.bf16.gmra.mrb[20].mxu0 %v1493_v38  ;;  %834 = vmatmul.mubr.bf16.gmra.mrb[20].mxu1 %v1494_v39 }
  0x50   : > { %777 = vmatprep.mubr.bf16.mxu0 %v1495_v40  ;;  %841 = vmatprep.mubr.bf16.mxu1 %v1497_v41 }
  0x57   : > { %778 = vmatmul.mubr.bf16.gmra.mrb[24].mxu0 %v1499_v42  ;;  %842 = vmatmul.mubr.bf16.gmra.mrb[24].mxu1 %v1500_v43 }
  0x58   : > { %785 = vmatprep.mubr.bf16.mxu0 %v1501_v44  ;;  %849 = vmatprep.mubr.bf16.mxu1 %v1503_v45 }
  0x5f   : > { %786 = vmatmul.mubr.bf16.gmra.mrb[28].mxu0 %v1505_v46  ;;  %850 = vmatmul.mubr.bf16.gmra.mrb[28].mxu1 %v1506_v47 }
  0xfa   : > { %v1307_v48 = vpop.f32.mrb[0].mxu0  ;;  %v1355_v49 = vpop.f32.mrb[0].mxu1 }
  0xfb   : > { %v1308_v50 = vpop.f32.mrb[1].mxu0  ;;  %v1356_v52 = vpop.f32.mrb[1].mxu1 }
  0xfc   : > { %v1309_v53 = vadd.f32 %v1308_v50, %v1307_v48  ;;  %v1357_v54 = vadd.f32 %v1356_v52, %v1355_v49  ;;  %v1310_v55 = vpop.f32.mrb[2].mxu0  ;;  %v1358_v56 = vpop.f32.mrb[2].mxu1 }
  0xfd   : > { %v1311_v58 = vpop.f32.mrb[3].mxu0  ;;  %v1359_v59 = vpop.f32.mrb[3].mxu1 }
  0xfe   : > { %v964_v60 = vmul.f32 %v1309_v53, %v1667_v51  ;;  %v980_v61 = vmul.f32 %v1357_v54, %v1667_v51  ;;  %v1312_v62 = vadd.f32 %v1311_v58, %v1310_v55  ;;  %v1360_v63 = vadd.f32 %v1359_v59, %v1358_v56 }
 0x100   : > { %v1003_v0 = vadd.f32 %v1672_v57, %v964_v60  ;;  %v1019_v1 = vadd.f32 %v1672_v57, %v980_v61  ;;  %v965_v2 = vmul.f32 %v1312_v62, %v1667_v51  ;;  %v981_v3 = vmul.f32 %v1360_v63, %v1667_v51 }
 0x102   : > { %v1035_v4 = vmax.f32 %v1003_v0, 0.0  ;;  %v1051_v5 = vmax.f32 %v1019_v1, 0.0  ;;  %v1004_v6 = vadd.f32 %v1672_v57, %v965_v2  ;;  %v1020_v7 = vadd.f32 %v1672_v57, %v981_v3  ;;  %v1313_v8 = vpop.f32.mrb[4].mxu0  ;;  %v1361_v9 = vpop.f32.mrb[4].mxu1 }
 0x103   : > { %v1314_v10 = vpop.f32.mrb[5].mxu0  ;;  %v1362_v11 = vpop.f32.mrb[5].mxu1 }
 0x104   : > { %1067 = vst [vmem:[%s1685_s15] sm:$0xff] %v1035_v4  ;;  %1083 = vst [vmem:[%s1685_s15 + $0x80] sm:$0xff] %v1051_v5  ;;  %v1036_v12 = vmax.f32 %v1004_v6, 0.0  ;;  %v1052_v13 = vmax.f32 %v1020_v7, 0.0  ;;  %v1315_v14 = vadd.f32 %v1314_v10, %v1313_v8  ;;  %v1363_v15 = vadd.f32 %v1362_v11, %v1361_v9  ;;  %v1316_v16 = vpop.f32.mrb[6].mxu0  ;;  %v1364_v17 = vpop.f32.mrb[6].mxu1 }
 0x105   : > { %v1317_v18 = vpop.f32.mrb[7].mxu0  ;;  %v1365_v19 = vpop.f32.mrb[7].mxu1 }
 0x106   : > { %1068 = vst [vmem:[%s1685_s15 + $0x8] sm:$0xff] %v1036_v12  ;;  %1084 = vst [vmem:[%s1685_s15 + $0x88] sm:$0xff] %v1052_v13  ;;  %v966_v20 = vmul.f32 %v1315_v14, %v1667_v51  ;;  %v982_v21 = vmul.f32 %v1363_v15, %v1667_v51  ;;  %v1318_v22 = vadd.f32 %v1317_v18, %v1316_v16 }
 0x107   : > { %v1366_v23 = vadd.f32 %v1365_v19, %v1364_v17 }
 0x108   : > { %v1005_v24 = vadd.f32 %v1672_v57, %v966_v20  ;;  %v1021_v25 = vadd.f32 %v1672_v57, %v982_v21  ;;  %v967_v26 = vmul.f32 %v1318_v22, %v1667_v51 }
 0x109   : > { %v983_v27 = vmul.f32 %v1366_v23, %v1667_v51 }
 0x10a   : > { %v1037_v28 = vmax.f32 %v1005_v24, 0.0  ;;  %v1053_v29 = vmax.f32 %v1021_v25, 0.0  ;;  %v1006_v30 = vadd.f32 %v1672_v57, %v967_v26  ;;  %v1319_v32 = vpop.f32.mrb[8].mxu0  ;;  %v1367_v33 = vpop.f32.mrb[8].mxu1 }
 0x10b   : > { %v1022_v31 = vadd.f32 %v1672_v57, %v983_v27  ;;  %v1320_v34 = vpop.f32.mrb[9].mxu0  ;;  %v1368_v35 = vpop.f32.mrb[9].mxu1 }
 0x10c   : > { %1069 = vst [vmem:[%s1685_s15 + $0x10] sm:$0xff] %v1037_v28  ;;  %1085 = vst [vmem:[%s1685_s15 + $0x90] sm:$0xff] %v1053_v29  ;;  %v1038_v36 = vmax.f32 %v1006_v30, 0.0  ;;  %v1321_v38 = vadd.f32 %v1320_v34, %v1319_v32  ;;  %v1369_v39 = vadd.f32 %v1368_v35, %v1367_v33  ;;  %v1322_v40 = vpop.f32.mrb[10].mxu0  ;;  %v1370_v41 = vpop.f32.mrb[10].mxu1 }
 0x10d   : > { %v1054_v37 = vmax.f32 %v1022_v31, 0.0  ;;  %v1323_v42 = vpop.f32.mrb[11].mxu0  ;;  %v1371_v43 = vpop.f32.mrb[11].mxu1 }
 0x10e   : > { %1070 = vst [vmem:[%s1685_s15 + $0x18] sm:$0xff] %v1038_v36  ;;  %v968_v44 = vmul.f32 %v1321_v38, %v1667_v51  ;;  %v984_v45 = vmul.f32 %v1369_v39, %v1667_v51  ;;  %v1324_v46 = vadd.f32 %v1323_v42, %v1322_v40  ;;  %v1372_v47 = vadd.f32 %v1371_v43, %v1370_v41 }
 0x10f   : > { %1086 = vst [vmem:[%s1685_s15 + $0x98] sm:$0xff] %v1054_v37 }
 0x110   : > { %v1007_v48 = vadd.f32 %v1672_v57, %v968_v44  ;;  %v1023_v49 = vadd.f32 %v1672_v57, %v984_v45  ;;  %v969_v50 = vmul.f32 %v1324_v46, %v1667_v51  ;;  %v985_v52 = vmul.f32 %v1372_v47, %v1667_v51 }
 0x112   : > { %v1039_v53 = vmax.f32 %v1007_v48, 0.0  ;;  %v1055_v54 = vmax.f32 %v1023_v49, 0.0  ;;  %v1008_v55 = vadd.f32 %v1672_v57, %v969_v50  ;;  %v1024_v56 = vadd.f32 %v1672_v57, %v985_v52  ;;  %v1325_v58 = vpop.f32.mrb[12].mxu0  ;;  %v1373_v59 = vpop.f32.mrb[12].mxu1 }
 0x113   : > { %v1326_v60 = vpop.f32.mrb[13].mxu0  ;;  %v1374_v61 = vpop.f32.mrb[13].mxu1 }
 0x114   : > { %1071 = vst [vmem:[%s1685_s15 + $0x20] sm:$0xff] %v1039_v53  ;;  %1087 = vst [vmem:[%s1685_s15 + $0xa0] sm:$0xff] %v1055_v54  ;;  %v1040_v62 = vmax.f32 %v1008_v55, 0.0  ;;  %v1056_v63 = vmax.f32 %v1024_v56, 0.0  ;;  %v1327_v0 = vadd.f32 %v1326_v60, %v1325_v58  ;;  %v1375_v1 = vadd.f32 %v1374_v61, %v1373_v59  ;;  %v1328_v2 = vpop.f32.mrb[14].mxu0  ;;  %v1376_v3 = vpop.f32.mrb[14].mxu1 }
 0x115   : > { %v1329_v4 = vpop.f32.mrb[15].mxu0  ;;  %v1377_v5 = vpop.f32.mrb[15].mxu1 }
 0x116   : > { %1072 = vst [vmem:[%s1685_s15 + $0x28] sm:$0xff] %v1040_v62  ;;  %1088 = vst [vmem:[%s1685_s15 + $0xa8] sm:$0xff] %v1056_v63  ;;  %v970_v6 = vmul.f32 %v1327_v0, %v1667_v51  ;;  %v986_v7 = vmul.f32 %v1375_v1, %v1667_v51  ;;  %v1330_v8 = vadd.f32 %v1329_v4, %v1328_v2 }
 0x117   : > { %v1378_v9 = vadd.f32 %v1377_v5, %v1376_v3 }
 0x118   : > { %v1009_v10 = vadd.f32 %v1672_v57, %v970_v6  ;;  %v1025_v11 = vadd.f32 %v1672_v57, %v986_v7  ;;  %v971_v12 = vmul.f32 %v1330_v8, %v1667_v51 }
 0x119   : > { %v987_v13 = vmul.f32 %v1378_v9, %v1667_v51 }
 0x11a   : > { %v1041_v14 = vmax.f32 %v1009_v10, 0.0  ;;  %v1057_v15 = vmax.f32 %v1025_v11, 0.0  ;;  %v1010_v16 = vadd.f32 %v1672_v57, %v971_v12  ;;  %v1331_v18 = vpop.f32.mrb[16].mxu0  ;;  %v1379_v19 = vpop.f32.mrb[16].mxu1 }
 0x11b   : > { %v1026_v17 = vadd.f32 %v1672_v57, %v987_v13  ;;  %v1332_v20 = vpop.f32.mrb[17].mxu0  ;;  %v1380_v21 = vpop.f32.mrb[17].mxu1 }
 0x11c   : > { %1073 = vst [vmem:[%s1685_s15 + $0x30] sm:$0xff] %v1041_v14  ;;  %1089 = vst [vmem:[%s1685_s15 + $0xb0] sm:$0xff] %v1057_v15  ;;  %v1042_v22 = vmax.f32 %v1010_v16, 0.0  ;;  %v1333_v24 = vadd.f32 %v1332_v20, %v1331_v18  ;;  %v1381_v25 = vadd.f32 %v1380_v21, %v1379_v19  ;;  %v1334_v26 = vpop.f32.mrb[18].mxu0  ;;  %v1382_v27 = vpop.f32.mrb[18].mxu1 }
 0x11d   : > { %v1058_v23 = vmax.f32 %v1026_v17, 0.0  ;;  %v1335_v28 = vpop.f32.mrb[19].mxu0  ;;  %v1383_v29 = vpop.f32.mrb[19].mxu1 }
 0x11e   : > { %1074 = vst [vmem:[%s1685_s15 + $0x38] sm:$0xff] %v1042_v22  ;;  %v972_v30 = vmul.f32 %v1333_v24, %v1667_v51  ;;  %v988_v31 = vmul.f32 %v1381_v25, %v1667_v51  ;;  %v1336_v32 = vadd.f32 %v1335_v28, %v1334_v26  ;;  %v1384_v33 = vadd.f32 %v1383_v29, %v1382_v27 }
 0x11f   : > { %1090 = vst [vmem:[%s1685_s15 + $0xb8] sm:$0xff] %v1058_v23 }
 0x120   : > { %v1011_v34 = vadd.f32 %v1672_v57, %v972_v30  ;;  %v1027_v35 = vadd.f32 %v1672_v57, %v988_v31  ;;  %v973_v36 = vmul.f32 %v1336_v32, %v1667_v51  ;;  %v989_v37 = vmul.f32 %v1384_v33, %v1667_v51 }
 0x122   : > { %v1043_v38 = vmax.f32 %v1011_v34, 0.0  ;;  %v1059_v39 = vmax.f32 %v1027_v35, 0.0  ;;  %v1012_v40 = vadd.f32 %v1672_v57, %v973_v36  ;;  %v1028_v41 = vadd.f32 %v1672_v57, %v989_v37  ;;  %v1337_v42 = vpop.f32.mrb[20].mxu0  ;;  %v1385_v43 = vpop.f32.mrb[20].mxu1 }
 0x123   : > { %v1338_v44 = vpop.f32.mrb[21].mxu0  ;;  %v1386_v45 = vpop.f32.mrb[21].mxu1 }
 0x124   : > { %1075 = vst [vmem:[%s1685_s15 + $0x40] sm:$0xff] %v1043_v38  ;;  %1091 = vst [vmem:[%s1685_s15 + $0xc0] sm:$0xff] %v1059_v39  ;;  %v1044_v46 = vmax.f32 %v1012_v40, 0.0  ;;  %v1060_v47 = vmax.f32 %v1028_v41, 0.0  ;;  %v1339_v48 = vadd.f32 %v1338_v44, %v1337_v42  ;;  %v1387_v49 = vadd.f32 %v1386_v45, %v1385_v43  ;;  %v1340_v50 = vpop.f32.mrb[22].mxu0  ;;  %v1388_v52 = vpop.f32.mrb[22].mxu1 }
 0x125   : > { %v1341_v53 = vpop.f32.mrb[23].mxu0  ;;  %v1389_v54 = vpop.f32.mrb[23].mxu1 }
 0x126   : > { %1076 = vst [vmem:[%s1685_s15 + $0x48] sm:$0xff] %v1044_v46  ;;  %1092 = vst [vmem:[%s1685_s15 + $0xc8] sm:$0xff] %v1060_v47  ;;  %v974_v55 = vmul.f32 %v1339_v48, %v1667_v51  ;;  %v990_v56 = vmul.f32 %v1387_v49, %v1667_v51  ;;  %v1342_v58 = vadd.f32 %v1341_v53, %v1340_v50 }
 0x127   : > { %v1390_v59 = vadd.f32 %v1389_v54, %v1388_v52 }
 0x128   : > { %v1013_v60 = vadd.f32 %v1672_v57, %v974_v55  ;;  %v1029_v61 = vadd.f32 %v1672_v57, %v990_v56  ;;  %v975_v62 = vmul.f32 %v1342_v58, %v1667_v51 }
 0x129   : > { %v991_v63 = vmul.f32 %v1390_v59, %v1667_v51 }
 0x12a   : > { %v1045_v0 = vmax.f32 %v1013_v60, 0.0  ;;  %v1061_v1 = vmax.f32 %v1029_v61, 0.0  ;;  %v1014_v2 = vadd.f32 %v1672_v57, %v975_v62  ;;  %v1343_v4 = vpop.f32.mrb[24].mxu0  ;;  %v1391_v5 = vpop.f32.mrb[24].mxu1 }
 0x12b   : > { %v1030_v3 = vadd.f32 %v1672_v57, %v991_v63  ;;  %v1344_v6 = vpop.f32.mrb[25].mxu0  ;;  %v1392_v7 = vpop.f32.mrb[25].mxu1 }
 0x12c   : > { %1077 = vst [vmem:[%s1685_s15 + $0x50] sm:$0xff] %v1045_v0  ;;  %1093 = vst [vmem:[%s1685_s15 + $0xd0] sm:$0xff] %v1061_v1  ;;  %v1046_v8 = vmax.f32 %v1014_v2, 0.0  ;;  %v1345_v10 = vadd.f32 %v1344_v6, %v1343_v4  ;;  %v1393_v11 = vadd.f32 %v1392_v7, %v1391_v5  ;;  %v1346_v12 = vpop.f32.mrb[26].mxu0  ;;  %v1394_v13 = vpop.f32.mrb[26].mxu1 }
 0x12d   : > { %v1062_v9 = vmax.f32 %v1030_v3, 0.0  ;;  %v1347_v14 = vpop.f32.mrb[27].mxu0  ;;  %v1395_v15 = vpop.f32.mrb[27].mxu1 }
 0x12e   : > { %1078 = vst [vmem:[%s1685_s15 + $0x58] sm:$0xff] %v1046_v8  ;;  %v976_v16 = vmul.f32 %v1345_v10, %v1667_v51  ;;  %v992_v17 = vmul.f32 %v1393_v11, %v1667_v51  ;;  %v1348_v18 = vadd.f32 %v1347_v14, %v1346_v12  ;;  %v1396_v19 = vadd.f32 %v1395_v15, %v1394_v13 }
 0x12f   : > { %1094 = vst [vmem:[%s1685_s15 + $0xd8] sm:$0xff] %v1062_v9 }
 0x130   : > { %v1015_v20 = vadd.f32 %v1672_v57, %v976_v16  ;;  %v1031_v21 = vadd.f32 %v1672_v57, %v992_v17  ;;  %v977_v22 = vmul.f32 %v1348_v18, %v1667_v51  ;;  %v993_v23 = vmul.f32 %v1396_v19, %v1667_v51 }
 0x132   : > { %v1047_v24 = vmax.f32 %v1015_v20, 0.0  ;;  %v1063_v25 = vmax.f32 %v1031_v21, 0.0  ;;  %v1016_v26 = vadd.f32 %v1672_v57, %v977_v22  ;;  %v1032_v27 = vadd.f32 %v1672_v57, %v993_v23  ;;  %v1349_v28 = vpop.f32.mrb[28].mxu0  ;;  %v1397_v29 = vpop.f32.mrb[28].mxu1 }
 0x133   : > { %v1350_v30 = vpop.f32.mrb[29].mxu0  ;;  %v1398_v31 = vpop.f32.mrb[29].mxu1 }
 0x134   : > { %1079 = vst [vmem:[%s1685_s15 + $0x60] sm:$0xff] %v1047_v24  ;;  %1095 = vst [vmem:[%s1685_s15 + $0xe0] sm:$0xff] %v1063_v25  ;;  %v1048_v32 = vmax.f32 %v1016_v26, 0.0  ;;  %v1064_v33 = vmax.f32 %v1032_v27, 0.0  ;;  %v1351_v34 = vadd.f32 %v1350_v30, %v1349_v28  ;;  %v1399_v35 = vadd.f32 %v1398_v31, %v1397_v29  ;;  %v1352_v36 = vpop.f32.mrb[30].mxu0  ;;  %v1400_v37 = vpop.f32.mrb[30].mxu1 }
 0x135   : > { %v1353_v38 = vpop.f32.mrb[31].mxu0  ;;  %v1401_v39 = vpop.f32.mrb[31].mxu1 }
 0x136   : > { %1080 = vst [vmem:[%s1685_s15 + $0x68] sm:$0xff] %v1048_v32  ;;  %1096 = vst [vmem:[%s1685_s15 + $0xe8] sm:$0xff] %v1064_v33  ;;  %v978_v40 = vmul.f32 %v1351_v34, %v1667_v51  ;;  %v994_v41 = vmul.f32 %v1399_v35, %v1667_v51  ;;  %v1354_v42 = vadd.f32 %v1353_v38, %v1352_v36 }
 0x137   : > { %v1402_v43 = vadd.f32 %v1401_v39, %v1400_v37 }
 0x138   : > { %v1017_v44 = vadd.f32 %v1672_v57, %v978_v40  ;;  %v1033_v45 = vadd.f32 %v1672_v57, %v994_v41  ;;  %v979_v46 = vmul.f32 %v1354_v42, %v1667_v51 }
 0x139   : > { %v995_v47 = vmul.f32 %v1402_v43, %v1667_v51 }
 0x13a   : > { %v1049_v48 = vmax.f32 %v1017_v44, 0.0  ;;  %v1065_v49 = vmax.f32 %v1033_v45, 0.0  ;;  %v1018_v50 = vadd.f32 %v1672_v57, %v979_v46 }
 0x13b   : > { %v1034_v52 = vadd.f32 %v1672_v57, %v995_v47 }
 0x13c   : > { %1081 = vst [vmem:[%s1685_s15 + $0x70] sm:$0xff] %v1049_v48  ;;  %1097 = vst [vmem:[%s1685_s15 + $0xf0] sm:$0xff] %v1065_v49  ;;  %v1050_v53 = vmax.f32 %v1018_v50, 0.0 }
 0x13d   : > { %v1066_v54 = vmax.f32 %v1034_v52, 0.0 }
 0x13e   : > { %1082 = vst [vmem:[%s1685_s15 + $0x78] sm:$0xff] %v1050_v53 }
 0x13f   : > { %1098 = vst [vmem:[%s1685_s15 + $0xf8] sm:$0xff] %v1066_v54 }
 0x140 PF: > { %s14_s17 = sadd.s32 1, %s1529_s17   ;;  %s1791_s15 = smov %s1525_s16 }
 0x141   : > { %p11_p5 = scmp.ge.s32.totalorder %s14_s17, 4   ;;  %s1792_s16 = smov %s1794_s18 }
 0x143   :  { %13 = sbr.rel (!%p11_p5) target bundleno = 2 (0x2), region = 83 }

// kernel: fwd.20
= control target key start
LH: loop header
LB: loop body
LE: loop exit
PB: predicated region body
PF: predicated region fallthrough
CT: control target
= control target key end

     0   :  { %s1953_s15 = smov 0   ;;  %s1955_s16 = smov 0   ;;  %s2332_s0 = inlined_call_operand.vmem [shape: bf16[384,1152], index: 0, kind: input, shape index: {}]   ;;  %s2333_s1 = inlined_call_operand.vmem [shape: bf16[1152,256], index: 1, kind: input, shape index: {}]   ;;  %s2334_s2 = inlined_call_operand.vmem [shape: f32[1,256], index: 2, kind: input, shape index: {}]   ;;  %s2335_s3 = inlined_call_operand.vmem [shape: f32[1,256], index: 3, kind: input, shape index: {}]   ;;  %s2336_s4 = inlined_call_operand.vmem [shape: f32[384,256], index: 4, kind: output, shape index: {}]  }
   0x1   :  { %s1957_s17 = smov 0   ;;  %s1959_s18 = smov 0  }
   0x2   :  { %s1961_s19 = smov 0   ;;  %s1963_s20 = smov 0  }
   0x3   :  { %s1965_s21 = smov 0  }
   0x4 LB: > { %s26_s22 = sadd.s32 1, %s1916_s19  ;;  %s33_s23 = sadd.s32 1, %s1920_s20  ;;  %s1924_s21 = sphi %s1965_s21, %s14_s21   ;;  %s1920_s20 = sphi %s1963_s20, %s2342_s20   ;;  %s1916_s19 = sphi %s1961_s19, %s2341_s19   ;;  %s1912_s18 = sphi %s1959_s18, %s2340_s18   ;;  %s1908_s17 = sphi %s1957_s17, %s2339_s17   ;;  %s1904_s16 = sphi %s1955_s16, %s2338_s16   ;;  %s1900_s15 = sphi %s1953_s15, %s2337_s15  }
   0x5   : > { %p27_p0 = scmp.ge.s32.totalorder %s26_s22, 3  ;;  %p49_p1 = scmp.ne.s32.totalorder %s1904_s16, %s1900_s15 }
   0x6   : > { %p50_p2 = scmp.eq.s32.totalorder %s1924_s21, 0  ;;  %s42_s27 = sadd.s32 1, %s1904_s16 }
   0x7   : > { %s2344_s22 = smov (%p27_p0, %s26_s22), 0  ;;  %s2346_s23 = smov (!%p27_p0, %s33_s23), %s1920_s20 }
   0x8   : > { %p51_p3 = por %p50_p2, %p49_p1  ;;  %p35_p4 = scmp.ge.s32.totalorder %s2346_s23, 3 }
   0x9   : > { %s38_s24 = ssub.s32 %s1916_s19, %s2344_s22  ;;  %p1553_p6 = scmp.ge.s32.totalorder %s1924_s21, 9 }
   0xa   : > { %s2348_s23 = smov (%p35_p4, %s2346_s23), 0 }
   0xb   : > { %s37_s25 = ssub.s32 %s1920_s20, %s2348_s23  ;;  %199 = sbr.rel (%p1553_p6) target bundleno = 45 (0x2d), region = 24 }
   0xc   : > { %s39_s26 = sor.u32 %s38_s24, %s37_s25 }
   0xd   : > { %p40_p5 = scmp.eq.s32.totalorder %s39_s26, 0 }
   0xf   : > { %s2004_s28 = scalar_select %p40_p5, %s1904_s16, %s42_s27  }
  0x12   : > { %202 = sbr.rel (!%p51_p3) target bundleno = 45 (0x2d), region = 28  ;;  %s204_s29 = sand.u32 (%p51_p3), 1, %s1904_s16  }
  0x13   : > { %s208_s30 = smul.u32 (%p51_p3), 3, %s1916_s19 }
  0x14   : > { %s1705_s5 = smul.u32 (%p51_p3), 192, %s204_s29 }
  0x15   : > { %s1706_s6 = smul.u32 (%p51_p3), 144, %s1920_s20 }
  0x16   : > { %s2018_s12 = scalar_lea.vmem (%p51_p3), [#allocation3], %s1705_s5 }
  0x17   : > { %s210_s7 = sadd.s32 (%p51_p3), %s1706_s6, %s208_s30 }
  0x18   : > { %s1556_s8 = sshll.u32 (%p51_p3), %s210_s7, 2 }
  0x19   : > { %s2013_s11 = scalar_lea.vmem %s2332_s0, %s1556_s8 }
  0x1a   : > { %v227_v0 = vld [vmem:[%s2013_s11] sm:$0xff]  ;;  %v231_v2 = vld [vmem:[%s2013_s11 + $0x48] sm:$0xff]  ;;  %v235_v4 = vld [vmem:[%s2013_s11 + $0x90] sm:$0xff] }
  0x1b   : > { %v229_v1 = vld [vmem:[%s2013_s11 + $0x24] sm:$0xff]  ;;  %228 = vst [vmem:[%s2018_s12] sm:$0xff] %v227_v0  ;;  %232 = vst [vmem:[%s2018_s12 + $0x18] sm:$0xff] %v231_v2  ;;  %v233_v3 = vld [vmem:[%s2013_s11 + $0x6c] sm:$0xff] }
  0x1c   : > { %230 = vst [vmem:[%s2018_s12 + $0xc] sm:$0xff] %v229_v1  ;;  %v237_v5 = vld [vmem:[%s2013_s11 + $0xb4] sm:$0xff]  ;;  %234 = vst [vmem:[%s2018_s12 + $0x24] sm:$0xff] %v233_v3  ;;  %v241_v7 = vld [vmem:[%s2013_s11 + $0xfc] sm:$0xff] }
  0x1d   : > { %236 = vst [vmem:[%s2018_s12 + $0x30] sm:$0xff] %v235_v4  ;;  %238 = vst [vmem:[%s2018_s12 + $0x3c] sm:$0xff] %v237_v5  ;;  %v239_v6 = vld [vmem:[%s2013_s11 + $0xd8] sm:$0xff]  ;;  %v243_v8 = vld [vmem:[%s2013_s11 + $0x120] sm:$0xff] }
  0x1e   : > { %240 = vst [vmem:[%s2018_s12 + $0x48] sm:$0xff] %v239_v6  ;;  %242 = vst [vmem:[%s2018_s12 + $0x54] sm:$0xff] %v241_v7  ;;  %v245_v9 = vld [vmem:[%s2013_s11 + $0x144] sm:$0xff]  ;;  %v249_v11 = vld [vmem:[%s2013_s11 + $0x18c] sm:$0xff] }
  0x1f   : > { %244 = vst [vmem:[%s2018_s12 + $0x60] sm:$0xff] %v243_v8  ;;  %v247_v10 = vld [vmem:[%s2013_s11 + $0x168] sm:$0xff]  ;;  %246 = vst [vmem:[%s2018_s12 + $0x6c] sm:$0xff] %v245_v9  ;;  %v251_v12 = vld [vmem:[%s2013_s11 + $0x1b0] sm:$0xff] }
  0x20   : > { %248 = vst [vmem:[%s2018_s12 + $0x78] sm:$0xff] %v247_v10  ;;  %250 = vst [vmem:[%s2018_s12 + $0x84] sm:$0xff] %v249_v11  ;;  %v253_v13 = vld [vmem:[%s2013_s11 + $0x1d4] sm:$0xff]  ;;  %v257_v15 = vld [vmem:[%s2013_s11 + $0x21c] sm:$0xff] }
  0x21   : > { %v255_v14 = vld [vmem:[%s2013_s11 + $0x1f8] sm:$0xff]  ;;  %252 = vst [vmem:[%s2018_s12 + $0x90] sm:$0xff] %v251_v12  ;;  %254 = vst [vmem:[%s2018_s12 + $0x9c] sm:$0xff] %v253_v13  ;;  %v1557_v16 = vld [vmem:[%s2013_s11 + $0x8] sm:$0xf] }
  0x22   : > { %256 = vst [vmem:[%s2018_s12 + $0xa8] sm:$0xff] %v255_v14  ;;  %v1559_v17 = vld [vmem:[%s2013_s11 + $0x2c] sm:$0xf]  ;;  %258 = vst [vmem:[%s2018_s12 + $0xb4] sm:$0xff] %v257_v15  ;;  %v1561_v18 = vld [vmem:[%s2013_s11 + $0x50] sm:$0xf] }
  0x23   : > { %1558 = vst [vmem:[%s2018_s12 + $0x8] sm:$0xf] %v1557_v16  ;;  %1560 = vst [vmem:[%s2018_s12 + $0x14] sm:$0xf] %v1559_v17  ;;  %v1563_v19 = vld [vmem:[%s2013_s11 + $0x74] sm:$0xf] }
  0x24   : > { %v1565_v20 = vld [vmem:[%s2013_s11 + $0x98] sm:$0xf]  ;;  %1562 = vst [vmem:[%s2018_s12 + $0x20] sm:$0xf] %v1561_v18  ;;  %1564 = vst [vmem:[%s2018_s12 + $0x2c] sm:$0xf] %v1563_v19 }
  0x25   : > { %1566 = vst [vmem:[%s2018_s12 + $0x38] sm:$0xf] %v1565_v20  ;;  %v1567_v21 = vld [vmem:[%s2013_s11 + $0xbc] sm:$0xf]  ;;  %v1569_v22 = vld [vmem:[%s2013_s11 + $0xe0] sm:$0xf] }
  0x26   : > { %v1571_v23 = vld [vmem:[%s2013_s11 + $0x104] sm:$0xf]  ;;  %1568 = vst [vmem:[%s2018_s12 + $0x44] sm:$0xf] %v1567_v21  ;;  %1570 = vst [vmem:[%s2018_s12 + $0x50] sm:$0xf] %v1569_v22 }
  0x27   : > { %1572 = vst [vmem:[%s2018_s12 + $0x5c] sm:$0xf] %v1571_v23  ;;  %v1573_v24 = vld [vmem:[%s2013_s11 + $0x128] sm:$0xf]  ;;  %v1575_v25 = vld [vmem:[%s2013_s11 + $0x14c] sm:$0xf] }
  0x28   : > { %v1577_v26 = vld [vmem:[%s2013_s11 + $0x170] sm:$0xf]  ;;  %1574 = vst [vmem:[%s2018_s12 + $0x68] sm:$0xf] %v1573_v24  ;;  %1576 = vst [vmem:[%s2018_s12 + $0x74] sm:$0xf] %v1575_v25 }
  0x29   : > { %1578 = vst [vmem:[%s2018_s12 + $0x80] sm:$0xf] %v1577_v26  ;;  %v1579_v27 = vld [vmem:[%s2013_s11 + $0x194] sm:$0xf]  ;;  %v1581_v28 = vld [vmem:[%s2013_s11 + $0x1b8] sm:$0xf] }
  0x2a   : > { %v1583_v29 = vld [vmem:[%s2013_s11 + $0x1dc] sm:$0xf]  ;;  %1580 = vst [vmem:[%s2018_s12 + $0x8c] sm:$0xf] %v1579_v27  ;;  %1582 = vst [vmem:[%s2018_s12 + $0x98] sm:$0xf] %v1581_v28 }
  0x2b   : > { %1584 = vst [vmem:[%s2018_s12 + $0xa4] sm:$0xf] %v1583_v29  ;;  %v1585_v30 = vld [vmem:[%s2013_s11 + $0x200] sm:$0xf]  ;;  %v1587_v31 = vld [vmem:[%s2013_s11 + $0x224] sm:$0xf] }
  0x2c   : > { %1586 = vst [vmem:[%s2018_s12 + $0xb0] sm:$0xf] %v1585_v30  ;;  %1588 = vst [vmem:[%s2018_s12 + $0xbc] sm:$0xf] %v1587_v31 }
  0x2d PF: > { %p1589_p7 = scmp.ge.s32.totalorder %s1924_s21, 1  ;;  %p317_p8 = scmp.lt.s32.totalorder %s1924_s21, 10 }
  0x2f   : > { %p318_p9 = pnand %p1589_p7, %p317_p8 }
  0x30   : > { %s324_s13 = sand.u32 (!%p318_p9), 1, %s1900_s15   ;;  %s374_s14 = smul.u32 (!%p318_p9), 48, %s1908_s17 }
  0x31   : > { %321 = sbr.rel (%p318_p9) target bundleno = 442 (0x1ba), region = 58  ;;  %s1592_s25 = sshll.u32 (!%p318_p9), %s1912_s18, 4 }
  0x32   : > { %s1707_s24 = smul.u32 (!%p318_p9), 192, %s324_s13  ;;  %p376_p10 = scmp.lt.s32.totalorder (!%p318_p9), %s374_s14, 143 }
  0x33   : > { %p398_p11 = scmp.lt.s32.totalorder (!%p318_p9), %s1592_s25, 47  ;;  %p1595_p12 = scmp.ne.s32.totalorder (!%p318_p9), %s1908_s17, 0 }
  0x34   : > { %s2096_s15 = scalar_lea.vmem (!%p318_p9), [#allocation3], %s1707_s24 }
  0x38   : > { %s2350_s14 = smov (!%p376_p10, %s374_s14), 143  ;;  %s2352_s25 = smov (!%p398_p11, %s1592_s25), 47 }
  0x39   : > { %s1671_s26 = sshll.u32 %s2350_s14, 3  ;;  %s1672_s5 = sshll.u32 %s2352_s25, 4  ;;  %v1926_v32 = vmov (!%p1595_p12), 0.0  }
  0x3a   : > { %s2089_s30 = scalar_lea.vmem %s2333_s1, %s1671_s26  ;;  %s2094_s8 = scalar_lea.vmem %s2336_s4, %s1672_s5  ;;  %413 = vst [vmem:[#allocation2] sm:$0xff] (!%p1595_p12), %v1926_v32  ;;  %414 = vst [vmem:[#allocation2 + $0x8] sm:$0xff] (!%p1595_p12), %v1926_v32 }
  0x3b   : > { %412 = sbr.rel (%p1595_p12) target bundleno = 74 (0x4a), region = 66  ;;  %415 = vst [vmem:[#allocation2 + $0x10] sm:$0xff] (!%p1595_p12), %v1926_v32  ;;  %416 = vst [vmem:[#allocation2 + $0x18] sm:$0xff] (!%p1595_p12), %v1926_v32 }
  0x3c   : > { %417 = vst [vmem:[#allocation2 + $0x20] sm:$0xff] (!%p1595_p12), %v1926_v32  ;;  %418 = vst [vmem:[#allocation2 + $0x28] sm:$0xff] (!%p1595_p12), %v1926_v32 }
  0x3d   : > { %419 = vst [vmem:[#allocation2 + $0x30] sm:$0xff] (!%p1595_p12), %v1926_v32  ;;  %420 = vst [vmem:[#allocation2 + $0x38] sm:$0xff] (!%p1595_p12), %v1926_v32 }
  0x3e   : > { %421 = vst [vmem:[#allocation2 + $0x40] sm:$0xff] (!%p1595_p12), %v1926_v32  ;;  %422 = vst [vmem:[#allocation2 + $0x48] sm:$0xff] (!%p1595_p12), %v1926_v32 }
  0x3f   : > { %423 = vst [vmem:[#allocation2 + $0x50] sm:$0xff] (!%p1595_p12), %v1926_v32  ;;  %424 = vst [vmem:[#allocation2 + $0x58] sm:$0xff] (!%p1595_p12), %v1926_v32 }
  0x40   : > { %425 = vst [vmem:[#allocation2 + $0x60] sm:$0xff] (!%p1595_p12), %v1926_v32  ;;  %426 = vst [vmem:[#allocation2 + $0x68] sm:$0xff] (!%p1595_p12), %v1926_v32 }
  0x41   : > { %427 = vst [vmem:[#allocation2 + $0x70] sm:$0xff] (!%p1595_p12), %v1926_v32  ;;  %428 = vst [vmem:[#allocation2 + $0x78] sm:$0xff] (!%p1595_p12), %v1926_v32 }
  0x42   : > { %429 = vst [vmem:[#allocation2 + $0x80] sm:$0xff] %v1926_v32  ;;  %430 = vst [vmem:[#allocation2 + $0x88] sm:$0xff] %v1926_v32 }
  0x43   : > { %431 = vst [vmem:[#allocation2 + $0x90] sm:$0xff] %v1926_v32  ;;  %432 = vst [vmem:[#allocation2 + $0x98] sm:$0xff] %v1926_v32 }
  0x44   : > { %433 = vst [vmem:[#allocation2 + $0xa0] sm:$0xff] %v1926_v32  ;;  %434 = vst [vmem:[#allocation2 + $0xa8] sm:$0xff] %v1926_v32 }
  0x45   : > { %435 = vst [vmem:[#allocation2 + $0xb0] sm:$0xff] %v1926_v32  ;;  %436 = vst [vmem:[#allocation2 + $0xb8] sm:$0xff] %v1926_v32 }
  0x46   : > { %437 = vst [vmem:[#allocation2 + $0xc0] sm:$0xff] %v1926_v32  ;;  %438 = vst [vmem:[#allocation2 + $0xc8] sm:$0xff] %v1926_v32 }
  0x47   : > { %439 = vst [vmem:[#allocation2 + $0xd0] sm:$0xff] %v1926_v32  ;;  %440 = vst [vmem:[#allocation2 + $0xd8] sm:$0xff] %v1926_v32 }
  0x48   : > { %441 = vst [vmem:[#allocation2 + $0xe0] sm:$0xff] %v1926_v32  ;;  %442 = vst [vmem:[#allocation2 + $0xe8] sm:$0xff] %v1926_v32 }
  0x49   : > { %443 = vst [vmem:[#allocation2 + $0xf0] sm:$0xff] %v1926_v32  ;;  %444 = vst [vmem:[#allocation2 + $0xf8] sm:$0xff] %v1926_v32 }
  0x4a PF: > { %v1766_v33 = vld [vmem:[%s2089_s30 + $0x4] ss:$8 sps:$4 sm:$0xff]   ;;  %v1768_v34 = vld [vmem:[%s2089_s30] ss:$8 sps:$4 sm:$0xff]   ;;  %v1927_v35 = vmov 0   ;;  %p1668_p13 = scmp.ne.s32.totalorder %s1908_s17, 2 }
  0x4b   : > { %1070 = vmatprep.mubr.bf16.mxu0 %v1927_v35  ;;  %925 = vmatprep.subr.bf16.mxu1 %v1766_v33  ;;  %v1769_v36 = vld [vmem:[%s2089_s30 + $0x14] ss:$8 sps:$4 sm:$0xff]   ;;  %v1771_v37 = vld [vmem:[%s2089_s30 + $0x10] ss:$8 sps:$4 sm:$0xff]   ;;  %v1772_v38 = vld [vmem:[%s2089_s30 + $0x24] ss:$8 sps:$4 sm:$0xff]  }
  0x4c   : > { %926 = vmatpush1.bf16.msra.mxu1 %v1768_v34  ;;  %v1774_v39 = vld [vmem:[%s2089_s30 + $0x20] ss:$8 sps:$4 sm:$0xff]   ;;  %v1775_v40 = vld [vmem:[%s2089_s30 + $0x34] ss:$8 sps:$4 sm:$0xff]   ;;  %v1777_v41 = vld [vmem:[%s2089_s30 + $0x30] ss:$8 sps:$4 sm:$0xff]  }
  0x4d   : > { %927 = vmatprep.subr.bf16.mxu1 %v1769_v36  ;;  %v1790_v42 = vld [vmem:[%s2089_s30 + $0x104] ss:$8 sps:$4 sm:$0xff]   ;;  %v1792_v43 = vld [vmem:[%s2089_s30 + $0x100] ss:$8 sps:$4 sm:$0xff]   ;;  %v1796_v45 = vld [vmem:[%s2089_s30 + $0x114] ss:$8 sps:$4 sm:$0xff]  }
  0x4e   : > { %v1778_v44 = vld [vmem:[%s2089_s30 + $0x44] ss:$8 sps:$4 sm:$0xff]   ;;  %1038 = vmatprep.subr.bf16.mxu0 %v1790_v42  ;;  %v1798_v46 = vld [vmem:[%s2089_s30 + $0x110] ss:$8 sps:$4 sm:$0xff]   ;;  %v1780_v47 = vld [vmem:[%s2089_s30 + $0x40] ss:$8 sps:$4 sm:$0xff]  }
  0x4f   : > { %1039 = vmatpush1.bf16.msra.mxu0 %v1792_v43  ;;  %v1781_v48 = vld [vmem:[%s2089_s30 + $0x54] ss:$8 sps:$4 sm:$0xff]   ;;  %v1802_v49 = vld [vmem:[%s2089_s30 + $0x124] ss:$8 sps:$4 sm:$0xff]   ;;  %v1804_v50 = vld [vmem:[%s2089_s30 + $0x120] ss:$8 sps:$4 sm:$0xff]  }
  0x50   : > { %928 = vmatpush1.bf16.msra.mxu1 %v1771_v37  ;;  %1040 = vmatprep.subr.bf16.mxu0 %v1796_v45  ;;  %v1783_v51 = vld [vmem:[%s2089_s30 + $0x50] ss:$8 sps:$4 sm:$0xff]   ;;  %v1808_v52 = vld [vmem:[%s2089_s30 + $0x134] ss:$8 sps:$4 sm:$0xff]   ;;  %v1784_v53 = vld [vmem:[%s2089_s30 + $0x64] ss:$8 sps:$4 sm:$0xff]  }
  0x51   : > { %929 = vmatprep.subr.bf16.mxu1 %v1772_v38  ;;  %v1810_v54 = vld [vmem:[%s2089_s30 + $0x130] ss:$8 sps:$4 sm:$0xff]   ;;  %v1786_v55 = vld [vmem:[%s2089_s30 + $0x60] ss:$8 sps:$4 sm:$0xff]   ;;  %v1814_v56 = vld [vmem:[%s2089_s30 + $0x144] ss:$8 sps:$4 sm:$0xff]  }
  0x52   : > { %v1787_v57 = vld [vmem:[%s2089_s30 + $0x74] ss:$8 sps:$4 sm:$0xff]   ;;  %v1816_v58 = vld [vmem:[%s2089_s30 + $0x140] ss:$8 sps:$4 sm:$0xff]   ;;  %v1789_v59 = vld [vmem:[%s2089_s30 + $0x70] ss:$8 sps:$4 sm:$0xff]  }
  0x53   : > { %1041 = vmatpush1.bf16.msra.mxu0 %v1798_v46  ;;  %v1820_v60 = vld [vmem:[%s2089_s30 + $0x154] ss:$8 sps:$4 sm:$0xff]   ;;  %v1793_v61 = vld [vmem:[%s2089_s30 + $0x84] ss:$8 sps:$4 sm:$0xff]   ;;  %v1822_v62 = vld [vmem:[%s2089_s30 + $0x150] ss:$8 sps:$4 sm:$0xff]  }
  0x54   : > { %930 = vmatpush1.bf16.msra.mxu1 %v1774_v39  ;;  %1042 = vmatprep.subr.bf16.mxu0 %v1802_v49  ;;  %v1795_v63 = vld [vmem:[%s2089_s30 + $0x80] ss:$8 sps:$4 sm:$0xff]   ;;  %v1826_v0 = vld [vmem:[%s2089_s30 + $0x164] ss:$8 sps:$4 sm:$0xff]   ;;  %v1799_v1 = vld [vmem:[%s2089_s30 + $0x94] ss:$8 sps:$4 sm:$0xff]  }
  0x55   : > { %931 = vmatprep.subr.bf16.mxu1 %v1775_v40  ;;  %v1801_v2 = vld [vmem:[%s2089_s30 + $0x90] ss:$8 sps:$4 sm:$0xff]   ;;  %v1828_v3 = vld [vmem:[%s2089_s30 + $0x160] ss:$8 sps:$4 sm:$0xff]   ;;  %v1832_v5 = vld [vmem:[%s2089_s30 + $0x174] ss:$8 sps:$4 sm:$0xff]  }
  0x56   : > { %v1841_v4 = vld [vmem:[%s2096_s15 + $0x4] ss:$12 sps:$4 sm:$0xff]   ;;  %v1807_v8 = vld [vmem:[%s2089_s30 + $0xa0] ss:$8 sps:$4 sm:$0xff]   ;;  %v1811_v9 = vld [vmem:[%s2089_s30 + $0xb4] ss:$8 sps:$4 sm:$0xff]  }
  0x57   : > { %1043 = vmatpush1.bf16.msra.mxu0 %v1804_v50  ;;  %v1805_v6 = vld [vmem:[%s2089_s30 + $0xa4] ss:$8 sps:$4 sm:$0xff]   ;;  %957 = vmatprep.mubr.bf16.mxu1 %v1841_v4  ;;  %v1834_v7 = vld [vmem:[%s2089_s30 + $0x170] ss:$8 sps:$4 sm:$0xff]   ;;  %v1838_v10 = vld [vmem:[%s2096_s15 + $0x8] ss:$12 sps:$4 sm:$0xff]  }
  0x58   : > { %932 = vmatpush1.bf16.msra.mxu1 %v1777_v41  ;;  %1044 = vmatprep.subr.bf16.mxu0 %v1808_v52  ;;  %v1813_v11 = vld [vmem:[%s2089_s30 + $0xb0] ss:$8 sps:$4 sm:$0xff]   ;;  %v1817_v12 = vld [vmem:[%s2089_s30 + $0xc4] ss:$8 sps:$4 sm:$0xff]   ;;  %v1819_v13 = vld [vmem:[%s2089_s30 + $0xc0] ss:$8 sps:$4 sm:$0xff]  }
  0x59   : > { %933 = vmatprep.subr.bf16.mxu1 %v1778_v44  ;;  %v1823_v14 = vld [vmem:[%s2089_s30 + $0xd4] ss:$8 sps:$4 sm:$0xff]   ;;  %v1842_v15 = vld [vmem:[%s2096_s15 + $0x20] ss:$12 sps:$4 sm:$0xff]   ;;  %v1825_v16 = vld [vmem:[%s2089_s30 + $0xd0] ss:$8 sps:$4 sm:$0xff]  }
  0x5a   : > { %v1829_v17 = vld [vmem:[%s2089_s30 + $0xe4] ss:$8 sps:$4 sm:$0xff]   ;;  %v1831_v18 = vld [vmem:[%s2089_s30 + $0xe0] ss:$8 sps:$4 sm:$0xff]   ;;  %v1835_v19 = vld [vmem:[%s2089_s30 + $0xf4] ss:$8 sps:$4 sm:$0xff]  }
  0x5b   : > { %1045 = vmatpush1.bf16.msra.mxu0 %v1810_v54  ;;  %v1846_v20 = vld [vmem:[%s2096_s15 + $0x38] ss:$12 sps:$4 sm:$0xff]   ;;  %v1839_v22 = vld [vmem:[%s2096_s15] ss:$12 sps:$4 sm:$0xff]   ;;  %v1843_v23 = vld [vmem:[%s2096_s15 + $0x1c] ss:$12 sps:$4 sm:$0xff]  }
  0x5c   : > { %934 = vmatpush1.bf16.msra.mxu1 %v1780_v47  ;;  %1046 = vmatprep.subr.bf16.mxu0 %v1814_v56  ;;  %v1837_v21 = vld [vmem:[%s2089_s30 + $0xf0] ss:$8 sps:$4 sm:$0xff]   ;;  %v1847_v26 = vld [vmem:[%s2096_s15 + $0x34] ss:$12 sps:$4 sm:$0xff]   ;;  %v1859_v36 = vld [vmem:[%s2096_s15 + $0x7c] ss:$12 sps:$4 sm:$0xff]  }
  0x5d   : > { %935 = vmatprep.subr.bf16.mxu1 %v1781_v48  ;;  %v1850_v24 = vld [vmem:[%s2096_s15 + $0x50] ss:$12 sps:$4 sm:$0xff]   ;;  %v1845_v25 = vld [vmem:[%s2096_s15 + $0x18] ss:$12 sps:$4 sm:$0xff]   ;;  %v1854_v27 = vld [vmem:[%s2096_s15 + $0x68] ss:$12 sps:$4 sm:$0xff]  }
  0x5e   : > { %v1849_v28 = vld [vmem:[%s2096_s15 + $0x30] ss:$12 sps:$4 sm:$0xff]   ;;  %v1851_v29 = vld [vmem:[%s2096_s15 + $0x4c] ss:$12 sps:$4 sm:$0xff]   ;;  %v1853_v31 = vld [vmem:[%s2096_s15 + $0x48] ss:$12 sps:$4 sm:$0xff]  }
  0x5f   : > { %1047 = vmatpush1.bf16.msra.mxu0 %v1816_v58  ;;  %v1858_v30 = vld [vmem:[%s2096_s15 + $0x80] ss:$12 sps:$4 sm:$0xff]   ;;  %v1855_v32 = vld [vmem:[%s2096_s15 + $0x64] ss:$12 sps:$4 sm:$0xff]   ;;  %v1869_v42 = vld [vmem:[%s2096_s15 + $0xa8] ss:$12 sps:$4 sm:$0xff]  }
  0x60   : > { %936 = vmatpush1.bf16.msra.mxu1 %v1783_v51  ;;  %1048 = vmatprep.subr.bf16.mxu0 %v1820_v60  ;;  %v1862_v33 = vld [vmem:[%s2096_s15 + $0x98] ss:$12 sps:$4 sm:$0xff]   ;;  %v1857_v34 = vld [vmem:[%s2096_s15 + $0x60] ss:$12 sps:$4 sm:$0xff]   ;;  %v1866_v37 = vld [vmem:[%s2096_s15 + $0xb0] ss:$12 sps:$4 sm:$0xff]  }
  0x61   : > { %937 = vmatprep.subr.bf16.mxu1 %v1784_v53  ;;  %v1861_v38 = vld [vmem:[%s2096_s15 + $0x78] ss:$12 sps:$4 sm:$0xff]   ;;  %v1863_v39 = vld [vmem:[%s2096_s15 + $0x94] ss:$12 sps:$4 sm:$0xff]   ;;  %v1865_v40 = vld [vmem:[%s2096_s15 + $0x90] ss:$12 sps:$4 sm:$0xff]  }
  0x62   : > { %v1867_v41 = vld [vmem:[%s2096_s15 + $0xac] ss:$12 sps:$4 sm:$0xff]   ;;  %v445_v54 = vld [vmem:[#allocation2] sm:$0xff]  ;;  %v447_v60 = vld [vmem:[#allocation2 + $0x10] sm:$0xff] }
  0x63   : > { %1049 = vmatpush1.bf16.msra.mxu0 %v1822_v62 }
  0x64   : > { %938 = vmatpush1.bf16.msra.mxu1 %v1786_v55  ;;  %1050 = vmatprep.subr.bf16.mxu0 %v1826_v0  ;;  %v448_v0 = vld [vmem:[#allocation2 + $0x18] sm:$0xff] }
  0x65   : > { %939 = vmatprep.subr.bf16.mxu1 %v1787_v57  ;;  %v446_v57 = vld [vmem:[#allocation2 + $0x8] sm:$0xff] }
  0x67   : > { %1051 = vmatpush1.bf16.msra.mxu0 %v1828_v3 }
  0x68   : > { %940 = vmatpush1.bf16.msra.mxu1 %v1789_v59  ;;  %1052 = vmatprep.subr.bf16.mxu0 %v1832_v5 }
  0x69   : > { %941 = vmatprep.subr.bf16.mxu1 %v1793_v61 }
  0x6b   : > { %1053 = vmatpush1.bf16.msra.mxu0 %v1834_v7 }
  0x6c   : > { %942 = vmatpush1.bf16.msra.mxu1 %v1795_v63 }
  0x6d   : > { %943 = vmatprep.subr.bf16.mxu1 %v1799_v1 }
  0x6e   : > { %1071 = vmatmul.mubr.bf16.vlgmr.msra.gmra.mrb[0].mxu0 %v1838_v10  ;;  %v449_v10 = vld [vmem:[#allocation2 + $0x20] sm:$0xff] }
  0x6f   : > { %1080 = vmatprep.mubr.bf16.mxu0 %v1927_v35 }
  0x70   : > { %944 = vmatpush1.bf16.msra.mxu1 %v1801_v2 }
  0x71   : > { %945 = vmatprep.subr.bf16.mxu1 %v1805_v6 }
  0x74   : > { %946 = vmatpush1.bf16.msra.mxu1 %v1807_v8 }
  0x75   : > { %947 = vmatprep.subr.bf16.mxu1 %v1811_v9 }
  0x76   : > { %1081 = vmatmul.mubr.bf16.gmra.mrb[4].mxu0 %v1842_v15 }
  0x77   : > { %1090 = vmatprep.mubr.bf16.mxu0 %v1927_v35 }
  0x78   : > { %948 = vmatpush1.bf16.msra.mxu1 %v1813_v11 }
  0x79   : > { %949 = vmatprep.subr.bf16.mxu1 %v1817_v12 }
  0x7c   : > { %950 = vmatpush1.bf16.msra.mxu1 %v1819_v13  ;;  %v450_v13 = vld [vmem:[#allocation2 + $0x28] sm:$0xff] }
  0x7d   : > { %951 = vmatprep.subr.bf16.mxu1 %v1823_v14 }
  0x7e   : > { %1091 = vmatmul.mubr.bf16.gmra.mrb[8].mxu0 %v1846_v20  ;;  %v452_v20 = vld [vmem:[#allocation2 + $0x38] sm:$0xff] }
  0x7f   : > { %1100 = vmatprep.mubr.bf16.mxu0 %v1927_v35 }
  0x80   : > { %952 = vmatpush1.bf16.msra.mxu1 %v1825_v16  ;;  %v451_v16 = vld [vmem:[#allocation2 + $0x30] sm:$0xff] }
  0x81   : > { %953 = vmatprep.subr.bf16.mxu1 %v1829_v17 }
  0x84   : > { %954 = vmatpush1.bf16.msra.mxu1 %v1831_v18 }
  0x85   : > { %955 = vmatprep.subr.bf16.mxu1 %v1835_v19 }
  0x86   : > { %1101 = vmatmul.mubr.bf16.gmra.mrb[12].mxu0 %v1850_v24 }
  0x87   : > { %1110 = vmatprep.mubr.bf16.mxu0 %v1927_v35 }
  0x88   : > { %956 = vmatpush1.bf16.msra.mxu1 %v1837_v21 }
  0x8b   : > { %958 = vmatmul.mubr.bf16.vlgmr.msra.gmra.mrb[0].mxu1 %v1839_v22 }
  0x8c   : > { %967 = vmatprep.mubr.bf16.mxu1 %v1843_v23 }
  0x8e   : > { %1111 = vmatmul.mubr.bf16.gmra.mrb[16].mxu0 %v1854_v27 }
  0x8f   : > { %1120 = vmatprep.mubr.bf16.mxu0 %v1927_v35 }
  0x93   : > { %968 = vmatmul.mubr.bf16.gmra.mrb[4].mxu1 %v1845_v25 }
  0x94   : > { %977 = vmatprep.mubr.bf16.mxu1 %v1847_v26 }
  0x96   : > { %1121 = vmatmul.mubr.bf16.gmra.mrb[20].mxu0 %v1858_v30  ;;  %v453_v30 = vld [vmem:[#allocation2 + $0x40] sm:$0xff] }
  0x97   : > { %1130 = vmatprep.mubr.bf16.mxu0 %v1927_v35 }
  0x9b   : > { %978 = vmatmul.mubr.bf16.gmra.mrb[8].mxu1 %v1849_v28 }
  0x9c   : > { %987 = vmatprep.mubr.bf16.mxu1 %v1851_v29 }
  0x9e   : > { %1131 = vmatmul.mubr.bf16.gmra.mrb[24].mxu0 %v1862_v33  ;;  %v454_v33 = vld [vmem:[#allocation2 + $0x48] sm:$0xff] }
  0x9f   : > { %1140 = vmatprep.mubr.bf16.mxu0 %v1927_v35 }
  0xa3   : > { %988 = vmatmul.mubr.bf16.gmra.mrb[12].mxu1 %v1853_v31 }
  0xa4   : > { %997 = vmatprep.mubr.bf16.mxu1 %v1855_v32 }
  0xa6   : > { %1141 = vmatmul.mubr.bf16.gmra.mrb[28].mxu0 %v1866_v37  ;;  %v455_v37 = vld [vmem:[#allocation2 + $0x50] sm:$0xff] }
  0xab   : > { %998 = vmatmul.mubr.bf16.gmra.mrb[16].mxu1 %v1857_v34 }
  0xac   : > { %1007 = vmatprep.mubr.bf16.mxu1 %v1859_v36 }
  0xb3   : > { %1008 = vmatmul.mubr.bf16.gmra.mrb[20].mxu1 %v1861_v38 }
  0xb4   : > { %1017 = vmatprep.mubr.bf16.mxu1 %v1863_v39 }
  0xbb   : > { %1018 = vmatmul.mubr.bf16.gmra.mrb[24].mxu1 %v1865_v40 }
  0xbc   : > { %1027 = vmatprep.mubr.bf16.mxu1 %v1867_v41  ;;  %v456_v41 = vld [vmem:[#allocation2 + $0x58] sm:$0xff] }
  0xc3   : > { %1028 = vmatmul.mubr.bf16.gmra.mrb[28].mxu1 %v1869_v42 }
 0x141   : > { %v1072_v43 = vpop.f32.mrb[0].mxu0 }
 0x142   : > { %v1074_v44 = vpop.f32.mrb[1].mxu0 }
 0x143   : > { %v1076_v45 = vpop.f32.mrb[2].mxu0 }
 0x144   : > { %v1078_v46 = vpop.f32.mrb[3].mxu0 }
 0x149   : > { %v1082_v35 = vpop.f32.mrb[4].mxu0 }
 0x14a   : > { %v1084_v47 = vpop.f32.mrb[5].mxu0 }
 0x14b   : > { %v1086_v48 = vpop.f32.mrb[6].mxu0 }
 0x14c   : > { %v1088_v49 = vpop.f32.mrb[7].mxu0 }
 0x151   : > { %v1092_v50 = vpop.f32.mrb[8].mxu0 }
 0x152   : > { %v1094_v51 = vpop.f32.mrb[9].mxu0 }
 0x153   : > { %v1096_v52 = vpop.f32.mrb[10].mxu0 }
 0x154   : > { %v2179_v53 = vpop.f32.mrb[11].mxu0 }
 0x159   : > { %v1102_v2 = vpop.f32.mrb[12].mxu0 }
 0x15a   : > { %v1104_v5 = vpop.f32.mrb[13].mxu0 }
 0x15b   : > { %v2181_v7 = vpop.f32.mrb[14].mxu0 }
 0x15c   : > { %v2183_v9 = vpop.f32.mrb[15].mxu0 }
 0x15e   : > { %v959_v55 = vpop.f32.mrb[0].mxu1 }
 0x15f   : > { %v1073_v56 = vadd.f32 %v1072_v43, %v959_v55  ;;  %v961_v58 = vpop.f32.mrb[1].mxu1 }
 0x160   : > { %v1075_v59 = vadd.f32 %v1074_v44, %v961_v58  ;;  %v963_v61 = vpop.f32.mrb[2].mxu1 }
 0x161   : > { %v1151_v62 = vadd.f32 %v1073_v56, %v445_v54  ;;  %v1077_v63 = vadd.f32 %v1076_v45, %v963_v61  ;;  %v965_v1 = vpop.f32.mrb[3].mxu1  ;;  %v1112_v22 = vpop.f32.mrb[16].mxu0  ;;  %v458_v54 = vld [vmem:[#allocation2 + $0x68] sm:$0xff] }
 0x162   : > { %v1152_v3 = vadd.f32 %v1075_v59, %v446_v57  ;;  %v1079_v4 = vadd.f32 %v1078_v46, %v965_v1  ;;  %v1114_v25 = vpop.f32.mrb[17].mxu0  ;;  %v459_v57 = vld [vmem:[#allocation2 + $0x70] sm:$0xff] }
 0x163   : > { %1183 = vst [vmem:[#allocation2] sm:$0xff] %v1151_v62  ;;  %v1153_v6 = vadd.f32 %v1077_v63, %v447_v60  ;;  %v2185_v27 = vpop.f32.mrb[18].mxu0  ;;  %v460_v60 = vld [vmem:[#allocation2 + $0x78] sm:$0xff] }
 0x164   : > { %1184 = vst [vmem:[#allocation2 + $0x8] sm:$0xff] %v1152_v3  ;;  %v1154_v8 = vadd.f32 %v1079_v4, %v448_v0  ;;  %v2187_v29 = vpop.f32.mrb[19].mxu0 }
 0x165   : > { %1185 = vst [vmem:[#allocation2 + $0x10] sm:$0xff] %v1153_v6 }
 0x166   : > { %1186 = vst [vmem:[#allocation2 + $0x18] sm:$0xff] %v1154_v8  ;;  %v969_v11 = vpop.f32.mrb[4].mxu1 }
 0x167   : > { %v1083_v12 = vadd.f32 %v1082_v35, %v969_v11  ;;  %v971_v14 = vpop.f32.mrb[5].mxu1  ;;  %v462_v11 = vld [vmem:[#allocation2 + $0x88] sm:$0xff] }
 0x168   : > { %v1085_v15 = vadd.f32 %v1084_v47, %v971_v14  ;;  %v973_v17 = vpop.f32.mrb[6].mxu1 }
 0x169   : > { %v1155_v18 = vadd.f32 %v1083_v12, %v449_v10  ;;  %v1087_v19 = vadd.f32 %v1086_v48, %v973_v17  ;;  %v975_v21 = vpop.f32.mrb[7].mxu1  ;;  %v1122_v43 = vpop.f32.mrb[20].mxu0 }
 0x16a   : > { %v1156_v23 = vadd.f32 %v1085_v15, %v450_v13  ;;  %v1089_v24 = vadd.f32 %v1088_v49, %v975_v21  ;;  %v1124_v46 = vpop.f32.mrb[21].mxu0  ;;  %v463_v13 = vld [vmem:[#allocation2 + $0x90] sm:$0xff] }
 0x16b   : > { %1187 = vst [vmem:[#allocation2 + $0x20] sm:$0xff] %v1155_v18  ;;  %v1157_v26 = vadd.f32 %v1087_v19, %v451_v16  ;;  %v2190_v47 = vpop.f32.mrb[22].mxu0  ;;  %v464_v16 = vld [vmem:[#allocation2 + $0x98] sm:$0xff] }
 0x16c   : > { %1188 = vst [vmem:[#allocation2 + $0x28] sm:$0xff] %v1156_v23  ;;  %v1158_v28 = vadd.f32 %v1089_v24, %v452_v20  ;;  %v2192_v49 = vpop.f32.mrb[23].mxu0 }
 0x16d   : > { %1189 = vst [vmem:[#allocation2 + $0x30] sm:$0xff] %v1157_v26 }
 0x16e   : > { %1190 = vst [vmem:[#allocation2 + $0x38] sm:$0xff] %v1158_v28  ;;  %v979_v31 = vpop.f32.mrb[8].mxu1 }
 0x16f   : > { %v1093_v32 = vadd.f32 %v1092_v50, %v979_v31  ;;  %v981_v34 = vpop.f32.mrb[9].mxu1  ;;  %v457_v50 = vld [vmem:[#allocation2 + $0x60] sm:$0xff]  ;;  %v466_v31 = vld [vmem:[#allocation2 + $0xa8] sm:$0xff] }
 0x170   : > { %v1095_v36 = vadd.f32 %v1094_v51, %v981_v34  ;;  %v983_v38 = vpop.f32.mrb[10].mxu1 }
 0x171   : > { %v1159_v39 = vadd.f32 %v1093_v32, %v453_v30  ;;  %v1097_v40 = vadd.f32 %v1096_v52, %v983_v38  ;;  %v985_v42 = vpop.f32.mrb[11].mxu1  ;;  %v1132_v62 = vpop.f32.mrb[24].mxu0 }
 0x172   : > { %v1160_v44 = vadd.f32 %v1095_v36, %v454_v33  ;;  %v1099_v45 = vadd.f32 %v2179_v53, %v985_v42  ;;  %v1134_v1 = vpop.f32.mrb[25].mxu0  ;;  %v467_v33 = vld [vmem:[#allocation2 + $0xb0] sm:$0xff] }
 0x173   : > { %1191 = vst [vmem:[#allocation2 + $0x40] sm:$0xff] %v1159_v39  ;;  %v1161_v35 = vadd.f32 %v1097_v40, %v455_v37  ;;  %v1136_v4 = vpop.f32.mrb[26].mxu0  ;;  %v468_v37 = vld [vmem:[#allocation2 + $0xb8] sm:$0xff] }
 0x174   : > { %1192 = vst [vmem:[#allocation2 + $0x48] sm:$0xff] %v1160_v44  ;;  %v1162_v48 = vadd.f32 %v1099_v45, %v456_v41  ;;  %v1138_v6 = vpop.f32.mrb[27].mxu0 }
 0x175   : > { %1193 = vst [vmem:[#allocation2 + $0x50] sm:$0xff] %v1161_v35 }
 0x176   : > { %1194 = vst [vmem:[#allocation2 + $0x58] sm:$0xff] %v1162_v48  ;;  %v989_v51 = vpop.f32.mrb[12].mxu1 }
 0x177   : > { %v1103_v52 = vadd.f32 %v1102_v2, %v989_v51  ;;  %v991_v55 = vpop.f32.mrb[13].mxu1 }
 0x178   : > { %v1105_v56 = vadd.f32 %v1104_v5, %v991_v55  ;;  %v993_v58 = vpop.f32.mrb[14].mxu1  ;;  %v461_v5 = vld [vmem:[#allocation2 + $0x80] sm:$0xff] }
 0x179   : > { %v1163_v53 = vadd.f32 %v1103_v52, %v457_v50  ;;  %v1107_v59 = vadd.f32 %v2181_v7, %v993_v58  ;;  %v995_v61 = vpop.f32.mrb[15].mxu1  ;;  %v1142_v18 = vpop.f32.mrb[28].mxu0  ;;  %v471_v50 = vld [vmem:[#allocation2 + $0xd0] sm:$0xff] }
 0x17a   : > { %v1164_v63 = vadd.f32 %v1105_v56, %v458_v54  ;;  %v1109_v0 = vadd.f32 %v2183_v9, %v995_v61  ;;  %v1144_v21 = vpop.f32.mrb[29].mxu0  ;;  %v472_v54 = vld [vmem:[#allocation2 + $0xd8] sm:$0xff]  ;;  %v474_v61 = vld [vmem:[#allocation2 + $0xe8] sm:$0xff] }
 0x17b   : > { %1195 = vst [vmem:[#allocation2 + $0x60] sm:$0xff] %v1163_v53  ;;  %v1165_v3 = vadd.f32 %v1107_v59, %v459_v57  ;;  %v1146_v24 = vpop.f32.mrb[30].mxu0  ;;  %v473_v53 = vld [vmem:[#allocation2 + $0xe0] sm:$0xff] }
 0x17c   : > { %1196 = vst [vmem:[#allocation2 + $0x68] sm:$0xff] %v1164_v63  ;;  %v1166_v2 = vadd.f32 %v1109_v0, %v460_v60  ;;  %v1148_v26 = vpop.f32.mrb[31].mxu0  ;;  %v475_v0 = vld [vmem:[#allocation2 + $0xf0] sm:$0xff] }
 0x17d   : > { %1197 = vst [vmem:[#allocation2 + $0x70] sm:$0xff] %v1165_v3 }
 0x17e   : > { %1198 = vst [vmem:[#allocation2 + $0x78] sm:$0xff] %v1166_v2  ;;  %v999_v8 = vpop.f32.mrb[16].mxu1  ;;  %v476_v2 = vld [vmem:[#allocation2 + $0xf8] sm:$0xff] }
 0x17f   : > { %v1113_v10 = vadd.f32 %v1112_v22, %v999_v8  ;;  %v1001_v7 = vpop.f32.mrb[17].mxu1 }
 0x180   : > { %v1115_v12 = vadd.f32 %v1114_v25, %v1001_v7  ;;  %v1003_v14 = vpop.f32.mrb[18].mxu1  ;;  %v465_v25 = vld [vmem:[#allocation2 + $0xa0] sm:$0xff]  ;;  %v1253_v7 = vlaneseq (!%p1668_p13) }
 0x181   : > { %v1167_v15 = vadd.f32 %v1113_v10, %v461_v5  ;;  %v1117_v9 = vadd.f32 %v2185_v27, %v1003_v14  ;;  %v1005_v17 = vpop.f32.mrb[19].mxu1  ;;  %v1295_v14 = vld [vmem:[%s2335_s3] sm:$0x3] (!%p1668_p13) }
 0x182   : > { %v1168_v19 = vadd.f32 %v1115_v12, %v462_v11  ;;  %v1119_v20 = vadd.f32 %v2187_v29, %v1005_v17  ;;  %v1254_v12 = vshrl.u32 (!%p1668_p13), %v1253_v7, 7 }
 0x183   : > { %1199 = vst [vmem:[#allocation2 + $0x80] sm:$0xff] %v1167_v15  ;;  %v1169_v23 = vadd.f32 %v1117_v9, %v463_v13  ;;  %v1251_v13 = vld [vmem:[%s2334_s2] sm:$0x3] (!%p1668_p13) }
 0x184   : > { %1200 = vst [vmem:[#allocation2 + $0x88] sm:$0xff] %v1168_v19  ;;  %v1170_v22 = vadd.f32 %v1119_v20, %v464_v16  ;;  %v1219_v15 = vld [vmem:[#allocation2] sm:$0xff] (!%p1668_p13)  ;;  %v1255_v9 = vsub.s32 (!%p1668_p13), 0, %v1254_v12  ;;  %v1220_v16 = vld [vmem:[#allocation2 + $0x8] sm:$0xff] (!%p1668_p13)  ;;  %v1259_v17 = vsub.s32 (!%p1668_p13), 1, %v1254_v12  ;;  %v1222_v19 = vld [vmem:[#allocation2 + $0x18] sm:$0xff] (!%p1668_p13) }
 0x185   : > { %1201 = vst [vmem:[#allocation2 + $0x90] sm:$0xff] %v1169_v23  ;;  %v1223_v20 = vld [vmem:[#allocation2 + $0x20] sm:$0xff] (!%p1668_p13) }
 0x186   : > { %1202 = vst [vmem:[#allocation2 + $0x98] sm:$0xff] %v1170_v22  ;;  %v1009_v28 = vpop.f32.mrb[20].mxu1  ;;  %v2209_v23 = vrot.slane (!%p1668_p13), %v1295_v14, %v1255_v9  ;;  %v2213_v22 = vrot.slane (!%p1668_p13), %v1295_v14, %v1259_v17 }
 0x187   : > { %v1123_v30 = vadd.f32 %v1122_v43, %v1009_v28  ;;  %v1011_v27 = vpop.f32.mrb[21].mxu1  ;;  %v469_v43 = vld [vmem:[#allocation2 + $0xc0] sm:$0xff]  ;;  %v1226_v28 = vld [vmem:[#allocation2 + $0x38] sm:$0xff] (!%p1668_p13) }
 0x188   : > { %v1125_v32 = vadd.f32 %v1124_v46, %v1011_v27  ;;  %v1013_v34 = vpop.f32.mrb[22].mxu1  ;;  %v470_v46 = vld [vmem:[#allocation2 + $0xc8] sm:$0xff] }
 0x189   : > { %v1171_v36 = vadd.f32 %v1123_v30, %v465_v25  ;;  %v1127_v29 = vadd.f32 %v2190_v47, %v1013_v34  ;;  %v1015_v38 = vpop.f32.mrb[23].mxu1  ;;  %v1225_v25 = vld [vmem:[#allocation2 + $0x30] sm:$0xff] (!%p1668_p13) }
 0x18a   : > { %v1172_v39 = vadd.f32 %v1125_v32, %v466_v31  ;;  %v1129_v40 = vadd.f32 %v2192_v49, %v1015_v38 }
 0x18b   : > { %1203 = vst [vmem:[#allocation2 + $0xa0] sm:$0xff] %v1171_v36  ;;  %v1173_v41 = vadd.f32 %v1127_v29, %v467_v33 }
 0x18c   : > { %1204 = vst [vmem:[#allocation2 + $0xa8] sm:$0xff] %v1172_v39  ;;  %v1174_v42 = vadd.f32 %v1129_v40, %v468_v37  ;;  %v1237_v7 = vld [vmem:[#allocation2 + $0x90] sm:$0xff] (!%p1668_p13) }
 0x18d   : > { %1205 = vst [vmem:[#allocation2 + $0xb0] sm:$0xff] %v1173_v41  ;;  %v1227_v41 = vld [vmem:[#allocation2 + $0x40] sm:$0xff] (!%p1668_p13) }
 0x18e   : > { %1206 = vst [vmem:[#allocation2 + $0xb8] sm:$0xff] %v1174_v42  ;;  %v1019_v44 = vpop.f32.mrb[24].mxu1  ;;  %v1228_v42 = vld [vmem:[#allocation2 + $0x48] sm:$0xff] (!%p1668_p13) }
 0x18f   : > { %v1133_v45 = vadd.f32 %v1132_v62, %v1019_v44  ;;  %v1021_v35 = vpop.f32.mrb[25].mxu1 }
 0x190   : > { %v1135_v48 = vadd.f32 %v1134_v1, %v1021_v35  ;;  %v1023_v51 = vpop.f32.mrb[26].mxu1 }
 0x191   : > { %v1175_v47 = vadd.f32 %v1133_v45, %v469_v43  ;;  %v1137_v52 = vadd.f32 %v1136_v4, %v1023_v51  ;;  %v1025_v55 = vpop.f32.mrb[27].mxu1  ;;  %v1229_v43 = vld [vmem:[#allocation2 + $0x50] sm:$0xff] (!%p1668_p13)  ;;  %v1232_v51 = vld [vmem:[#allocation2 + $0x68] sm:$0xff] (!%p1668_p13) }
 0x192   : > { %v1176_v56 = vadd.f32 %v1135_v48, %v470_v46  ;;  %v1139_v49 = vadd.f32 %v1138_v6, %v1025_v55  ;;  %v1230_v48 = vld [vmem:[#allocation2 + $0x58] sm:$0xff] (!%p1668_p13) }
 0x193   : > { %1207 = vst [vmem:[#allocation2 + $0xc0] sm:$0xff] %v1175_v47  ;;  %v1177_v57 = vadd.f32 %v1137_v52, %v471_v50  ;;  %v1231_v50 = vld [vmem:[#allocation2 + $0x60] sm:$0xff] (!%p1668_p13) }
 0x194   : > { %1208 = vst [vmem:[#allocation2 + $0xc8] sm:$0xff] %v1176_v56  ;;  %v1178_v58 = vadd.f32 %v1139_v49, %v472_v54  ;;  %v1233_v56 = vld [vmem:[#allocation2 + $0x70] sm:$0xff] (!%p1668_p13)  ;;  %v1234_v49 = vld [vmem:[#allocation2 + $0x78] sm:$0xff] (!%p1668_p13) }
 0x195   : > { %1209 = vst [vmem:[#allocation2 + $0xd0] sm:$0xff] %v1177_v57 }
 0x196   : > { %1210 = vst [vmem:[#allocation2 + $0xd8] sm:$0xff] %v1178_v58  ;;  %v1029_v59 = vpop.f32.mrb[28].mxu1 }
 0x197   : > { %v1143_v60 = vadd.f32 %v1142_v18, %v1029_v59  ;;  %v1031_v62 = vpop.f32.mrb[29].mxu1  ;;  %v1221_v18 = vld [vmem:[#allocation2 + $0x10] sm:$0xff] (!%p1668_p13) }
 0x198   : > { %v1145_v63 = vadd.f32 %v1144_v21, %v1031_v62  ;;  %v1033_v1 = vpop.f32.mrb[30].mxu1  ;;  %1218 = sbr.rel (%p1668_p13) target bundleno = 442 (0x1ba), region = 70  ;;  %v2207_v21 = vrot.slane (!%p1668_p13), %v1251_v13, %v1255_v9  ;;  %v1238_v9 = vld [vmem:[#allocation2 + $0x98] sm:$0xff] (!%p1668_p13) }
 0x199   : > { %v1179_v3 = vadd.f32 %v1143_v60, %v473_v53  ;;  %v1147_v4 = vadd.f32 %v1146_v24, %v1033_v1  ;;  %v1035_v5 = vpop.f32.mrb[31].mxu1  ;;  %v2211_v24 = vrot.slane (!%p1668_p13), %v1251_v13, %v1259_v17  ;;  %v1240_v17 = vld [vmem:[#allocation2 + $0xa8] sm:$0xff] (!%p1668_p13) }
 0x19a   : > { %v1180_v8 = vadd.f32 %v1145_v63, %v474_v61  ;;  %v1149_v6 = vadd.f32 %v1148_v26, %v1035_v5  ;;  %v1224_v26 = vld [vmem:[#allocation2 + $0x28] sm:$0xff] (!%p1668_p13)  ;;  %v1263_v30 = vmul.f32 (!%p1668_p13), %v2207_v21, %v1219_v15  ;;  %v1265_v27 = vmul.f32 (!%p1668_p13), %v2207_v21, %v1221_v18 }
 0x19b   : > { %1211 = vst [vmem:[#allocation2 + $0xe0] sm:$0xff] %v1179_v3  ;;  %v1181_v10 = vadd.f32 %v1147_v4, %v475_v0  ;;  %v1264_v31 = vmul.f32 (!%p1668_p13), %v2211_v24, %v1220_v16  ;;  %v1266_v32 = vmul.f32 (!%p1668_p13), %v2211_v24, %v1222_v19  ;;  %v1267_v33 = vmul.f32 (!%p1668_p13), %v2207_v21, %v1223_v20  ;;  %v1239_v16 = vld [vmem:[#allocation2 + $0xa0] sm:$0xff] (!%p1668_p13) }
 0x19c   : > { %1212 = vst [vmem:[#allocation2 + $0xe8] sm:$0xff] %v1180_v8  ;;  %v1182_v11 = vadd.f32 %v1149_v6, %v476_v2  ;;  %v1268_v34 = vmul.f32 (!%p1668_p13), %v2211_v24, %v1224_v26  ;;  %v1269_v36 = vmul.f32 (!%p1668_p13), %v2207_v21, %v1225_v25  ;;  %v1270_v29 = vmul.f32 (!%p1668_p13), %v2211_v24, %v1226_v28  ;;  %v1241_v25 = vld [vmem:[#allocation2 + $0xb0] sm:$0xff] (!%p1668_p13)  ;;  %v1242_v28 = vld [vmem:[#allocation2 + $0xb8] sm:$0xff] (!%p1668_p13) }
 0x19d   : > { %1213 = vst [vmem:[#allocation2 + $0xf0] sm:$0xff] %v1181_v10  ;;  %v1307_v37 = vadd.f32 (!%p1668_p13), %v2209_v23, %v1263_v30  ;;  %v1308_v38 = vadd.f32 (!%p1668_p13), %v2213_v22, %v1264_v31  ;;  %v1309_v39 = vadd.f32 (!%p1668_p13), %v2209_v23, %v1265_v27  ;;  %v1310_v40 = vadd.f32 (!%p1668_p13), %v2213_v22, %v1266_v32  ;;  %v1235_v10 = vld [vmem:[#allocation2 + $0x80] sm:$0xff] (!%p1668_p13) }
 0x19e   : > { %1214 = vst [vmem:[#allocation2 + $0xf8] sm:$0xff] %v1182_v11  ;;  %v1311_v44 = vadd.f32 (!%p1668_p13), %v2209_v23, %v1267_v33  ;;  %v1312_v45 = vadd.f32 (!%p1668_p13), %v2213_v22, %v1268_v34  ;;  %v1313_v46 = vadd.f32 (!%p1668_p13), %v2209_v23, %v1269_v36  ;;  %v1314_v35 = vadd.f32 (!%p1668_p13), %v2213_v22, %v1270_v29  ;;  %v1236_v11 = vld [vmem:[#allocation2 + $0x88] sm:$0xff] (!%p1668_p13) }
 0x19f   : > { %v1339_v47 = vmax.f32 %v1307_v37, 0.0  ;;  %v1340_v52 = vmax.f32 %v1308_v38, 0.0  ;;  %v1341_v54 = vmax.f32 %v1309_v39, 0.0  ;;  %v1342_v55 = vmax.f32 %v1310_v40, 0.0 }
 0x1a0   : > { %v1343_v57 = vmax.f32 %v1311_v44, 0.0  ;;  %v1344_v58 = vmax.f32 %v1312_v45, 0.0  ;;  %v1345_v53 = vmax.f32 %v1313_v46, 0.0  ;;  %v1346_v59 = vmax.f32 %v1314_v35, 0.0  ;;  %v1243_v45 = vld [vmem:[#allocation2 + $0xc0] sm:$0xff]  ;;  %v1244_v46 = vld [vmem:[#allocation2 + $0xc8] sm:$0xff] }
 0x1a1   : > { %1371 = vst [vmem:[%s2094_s8] sm:$0xff] %v1339_v47  ;;  %1372 = vst [vmem:[%s2094_s8 + $0x8] sm:$0xff] %v1340_v52  ;;  %v1271_v60 = vmul.f32 %v2207_v21, %v1227_v41  ;;  %v1272_v61 = vmul.f32 %v2211_v24, %v1228_v42  ;;  %v1273_v62 = vmul.f32 %v2207_v21, %v1229_v43  ;;  %v1245_v35 = vld [vmem:[#allocation2 + $0xd0] sm:$0xff]  ;;  %v1246_v52 = vld [vmem:[#allocation2 + $0xd8] sm:$0xff] }
 0x1a2   : > { %1373 = vst [vmem:[%s2094_s8 + $0x10] sm:$0xff] %v1341_v54  ;;  %1374 = vst [vmem:[%s2094_s8 + $0x18] sm:$0xff] %v1342_v55  ;;  %v1274_v63 = vmul.f32 %v2211_v24, %v1230_v48  ;;  %v1275_v0 = vmul.f32 %v2207_v21, %v1231_v50  ;;  %v1276_v1 = vmul.f32 %v2211_v24, %v1232_v51  ;;  %v1247_v54 = vld [vmem:[#allocation2 + $0xe0] sm:$0xff] }
 0x1a3   : > { %1375 = vst [vmem:[%s2094_s8 + $0x20] sm:$0xff] %v1343_v57  ;;  %1376 = vst [vmem:[%s2094_s8 + $0x28] sm:$0xff] %v1344_v58  ;;  %v1277_v3 = vmul.f32 %v2207_v21, %v1233_v56  ;;  %v1278_v4 = vmul.f32 %v2211_v24, %v1234_v49  ;;  %v1315_v2 = vadd.f32 %v2209_v23, %v1271_v60  ;;  %v1248_v55 = vld [vmem:[#allocation2 + $0xe8] sm:$0xff] }
 0x1a4   : > { %1377 = vst [vmem:[%s2094_s8 + $0x30] sm:$0xff] %v1345_v53  ;;  %1378 = vst [vmem:[%s2094_s8 + $0x38] sm:$0xff] %v1346_v59  ;;  %v1316_v5 = vadd.f32 %v2213_v22, %v1272_v61  ;;  %v1317_v8 = vadd.f32 %v2209_v23, %v1273_v62  ;;  %v1318_v6 = vadd.f32 %v2213_v22, %v1274_v63  ;;  %v1249_v53 = vld [vmem:[#allocation2 + $0xf0] sm:$0xff] }
 0x1a5   : > { %v1319_v12 = vadd.f32 %v2209_v23, %v1275_v0  ;;  %v1320_v13 = vadd.f32 %v2213_v22, %v1276_v1  ;;  %v1321_v14 = vadd.f32 %v2209_v23, %v1277_v3  ;;  %v1322_v15 = vadd.f32 %v2213_v22, %v1278_v4  ;;  %v1250_v59 = vld [vmem:[#allocation2 + $0xf8] sm:$0xff] }
 0x1a6   : > { %v1347_v18 = vmax.f32 %v1315_v2, 0.0  ;;  %v1348_v19 = vmax.f32 %v1316_v5, 0.0  ;;  %v1349_v20 = vmax.f32 %v1317_v8, 0.0  ;;  %v1350_v26 = vmax.f32 %v1318_v6, 0.0 }
 0x1a7   : > { %v1351_v30 = vmax.f32 %v1319_v12, 0.0  ;;  %v1352_v31 = vmax.f32 %v1320_v13, 0.0  ;;  %v1353_v27 = vmax.f32 %v1321_v14, 0.0  ;;  %v1354_v32 = vmax.f32 %v1322_v15, 0.0 }
 0x1a8   : > { %1379 = vst [vmem:[%s2094_s8 + $0x40] sm:$0xff] %v1347_v18  ;;  %1380 = vst [vmem:[%s2094_s8 + $0x48] sm:$0xff] %v1348_v19  ;;  %v1279_v33 = vmul.f32 %v2207_v21, %v1235_v10  ;;  %v1280_v34 = vmul.f32 %v2211_v24, %v1236_v11  ;;  %v1281_v36 = vmul.f32 %v2207_v21, %v1237_v7 }
 0x1a9   : > { %1381 = vst [vmem:[%s2094_s8 + $0x50] sm:$0xff] %v1349_v20  ;;  %1382 = vst [vmem:[%s2094_s8 + $0x58] sm:$0xff] %v1350_v26  ;;  %v1282_v29 = vmul.f32 %v2211_v24, %v1238_v9  ;;  %v1283_v37 = vmul.f32 %v2207_v21, %v1239_v16  ;;  %v1284_v38 = vmul.f32 %v2211_v24, %v1240_v17 }
 0x1aa   : > { %1383 = vst [vmem:[%s2094_s8 + $0x60] sm:$0xff] %v1351_v30  ;;  %1384 = vst [vmem:[%s2094_s8 + $0x68] sm:$0xff] %v1352_v31  ;;  %v1285_v39 = vmul.f32 %v2207_v21, %v1241_v25  ;;  %v1286_v40 = vmul.f32 %v2211_v24, %v1242_v28  ;;  %v1323_v41 = vadd.f32 %v2209_v23, %v1279_v33 }
 0x1ab   : > { %1385 = vst [vmem:[%s2094_s8 + $0x70] sm:$0xff] %v1353_v27  ;;  %1386 = vst [vmem:[%s2094_s8 + $0x78] sm:$0xff] %v1354_v32  ;;  %v1324_v42 = vadd.f32 %v2213_v22, %v1280_v34  ;;  %v1325_v43 = vadd.f32 %v2209_v23, %v1281_v36  ;;  %v1326_v44 = vadd.f32 %v2213_v22, %v1282_v29 }
 0x1ac   : > { %v1327_v48 = vadd.f32 %v2209_v23, %v1283_v37  ;;  %v1328_v50 = vadd.f32 %v2213_v22, %v1284_v38  ;;  %v1329_v51 = vadd.f32 %v2209_v23, %v1285_v39  ;;  %v1330_v47 = vadd.f32 %v2213_v22, %v1286_v40 }
 0x1ad   : > { %v1355_v56 = vmax.f32 %v1323_v41, 0.0  ;;  %v1356_v49 = vmax.f32 %v1324_v42, 0.0  ;;  %v1357_v57 = vmax.f32 %v1325_v43, 0.0  ;;  %v1358_v58 = vmax.f32 %v1326_v44, 0.0 }
 0x1ae   : > { %v1359_v60 = vmax.f32 %v1327_v48, 0.0  ;;  %v1360_v61 = vmax.f32 %v1328_v50, 0.0  ;;  %v1361_v62 = vmax.f32 %v1329_v51, 0.0  ;;  %v1362_v63 = vmax.f32 %v1330_v47, 0.0 }
 0x1af   : > { %1387 = vst [vmem:[%s2094_s8 + $0x80] sm:$0xff] %v1355_v56  ;;  %1388 = vst [vmem:[%s2094_s8 + $0x88] sm:$0xff] %v1356_v49  ;;  %v1287_v0 = vmul.f32 %v2207_v21, %v1243_v45  ;;  %v1288_v1 = vmul.f32 %v2211_v24, %v1244_v46  ;;  %v1289_v3 = vmul.f32 %v2207_v21, %v1245_v35 }
 0x1b0   : > { %1389 = vst [vmem:[%s2094_s8 + $0x90] sm:$0xff] %v1357_v57  ;;  %1390 = vst [vmem:[%s2094_s8 + $0x98] sm:$0xff] %v1358_v58  ;;  %v1290_v4 = vmul.f32 %v2211_v24, %v1246_v52  ;;  %v1291_v2 = vmul.f32 %v2207_v21, %v1247_v54  ;;  %v1292_v5 = vmul.f32 %v2211_v24, %v1248_v55 }
 0x1b1   : > { %1391 = vst [vmem:[%s2094_s8 + $0xa0] sm:$0xff] %v1359_v60  ;;  %1392 = vst [vmem:[%s2094_s8 + $0xa8] sm:$0xff] %v1360_v61  ;;  %v1293_v8 = vmul.f32 %v2207_v21, %v1249_v53  ;;  %v1294_v6 = vmul.f32 %v2211_v24, %v1250_v59  ;;  %v1331_v10 = vadd.f32 %v2209_v23, %v1287_v0 }
 0x1b2   : > { %1393 = vst [vmem:[%s2094_s8 + $0xb0] sm:$0xff] %v1361_v62  ;;  %1394 = vst [vmem:[%s2094_s8 + $0xb8] sm:$0xff] %v1362_v63  ;;  %v1332_v11 = vadd.f32 %v2213_v22, %v1288_v1  ;;  %v1333_v7 = vadd.f32 %v2209_v23, %v1289_v3  ;;  %v1334_v12 = vadd.f32 %v2213_v22, %v1290_v4 }
 0x1b3   : > { %v1335_v13 = vadd.f32 %v2209_v23, %v1291_v2  ;;  %v1336_v14 = vadd.f32 %v2213_v22, %v1292_v5  ;;  %v1337_v21 = vadd.f32 %v2209_v23, %v1293_v8  ;;  %v1338_v24 = vadd.f32 %v2213_v22, %v1294_v6 }
 0x1b4   : > { %v1363_v15 = vmax.f32 %v1331_v10, 0.0  ;;  %v1364_v9 = vmax.f32 %v1332_v11, 0.0  ;;  %v1365_v16 = vmax.f32 %v1333_v7, 0.0  ;;  %v1366_v17 = vmax.f32 %v1334_v12, 0.0 }
 0x1b5   : > { %v1367_v18 = vmax.f32 %v1335_v13, 0.0  ;;  %v1368_v19 = vmax.f32 %v1336_v14, 0.0  ;;  %v1369_v20 = vmax.f32 %v1337_v21, 0.0  ;;  %v1370_v26 = vmax.f32 %v1338_v24, 0.0 }
 0x1b6   : > { %1395 = vst [vmem:[%s2094_s8 + $0xc0] sm:$0xff] %v1363_v15  ;;  %1396 = vst [vmem:[%s2094_s8 + $0xc8] sm:$0xff] %v1364_v9 }
 0x1b7   : > { %1397 = vst [vmem:[%s2094_s8 + $0xd0] sm:$0xff] %v1365_v16  ;;  %1398 = vst [vmem:[%s2094_s8 + $0xd8] sm:$0xff] %v1366_v17 }
 0x1b8   : > { %1399 = vst [vmem:[%s2094_s8 + $0xe0] sm:$0xff] %v1367_v18  ;;  %1400 = vst [vmem:[%s2094_s8 + $0xe8] sm:$0xff] %v1368_v19 }
 0x1b9   : > { %1401 = vst [vmem:[%s2094_s8 + $0xf0] sm:$0xff] %v1369_v20  ;;  %1402 = vst [vmem:[%s2094_s8 + $0xf8] sm:$0xff] %v1370_v26 }
 0x1ba PF: > { %s14_s21 = sadd.s32 1, %s1924_s21   ;;  %s2337_s15 = smov %s1904_s16 }
 0x1bb   : > { %p11_p0 = scmp.ge.s32.totalorder %s14_s21, 11   ;;  %s2338_s16 = smov %s2004_s28 }
 0x1bc   : > { %s2339_s17 = smov %s1916_s19  ;;  %s2340_s18 = smov %s1920_s20 }
 0x1bd   : > { %s2341_s19 = smov %s2344_s22  ;;  %s2342_s20 = smov %s2348_s23 }
 0x1be   :  { %13 = sbr.rel (!%p11_p0) target bundleno = 4 (0x4), region = 120 }

// kernel: fwd.21
= control target key start
LH: loop header
LB: loop body
LE: loop exit
PB: predicated region body
PF: predicated region fallthrough
CT: control target
= control target key end

     0   :  { %s2099_s15 = smov 0   ;;  %s2101_s16 = smov 0   ;;  %s2473_s0 = inlined_call_operand.vmem [shape: bf16[384,2048], index: 0, kind: input, shape index: {}]   ;;  %s2474_s1 = inlined_call_operand.vmem [shape: bf16[2048,256], index: 1, kind: input, shape index: {}]   ;;  %s2475_s2 = inlined_call_operand.vmem [shape: f32[1,256], index: 2, kind: input, shape index: {}]   ;;  %s2476_s3 = inlined_call_operand.vmem [shape: f32[1,256], index: 3, kind: input, shape index: {}]   ;;  %s2477_s4 = inlined_call_operand.vmem [shape: f32[384,256], index: 4, kind: output, shape index: {}]  }
   0x1   :  { %s2103_s17 = smov 0   ;;  %s2105_s18 = smov 0  }
   0x2   :  { %s2107_s19 = smov 0   ;;  %s2109_s20 = smov 0  }
   0x3   :  { %s2111_s21 = smov 0  }
   0x4 LB: > { %s26_s22 = sadd.s32 1, %s2063_s19  ;;  %s33_s23 = sadd.s32 1, %s2067_s20  ;;  %s2071_s21 = sphi %s2111_s21, %s14_s21   ;;  %s2067_s20 = sphi %s2109_s20, %s2483_s20   ;;  %s2063_s19 = sphi %s2107_s19, %s2482_s19   ;;  %s2059_s18 = sphi %s2105_s18, %s2481_s18   ;;  %s2055_s17 = sphi %s2103_s17, %s2480_s17   ;;  %s2051_s16 = sphi %s2101_s16, %s2479_s16   ;;  %s2047_s15 = sphi %s2099_s15, %s2478_s15  }
   0x5   : > { %p27_p0 = scmp.ge.s32.totalorder %s26_s22, 4  ;;  %p49_p1 = scmp.ne.s32.totalorder %s2051_s16, %s2047_s15 }
   0x6   : > { %p50_p2 = scmp.eq.s32.totalorder %s2071_s21, 0  ;;  %s42_s27 = sadd.s32 1, %s2051_s16 }
   0x7   : > { %s2485_s22 = smov (%p27_p0, %s26_s22), 0  ;;  %s2487_s23 = smov (!%p27_p0, %s33_s23), %s2067_s20 }
   0x8   : > { %p51_p3 = por %p50_p2, %p49_p1  ;;  %p35_p4 = scmp.ge.s32.totalorder %s2487_s23, 3 }
   0x9   : > { %s38_s24 = ssub.s32 %s2063_s19, %s2485_s22  ;;  %p1667_p6 = scmp.ge.s32.totalorder %s2071_s21, 12 }
   0xa   : > { %s2489_s23 = smov (%p35_p4, %s2487_s23), 0 }
   0xb   : > { %s37_s25 = ssub.s32 %s2067_s20, %s2489_s23  ;;  %199 = sbr.rel (%p1667_p6) target bundleno = 41 (0x29), region = 24 }
   0xc   : > { %s39_s26 = sor.u32 %s38_s24, %s37_s25 }
   0xd   : > { %p40_p5 = scmp.eq.s32.totalorder %s39_s26, 0 }
   0xf   : > { %s2150_s28 = scalar_select %p40_p5, %s2051_s16, %s42_s27  }
  0x12   : > { %202 = sbr.rel (!%p51_p3) target bundleno = 41 (0x29), region = 28  ;;  %s204_s29 = sand.u32 (%p51_p3), 1, %s2051_s16  }
  0x13   : > { %s1670_s30 = sshll.u32 (%p51_p3), %s2063_s19, 2  ;;  %s1668_s5 = sshll.u32 (%p51_p3), %s204_s29, 8 }
  0x14   : > { %s1781_s6 = sshll.u32 (%p51_p3), %s2067_s20, 8  ;;  %s2164_s12 = scalar_lea.vmem (%p51_p3), [#allocation3], %s1668_s5 }
  0x15   : > { %s210_s7 = sadd.s32 (%p51_p3), %s1781_s6, %s1670_s30 }
  0x16   : > { %s1672_s8 = sshll.u32 (%p51_p3), %s210_s7, 2 }
  0x17   : > { %s2159_s11 = scalar_lea.vmem (%p51_p3), %s2473_s0, %s1672_s8 }
  0x18   : > { %v225_v0 = vld [vmem:[%s2159_s11] sm:$0xff] (%p51_p3)  ;;  %v227_v1 = vld [vmem:[%s2159_s11 + $0x8] sm:$0xff] (%p51_p3) }
  0x19   : > { %v229_v2 = vld [vmem:[%s2159_s11 + $0x40] sm:$0xff]  ;;  %226 = vst [vmem:[%s2164_s12] sm:$0xff] %v225_v0  ;;  %228 = vst [vmem:[%s2164_s12 + $0x8] sm:$0xff] %v227_v1  ;;  %v231_v3 = vld [vmem:[%s2159_s11 + $0x48] sm:$0xff] }
  0x1a   : > { %230 = vst [vmem:[%s2164_s12 + $0x10] sm:$0xff] %v229_v2  ;;  %v233_v4 = vld [vmem:[%s2159_s11 + $0x80] sm:$0xff]  ;;  %v235_v5 = vld [vmem:[%s2159_s11 + $0x88] sm:$0xff]  ;;  %232 = vst [vmem:[%s2164_s12 + $0x18] sm:$0xff] %v231_v3 }
  0x1b   : > { %234 = vst [vmem:[%s2164_s12 + $0x20] sm:$0xff] %v233_v4  ;;  %236 = vst [vmem:[%s2164_s12 + $0x28] sm:$0xff] %v235_v5  ;;  %v237_v6 = vld [vmem:[%s2159_s11 + $0xc0] sm:$0xff]  ;;  %v239_v7 = vld [vmem:[%s2159_s11 + $0xc8] sm:$0xff] }
  0x1c   : > { %v241_v8 = vld [vmem:[%s2159_s11 + $0x100] sm:$0xff]  ;;  %238 = vst [vmem:[%s2164_s12 + $0x30] sm:$0xff] %v237_v6  ;;  %240 = vst [vmem:[%s2164_s12 + $0x38] sm:$0xff] %v239_v7  ;;  %v243_v9 = vld [vmem:[%s2159_s11 + $0x108] sm:$0xff] }
  0x1d   : > { %242 = vst [vmem:[%s2164_s12 + $0x40] sm:$0xff] %v241_v8  ;;  %v245_v10 = vld [vmem:[%s2159_s11 + $0x140] sm:$0xff]  ;;  %v247_v11 = vld [vmem:[%s2159_s11 + $0x148] sm:$0xff]  ;;  %244 = vst [vmem:[%s2164_s12 + $0x48] sm:$0xff] %v243_v9 }
  0x1e   : > { %246 = vst [vmem:[%s2164_s12 + $0x50] sm:$0xff] %v245_v10  ;;  %248 = vst [vmem:[%s2164_s12 + $0x58] sm:$0xff] %v247_v11  ;;  %v249_v12 = vld [vmem:[%s2159_s11 + $0x180] sm:$0xff]  ;;  %v251_v13 = vld [vmem:[%s2159_s11 + $0x188] sm:$0xff] }
  0x1f   : > { %v253_v14 = vld [vmem:[%s2159_s11 + $0x1c0] sm:$0xff]  ;;  %250 = vst [vmem:[%s2164_s12 + $0x60] sm:$0xff] %v249_v12  ;;  %252 = vst [vmem:[%s2164_s12 + $0x68] sm:$0xff] %v251_v13  ;;  %v255_v15 = vld [vmem:[%s2159_s11 + $0x1c8] sm:$0xff] }
  0x20   : > { %254 = vst [vmem:[%s2164_s12 + $0x70] sm:$0xff] %v253_v14  ;;  %v257_v16 = vld [vmem:[%s2159_s11 + $0x200] sm:$0xff]  ;;  %v259_v17 = vld [vmem:[%s2159_s11 + $0x208] sm:$0xff]  ;;  %256 = vst [vmem:[%s2164_s12 + $0x78] sm:$0xff] %v255_v15 }
  0x21   : > { %258 = vst [vmem:[%s2164_s12 + $0x80] sm:$0xff] %v257_v16  ;;  %260 = vst [vmem:[%s2164_s12 + $0x88] sm:$0xff] %v259_v17  ;;  %v261_v18 = vld [vmem:[%s2159_s11 + $0x240] sm:$0xff]  ;;  %v263_v19 = vld [vmem:[%s2159_s11 + $0x248] sm:$0xff] }
  0x22   : > { %v265_v20 = vld [vmem:[%s2159_s11 + $0x280] sm:$0xff]  ;;  %262 = vst [vmem:[%s2164_s12 + $0x90] sm:$0xff] %v261_v18  ;;  %264 = vst [vmem:[%s2164_s12 + $0x98] sm:$0xff] %v263_v19  ;;  %v267_v21 = vld [vmem:[%s2159_s11 + $0x288] sm:$0xff] }
  0x23   : > { %266 = vst [vmem:[%s2164_s12 + $0xa0] sm:$0xff] %v265_v20  ;;  %v269_v22 = vld [vmem:[%s2159_s11 + $0x2c0] sm:$0xff]  ;;  %v271_v23 = vld [vmem:[%s2159_s11 + $0x2c8] sm:$0xff]  ;;  %268 = vst [vmem:[%s2164_s12 + $0xa8] sm:$0xff] %v267_v21 }
  0x24   : > { %270 = vst [vmem:[%s2164_s12 + $0xb0] sm:$0xff] %v269_v22  ;;  %272 = vst [vmem:[%s2164_s12 + $0xb8] sm:$0xff] %v271_v23  ;;  %v273_v24 = vld [vmem:[%s2159_s11 + $0x300] sm:$0xff]  ;;  %v275_v25 = vld [vmem:[%s2159_s11 + $0x308] sm:$0xff] }
  0x25   : > { %v277_v26 = vld [vmem:[%s2159_s11 + $0x340] sm:$0xff]  ;;  %274 = vst [vmem:[%s2164_s12 + $0xc0] sm:$0xff] %v273_v24  ;;  %276 = vst [vmem:[%s2164_s12 + $0xc8] sm:$0xff] %v275_v25  ;;  %v279_v27 = vld [vmem:[%s2159_s11 + $0x348] sm:$0xff] }
  0x26   : > { %278 = vst [vmem:[%s2164_s12 + $0xd0] sm:$0xff] %v277_v26  ;;  %v281_v28 = vld [vmem:[%s2159_s11 + $0x380] sm:$0xff]  ;;  %v283_v29 = vld [vmem:[%s2159_s11 + $0x388] sm:$0xff]  ;;  %280 = vst [vmem:[%s2164_s12 + $0xd8] sm:$0xff] %v279_v27 }
  0x27   : > { %282 = vst [vmem:[%s2164_s12 + $0xe0] sm:$0xff] %v281_v28  ;;  %284 = vst [vmem:[%s2164_s12 + $0xe8] sm:$0xff] %v283_v29  ;;  %v285_v30 = vld [vmem:[%s2159_s11 + $0x3c0] sm:$0xff]  ;;  %v287_v31 = vld [vmem:[%s2159_s11 + $0x3c8] sm:$0xff] }
  0x28   : > { %286 = vst [vmem:[%s2164_s12 + $0xf0] sm:$0xff] %v285_v30  ;;  %288 = vst [vmem:[%s2164_s12 + $0xf8] sm:$0xff] %v287_v31 }
  0x29 PF: > { %p1673_p7 = scmp.ge.s32.totalorder %s2071_s21, 1  ;;  %p308_p8 = scmp.lt.s32.totalorder %s2071_s21, 13 }
  0x2b   : > { %p309_p9 = pnand %p1673_p7, %p308_p8 }
  0x2c   : > { %s315_s13 = sand.u32 (!%p309_p9), 1, %s2047_s15   ;;  %s1675_s14 = sshll.u32 (!%p309_p9), %s2055_s17, 6 }
  0x2d   : > { %312 = sbr.rel (%p309_p9) target bundleno = 428 (0x1ac), region = 55  ;;  %s1674_s24 = sshll.u32 (!%p309_p9), %s315_s13, 8 }
  0x2e   : > { %p367_p10 = scmp.lt.s32.totalorder (!%p309_p9), %s1675_s14, 255  ;;  %s1678_s25 = sshll.u32 (!%p309_p9), %s2059_s18, 4 }
  0x2f   : > { %p389_p11 = scmp.lt.s32.totalorder (!%p309_p9), %s1678_s25, 47  ;;  %s2242_s15 = scalar_lea.vmem (!%p309_p9), [#allocation3], %s1674_s24 }
  0x30   : > { %p1681_p12 = scmp.ne.s32.totalorder (!%p309_p9), %s2055_s17, 0 }
  0x34   : > { %s2491_s14 = smov (!%p367_p10, %s1675_s14), 255  ;;  %s2493_s25 = smov (!%p389_p11, %s1678_s25), 47 }
  0x35   : > { %s1782_s26 = sshll.u32 %s2491_s14, 3  ;;  %s1783_s5 = sshll.u32 %s2493_s25, 4  ;;  %v2073_v32 = vmov (!%p1681_p12), 0.0  }
  0x36   : > { %s2235_s30 = scalar_lea.vmem %s2474_s1, %s1782_s26  ;;  %s2240_s8 = scalar_lea.vmem %s2477_s4, %s1783_s5  ;;  %403 = vst [vmem:[#allocation2] sm:$0xff] (!%p1681_p12), %v2073_v32  ;;  %404 = vst [vmem:[#allocation2 + $0x8] sm:$0xff] (!%p1681_p12), %v2073_v32 }
  0x37   : > { %402 = sbr.rel (%p1681_p12) target bundleno = 70 (0x46), region = 63  ;;  %405 = vst [vmem:[#allocation2 + $0x10] sm:$0xff] (!%p1681_p12), %v2073_v32  ;;  %406 = vst [vmem:[#allocation2 + $0x18] sm:$0xff] (!%p1681_p12), %v2073_v32 }
  0x38   : > { %407 = vst [vmem:[#allocation2 + $0x20] sm:$0xff] (!%p1681_p12), %v2073_v32  ;;  %408 = vst [vmem:[#allocation2 + $0x28] sm:$0xff] (!%p1681_p12), %v2073_v32 }
  0x39   : > { %409 = vst [vmem:[#allocation2 + $0x30] sm:$0xff] (!%p1681_p12), %v2073_v32  ;;  %410 = vst [vmem:[#allocation2 + $0x38] sm:$0xff] (!%p1681_p12), %v2073_v32 }
  0x3a   : > { %411 = vst [vmem:[#allocation2 + $0x40] sm:$0xff] (!%p1681_p12), %v2073_v32  ;;  %412 = vst [vmem:[#allocation2 + $0x48] sm:$0xff] (!%p1681_p12), %v2073_v32 }
  0x3b   : > { %413 = vst [vmem:[#allocation2 + $0x50] sm:$0xff] (!%p1681_p12), %v2073_v32  ;;  %414 = vst [vmem:[#allocation2 + $0x58] sm:$0xff] (!%p1681_p12), %v2073_v32 }
  0x3c   : > { %415 = vst [vmem:[#allocation2 + $0x60] sm:$0xff] (!%p1681_p12), %v2073_v32  ;;  %416 = vst [vmem:[#allocation2 + $0x68] sm:$0xff] (!%p1681_p12), %v2073_v32 }
  0x3d   : > { %417 = vst [vmem:[#allocation2 + $0x70] sm:$0xff] (!%p1681_p12), %v2073_v32  ;;  %418 = vst [vmem:[#allocation2 + $0x78] sm:$0xff] (!%p1681_p12), %v2073_v32 }
  0x3e   : > { %419 = vst [vmem:[#allocation2 + $0x80] sm:$0xff] %v2073_v32  ;;  %420 = vst [vmem:[#allocation2 + $0x88] sm:$0xff] %v2073_v32 }
  0x3f   : > { %421 = vst [vmem:[#allocation2 + $0x90] sm:$0xff] %v2073_v32  ;;  %422 = vst [vmem:[#allocation2 + $0x98] sm:$0xff] %v2073_v32 }
  0x40   : > { %423 = vst [vmem:[#allocation2 + $0xa0] sm:$0xff] %v2073_v32  ;;  %424 = vst [vmem:[#allocation2 + $0xa8] sm:$0xff] %v2073_v32 }
  0x41   : > { %425 = vst [vmem:[#allocation2 + $0xb0] sm:$0xff] %v2073_v32  ;;  %426 = vst [vmem:[#allocation2 + $0xb8] sm:$0xff] %v2073_v32 }
  0x42   : > { %427 = vst [vmem:[#allocation2 + $0xc0] sm:$0xff] %v2073_v32  ;;  %428 = vst [vmem:[#allocation2 + $0xc8] sm:$0xff] %v2073_v32 }
  0x43   : > { %429 = vst [vmem:[#allocation2 + $0xd0] sm:$0xff] %v2073_v32  ;;  %430 = vst [vmem:[#allocation2 + $0xd8] sm:$0xff] %v2073_v32 }
  0x44   : > { %431 = vst [vmem:[#allocation2 + $0xe0] sm:$0xff] %v2073_v32  ;;  %432 = vst [vmem:[#allocation2 + $0xe8] sm:$0xff] %v2073_v32 }
  0x45   : > { %433 = vst [vmem:[#allocation2 + $0xf0] sm:$0xff] %v2073_v32  ;;  %434 = vst [vmem:[#allocation2 + $0xf8] sm:$0xff] %v2073_v32 }
  0x46 PF: > { %v1873_v33 = vld [vmem:[%s2235_s30 + $0x4] ss:$8 sps:$4 sm:$0xff]   ;;  %v1877_v35 = vld [vmem:[%s2235_s30] ss:$8 sps:$4 sm:$0xff]   ;;  %v1879_v37 = vld [vmem:[%s2235_s30 + $0x14] ss:$8 sps:$4 sm:$0xff]  }
  0x47   : > { %v1875_v34 = vld [vmem:[%s2235_s30 + $0x104] ss:$8 sps:$4 sm:$0xff]   ;;  %1043 = vmatprep.subr.bf16.mxu1 %v1873_v33  ;;  %v1878_v36 = vld [vmem:[%s2235_s30 + $0x100] ss:$8 sps:$4 sm:$0xff]   ;;  %v1881_v38 = vld [vmem:[%s2235_s30 + $0x114] ss:$8 sps:$4 sm:$0xff]  }
  0x48   : > { %1156 = vmatprep.subr.bf16.mxu0 %v1875_v34  ;;  %1044 = vmatpush1.bf16.msra.mxu1 %v1877_v35  ;;  %v1883_v39 = vld [vmem:[%s2235_s30 + $0x10] ss:$8 sps:$4 sm:$0xff]   ;;  %v1885_v41 = vld [vmem:[%s2235_s30 + $0x24] ss:$8 sps:$4 sm:$0xff]   ;;  %v1889_v43 = vld [vmem:[%s2235_s30 + $0x20] ss:$8 sps:$4 sm:$0xff]  }
  0x49   : > { %1157 = vmatpush1.bf16.msra.mxu0 %v1878_v36  ;;  %1045 = vmatprep.subr.bf16.mxu1 %v1879_v37  ;;  %v1884_v40 = vld [vmem:[%s2235_s30 + $0x110] ss:$8 sps:$4 sm:$0xff]   ;;  %v1887_v42 = vld [vmem:[%s2235_s30 + $0x124] ss:$8 sps:$4 sm:$0xff]   ;;  %v1890_v44 = vld [vmem:[%s2235_s30 + $0x120] ss:$8 sps:$4 sm:$0xff]  }
  0x4a   : > { %1158 = vmatprep.subr.bf16.mxu0 %v1881_v38  ;;  %v1891_v45 = vld [vmem:[%s2235_s30 + $0x34] ss:$8 sps:$4 sm:$0xff]   ;;  %v1895_v47 = vld [vmem:[%s2235_s30 + $0x30] ss:$8 sps:$4 sm:$0xff]   ;;  %v1897_v49 = vld [vmem:[%s2235_s30 + $0x44] ss:$8 sps:$4 sm:$0xff]  }
  0x4b   : > { %v1893_v46 = vld [vmem:[%s2235_s30 + $0x134] ss:$8 sps:$4 sm:$0xff]   ;;  %v1896_v48 = vld [vmem:[%s2235_s30 + $0x130] ss:$8 sps:$4 sm:$0xff]   ;;  %v1899_v50 = vld [vmem:[%s2235_s30 + $0x144] ss:$8 sps:$4 sm:$0xff]  }
  0x4c   : > { %1046 = vmatpush1.bf16.msra.mxu1 %v1883_v39  ;;  %v1901_v51 = vld [vmem:[%s2235_s30 + $0x40] ss:$8 sps:$4 sm:$0xff]   ;;  %v1903_v53 = vld [vmem:[%s2235_s30 + $0x54] ss:$8 sps:$4 sm:$0xff]   ;;  %v1907_v55 = vld [vmem:[%s2235_s30 + $0x50] ss:$8 sps:$4 sm:$0xff]  }
  0x4d   : > { %1159 = vmatpush1.bf16.msra.mxu0 %v1884_v40  ;;  %1047 = vmatprep.subr.bf16.mxu1 %v1885_v41  ;;  %v1902_v52 = vld [vmem:[%s2235_s30 + $0x140] ss:$8 sps:$4 sm:$0xff]   ;;  %v1905_v54 = vld [vmem:[%s2235_s30 + $0x154] ss:$8 sps:$4 sm:$0xff]   ;;  %v1908_v56 = vld [vmem:[%s2235_s30 + $0x150] ss:$8 sps:$4 sm:$0xff]  }
  0x4e   : > { %1160 = vmatprep.subr.bf16.mxu0 %v1887_v42  ;;  %v1909_v57 = vld [vmem:[%s2235_s30 + $0x64] ss:$8 sps:$4 sm:$0xff]   ;;  %v1913_v59 = vld [vmem:[%s2235_s30 + $0x60] ss:$8 sps:$4 sm:$0xff]   ;;  %v1915_v61 = vld [vmem:[%s2235_s30 + $0x74] ss:$8 sps:$4 sm:$0xff]  }
  0x4f   : > { %v1911_v58 = vld [vmem:[%s2235_s30 + $0x164] ss:$8 sps:$4 sm:$0xff]   ;;  %v1914_v60 = vld [vmem:[%s2235_s30 + $0x160] ss:$8 sps:$4 sm:$0xff]   ;;  %v1917_v62 = vld [vmem:[%s2235_s30 + $0x174] ss:$8 sps:$4 sm:$0xff]  }
  0x50   : > { %1048 = vmatpush1.bf16.msra.mxu1 %v1889_v43  ;;  %v1919_v63 = vld [vmem:[%s2235_s30 + $0x70] ss:$8 sps:$4 sm:$0xff]   ;;  %v1921_v1 = vld [vmem:[%s2235_s30 + $0x84] ss:$8 sps:$4 sm:$0xff]   ;;  %v1925_v3 = vld [vmem:[%s2235_s30 + $0x80] ss:$8 sps:$4 sm:$0xff]  }
  0x51   : > { %1161 = vmatpush1.bf16.msra.mxu0 %v1890_v44  ;;  %1049 = vmatprep.subr.bf16.mxu1 %v1891_v45  ;;  %v1920_v0 = vld [vmem:[%s2235_s30 + $0x170] ss:$8 sps:$4 sm:$0xff]   ;;  %v1923_v2 = vld [vmem:[%s2235_s30 + $0x184] ss:$8 sps:$4 sm:$0xff]   ;;  %v1926_v4 = vld [vmem:[%s2235_s30 + $0x180] ss:$8 sps:$4 sm:$0xff]  }
  0x52   : > { %1162 = vmatprep.subr.bf16.mxu0 %v1893_v46  ;;  %v1927_v5 = vld [vmem:[%s2235_s30 + $0x94] ss:$8 sps:$4 sm:$0xff]   ;;  %v1931_v7 = vld [vmem:[%s2235_s30 + $0x90] ss:$8 sps:$4 sm:$0xff]   ;;  %v1933_v9 = vld [vmem:[%s2235_s30 + $0xa4] ss:$8 sps:$4 sm:$0xff]  }
  0x53   : > { %v1929_v6 = vld [vmem:[%s2235_s30 + $0x194] ss:$8 sps:$4 sm:$0xff]   ;;  %v1932_v8 = vld [vmem:[%s2235_s30 + $0x190] ss:$8 sps:$4 sm:$0xff]   ;;  %v1935_v10 = vld [vmem:[%s2235_s30 + $0x1a4] ss:$8 sps:$4 sm:$0xff]  }
  0x54   : > { %1050 = vmatpush1.bf16.msra.mxu1 %v1895_v47  ;;  %v1937_v11 = vld [vmem:[%s2235_s30 + $0xa0] ss:$8 sps:$4 sm:$0xff]   ;;  %v1939_v13 = vld [vmem:[%s2235_s30 + $0xb4] ss:$8 sps:$4 sm:$0xff]   ;;  %v1943_v15 = vld [vmem:[%s2235_s30 + $0xb0] ss:$8 sps:$4 sm:$0xff]  }
  0x55   : > { %1163 = vmatpush1.bf16.msra.mxu0 %v1896_v48  ;;  %1051 = vmatprep.subr.bf16.mxu1 %v1897_v49  ;;  %v1938_v12 = vld [vmem:[%s2235_s30 + $0x1a0] ss:$8 sps:$4 sm:$0xff]   ;;  %v1941_v14 = vld [vmem:[%s2235_s30 + $0x1b4] ss:$8 sps:$4 sm:$0xff]   ;;  %v1944_v16 = vld [vmem:[%s2235_s30 + $0x1b0] ss:$8 sps:$4 sm:$0xff]  }
  0x56   : > { %1164 = vmatprep.subr.bf16.mxu0 %v1899_v50  ;;  %v1945_v17 = vld [vmem:[%s2235_s30 + $0xc4] ss:$8 sps:$4 sm:$0xff]   ;;  %v1949_v21 = vld [vmem:[%s2235_s30 + $0xc0] ss:$8 sps:$4 sm:$0xff]   ;;  %v1951_v23 = vld [vmem:[%s2235_s30 + $0xd4] ss:$8 sps:$4 sm:$0xff]  }
  0x57   : > { %v1971_v18 = vld [vmem:[%s2242_s15 + $0x4] ss:$16 sps:$4 sm:$0xff]   ;;  %v1974_v20 = vld [vmem:[%s2242_s15 + $0xc] ss:$16 sps:$4 sm:$0xff]   ;;  %v1950_v22 = vld [vmem:[%s2235_s30 + $0x1c0] ss:$8 sps:$4 sm:$0xff]  }
  0x58   : > { %1052 = vmatpush1.bf16.msra.mxu1 %v1901_v51  ;;  %v1947_v19 = vld [vmem:[%s2235_s30 + $0x1c4] ss:$8 sps:$4 sm:$0xff]   ;;  %1075 = vmatprep.mubr.bf16.mxu1 %v1971_v18  ;;  %v1953_v24 = vld [vmem:[%s2235_s30 + $0x1d4] ss:$8 sps:$4 sm:$0xff]   ;;  %v1955_v25 = vld [vmem:[%s2235_s30 + $0xd0] ss:$8 sps:$4 sm:$0xff]  }
  0x59   : > { %1165 = vmatpush1.bf16.msra.mxu0 %v1902_v52  ;;  %1053 = vmatprep.subr.bf16.mxu1 %v1903_v53  ;;  %v1956_v26 = vld [vmem:[%s2235_s30 + $0x1d0] ss:$8 sps:$4 sm:$0xff]   ;;  %v1957_v27 = vld [vmem:[%s2235_s30 + $0xe4] ss:$8 sps:$4 sm:$0xff]   ;;  %v1961_v29 = vld [vmem:[%s2235_s30 + $0xe0] ss:$8 sps:$4 sm:$0xff]  }
  0x5a   : > { %1166 = vmatprep.subr.bf16.mxu0 %v1905_v54  ;;  %1188 = vmatprep.mubr.bf16.mxu0 %v1974_v20  ;;  %v1959_v28 = vld [vmem:[%s2235_s30 + $0x1e4] ss:$8 sps:$4 sm:$0xff]   ;;  %v1962_v30 = vld [vmem:[%s2235_s30 + $0x1e0] ss:$8 sps:$4 sm:$0xff]   ;;  %v1963_v31 = vld [vmem:[%s2235_s30 + $0xf4] ss:$8 sps:$4 sm:$0xff]  }
  0x5b   : > { %v1965_v32 = vld [vmem:[%s2235_s30 + $0x1f4] ss:$8 sps:$4 sm:$0xff]   ;;  %v1967_v33 = vld [vmem:[%s2235_s30 + $0xf0] ss:$8 sps:$4 sm:$0xff]   ;;  %p1778_p13 = scmp.ne.s32.totalorder %s2055_s17, 3 }
  0x5c   : > { %1054 = vmatpush1.bf16.msra.mxu1 %v1907_v55  ;;  %v1968_v34 = vld [vmem:[%s2235_s30 + $0x1f0] ss:$8 sps:$4 sm:$0xff]   ;;  %v1975_v37 = vld [vmem:[%s2242_s15 + $0x24] ss:$16 sps:$4 sm:$0xff]   ;;  %v1977_v38 = vld [vmem:[%s2242_s15 + $0x2c] ss:$16 sps:$4 sm:$0xff]  }
  0x5d   : > { %1167 = vmatpush1.bf16.msra.mxu0 %v1908_v56  ;;  %1055 = vmatprep.subr.bf16.mxu1 %v1909_v57  ;;  %v1969_v35 = vld [vmem:[%s2242_s15] ss:$16 sps:$4 sm:$0xff]   ;;  %v1972_v36 = vld [vmem:[%s2242_s15 + $0x8] ss:$16 sps:$4 sm:$0xff]   ;;  %v1981_v41 = vld [vmem:[%s2242_s15 + $0x44] ss:$16 sps:$4 sm:$0xff]  }
  0x5e   : > { %1168 = vmatprep.subr.bf16.mxu0 %v1911_v58  ;;  %v1979_v39 = vld [vmem:[%s2242_s15 + $0x20] ss:$16 sps:$4 sm:$0xff]   ;;  %v1980_v40 = vld [vmem:[%s2242_s15 + $0x28] ss:$16 sps:$4 sm:$0xff]   ;;  %v1983_v42 = vld [vmem:[%s2242_s15 + $0x4c] ss:$16 sps:$4 sm:$0xff]  }
  0x5f   : > { %v1985_v43 = vld [vmem:[%s2242_s15 + $0x40] ss:$16 sps:$4 sm:$0xff]   ;;  %v1986_v44 = vld [vmem:[%s2242_s15 + $0x48] ss:$16 sps:$4 sm:$0xff]   ;;  %v1987_v45 = vld [vmem:[%s2242_s15 + $0x64] ss:$16 sps:$4 sm:$0xff]  }
  0x60   : > { %1056 = vmatpush1.bf16.msra.mxu1 %v1913_v59  ;;  %v1989_v46 = vld [vmem:[%s2242_s15 + $0x6c] ss:$16 sps:$4 sm:$0xff]   ;;  %v1991_v47 = vld [vmem:[%s2242_s15 + $0x60] ss:$16 sps:$4 sm:$0xff]   ;;  %v1992_v48 = vld [vmem:[%s2242_s15 + $0x68] ss:$16 sps:$4 sm:$0xff]  }
  0x61   : > { %1169 = vmatpush1.bf16.msra.mxu0 %v1914_v60  ;;  %1057 = vmatprep.subr.bf16.mxu1 %v1915_v61  ;;  %v1993_v49 = vld [vmem:[%s2242_s15 + $0x84] ss:$16 sps:$4 sm:$0xff]   ;;  %v1995_v50 = vld [vmem:[%s2242_s15 + $0x8c] ss:$16 sps:$4 sm:$0xff]   ;;  %v1997_v51 = vld [vmem:[%s2242_s15 + $0x80] ss:$16 sps:$4 sm:$0xff]  }
  0x62   : > { %1170 = vmatprep.subr.bf16.mxu0 %v1917_v62  ;;  %v1998_v52 = vld [vmem:[%s2242_s15 + $0x88] ss:$16 sps:$4 sm:$0xff]   ;;  %v1999_v53 = vld [vmem:[%s2242_s15 + $0xa4] ss:$16 sps:$4 sm:$0xff]   ;;  %v2001_v54 = vld [vmem:[%s2242_s15 + $0xac] ss:$16 sps:$4 sm:$0xff]  }
  0x63   : > { %v2003_v55 = vld [vmem:[%s2242_s15 + $0xa0] ss:$16 sps:$4 sm:$0xff]   ;;  %v2004_v56 = vld [vmem:[%s2242_s15 + $0xa8] ss:$16 sps:$4 sm:$0xff]   ;;  %v2005_v57 = vld [vmem:[%s2242_s15 + $0xc4] ss:$16 sps:$4 sm:$0xff]  }
  0x64   : > { %1058 = vmatpush1.bf16.msra.mxu1 %v1919_v63  ;;  %v2007_v58 = vld [vmem:[%s2242_s15 + $0xcc] ss:$16 sps:$4 sm:$0xff]   ;;  %v2009_v59 = vld [vmem:[%s2242_s15 + $0xc0] ss:$16 sps:$4 sm:$0xff]   ;;  %v2010_v60 = vld [vmem:[%s2242_s15 + $0xc8] ss:$16 sps:$4 sm:$0xff]  }
  0x65   : > { %1171 = vmatpush1.bf16.msra.mxu0 %v1920_v0  ;;  %1059 = vmatprep.subr.bf16.mxu1 %v1921_v1  ;;  %v2011_v61 = vld [vmem:[%s2242_s15 + $0xe4] ss:$16 sps:$4 sm:$0xff]   ;;  %v2013_v62 = vld [vmem:[%s2242_s15 + $0xec] ss:$16 sps:$4 sm:$0xff]   ;;  %v2015_v63 = vld [vmem:[%s2242_s15 + $0xe0] ss:$16 sps:$4 sm:$0xff]  }
  0x66   : > { %1172 = vmatprep.subr.bf16.mxu0 %v1923_v2  ;;  %v2016_v0 = vld [vmem:[%s2242_s15 + $0xe8] ss:$16 sps:$4 sm:$0xff]   ;;  %v435_v2 = vld [vmem:[#allocation2] sm:$0xff] }
  0x68   : > { %1060 = vmatpush1.bf16.msra.mxu1 %v1925_v3 }
  0x69   : > { %1173 = vmatpush1.bf16.msra.mxu0 %v1926_v4  ;;  %1061 = vmatprep.subr.bf16.mxu1 %v1927_v5 }
  0x6a   : > { %1174 = vmatprep.subr.bf16.mxu0 %v1929_v6  ;;  %v436_v6 = vld [vmem:[#allocation2 + $0x8] sm:$0xff] }
  0x6c   : > { %1062 = vmatpush1.bf16.msra.mxu1 %v1931_v7 }
  0x6d   : > { %1175 = vmatpush1.bf16.msra.mxu0 %v1932_v8  ;;  %1063 = vmatprep.subr.bf16.mxu1 %v1933_v9 }
  0x6e   : > { %1176 = vmatprep.subr.bf16.mxu0 %v1935_v10  ;;  %v437_v10 = vld [vmem:[#allocation2 + $0x10] sm:$0xff] }
  0x70   : > { %1064 = vmatpush1.bf16.msra.mxu1 %v1937_v11 }
  0x71   : > { %1177 = vmatpush1.bf16.msra.mxu0 %v1938_v12  ;;  %1065 = vmatprep.subr.bf16.mxu1 %v1939_v13 }
  0x72   : > { %1178 = vmatprep.subr.bf16.mxu0 %v1941_v14 }
  0x74   : > { %1066 = vmatpush1.bf16.msra.mxu1 %v1943_v15  ;;  %v438_v15 = vld [vmem:[#allocation2 + $0x18] sm:$0xff] }
  0x75   : > { %1179 = vmatpush1.bf16.msra.mxu0 %v1944_v16  ;;  %1067 = vmatprep.subr.bf16.mxu1 %v1945_v17 }
  0x76   : > { %1180 = vmatprep.subr.bf16.mxu0 %v1947_v19 }
  0x78   : > { %1068 = vmatpush1.bf16.msra.mxu1 %v1949_v21 }
  0x79   : > { %1181 = vmatpush1.bf16.msra.mxu0 %v1950_v22  ;;  %1069 = vmatprep.subr.bf16.mxu1 %v1951_v23  ;;  %v439_v22 = vld [vmem:[#allocation2 + $0x20] sm:$0xff] }
  0x7a   : > { %1182 = vmatprep.subr.bf16.mxu0 %v1953_v24 }
  0x7c   : > { %1070 = vmatpush1.bf16.msra.mxu1 %v1955_v25 }
  0x7d   : > { %1183 = vmatpush1.bf16.msra.mxu0 %v1956_v26  ;;  %1071 = vmatprep.subr.bf16.mxu1 %v1957_v27  ;;  %v440_v26 = vld [vmem:[#allocation2 + $0x28] sm:$0xff] }
  0x7e   : > { %1184 = vmatprep.subr.bf16.mxu0 %v1959_v28 }
  0x80   : > { %1072 = vmatpush1.bf16.msra.mxu1 %v1961_v29 }
  0x81   : > { %1185 = vmatpush1.bf16.msra.mxu0 %v1962_v30  ;;  %1073 = vmatprep.subr.bf16.mxu1 %v1963_v31  ;;  %v441_v30 = vld [vmem:[#allocation2 + $0x30] sm:$0xff] }
  0x82   : > { %1186 = vmatprep.subr.bf16.mxu0 %v1965_v32 }
  0x84   : > { %1074 = vmatpush1.bf16.msra.mxu1 %v1967_v33 }
  0x85   : > { %1187 = vmatpush1.bf16.msra.mxu0 %v1968_v34 }
  0x87   : > { %1076 = vmatmul.mubr.bf16.vlgmr.msra.gmra.mrb[0].mxu1 %v1969_v35  ;;  %v442_v35 = vld [vmem:[#allocation2 + $0x38] sm:$0xff] }
  0x88   : > { %1189 = vmatmul.mubr.bf16.vlgmr.msra.gmra.mrb[0].mxu0 %v1972_v36  ;;  %1085 = vmatprep.mubr.bf16.mxu1 %v1975_v37 }
  0x89   : > { %1198 = vmatprep.mubr.bf16.mxu0 %v1977_v38 }
  0x8f   : > { %1086 = vmatmul.mubr.bf16.gmra.mrb[4].mxu1 %v1979_v39 }
  0x90   : > { %1199 = vmatmul.mubr.bf16.gmra.mrb[4].mxu0 %v1980_v40  ;;  %1095 = vmatprep.mubr.bf16.mxu1 %v1981_v41 }
  0x91   : > { %1208 = vmatprep.mubr.bf16.mxu0 %v1983_v42  ;;  %v443_v42 = vld [vmem:[#allocation2 + $0x40] sm:$0xff] }
  0x97   : > { %1096 = vmatmul.mubr.bf16.gmra.mrb[8].mxu1 %v1985_v43 }
  0x98   : > { %1209 = vmatmul.mubr.bf16.gmra.mrb[8].mxu0 %v1986_v44  ;;  %1105 = vmatprep.mubr.bf16.mxu1 %v1987_v45 }
  0x99   : > { %1218 = vmatprep.mubr.bf16.mxu0 %v1989_v46  ;;  %v444_v46 = vld [vmem:[#allocation2 + $0x48] sm:$0xff] }
  0x9f   : > { %1106 = vmatmul.mubr.bf16.gmra.mrb[12].mxu1 %v1991_v47 }
  0xa0   : > { %1219 = vmatmul.mubr.bf16.gmra.mrb[12].mxu0 %v1992_v48  ;;  %1115 = vmatprep.mubr.bf16.mxu1 %v1993_v49 }
  0xa1   : > { %1228 = vmatprep.mubr.bf16.mxu0 %v1995_v50  ;;  %v445_v50 = vld [vmem:[#allocation2 + $0x50] sm:$0xff] }
  0xa7   : > { %1116 = vmatmul.mubr.bf16.gmra.mrb[16].mxu1 %v1997_v51 }
  0xa8   : > { %1229 = vmatmul.mubr.bf16.gmra.mrb[16].mxu0 %v1998_v52  ;;  %1125 = vmatprep.mubr.bf16.mxu1 %v1999_v53 }
  0xa9   : > { %1238 = vmatprep.mubr.bf16.mxu0 %v2001_v54 }
  0xaf   : > { %1126 = vmatmul.mubr.bf16.gmra.mrb[20].mxu1 %v2003_v55  ;;  %v446_v55 = vld [vmem:[#allocation2 + $0x58] sm:$0xff] }
  0xb0   : > { %1239 = vmatmul.mubr.bf16.gmra.mrb[20].mxu0 %v2004_v56  ;;  %1135 = vmatprep.mubr.bf16.mxu1 %v2005_v57 }
  0xb1   : > { %1248 = vmatprep.mubr.bf16.mxu0 %v2007_v58 }
  0xb7   : > { %1136 = vmatmul.mubr.bf16.gmra.mrb[24].mxu1 %v2009_v59 }
  0xb8   : > { %1249 = vmatmul.mubr.bf16.gmra.mrb[24].mxu0 %v2010_v60  ;;  %1145 = vmatprep.mubr.bf16.mxu1 %v2011_v61 }
  0xb9   : > { %1258 = vmatprep.mubr.bf16.mxu0 %v2013_v62  ;;  %v447_v62 = vld [vmem:[#allocation2 + $0x60] sm:$0xff] }
  0xbf   : > { %1146 = vmatmul.mubr.bf16.gmra.mrb[28].mxu1 %v2015_v63 }
  0xc0   : > { %1259 = vmatmul.mubr.bf16.gmra.mrb[28].mxu0 %v2016_v0 }
 0x15a   : > { %v1077_v1 = vpop.f32.mrb[0].mxu1 }
 0x15b   : > { %v1190_v3 = vpop.f32.mrb[0].mxu0  ;;  %v1079_v5 = vpop.f32.mrb[1].mxu1 }
 0x15c   : > { %v1191_v4 = vadd.f32 %v1190_v3, %v1077_v1  ;;  %v1192_v7 = vpop.f32.mrb[1].mxu0  ;;  %v1081_v9 = vpop.f32.mrb[2].mxu1 }
 0x15d   : > { %v1193_v8 = vadd.f32 %v1192_v7, %v1079_v5  ;;  %v1194_v11 = vpop.f32.mrb[2].mxu0  ;;  %v1083_v14 = vpop.f32.mrb[3].mxu1 }
 0x15e   : > { %v1269_v12 = vadd.f32 %v1191_v4, %v435_v2  ;;  %v1195_v13 = vadd.f32 %v1194_v11, %v1081_v9  ;;  %v1196_v16 = vpop.f32.mrb[3].mxu0  ;;  %v448_v2 = vld [vmem:[#allocation2 + $0x68] sm:$0xff]  ;;  %v450_v11 = vld [vmem:[#allocation2 + $0x78] sm:$0xff] }
 0x15f   : > { %v1270_v17 = vadd.f32 %v1193_v8, %v436_v6  ;;  %v1197_v18 = vadd.f32 %v1196_v16, %v1083_v14  ;;  %v449_v6 = vld [vmem:[#allocation2 + $0x70] sm:$0xff] }
 0x160   : > { %1301 = vst [vmem:[#allocation2] sm:$0xff] %v1269_v12  ;;  %v1271_v19 = vadd.f32 %v1195_v13, %v437_v10 }
 0x161   : > { %1302 = vst [vmem:[#allocation2 + $0x8] sm:$0xff] %v1270_v17  ;;  %v1272_v20 = vadd.f32 %v1197_v18, %v438_v15  ;;  %v451_v18 = vld [vmem:[#allocation2 + $0x80] sm:$0xff] }
 0x162   : > { %1303 = vst [vmem:[#allocation2 + $0x10] sm:$0xff] %v1271_v19  ;;  %v1087_v21 = vpop.f32.mrb[4].mxu1 }
 0x163   : > { %1304 = vst [vmem:[#allocation2 + $0x18] sm:$0xff] %v1272_v20  ;;  %v1200_v23 = vpop.f32.mrb[4].mxu0  ;;  %v1089_v25 = vpop.f32.mrb[5].mxu1 }
 0x164   : > { %v1201_v24 = vadd.f32 %v1200_v23, %v1087_v21  ;;  %v1202_v27 = vpop.f32.mrb[5].mxu0  ;;  %v1091_v29 = vpop.f32.mrb[6].mxu1 }
 0x165   : > { %v1203_v28 = vadd.f32 %v1202_v27, %v1089_v25  ;;  %v1204_v31 = vpop.f32.mrb[6].mxu0  ;;  %v1093_v34 = vpop.f32.mrb[7].mxu1 }
 0x166   : > { %v1273_v32 = vadd.f32 %v1201_v24, %v439_v22  ;;  %v1205_v33 = vadd.f32 %v1204_v31, %v1091_v29  ;;  %v1206_v36 = vpop.f32.mrb[7].mxu0  ;;  %v452_v22 = vld [vmem:[#allocation2 + $0x88] sm:$0xff]  ;;  %v454_v31 = vld [vmem:[#allocation2 + $0x98] sm:$0xff] }
 0x167   : > { %v1274_v37 = vadd.f32 %v1203_v28, %v440_v26  ;;  %v1207_v38 = vadd.f32 %v1206_v36, %v1093_v34  ;;  %v453_v26 = vld [vmem:[#allocation2 + $0x90] sm:$0xff] }
 0x168   : > { %1305 = vst [vmem:[#allocation2 + $0x20] sm:$0xff] %v1273_v32  ;;  %v1275_v39 = vadd.f32 %v1205_v33, %v441_v30 }
 0x169   : > { %1306 = vst [vmem:[#allocation2 + $0x28] sm:$0xff] %v1274_v37  ;;  %v1276_v40 = vadd.f32 %v1207_v38, %v442_v35  ;;  %v455_v38 = vld [vmem:[#allocation2 + $0xa0] sm:$0xff] }
 0x16a   : > { %1307 = vst [vmem:[#allocation2 + $0x30] sm:$0xff] %v1275_v39  ;;  %v1097_v41 = vpop.f32.mrb[8].mxu1 }
 0x16b   : > { %1308 = vst [vmem:[#allocation2 + $0x38] sm:$0xff] %v1276_v40  ;;  %v1210_v43 = vpop.f32.mrb[8].mxu0  ;;  %v1099_v45 = vpop.f32.mrb[9].mxu1 }
 0x16c   : > { %v1211_v44 = vadd.f32 %v1210_v43, %v1097_v41  ;;  %v1212_v47 = vpop.f32.mrb[9].mxu0  ;;  %v1101_v49 = vpop.f32.mrb[10].mxu1 }
 0x16d   : > { %v1213_v48 = vadd.f32 %v1212_v47, %v1099_v45  ;;  %v1214_v51 = vpop.f32.mrb[10].mxu0  ;;  %v1103_v54 = vpop.f32.mrb[11].mxu1 }
 0x16e   : > { %v1277_v52 = vadd.f32 %v1211_v44, %v443_v42  ;;  %v1215_v53 = vadd.f32 %v1214_v51, %v1101_v49  ;;  %v1216_v56 = vpop.f32.mrb[11].mxu0  ;;  %v456_v42 = vld [vmem:[#allocation2 + $0xa8] sm:$0xff]  ;;  %v458_v51 = vld [vmem:[#allocation2 + $0xb8] sm:$0xff] }
 0x16f   : > { %v1278_v57 = vadd.f32 %v1213_v48, %v444_v46  ;;  %v1217_v58 = vadd.f32 %v1216_v56, %v1103_v54  ;;  %v457_v46 = vld [vmem:[#allocation2 + $0xb0] sm:$0xff] }
 0x170   : > { %1309 = vst [vmem:[#allocation2 + $0x40] sm:$0xff] %v1277_v52  ;;  %v1279_v59 = vadd.f32 %v1215_v53, %v445_v50 }
 0x171   : > { %1310 = vst [vmem:[#allocation2 + $0x48] sm:$0xff] %v1278_v57  ;;  %v1280_v60 = vadd.f32 %v1217_v58, %v446_v55  ;;  %v459_v58 = vld [vmem:[#allocation2 + $0xc0] sm:$0xff] }
 0x172   : > { %1311 = vst [vmem:[#allocation2 + $0x50] sm:$0xff] %v1279_v59  ;;  %v1107_v61 = vpop.f32.mrb[12].mxu1 }
 0x173   : > { %1312 = vst [vmem:[#allocation2 + $0x58] sm:$0xff] %v1280_v60  ;;  %v1220_v63 = vpop.f32.mrb[12].mxu0  ;;  %v1109_v1 = vpop.f32.mrb[13].mxu1 }
 0x174   : > { %v1221_v0 = vadd.f32 %v1220_v63, %v1107_v61  ;;  %v1222_v3 = vpop.f32.mrb[13].mxu0  ;;  %v1111_v5 = vpop.f32.mrb[14].mxu1 }
 0x175   : > { %v1223_v4 = vadd.f32 %v1222_v3, %v1109_v1  ;;  %v1224_v7 = vpop.f32.mrb[14].mxu0  ;;  %v1113_v10 = vpop.f32.mrb[15].mxu1 }
 0x176   : > { %v1281_v8 = vadd.f32 %v1221_v0, %v447_v62  ;;  %v1225_v9 = vadd.f32 %v1224_v7, %v1111_v5  ;;  %v1226_v12 = vpop.f32.mrb[15].mxu0  ;;  %v460_v62 = vld [vmem:[#allocation2 + $0xc8] sm:$0xff]  ;;  %v462_v7 = vld [vmem:[#allocation2 + $0xd8] sm:$0xff] }
 0x177   : > { %v1282_v13 = vadd.f32 %v1223_v4, %v448_v2  ;;  %v1227_v14 = vadd.f32 %v1226_v12, %v1113_v10  ;;  %v461_v2 = vld [vmem:[#allocation2 + $0xd0] sm:$0xff] }
 0x178   : > { %1313 = vst [vmem:[#allocation2 + $0x60] sm:$0xff] %v1281_v8  ;;  %v1283_v15 = vadd.f32 %v1225_v9, %v449_v6 }
 0x179   : > { %1314 = vst [vmem:[#allocation2 + $0x68] sm:$0xff] %v1282_v13  ;;  %v1284_v16 = vadd.f32 %v1227_v14, %v450_v11  ;;  %v463_v14 = vld [vmem:[#allocation2 + $0xe0] sm:$0xff] }
 0x17a   : > { %1315 = vst [vmem:[#allocation2 + $0x70] sm:$0xff] %v1283_v15  ;;  %v1117_v17 = vpop.f32.mrb[16].mxu1 }
 0x17b   : > { %1316 = vst [vmem:[#allocation2 + $0x78] sm:$0xff] %v1284_v16  ;;  %v1230_v19 = vpop.f32.mrb[16].mxu0  ;;  %v1119_v21 = vpop.f32.mrb[17].mxu1 }
 0x17c   : > { %v1231_v20 = vadd.f32 %v1230_v19, %v1117_v17  ;;  %v1232_v23 = vpop.f32.mrb[17].mxu0  ;;  %v1121_v25 = vpop.f32.mrb[18].mxu1 }
 0x17d   : > { %v1233_v24 = vadd.f32 %v1232_v23, %v1119_v21  ;;  %v1234_v27 = vpop.f32.mrb[18].mxu0  ;;  %v1123_v30 = vpop.f32.mrb[19].mxu1 }
 0x17e   : > { %v1285_v28 = vadd.f32 %v1231_v20, %v451_v18  ;;  %v1235_v29 = vadd.f32 %v1234_v27, %v1121_v25  ;;  %v1236_v32 = vpop.f32.mrb[19].mxu0  ;;  %v464_v18 = vld [vmem:[#allocation2 + $0xe8] sm:$0xff]  ;;  %v466_v27 = vld [vmem:[#allocation2 + $0xf8] sm:$0xff] }
 0x17f   : > { %v1286_v33 = vadd.f32 %v1233_v24, %v452_v22  ;;  %v1237_v34 = vadd.f32 %v1236_v32, %v1123_v30  ;;  %v465_v22 = vld [vmem:[#allocation2 + $0xf0] sm:$0xff] }
 0x180   : > { %1317 = vst [vmem:[#allocation2 + $0x80] sm:$0xff] %v1285_v28  ;;  %v1287_v35 = vadd.f32 %v1235_v29, %v453_v26 }
 0x181   : > { %1318 = vst [vmem:[#allocation2 + $0x88] sm:$0xff] %v1286_v33  ;;  %v1288_v36 = vadd.f32 %v1237_v34, %v454_v31  ;;  %v1371_v33 = vlaneseq (!%p1778_p13) }
 0x182   : > { %1319 = vst [vmem:[#allocation2 + $0x90] sm:$0xff] %v1287_v35  ;;  %v1127_v37 = vpop.f32.mrb[20].mxu1  ;;  %v1369_v35 = vld [vmem:[%s2475_s2] sm:$0x3] (!%p1778_p13) }
 0x183   : > { %1320 = vst [vmem:[#allocation2 + $0x98] sm:$0xff] %v1288_v36  ;;  %v1240_v39 = vpop.f32.mrb[20].mxu0  ;;  %v1129_v41 = vpop.f32.mrb[21].mxu1  ;;  %v1372_v34 = vshrl.u32 (!%p1778_p13), %v1371_v33, 7  ;;  %v1413_v36 = vld [vmem:[%s2476_s3] sm:$0x3] (!%p1778_p13) }
 0x184   : > { %v1241_v40 = vadd.f32 %v1240_v39, %v1127_v37  ;;  %v1242_v43 = vpop.f32.mrb[21].mxu0  ;;  %v1131_v45 = vpop.f32.mrb[22].mxu1  ;;  %v1337_v37 = vld [vmem:[#allocation2] sm:$0xff] (!%p1778_p13)  ;;  %v1338_v39 = vld [vmem:[#allocation2 + $0x8] sm:$0xff] (!%p1778_p13) }
 0x185   : > { %v1243_v44 = vadd.f32 %v1242_v43, %v1129_v41  ;;  %v1244_v47 = vpop.f32.mrb[22].mxu0  ;;  %v1133_v50 = vpop.f32.mrb[23].mxu1  ;;  %v1339_v41 = vld [vmem:[#allocation2 + $0x10] sm:$0xff] (!%p1778_p13)  ;;  %v1341_v43 = vld [vmem:[#allocation2 + $0x20] sm:$0xff] (!%p1778_p13) }
 0x186   : > { %v1289_v48 = vadd.f32 %v1241_v40, %v455_v38  ;;  %v1245_v49 = vadd.f32 %v1244_v47, %v1131_v45  ;;  %v1246_v52 = vpop.f32.mrb[23].mxu0  ;;  %v1373_v38 = vsub.s32 (!%p1778_p13), 0, %v1372_v34  ;;  %v1377_v40 = vsub.s32 (!%p1778_p13), 1, %v1372_v34 }
 0x187   : > { %v1290_v53 = vadd.f32 %v1243_v44, %v456_v42  ;;  %v1247_v54 = vadd.f32 %v1246_v52, %v1133_v50  ;;  %v1340_v42 = vld [vmem:[#allocation2 + $0x18] sm:$0xff] (!%p1778_p13) }
 0x188   : > { %1321 = vst [vmem:[#allocation2 + $0xa0] sm:$0xff] %v1289_v48  ;;  %v1291_v55 = vadd.f32 %v1245_v49, %v457_v46  ;;  %v2348_v44 = vrot.slane (!%p1778_p13), %v1369_v35, %v1373_v38  ;;  %v2350_v45 = vrot.slane (!%p1778_p13), %v1413_v36, %v1373_v38  ;;  %v2352_v46 = vrot.slane (!%p1778_p13), %v1369_v35, %v1377_v40  ;;  %v1342_v48 = vld [vmem:[#allocation2 + $0x28] sm:$0xff] (!%p1778_p13)  ;;  %v1343_v49 = vld [vmem:[#allocation2 + $0x30] sm:$0xff] (!%p1778_p13)  ;;  %v1344_v50 = vld [vmem:[#allocation2 + $0x38] sm:$0xff] (!%p1778_p13) }
 0x189   : > { %1322 = vst [vmem:[#allocation2 + $0xa8] sm:$0xff] %v1290_v53  ;;  %v1292_v56 = vadd.f32 %v1247_v54, %v458_v51  ;;  %v2354_v47 = vrot.slane (!%p1778_p13), %v1413_v36, %v1377_v40  ;;  %v1355_v33 = vld [vmem:[#allocation2 + $0x90] sm:$0xff] (!%p1778_p13) }
 0x18a   : > { %1323 = vst [vmem:[#allocation2 + $0xb0] sm:$0xff] %v1291_v55  ;;  %v1137_v57 = vpop.f32.mrb[24].mxu1  ;;  %v1381_v51 = vmul.f32 (!%p1778_p13), %v2348_v44, %v1337_v37  ;;  %v1382_v52 = vmul.f32 (!%p1778_p13), %v2352_v46, %v1338_v39  ;;  %v1383_v53 = vmul.f32 (!%p1778_p13), %v2348_v44, %v1339_v41  ;;  %v1384_v54 = vmul.f32 (!%p1778_p13), %v2352_v46, %v1340_v42  ;;  %v1356_v38 = vld [vmem:[#allocation2 + $0x98] sm:$0xff] (!%p1778_p13) }
 0x18b   : > { %1324 = vst [vmem:[#allocation2 + $0xb8] sm:$0xff] %v1292_v56  ;;  %v1250_v59 = vpop.f32.mrb[24].mxu0  ;;  %v1139_v61 = vpop.f32.mrb[25].mxu1  ;;  %v1385_v55 = vmul.f32 (!%p1778_p13), %v2348_v44, %v1341_v43  ;;  %v1386_v56 = vmul.f32 (!%p1778_p13), %v2352_v46, %v1342_v48 }
 0x18c   : > { %v1251_v60 = vadd.f32 %v1250_v59, %v1137_v57  ;;  %v1252_v63 = vpop.f32.mrb[25].mxu0  ;;  %v1141_v1 = vpop.f32.mrb[26].mxu1  ;;  %v1387_v57 = vmul.f32 (!%p1778_p13), %v2348_v44, %v1343_v49  ;;  %v1425_v59 = vadd.f32 (!%p1778_p13), %v2350_v45, %v1381_v51 }
 0x18d   : > { %v1253_v0 = vadd.f32 %v1252_v63, %v1139_v61  ;;  %v1254_v3 = vpop.f32.mrb[26].mxu0  ;;  %v1143_v6 = vpop.f32.mrb[27].mxu1  ;;  %v1427_v61 = vadd.f32 (!%p1778_p13), %v2350_v45, %v1383_v53  ;;  %v1345_v63 = vld [vmem:[#allocation2 + $0x40] sm:$0xff] (!%p1778_p13) }
 0x18e   : > { %v1293_v4 = vadd.f32 %v1251_v60, %v459_v58  ;;  %v1255_v5 = vadd.f32 %v1254_v3, %v1141_v1  ;;  %v1256_v8 = vpop.f32.mrb[27].mxu0  ;;  %v1388_v58 = vmul.f32 (!%p1778_p13), %v2352_v46, %v1344_v50  ;;  %v1426_v60 = vadd.f32 (!%p1778_p13), %v2354_v47, %v1382_v52  ;;  %v1347_v1 = vld [vmem:[#allocation2 + $0x50] sm:$0xff] (!%p1778_p13) }
 0x18f   : > { %v1294_v9 = vadd.f32 %v1253_v0, %v460_v62  ;;  %v1257_v10 = vadd.f32 %v1256_v8, %v1143_v6  ;;  %v1428_v62 = vadd.f32 (!%p1778_p13), %v2354_v47, %v1384_v54  ;;  %v1346_v0 = vld [vmem:[#allocation2 + $0x48] sm:$0xff] (!%p1778_p13)  ;;  %v1430_v3 = vadd.f32 (!%p1778_p13), %v2354_v47, %v1386_v56  ;;  %v1348_v6 = vld [vmem:[#allocation2 + $0x58] sm:$0xff] (!%p1778_p13)  ;;  %v1357_v39 = vld [vmem:[#allocation2 + $0xa0] sm:$0xff] (!%p1778_p13) }
 0x190   : > { %1325 = vst [vmem:[#allocation2 + $0xc0] sm:$0xff] %v1293_v4  ;;  %v1295_v11 = vadd.f32 %v1255_v5, %v461_v2  ;;  %v1429_v2 = vadd.f32 (!%p1778_p13), %v2350_v45, %v1385_v55  ;;  %v1431_v4 = vadd.f32 (!%p1778_p13), %v2350_v45, %v1387_v57  ;;  %v1432_v5 = vadd.f32 (!%p1778_p13), %v2354_v47, %v1388_v58  ;;  %v1350_v8 = vld [vmem:[#allocation2 + $0x68] sm:$0xff] (!%p1778_p13) }
 0x191   : > { %1326 = vst [vmem:[#allocation2 + $0xc8] sm:$0xff] %v1294_v9  ;;  %v1296_v12 = vadd.f32 %v1257_v10, %v462_v7  ;;  %v1349_v7 = vld [vmem:[#allocation2 + $0x60] sm:$0xff] (!%p1778_p13)  ;;  %v1457_v9 = vmax.f32 (!%p1778_p13), %v1425_v59, 0.0  ;;  %v1458_v10 = vmax.f32 (!%p1778_p13), %v1426_v60, 0.0  ;;  %v1358_v40 = vld [vmem:[#allocation2 + $0xa8] sm:$0xff] (!%p1778_p13)  ;;  %v1359_v49 = vld [vmem:[#allocation2 + $0xb0] sm:$0xff] (!%p1778_p13)  ;;  %v1399_v57 = vmul.f32 (!%p1778_p13), %v2348_v44, %v1355_v33 }
 0x192   : > { %1327 = vst [vmem:[#allocation2 + $0xd0] sm:$0xff] %v1295_v11  ;;  %v1147_v13 = vpop.f32.mrb[28].mxu1  ;;  %v1459_v11 = vmax.f32 (!%p1778_p13), %v1427_v61, 0.0  ;;  %v1360_v50 = vld [vmem:[#allocation2 + $0xb8] sm:$0xff] (!%p1778_p13)  ;;  %v1400_v58 = vmul.f32 (!%p1778_p13), %v2352_v46, %v1356_v38  ;;  %v1401_v59 = vmul.f32 (!%p1778_p13), %v2348_v44, %v1357_v39  ;;  %v1402_v60 = vmul.f32 (!%p1778_p13), %v2352_v46, %v1358_v40 }
 0x193   : > { %1328 = vst [vmem:[#allocation2 + $0xd8] sm:$0xff] %v1296_v12  ;;  %v1260_v15 = vpop.f32.mrb[28].mxu0  ;;  %v1149_v17 = vpop.f32.mrb[29].mxu1  ;;  %v1460_v12 = vmax.f32 (!%p1778_p13), %v1428_v62, 0.0  ;;  %1489 = vst [vmem:[%s2240_s8] sm:$0xff] (!%p1778_p13), %v1457_v9  ;;  %v1403_v61 = vmul.f32 (!%p1778_p13), %v2348_v44, %v1359_v49  ;;  %v1404_v62 = vmul.f32 (!%p1778_p13), %v2352_v46, %v1360_v50 }
 0x194   : > { %v1261_v16 = vadd.f32 %v1260_v15, %v1147_v13  ;;  %v1262_v19 = vpop.f32.mrb[29].mxu0  ;;  %v1151_v21 = vpop.f32.mrb[30].mxu1  ;;  %v1351_v13 = vld [vmem:[#allocation2 + $0x70] sm:$0xff] (!%p1778_p13)  ;;  %v1461_v15 = vmax.f32 (!%p1778_p13), %v1429_v2, 0.0  ;;  %1490 = vst [vmem:[%s2240_s8 + $0x8] sm:$0xff] (!%p1778_p13), %v1458_v10  ;;  %1491 = vst [vmem:[%s2240_s8 + $0x10] sm:$0xff] (!%p1778_p13), %v1459_v11  ;;  %v1444_v2 = vadd.f32 (!%p1778_p13), %v2354_v47, %v1400_v58 }
 0x195   : > { %v1263_v20 = vadd.f32 %v1262_v19, %v1149_v17  ;;  %v1264_v23 = vpop.f32.mrb[30].mxu0  ;;  %v1153_v26 = vpop.f32.mrb[31].mxu1  ;;  %1336 = sbr.rel (%p1778_p13) target bundleno = 428 (0x1ac), region = 67  ;;  %v1463_v17 = vmax.f32 (!%p1778_p13), %v1431_v4, 0.0  ;;  %1492 = vst [vmem:[%s2240_s8 + $0x18] sm:$0xff] (!%p1778_p13), %v1460_v12  ;;  %v1389_v19 = vmul.f32 (!%p1778_p13), %v2348_v44, %v1345_v63  ;;  %v1448_v9 = vadd.f32 (!%p1778_p13), %v2354_v47, %v1404_v62 }
 0x196   : > { %v1297_v24 = vadd.f32 %v1261_v16, %v463_v14  ;;  %v1265_v25 = vadd.f32 %v1264_v23, %v1151_v21  ;;  %v1266_v28 = vpop.f32.mrb[31].mxu0  ;;  %v1352_v14 = vld [vmem:[#allocation2 + $0x78] sm:$0xff] (!%p1778_p13)  ;;  %v1462_v16 = vmax.f32 (!%p1778_p13), %v1430_v3, 0.0  ;;  %v1391_v21 = vmul.f32 (!%p1778_p13), %v2348_v44, %v1347_v1  ;;  %1493 = vst [vmem:[%s2240_s8 + $0x20] sm:$0xff] (!%p1778_p13), %v1461_v15 }
 0x197   : > { %v1298_v29 = vadd.f32 %v1263_v20, %v464_v18  ;;  %v1267_v30 = vadd.f32 %v1266_v28, %v1153_v26  ;;  %v1464_v18 = vmax.f32 (!%p1778_p13), %v1432_v5, 0.0  ;;  %v1390_v20 = vmul.f32 (!%p1778_p13), %v2352_v46, %v1346_v0  ;;  %1495 = vst [vmem:[%s2240_s8 + $0x30] sm:$0xff] (!%p1778_p13), %v1463_v17  ;;  %v1361_v3 = vld [vmem:[#allocation2 + $0xc0] sm:$0xff] (!%p1778_p13) }
 0x198   : > { %1329 = vst [vmem:[#allocation2 + $0xe0] sm:$0xff] %v1297_v24  ;;  %v1299_v31 = vadd.f32 %v1265_v25, %v465_v22  ;;  %v1392_v22 = vmul.f32 (!%p1778_p13), %v2352_v46, %v1348_v6  ;;  %1494 = vst [vmem:[%s2240_s8 + $0x28] sm:$0xff] (!%p1778_p13), %v1462_v16  ;;  %v1393_v23 = vmul.f32 (!%p1778_p13), %v2348_v44, %v1349_v7  ;;  %v1362_v4 = vld [vmem:[#allocation2 + $0xc8] sm:$0xff] (!%p1778_p13)  ;;  %v1476_v16 = vmax.f32 (!%p1778_p13), %v1444_v2, 0.0 }
 0x199   : > { %1330 = vst [vmem:[#allocation2 + $0xe8] sm:$0xff] %v1298_v29  ;;  %v1300_v32 = vadd.f32 %v1267_v30, %v466_v27  ;;  %1496 = vst [vmem:[%s2240_s8 + $0x38] sm:$0xff] (!%p1778_p13), %v1464_v18  ;;  %v1394_v24 = vmul.f32 (!%p1778_p13), %v2352_v46, %v1350_v8  ;;  %v1395_v25 = vmul.f32 (!%p1778_p13), %v2348_v44, %v1351_v13  ;;  %v1363_v5 = vld [vmem:[#allocation2 + $0xd0] sm:$0xff] (!%p1778_p13) }
 0x19a   : > { %1331 = vst [vmem:[#allocation2 + $0xf0] sm:$0xff] %v1299_v31  ;;  %v1396_v26 = vmul.f32 (!%p1778_p13), %v2352_v46, %v1352_v14  ;;  %v1433_v27 = vadd.f32 (!%p1778_p13), %v2350_v45, %v1389_v19  ;;  %v1434_v28 = vadd.f32 (!%p1778_p13), %v2354_v47, %v1390_v20  ;;  %v1435_v29 = vadd.f32 (!%p1778_p13), %v2350_v45, %v1391_v21  ;;  %v1353_v31 = vld [vmem:[#allocation2 + $0x80] sm:$0xff] (!%p1778_p13)  ;;  %v1364_v10 = vld [vmem:[#allocation2 + $0xd8] sm:$0xff] (!%p1778_p13) }
 0x19b   : > { %1332 = vst [vmem:[#allocation2 + $0xf8] sm:$0xff] %v1300_v32  ;;  %v1436_v30 = vadd.f32 (!%p1778_p13), %v2354_v47, %v1392_v22  ;;  %v1354_v32 = vld [vmem:[#allocation2 + $0x88] sm:$0xff] (!%p1778_p13)  ;;  %v1437_v34 = vadd.f32 (!%p1778_p13), %v2350_v45, %v1393_v23  ;;  %v1438_v35 = vadd.f32 (!%p1778_p13), %v2354_v47, %v1394_v24  ;;  %v1439_v36 = vadd.f32 (!%p1778_p13), %v2350_v45, %v1395_v25 }
 0x19c   : > { %v1440_v37 = vadd.f32 %v2354_v47, %v1396_v26  ;;  %v1465_v41 = vmax.f32 %v1433_v27, 0.0  ;;  %v1466_v42 = vmax.f32 %v1434_v28, 0.0  ;;  %v1467_v43 = vmax.f32 %v1435_v29, 0.0  ;;  %1508 = vst [vmem:[%s2240_s8 + $0x98] sm:$0xff] %v1476_v16 }
 0x19d   : > { %v1468_v48 = vmax.f32 %v1436_v30, 0.0  ;;  %v1469_v51 = vmax.f32 %v1437_v34, 0.0  ;;  %v1470_v52 = vmax.f32 %v1438_v35, 0.0  ;;  %v1471_v53 = vmax.f32 %v1439_v36, 0.0 }
 0x19e   : > { %v1472_v54 = vmax.f32 %v1440_v37, 0.0  ;;  %1497 = vst [vmem:[%s2240_s8 + $0x40] sm:$0xff] %v1465_v41  ;;  %1498 = vst [vmem:[%s2240_s8 + $0x48] sm:$0xff] %v1466_v42  ;;  %v1397_v55 = vmul.f32 %v2348_v44, %v1353_v31  ;;  %v1398_v56 = vmul.f32 %v2352_v46, %v1354_v32  ;;  %v1443_v1 = vadd.f32 %v2350_v45, %v1399_v57 }
 0x19f   : > { %1499 = vst [vmem:[%s2240_s8 + $0x50] sm:$0xff] %v1467_v43  ;;  %1500 = vst [vmem:[%s2240_s8 + $0x58] sm:$0xff] %v1468_v48  ;;  %v1445_v6 = vadd.f32 %v2350_v45, %v1401_v59  ;;  %v1446_v7 = vadd.f32 %v2354_v47, %v1402_v60  ;;  %v1447_v8 = vadd.f32 %v2350_v45, %v1403_v61  ;;  %v1365_v11 = vld [vmem:[#allocation2 + $0xe0] sm:$0xff]  ;;  %v1480_v22 = vmax.f32 %v1448_v9, 0.0 }
 0x1a0   : > { %1501 = vst [vmem:[%s2240_s8 + $0x60] sm:$0xff] %v1469_v51  ;;  %1502 = vst [vmem:[%s2240_s8 + $0x68] sm:$0xff] %v1470_v52  ;;  %v1441_v63 = vadd.f32 %v2350_v45, %v1397_v55  ;;  %v1442_v0 = vadd.f32 %v2354_v47, %v1398_v56  ;;  %v1366_v12 = vld [vmem:[#allocation2 + $0xe8] sm:$0xff]  ;;  %v1475_v15 = vmax.f32 %v1443_v1, 0.0  ;;  %v1405_v23 = vmul.f32 %v2348_v44, %v1361_v3 }
 0x1a1   : > { %1503 = vst [vmem:[%s2240_s8 + $0x70] sm:$0xff] %v1471_v53  ;;  %1504 = vst [vmem:[%s2240_s8 + $0x78] sm:$0xff] %v1472_v54  ;;  %v1367_v17 = vld [vmem:[#allocation2 + $0xf0] sm:$0xff]  ;;  %v1477_v19 = vmax.f32 %v1445_v6, 0.0  ;;  %v1478_v20 = vmax.f32 %v1446_v7, 0.0  ;;  %v1479_v21 = vmax.f32 %v1447_v8, 0.0  ;;  %v1406_v24 = vmul.f32 %v2352_v46, %v1362_v4 }
 0x1a2   : > { %v1473_v13 = vmax.f32 %v1441_v63, 0.0  ;;  %v1474_v14 = vmax.f32 %v1442_v0, 0.0  ;;  %v1368_v18 = vld [vmem:[#allocation2 + $0xf8] sm:$0xff]  ;;  %1507 = vst [vmem:[%s2240_s8 + $0x90] sm:$0xff] %v1475_v15  ;;  %v1407_v25 = vmul.f32 %v2348_v44, %v1363_v5  ;;  %v1408_v26 = vmul.f32 %v2352_v46, %v1364_v10  ;;  %1512 = vst [vmem:[%s2240_s8 + $0xb8] sm:$0xff] %v1480_v22 }
 0x1a3   : > { %1509 = vst [vmem:[%s2240_s8 + $0xa0] sm:$0xff] %v1477_v19  ;;  %1510 = vst [vmem:[%s2240_s8 + $0xa8] sm:$0xff] %v1478_v20  ;;  %v1409_v27 = vmul.f32 %v2348_v44, %v1365_v11  ;;  %v1410_v28 = vmul.f32 %v2352_v46, %v1366_v12  ;;  %v1411_v29 = vmul.f32 %v2348_v44, %v1367_v17 }
 0x1a4   : > { %1505 = vst [vmem:[%s2240_s8 + $0x80] sm:$0xff] %v1473_v13  ;;  %1506 = vst [vmem:[%s2240_s8 + $0x88] sm:$0xff] %v1474_v14  ;;  %v1412_v30 = vmul.f32 %v2352_v46, %v1368_v18  ;;  %v1449_v31 = vadd.f32 %v2350_v45, %v1405_v23  ;;  %v1450_v32 = vadd.f32 %v2354_v47, %v1406_v24 }
 0x1a5   : > { %1511 = vst [vmem:[%s2240_s8 + $0xb0] sm:$0xff] %v1479_v21  ;;  %v1451_v33 = vadd.f32 %v2350_v45, %v1407_v25  ;;  %v1452_v34 = vadd.f32 %v2354_v47, %v1408_v26  ;;  %v1453_v35 = vadd.f32 %v2350_v45, %v1409_v27  ;;  %v1454_v36 = vadd.f32 %v2354_v47, %v1410_v28 }
 0x1a6   : > { %v1455_v44 = vadd.f32 %v2350_v45, %v1411_v29  ;;  %v1456_v46 = vadd.f32 %v2354_v47, %v1412_v30  ;;  %v1481_v37 = vmax.f32 %v1449_v31, 0.0  ;;  %v1482_v38 = vmax.f32 %v1450_v32, 0.0 }
 0x1a7   : > { %v1483_v39 = vmax.f32 %v1451_v33, 0.0  ;;  %v1484_v40 = vmax.f32 %v1452_v34, 0.0  ;;  %v1485_v41 = vmax.f32 %v1453_v35, 0.0  ;;  %v1486_v42 = vmax.f32 %v1454_v36, 0.0 }
 0x1a8   : > { %v1487_v43 = vmax.f32 %v1455_v44, 0.0  ;;  %v1488_v48 = vmax.f32 %v1456_v46, 0.0  ;;  %1513 = vst [vmem:[%s2240_s8 + $0xc0] sm:$0xff] %v1481_v37  ;;  %1514 = vst [vmem:[%s2240_s8 + $0xc8] sm:$0xff] %v1482_v38 }
 0x1a9   : > { %1515 = vst [vmem:[%s2240_s8 + $0xd0] sm:$0xff] %v1483_v39  ;;  %1516 = vst [vmem:[%s2240_s8 + $0xd8] sm:$0xff] %v1484_v40 }
 0x1aa   : > { %1517 = vst [vmem:[%s2240_s8 + $0xe0] sm:$0xff] %v1485_v41  ;;  %1518 = vst [vmem:[%s2240_s8 + $0xe8] sm:$0xff] %v1486_v42 }
 0x1ab   : > { %1519 = vst [vmem:[%s2240_s8 + $0xf0] sm:$0xff] %v1487_v43  ;;  %1520 = vst [vmem:[%s2240_s8 + $0xf8] sm:$0xff] %v1488_v48 }
 0x1ac PF: > { %s14_s21 = sadd.s32 1, %s2071_s21   ;;  %s2478_s15 = smov %s2051_s16 }
 0x1ad   : > { %p11_p0 = scmp.ge.s32.totalorder %s14_s21, 14   ;;  %s2479_s16 = smov %s2150_s28 }
 0x1ae   : > { %s2480_s17 = smov %s2063_s19  ;;  %s2481_s18 = smov %s2067_s20 }
 0x1af   : > { %s2482_s19 = smov %s2485_s22  ;;  %s2483_s20 = smov %s2489_s23 }
 0x1b0   :  { %13 = sbr.rel (!%p11_p0) target bundleno = 4 (0x4), region = 111 }

// kernel: fwd.22
= control target key start
LH: loop header
LB: loop body
LE: loop exit
PB: predicated region body
PF: predicated region fallthrough
CT: control target
= control target key end

     0   :  { %s1749_s15 = smov 0   ;;  %s1751_s16 = smov 0   ;;  %s2021_s0 = inlined_call_operand.vmem [shape: bf16[384,2048], index: 0, kind: input, shape index: {}]   ;;  %s2022_s1 = inlined_call_operand.vmem [shape: bf16[2048,128], index: 1, kind: input, shape index: {}]   ;;  %s2023_s2 = inlined_call_operand.vmem [shape: f32[1,128], index: 2, kind: input, shape index: {}]   ;;  %s2024_s3 = inlined_call_operand.vmem [shape: f32[1,128], index: 3, kind: input, shape index: {}]   ;;  %s2025_s4 = inlined_call_operand.vmem [shape: f32[384,128], index: 4, kind: output, shape index: {}]  }
   0x1   :  { %s1753_s17 = smov 0   ;;  %s1755_s18 = smov 0  }
   0x2   :  { %s1757_s19 = smov 0   ;;  %s1759_s20 = smov 0  }
   0x3   :  { %s1761_s21 = smov 0  }
   0x4 LB: > { %s26_s22 = sadd.s32 1, %s1713_s19  ;;  %s33_s23 = sadd.s32 1, %s1717_s20  ;;  %s1721_s21 = sphi %s1761_s21, %s14_s21   ;;  %s1717_s20 = sphi %s1759_s20, %s2031_s20   ;;  %s1713_s19 = sphi %s1757_s19, %s2030_s19   ;;  %s1709_s18 = sphi %s1755_s18, %s2029_s18   ;;  %s1705_s17 = sphi %s1753_s17, %s2028_s17   ;;  %s1701_s16 = sphi %s1751_s16, %s2027_s16   ;;  %s1697_s15 = sphi %s1749_s15, %s2026_s15  }
   0x5   : > { %p27_p0 = scmp.ge.s32.totalorder %s26_s22, 4  ;;  %p49_p1 = scmp.ne.s32.totalorder %s1701_s16, %s1697_s15 }
   0x6   : > { %p50_p2 = scmp.eq.s32.totalorder %s1721_s21, 0  ;;  %s42_s27 = sadd.s32 1, %s1701_s16 }
   0x7   : > { %s2033_s22 = smov (%p27_p0, %s26_s22), 0  ;;  %s2035_s23 = smov (!%p27_p0, %s33_s23), %s1717_s20 }
   0x8   : > { %p51_p3 = por %p50_p2, %p49_p1  ;;  %p35_p4 = scmp.ge.s32.totalorder %s2035_s23, 3 }
   0x9   : > { %s38_s24 = ssub.s32 %s1713_s19, %s2033_s22  ;;  %p1319_p6 = scmp.ge.s32.totalorder %s1721_s21, 12 }
   0xa   : > { %s2037_s23 = smov (%p35_p4, %s2035_s23), 0 }
   0xb   : > { %s37_s25 = ssub.s32 %s1717_s20, %s2037_s23  ;;  %195 = sbr.rel (%p1319_p6) target bundleno = 41 (0x29), region = 24 }
   0xc   : > { %s39_s26 = sor.u32 %s38_s24, %s37_s25 }
   0xd   : > { %p40_p5 = scmp.eq.s32.totalorder %s39_s26, 0 }
   0xf   : > { %s1800_s28 = scalar_select %p40_p5, %s1701_s16, %s42_s27  }
  0x12   : > { %198 = sbr.rel (!%p51_p3) target bundleno = 41 (0x29), region = 28  ;;  %s200_s29 = sand.u32 (%p51_p3), 1, %s1701_s16  }
  0x13   : > { %s1322_s30 = sshll.u32 (%p51_p3), %s1713_s19, 2  ;;  %s1320_s5 = sshll.u32 (%p51_p3), %s200_s29, 8 }
  0x14   : > { %s1401_s6 = sshll.u32 (%p51_p3), %s1717_s20, 8  ;;  %s1814_s12 = scalar_lea.vmem (%p51_p3), [#allocation3], %s1320_s5 }
  0x15   : > { %s206_s7 = sadd.s32 (%p51_p3), %s1401_s6, %s1322_s30 }
  0x16   : > { %s1324_s8 = sshll.u32 (%p51_p3), %s206_s7, 2 }
  0x17   : > { %s1809_s11 = scalar_lea.vmem (%p51_p3), %s2021_s0, %s1324_s8 }
  0x18   : > { %v221_v0 = vld [vmem:[%s1809_s11] sm:$0xff] (%p51_p3)  ;;  %v223_v1 = vld [vmem:[%s1809_s11 + $0x8] sm:$0xff] (%p51_p3) }
  0x19   : > { %v225_v2 = vld [vmem:[%s1809_s11 + $0x40] sm:$0xff]  ;;  %222 = vst [vmem:[%s1814_s12] sm:$0xff] %v221_v0  ;;  %224 = vst [vmem:[%s1814_s12 + $0x8] sm:$0xff] %v223_v1  ;;  %v227_v3 = vld [vmem:[%s1809_s11 + $0x48] sm:$0xff] }
  0x1a   : > { %226 = vst [vmem:[%s1814_s12 + $0x10] sm:$0xff] %v225_v2  ;;  %v229_v4 = vld [vmem:[%s1809_s11 + $0x80] sm:$0xff]  ;;  %v231_v5 = vld [vmem:[%s1809_s11 + $0x88] sm:$0xff]  ;;  %228 = vst [vmem:[%s1814_s12 + $0x18] sm:$0xff] %v227_v3 }
  0x1b   : > { %230 = vst [vmem:[%s1814_s12 + $0x20] sm:$0xff] %v229_v4  ;;  %232 = vst [vmem:[%s1814_s12 + $0x28] sm:$0xff] %v231_v5  ;;  %v233_v6 = vld [vmem:[%s1809_s11 + $0xc0] sm:$0xff]  ;;  %v235_v7 = vld [vmem:[%s1809_s11 + $0xc8] sm:$0xff] }
  0x1c   : > { %v237_v8 = vld [vmem:[%s1809_s11 + $0x100] sm:$0xff]  ;;  %234 = vst [vmem:[%s1814_s12 + $0x30] sm:$0xff] %v233_v6  ;;  %236 = vst [vmem:[%s1814_s12 + $0x38] sm:$0xff] %v235_v7  ;;  %v239_v9 = vld [vmem:[%s1809_s11 + $0x108] sm:$0xff] }
  0x1d   : > { %238 = vst [vmem:[%s1814_s12 + $0x40] sm:$0xff] %v237_v8  ;;  %v241_v10 = vld [vmem:[%s1809_s11 + $0x140] sm:$0xff]  ;;  %v243_v11 = vld [vmem:[%s1809_s11 + $0x148] sm:$0xff]  ;;  %240 = vst [vmem:[%s1814_s12 + $0x48] sm:$0xff] %v239_v9 }
  0x1e   : > { %242 = vst [vmem:[%s1814_s12 + $0x50] sm:$0xff] %v241_v10  ;;  %244 = vst [vmem:[%s1814_s12 + $0x58] sm:$0xff] %v243_v11  ;;  %v245_v12 = vld [vmem:[%s1809_s11 + $0x180] sm:$0xff]  ;;  %v247_v13 = vld [vmem:[%s1809_s11 + $0x188] sm:$0xff] }
  0x1f   : > { %v249_v14 = vld [vmem:[%s1809_s11 + $0x1c0] sm:$0xff]  ;;  %246 = vst [vmem:[%s1814_s12 + $0x60] sm:$0xff] %v245_v12  ;;  %248 = vst [vmem:[%s1814_s12 + $0x68] sm:$0xff] %v247_v13  ;;  %v251_v15 = vld [vmem:[%s1809_s11 + $0x1c8] sm:$0xff] }
  0x20   : > { %250 = vst [vmem:[%s1814_s12 + $0x70] sm:$0xff] %v249_v14  ;;  %v253_v16 = vld [vmem:[%s1809_s11 + $0x200] sm:$0xff]  ;;  %v255_v17 = vld [vmem:[%s1809_s11 + $0x208] sm:$0xff]  ;;  %252 = vst [vmem:[%s1814_s12 + $0x78] sm:$0xff] %v251_v15 }
  0x21   : > { %254 = vst [vmem:[%s1814_s12 + $0x80] sm:$0xff] %v253_v16  ;;  %256 = vst [vmem:[%s1814_s12 + $0x88] sm:$0xff] %v255_v17  ;;  %v257_v18 = vld [vmem:[%s1809_s11 + $0x240] sm:$0xff]  ;;  %v259_v19 = vld [vmem:[%s1809_s11 + $0x248] sm:$0xff] }
  0x22   : > { %v261_v20 = vld [vmem:[%s1809_s11 + $0x280] sm:$0xff]  ;;  %258 = vst [vmem:[%s1814_s12 + $0x90] sm:$0xff] %v257_v18  ;;  %260 = vst [vmem:[%s1814_s12 + $0x98] sm:$0xff] %v259_v19  ;;  %v263_v21 = vld [vmem:[%s1809_s11 + $0x288] sm:$0xff] }
  0x23   : > { %262 = vst [vmem:[%s1814_s12 + $0xa0] sm:$0xff] %v261_v20  ;;  %v265_v22 = vld [vmem:[%s1809_s11 + $0x2c0] sm:$0xff]  ;;  %v267_v23 = vld [vmem:[%s1809_s11 + $0x2c8] sm:$0xff]  ;;  %264 = vst [vmem:[%s1814_s12 + $0xa8] sm:$0xff] %v263_v21 }
  0x24   : > { %266 = vst [vmem:[%s1814_s12 + $0xb0] sm:$0xff] %v265_v22  ;;  %268 = vst [vmem:[%s1814_s12 + $0xb8] sm:$0xff] %v267_v23  ;;  %v269_v24 = vld [vmem:[%s1809_s11 + $0x300] sm:$0xff]  ;;  %v271_v25 = vld [vmem:[%s1809_s11 + $0x308] sm:$0xff] }
  0x25   : > { %v273_v26 = vld [vmem:[%s1809_s11 + $0x340] sm:$0xff]  ;;  %270 = vst [vmem:[%s1814_s12 + $0xc0] sm:$0xff] %v269_v24  ;;  %272 = vst [vmem:[%s1814_s12 + $0xc8] sm:$0xff] %v271_v25  ;;  %v275_v27 = vld [vmem:[%s1809_s11 + $0x348] sm:$0xff] }
  0x26   : > { %274 = vst [vmem:[%s1814_s12 + $0xd0] sm:$0xff] %v273_v26  ;;  %v277_v28 = vld [vmem:[%s1809_s11 + $0x380] sm:$0xff]  ;;  %v279_v29 = vld [vmem:[%s1809_s11 + $0x388] sm:$0xff]  ;;  %276 = vst [vmem:[%s1814_s12 + $0xd8] sm:$0xff] %v275_v27 }
  0x27   : > { %278 = vst [vmem:[%s1814_s12 + $0xe0] sm:$0xff] %v277_v28  ;;  %280 = vst [vmem:[%s1814_s12 + $0xe8] sm:$0xff] %v279_v29  ;;  %v281_v30 = vld [vmem:[%s1809_s11 + $0x3c0] sm:$0xff]  ;;  %v283_v31 = vld [vmem:[%s1809_s11 + $0x3c8] sm:$0xff] }
  0x28   : > { %282 = vst [vmem:[%s1814_s12 + $0xf0] sm:$0xff] %v281_v30  ;;  %284 = vst [vmem:[%s1814_s12 + $0xf8] sm:$0xff] %v283_v31 }
  0x29 PF: > { %p1325_p7 = scmp.ge.s32.totalorder %s1721_s21, 1  ;;  %p301_p8 = scmp.lt.s32.totalorder %s1721_s21, 13 }
  0x2b   : > { %p302_p9 = pnand %p1325_p7, %p301_p8 }
  0x2c   : > { %s308_s13 = sand.u32 (!%p302_p9), 1, %s1697_s15   ;;  %s1327_s14 = sshll.u32 (!%p302_p9), %s1705_s17, 6 }
  0x2d   : > { %305 = sbr.rel (%p302_p9) target bundleno = 389 (0x185), region = 55  ;;  %s1326_s24 = sshll.u32 (!%p302_p9), %s308_s13, 8 }
  0x2e   : > { %p353_p10 = scmp.lt.s32.totalorder (!%p302_p9), %s1327_s14, 255  ;;  %s1329_s25 = sshll.u32 (!%p302_p9), %s1709_s18, 4 }
  0x2f   : > { %p368_p11 = scmp.lt.s32.totalorder (!%p302_p9), %s1329_s25, 47  ;;  %s1892_s15 = scalar_lea.vmem (!%p302_p9), [#allocation3], %s1326_s24 }
  0x30   : > { %p1331_p12 = scmp.ne.s32.totalorder (!%p302_p9), %s1705_s17, 0 }
  0x34   : > { %s2039_s14 = smov (!%p353_p10, %s1327_s14), 255  ;;  %s2041_s25 = smov (!%p368_p11, %s1329_s25), 47 }
  0x35   : > { %s1328_s26 = sshll.u32 %s2039_s14, 2  ;;  %s1330_s5 = sshll.u32 %s2041_s25, 3  ;;  %v1723_v32 = vmov (!%p1331_p12), 0.0  }
  0x36   : > { %s1885_s30 = scalar_lea.vmem %s2022_s1, %s1328_s26  ;;  %s1890_s8 = scalar_lea.vmem %s2025_s4, %s1330_s5  ;;  %381 = vst [vmem:[#allocation2] sm:$0xff] (!%p1331_p12), %v1723_v32  ;;  %382 = vst [vmem:[#allocation2 + $0x8] sm:$0xff] (!%p1331_p12), %v1723_v32 }
  0x37   : > { %380 = sbr.rel (%p1331_p12) target bundleno = 62 (0x3e), region = 63  ;;  %383 = vst [vmem:[#allocation2 + $0x10] sm:$0xff] (!%p1331_p12), %v1723_v32  ;;  %384 = vst [vmem:[#allocation2 + $0x18] sm:$0xff] (!%p1331_p12), %v1723_v32 }
  0x38   : > { %385 = vst [vmem:[#allocation2 + $0x20] sm:$0xff] (!%p1331_p12), %v1723_v32  ;;  %386 = vst [vmem:[#allocation2 + $0x28] sm:$0xff] (!%p1331_p12), %v1723_v32 }
  0x39   : > { %387 = vst [vmem:[#allocation2 + $0x30] sm:$0xff] (!%p1331_p12), %v1723_v32  ;;  %388 = vst [vmem:[#allocation2 + $0x38] sm:$0xff] (!%p1331_p12), %v1723_v32 }
  0x3a   : > { %389 = vst [vmem:[#allocation2 + $0x40] sm:$0xff] (!%p1331_p12), %v1723_v32  ;;  %390 = vst [vmem:[#allocation2 + $0x48] sm:$0xff] (!%p1331_p12), %v1723_v32 }
  0x3b   : > { %391 = vst [vmem:[#allocation2 + $0x50] sm:$0xff] (!%p1331_p12), %v1723_v32  ;;  %392 = vst [vmem:[#allocation2 + $0x58] sm:$0xff] (!%p1331_p12), %v1723_v32 }
  0x3c   : > { %393 = vst [vmem:[#allocation2 + $0x60] sm:$0xff] (!%p1331_p12), %v1723_v32  ;;  %394 = vst [vmem:[#allocation2 + $0x68] sm:$0xff] (!%p1331_p12), %v1723_v32 }
  0x3d   : > { %395 = vst [vmem:[#allocation2 + $0x70] sm:$0xff] (!%p1331_p12), %v1723_v32  ;;  %396 = vst [vmem:[#allocation2 + $0x78] sm:$0xff] (!%p1331_p12), %v1723_v32 }
  0x3e PF: > { %v1587_v33 = vld [vmem:[%s1885_s30 + $0x40] sm:$0xff]   ;;  %v1591_v37 = vld [vmem:[%s1885_s30 + $0x48] sm:$0xff]   ;;  %v1595_v41 = vld [vmem:[%s1885_s30 + $0x50] sm:$0xff]   ;;  %p1396_p13 = scmp.ne.s32.totalorder %s1705_s17, 3 }
  0x3f   : > { %v1588_v34 = vld [vmem:[%s1885_s30 + $0xc0] sm:$0xff]   ;;  %1402 = vmatprep.subr.bf16.mxu0 %v1587_v33  ;;  %v1592_v38 = vld [vmem:[%s1885_s30 + $0xc8] sm:$0xff]   ;;  %v1596_v42 = vld [vmem:[%s1885_s30 + $0xd0] sm:$0xff]  }
  0x40   : > { %v1589_v35 = vld [vmem:[%s1885_s30] sm:$0xff]   ;;  %1466 = vmatprep.subr.bf16.mxu1 %v1588_v34  ;;  %v1593_v39 = vld [vmem:[%s1885_s30 + $0x8] sm:$0xff]   ;;  %v1597_v43 = vld [vmem:[%s1885_s30 + $0x10] sm:$0xff]  }
  0x41   : > { %v1590_v36 = vld [vmem:[%s1885_s30 + $0x80] sm:$0xff]   ;;  %1403 = vmatpush3.bf16.msra.mxu0 %v1589_v35  ;;  %v1594_v40 = vld [vmem:[%s1885_s30 + $0x88] sm:$0xff]   ;;  %v1598_v44 = vld [vmem:[%s1885_s30 + $0x90] sm:$0xff]  }
  0x42   : > { %1467 = vmatpush3.bf16.msra.mxu1 %v1590_v36  ;;  %1404 = vmatprep.subr.bf16.mxu0 %v1591_v37  ;;  %v1599_v45 = vld [vmem:[%s1885_s30 + $0x58] sm:$0xff]   ;;  %v1603_v49 = vld [vmem:[%s1885_s30 + $0x60] sm:$0xff]   ;;  %v1607_v53 = vld [vmem:[%s1885_s30 + $0x68] sm:$0xff]  }
  0x43   : > { %1468 = vmatprep.subr.bf16.mxu1 %v1592_v38  ;;  %v1600_v46 = vld [vmem:[%s1885_s30 + $0xd8] sm:$0xff]   ;;  %v1604_v50 = vld [vmem:[%s1885_s30 + $0xe0] sm:$0xff]   ;;  %v1608_v54 = vld [vmem:[%s1885_s30 + $0xe8] sm:$0xff]  }
  0x44   : > { %v1601_v47 = vld [vmem:[%s1885_s30 + $0x18] sm:$0xff]   ;;  %v1605_v51 = vld [vmem:[%s1885_s30 + $0x20] sm:$0xff]   ;;  %v1609_v55 = vld [vmem:[%s1885_s30 + $0x28] sm:$0xff]  }
  0x45   : > { %1405 = vmatpush3.bf16.msra.mxu0 %v1593_v39  ;;  %v1602_v48 = vld [vmem:[%s1885_s30 + $0x98] sm:$0xff]   ;;  %v1606_v52 = vld [vmem:[%s1885_s30 + $0xa0] sm:$0xff]   ;;  %v1610_v56 = vld [vmem:[%s1885_s30 + $0xa8] sm:$0xff]  }
  0x46   : > { %1469 = vmatpush3.bf16.msra.mxu1 %v1594_v40  ;;  %1406 = vmatprep.subr.bf16.mxu0 %v1595_v41  ;;  %v1611_v57 = vld [vmem:[%s1885_s30 + $0x70] sm:$0xff]   ;;  %v1615_v61 = vld [vmem:[%s1885_s30 + $0x78] sm:$0xff]  }
  0x47   : > { %1470 = vmatprep.subr.bf16.mxu1 %v1596_v42  ;;  %v1612_v58 = vld [vmem:[%s1885_s30 + $0xf0] sm:$0xff]   ;;  %v1616_v62 = vld [vmem:[%s1885_s30 + $0xf8] sm:$0xff]   ;;  %v397_v42 = vld [vmem:[#allocation2] sm:$0xff] }
  0x48   : > { %v1613_v59 = vld [vmem:[%s1885_s30 + $0x30] sm:$0xff]   ;;  %v1617_v63 = vld [vmem:[%s1885_s30 + $0x38] sm:$0xff]  }
  0x49   : > { %1407 = vmatpush3.bf16.msra.mxu0 %v1597_v43  ;;  %v1614_v60 = vld [vmem:[%s1885_s30 + $0xb0] sm:$0xff]   ;;  %v1618_v0 = vld [vmem:[%s1885_s30 + $0xb8] sm:$0xff]  }
  0x4a   : > { %1471 = vmatpush3.bf16.msra.mxu1 %v1598_v44  ;;  %1408 = vmatprep.subr.bf16.mxu0 %v1599_v45  ;;  %v1619_v1 = vld [vmem:[%s1892_s15] ss:$16 sps:$4 sm:$0xff]   ;;  %v1621_v2 = vld [vmem:[%s1892_s15 + $0x4] ss:$16 sps:$4 sm:$0xff]   ;;  %v1622_v3 = vld [vmem:[%s1892_s15 + $0x8] ss:$16 sps:$4 sm:$0xff]  }
  0x4b   : > { %1472 = vmatprep.subr.bf16.mxu1 %v1600_v46  ;;  %v1624_v4 = vld [vmem:[%s1892_s15 + $0xc] ss:$16 sps:$4 sm:$0xff]   ;;  %893 = vmatprep.mubr.bf16.mxu0 %v1621_v2  ;;  %v1625_v5 = vld [vmem:[%s1892_s15 + $0x24] ss:$16 sps:$4 sm:$0xff]   ;;  %v1629_v7 = vld [vmem:[%s1892_s15 + $0x20] ss:$16 sps:$4 sm:$0xff]  }
  0x4c   : > { %990 = vmatprep.mubr.bf16.mxu1 %v1624_v4  ;;  %v1627_v6 = vld [vmem:[%s1892_s15 + $0x2c] ss:$16 sps:$4 sm:$0xff]   ;;  %v1630_v8 = vld [vmem:[%s1892_s15 + $0x28] ss:$16 sps:$4 sm:$0xff]   ;;  %v1631_v9 = vld [vmem:[%s1892_s15 + $0x44] ss:$16 sps:$4 sm:$0xff]  }
  0x4d   : > { %1409 = vmatpush3.bf16.msra.mxu0 %v1601_v47  ;;  %v1633_v10 = vld [vmem:[%s1892_s15 + $0x4c] ss:$16 sps:$4 sm:$0xff]   ;;  %v1635_v11 = vld [vmem:[%s1892_s15 + $0x40] ss:$16 sps:$4 sm:$0xff]   ;;  %v1636_v12 = vld [vmem:[%s1892_s15 + $0x48] ss:$16 sps:$4 sm:$0xff]  }
  0x4e   : > { %1473 = vmatpush3.bf16.msra.mxu1 %v1602_v48  ;;  %1410 = vmatprep.subr.bf16.mxu0 %v1603_v49  ;;  %v1637_v13 = vld [vmem:[%s1892_s15 + $0x64] ss:$16 sps:$4 sm:$0xff]   ;;  %v1639_v14 = vld [vmem:[%s1892_s15 + $0x6c] ss:$16 sps:$4 sm:$0xff]   ;;  %v1641_v15 = vld [vmem:[%s1892_s15 + $0x60] ss:$16 sps:$4 sm:$0xff]  }
  0x4f   : > { %1474 = vmatprep.subr.bf16.mxu1 %v1604_v50  ;;  %v1642_v16 = vld [vmem:[%s1892_s15 + $0x68] ss:$16 sps:$4 sm:$0xff]   ;;  %v1643_v17 = vld [vmem:[%s1892_s15 + $0x84] ss:$16 sps:$4 sm:$0xff]   ;;  %v1645_v18 = vld [vmem:[%s1892_s15 + $0x8c] ss:$16 sps:$4 sm:$0xff]  }
  0x50   : > { %v1647_v19 = vld [vmem:[%s1892_s15 + $0x80] ss:$16 sps:$4 sm:$0xff]   ;;  %v1648_v20 = vld [vmem:[%s1892_s15 + $0x88] ss:$16 sps:$4 sm:$0xff]   ;;  %v1649_v21 = vld [vmem:[%s1892_s15 + $0xa4] ss:$16 sps:$4 sm:$0xff]  }
  0x51   : > { %1411 = vmatpush3.bf16.msra.mxu0 %v1605_v51  ;;  %v1651_v22 = vld [vmem:[%s1892_s15 + $0xac] ss:$16 sps:$4 sm:$0xff]   ;;  %v1653_v23 = vld [vmem:[%s1892_s15 + $0xa0] ss:$16 sps:$4 sm:$0xff]   ;;  %v1654_v24 = vld [vmem:[%s1892_s15 + $0xa8] ss:$16 sps:$4 sm:$0xff]  }
  0x52   : > { %1475 = vmatpush3.bf16.msra.mxu1 %v1606_v52  ;;  %1412 = vmatprep.subr.bf16.mxu0 %v1607_v53  ;;  %v1655_v25 = vld [vmem:[%s1892_s15 + $0xc4] ss:$16 sps:$4 sm:$0xff]   ;;  %v1657_v26 = vld [vmem:[%s1892_s15 + $0xcc] ss:$16 sps:$4 sm:$0xff]   ;;  %v1659_v27 = vld [vmem:[%s1892_s15 + $0xc0] ss:$16 sps:$4 sm:$0xff]  }
  0x53   : > { %1476 = vmatprep.subr.bf16.mxu1 %v1608_v54  ;;  %v1660_v28 = vld [vmem:[%s1892_s15 + $0xc8] ss:$16 sps:$4 sm:$0xff]   ;;  %v1661_v29 = vld [vmem:[%s1892_s15 + $0xe4] ss:$16 sps:$4 sm:$0xff]   ;;  %v1663_v30 = vld [vmem:[%s1892_s15 + $0xec] ss:$16 sps:$4 sm:$0xff]  }
  0x54   : > { %v1665_v31 = vld [vmem:[%s1892_s15 + $0xe0] ss:$16 sps:$4 sm:$0xff]   ;;  %v1666_v32 = vld [vmem:[%s1892_s15 + $0xe8] ss:$16 sps:$4 sm:$0xff]  }
  0x55   : > { %1413 = vmatpush3.bf16.msra.mxu0 %v1609_v55  ;;  %v398_v47 = vld [vmem:[#allocation2 + $0x8] sm:$0xff] }
  0x56   : > { %1477 = vmatpush3.bf16.msra.mxu1 %v1610_v56  ;;  %1414 = vmatprep.subr.bf16.mxu0 %v1611_v57 }
  0x57   : > { %1478 = vmatprep.subr.bf16.mxu1 %v1612_v58 }
  0x59   : > { %1415 = vmatpush3.bf16.msra.mxu0 %v1613_v59 }
  0x5a   : > { %1479 = vmatpush3.bf16.msra.mxu1 %v1614_v60  ;;  %1416 = vmatprep.subr.bf16.mxu0 %v1615_v61  ;;  %v399_v60 = vld [vmem:[#allocation2 + $0x10] sm:$0xff] }
  0x5b   : > { %1480 = vmatprep.subr.bf16.mxu1 %v1616_v62 }
  0x5d   : > { %1417 = vmatpush3.bf16.msra.mxu0 %v1617_v63 }
  0x5e   : > { %1481 = vmatpush3.bf16.msra.mxu1 %v1618_v0 }
  0x60   : > { %894 = vmatmul.mubr.bf16.vlgmr.msra.gmra.mrb[0].mxu0 %v1619_v1  ;;  %v400_v1 = vld [vmem:[#allocation2 + $0x18] sm:$0xff] }
  0x61   : > { %991 = vmatmul.mubr.bf16.vlgmr.msra.gmra.mrb[0].mxu1 %v1622_v3  ;;  %901 = vmatprep.mubr.bf16.mxu0 %v1625_v5 }
  0x62   : > { %998 = vmatprep.mubr.bf16.mxu1 %v1627_v6 }
  0x68   : > { %902 = vmatmul.mubr.bf16.gmra.mrb[4].mxu0 %v1629_v7 }
  0x69   : > { %999 = vmatmul.mubr.bf16.gmra.mrb[4].mxu1 %v1630_v8  ;;  %909 = vmatprep.mubr.bf16.mxu0 %v1631_v9 }
  0x6a   : > { %1006 = vmatprep.mubr.bf16.mxu1 %v1633_v10 }
  0x70   : > { %910 = vmatmul.mubr.bf16.gmra.mrb[8].mxu0 %v1635_v11 }
  0x71   : > { %1007 = vmatmul.mubr.bf16.gmra.mrb[8].mxu1 %v1636_v12  ;;  %917 = vmatprep.mubr.bf16.mxu0 %v1637_v13 }
  0x72   : > { %1014 = vmatprep.mubr.bf16.mxu1 %v1639_v14  ;;  %v401_v14 = vld [vmem:[#allocation2 + $0x20] sm:$0xff] }
  0x78   : > { %918 = vmatmul.mubr.bf16.gmra.mrb[12].mxu0 %v1641_v15 }
  0x79   : > { %1015 = vmatmul.mubr.bf16.gmra.mrb[12].mxu1 %v1642_v16  ;;  %925 = vmatprep.mubr.bf16.mxu0 %v1643_v17 }
  0x7a   : > { %1022 = vmatprep.mubr.bf16.mxu1 %v1645_v18 }
  0x80   : > { %926 = vmatmul.mubr.bf16.gmra.mrb[16].mxu0 %v1647_v19  ;;  %v402_v19 = vld [vmem:[#allocation2 + $0x28] sm:$0xff] }
  0x81   : > { %1023 = vmatmul.mubr.bf16.gmra.mrb[16].mxu1 %v1648_v20  ;;  %933 = vmatprep.mubr.bf16.mxu0 %v1649_v21 }
  0x82   : > { %1030 = vmatprep.mubr.bf16.mxu1 %v1651_v22 }
  0x88   : > { %934 = vmatmul.mubr.bf16.gmra.mrb[20].mxu0 %v1653_v23 }
  0x89   : > { %1031 = vmatmul.mubr.bf16.gmra.mrb[20].mxu1 %v1654_v24  ;;  %941 = vmatprep.mubr.bf16.mxu0 %v1655_v25 }
  0x8a   : > { %1038 = vmatprep.mubr.bf16.mxu1 %v1657_v26 }
  0x90   : > { %942 = vmatmul.mubr.bf16.gmra.mrb[24].mxu0 %v1659_v27 }
  0x91   : > { %1039 = vmatmul.mubr.bf16.gmra.mrb[24].mxu1 %v1660_v28  ;;  %949 = vmatprep.mubr.bf16.mxu0 %v1661_v29 }
  0x92   : > { %1046 = vmatprep.mubr.bf16.mxu1 %v1663_v30 }
  0x98   : > { %950 = vmatmul.mubr.bf16.gmra.mrb[28].mxu0 %v1665_v31 }
  0x99   : > { %1047 = vmatmul.mubr.bf16.gmra.mrb[28].mxu1 %v1666_v32  ;;  %v403_v32 = vld [vmem:[#allocation2 + $0x30] sm:$0xff] }
 0x133   : > { %v1418_v33 = vpop.f32.mrb[0].mxu0 }
 0x134   : > { %v1482_v34 = vpop.f32.mrb[0].mxu1  ;;  %v1419_v35 = vpop.f32.mrb[1].mxu0 }
 0x135   : > { %v1420_v36 = vadd.f32 %v1419_v35, %v1418_v33  ;;  %v1483_v37 = vpop.f32.mrb[1].mxu1  ;;  %v1421_v38 = vpop.f32.mrb[2].mxu0 }
 0x136   : > { %v1484_v39 = vadd.f32 %v1483_v37, %v1482_v34  ;;  %v1485_v40 = vpop.f32.mrb[2].mxu1  ;;  %v1422_v41 = vpop.f32.mrb[3].mxu0  ;;  %v404_v37 = vld [vmem:[#allocation2 + $0x38] sm:$0xff] }
 0x137   : > { %v1423_v43 = vadd.f32 %v1422_v41, %v1421_v38  ;;  %v1486_v44 = vpop.f32.mrb[3].mxu1 }
 0x138   : > { %v993_v45 = vadd.f32 %v1484_v39, %v1420_v36  ;;  %v1487_v46 = vadd.f32 %v1486_v44, %v1485_v40 }
 0x13a   : > { %v1055_v48 = vadd.f32 %v993_v45, %v397_v42  ;;  %v996_v49 = vadd.f32 %v1487_v46, %v1423_v43 }
 0x13b   : > { %v1424_v50 = vpop.f32.mrb[4].mxu0 }
 0x13c   : > { %1071 = vst [vmem:[#allocation2] sm:$0xff] %v1055_v48  ;;  %v1056_v51 = vadd.f32 %v996_v49, %v398_v47  ;;  %v1488_v52 = vpop.f32.mrb[4].mxu1  ;;  %v1425_v53 = vpop.f32.mrb[5].mxu0 }
 0x13d   : > { %v1426_v54 = vadd.f32 %v1425_v53, %v1424_v50  ;;  %v1489_v55 = vpop.f32.mrb[5].mxu1  ;;  %v1427_v56 = vpop.f32.mrb[6].mxu0  ;;  %v405_v50 = vld [vmem:[#allocation2 + $0x40] sm:$0xff] }
 0x13e   : > { %1072 = vst [vmem:[#allocation2 + $0x8] sm:$0xff] %v1056_v51  ;;  %v1490_v57 = vadd.f32 %v1489_v55, %v1488_v52  ;;  %v1491_v58 = vpop.f32.mrb[6].mxu1  ;;  %v1428_v59 = vpop.f32.mrb[7].mxu0  ;;  %v406_v55 = vld [vmem:[#allocation2 + $0x48] sm:$0xff] }
 0x13f   : > { %v1429_v61 = vadd.f32 %v1428_v59, %v1427_v56  ;;  %v1492_v62 = vpop.f32.mrb[7].mxu1 }
 0x140   : > { %v1001_v63 = vadd.f32 %v1490_v57, %v1426_v54  ;;  %v1493_v0 = vadd.f32 %v1492_v62, %v1491_v58 }
 0x142   : > { %v1057_v2 = vadd.f32 %v1001_v63, %v399_v60  ;;  %v1004_v3 = vadd.f32 %v1493_v0, %v1429_v61 }
 0x143   : > { %v1430_v4 = vpop.f32.mrb[8].mxu0 }
 0x144   : > { %1073 = vst [vmem:[#allocation2 + $0x10] sm:$0xff] %v1057_v2  ;;  %v1058_v5 = vadd.f32 %v1004_v3, %v400_v1  ;;  %v1494_v6 = vpop.f32.mrb[8].mxu1  ;;  %v1431_v7 = vpop.f32.mrb[9].mxu0 }
 0x145   : > { %v1432_v8 = vadd.f32 %v1431_v7, %v1430_v4  ;;  %v1495_v9 = vpop.f32.mrb[9].mxu1  ;;  %v1433_v10 = vpop.f32.mrb[10].mxu0  ;;  %v407_v4 = vld [vmem:[#allocation2 + $0x50] sm:$0xff] }
 0x146   : > { %1074 = vst [vmem:[#allocation2 + $0x18] sm:$0xff] %v1058_v5  ;;  %v1496_v11 = vadd.f32 %v1495_v9, %v1494_v6  ;;  %v1497_v12 = vpop.f32.mrb[10].mxu1  ;;  %v1434_v13 = vpop.f32.mrb[11].mxu0  ;;  %v408_v9 = vld [vmem:[#allocation2 + $0x58] sm:$0xff] }
 0x147   : > { %v1435_v15 = vadd.f32 %v1434_v13, %v1433_v10  ;;  %v1498_v16 = vpop.f32.mrb[11].mxu1 }
 0x148   : > { %v1009_v17 = vadd.f32 %v1496_v11, %v1432_v8  ;;  %v1499_v18 = vadd.f32 %v1498_v16, %v1497_v12 }
 0x14a   : > { %v1059_v20 = vadd.f32 %v1009_v17, %v401_v14  ;;  %v1012_v21 = vadd.f32 %v1499_v18, %v1435_v15 }
 0x14b   : > { %v1436_v22 = vpop.f32.mrb[12].mxu0 }
 0x14c   : > { %1075 = vst [vmem:[#allocation2 + $0x20] sm:$0xff] %v1059_v20  ;;  %v1060_v23 = vadd.f32 %v1012_v21, %v402_v19  ;;  %v1500_v24 = vpop.f32.mrb[12].mxu1  ;;  %v1437_v25 = vpop.f32.mrb[13].mxu0 }
 0x14d   : > { %v1438_v26 = vadd.f32 %v1437_v25, %v1436_v22  ;;  %v1501_v27 = vpop.f32.mrb[13].mxu1  ;;  %v1439_v28 = vpop.f32.mrb[14].mxu0  ;;  %v409_v22 = vld [vmem:[#allocation2 + $0x60] sm:$0xff] }
 0x14e   : > { %1076 = vst [vmem:[#allocation2 + $0x28] sm:$0xff] %v1060_v23  ;;  %v1502_v29 = vadd.f32 %v1501_v27, %v1500_v24  ;;  %v1503_v30 = vpop.f32.mrb[14].mxu1  ;;  %v1440_v31 = vpop.f32.mrb[15].mxu0  ;;  %v410_v27 = vld [vmem:[#allocation2 + $0x68] sm:$0xff] }
 0x14f   : > { %v1441_v33 = vadd.f32 %v1440_v31, %v1439_v28  ;;  %v1504_v34 = vpop.f32.mrb[15].mxu1 }
 0x150   : > { %v1017_v35 = vadd.f32 %v1502_v29, %v1438_v26  ;;  %v1505_v36 = vadd.f32 %v1504_v34, %v1503_v30 }
 0x152   : > { %v1061_v38 = vadd.f32 %v1017_v35, %v403_v32  ;;  %v1020_v39 = vadd.f32 %v1505_v36, %v1441_v33 }
 0x153   : > { %v1442_v40 = vpop.f32.mrb[16].mxu0 }
 0x154   : > { %1077 = vst [vmem:[#allocation2 + $0x30] sm:$0xff] %v1061_v38  ;;  %v1062_v41 = vadd.f32 %v1020_v39, %v404_v37  ;;  %v1506_v42 = vpop.f32.mrb[16].mxu1  ;;  %v1443_v43 = vpop.f32.mrb[17].mxu0 }
 0x155   : > { %v1444_v44 = vadd.f32 %v1443_v43, %v1442_v40  ;;  %v1507_v45 = vpop.f32.mrb[17].mxu1  ;;  %v1445_v46 = vpop.f32.mrb[18].mxu0  ;;  %v411_v40 = vld [vmem:[#allocation2 + $0x70] sm:$0xff] }
 0x156   : > { %1078 = vst [vmem:[#allocation2 + $0x38] sm:$0xff] %v1062_v41  ;;  %v1508_v47 = vadd.f32 %v1507_v45, %v1506_v42  ;;  %v1509_v48 = vpop.f32.mrb[18].mxu1  ;;  %v1446_v49 = vpop.f32.mrb[19].mxu0  ;;  %v412_v45 = vld [vmem:[#allocation2 + $0x78] sm:$0xff] }
 0x157   : > { %v1447_v51 = vadd.f32 %v1446_v49, %v1445_v46  ;;  %v1510_v52 = vpop.f32.mrb[19].mxu1  ;;  %v1091_v49 = vld [vmem:[#allocation2] sm:$0xff] (!%p1396_p13) }
 0x158   : > { %v1025_v53 = vadd.f32 %v1508_v47, %v1444_v44  ;;  %v1511_v54 = vadd.f32 %v1510_v52, %v1509_v48 }
 0x15a   : > { %v1063_v56 = vadd.f32 %v1025_v53, %v405_v50  ;;  %v1028_v57 = vadd.f32 %v1511_v54, %v1447_v51  ;;  %v1397_v50 = vld [vmem:[%s2023_s2] ss:$0 sm:$0xff] (!%p1396_p13)  ;;  %v1092_v53 = vld [vmem:[#allocation2 + $0x8] sm:$0xff] (!%p1396_p13)  ;;  %v1093_v54 = vld [vmem:[#allocation2 + $0x10] sm:$0xff] (!%p1396_p13) }
 0x15b   : > { %v1448_v58 = vpop.f32.mrb[20].mxu0  ;;  %v1966_v51 = vld [vmem:[%s2024_s3] ss:$0 sm:$0xff] (!%p1396_p13)  ;;  %v1114_v52 = vmul.f32 (!%p1396_p13), %v1397_v50, %v1091_v49 }
 0x15c   : > { %1079 = vst [vmem:[#allocation2 + $0x40] sm:$0xff] %v1063_v56  ;;  %v1064_v59 = vadd.f32 %v1028_v57, %v406_v55  ;;  %v1512_v60 = vpop.f32.mrb[20].mxu1  ;;  %v1449_v61 = vpop.f32.mrb[21].mxu0  ;;  %v1094_v55 = vld [vmem:[#allocation2 + $0x18] sm:$0xff] (!%p1396_p13)  ;;  %v1115_v56 = vmul.f32 (!%p1396_p13), %v1397_v50, %v1092_v53  ;;  %v1116_v57 = vmul.f32 (!%p1396_p13), %v1397_v50, %v1093_v54 }
 0x15d   : > { %v1450_v62 = vadd.f32 %v1449_v61, %v1448_v58  ;;  %v1513_v63 = vpop.f32.mrb[21].mxu1  ;;  %v1451_v0 = vpop.f32.mrb[22].mxu0  ;;  %v1117_v58 = vmul.f32 (!%p1396_p13), %v1397_v50, %v1094_v55  ;;  %v1097_v61 = vld [vmem:[#allocation2 + $0x30] sm:$0xff] (!%p1396_p13) }
 0x15e   : > { %1080 = vst [vmem:[#allocation2 + $0x48] sm:$0xff] %v1064_v59  ;;  %v1514_v1 = vadd.f32 %v1513_v63, %v1512_v60  ;;  %v1515_v2 = vpop.f32.mrb[22].mxu1  ;;  %v1452_v3 = vpop.f32.mrb[23].mxu0  ;;  %v1095_v59 = vld [vmem:[#allocation2 + $0x20] sm:$0xff] (!%p1396_p13)  ;;  %v1096_v60 = vld [vmem:[#allocation2 + $0x28] sm:$0xff] (!%p1396_p13) }
 0x15f   : > { %v1453_v5 = vadd.f32 %v1452_v3, %v1451_v0  ;;  %v1516_v6 = vpop.f32.mrb[23].mxu1  ;;  %v1118_v63 = vmul.f32 (!%p1396_p13), %v1397_v50, %v1095_v59  ;;  %v1119_v0 = vmul.f32 (!%p1396_p13), %v1397_v50, %v1096_v60  ;;  %v1138_v3 = vadd.f32 (!%p1396_p13), %v1966_v51, %v1115_v56 }
 0x160   : > { %v1033_v7 = vadd.f32 %v1514_v1, %v1450_v62  ;;  %v1517_v8 = vadd.f32 %v1516_v6, %v1515_v2  ;;  %v1137_v62 = vadd.f32 (!%p1396_p13), %v1966_v51, %v1114_v52  ;;  %v1120_v1 = vmul.f32 (!%p1396_p13), %v1397_v50, %v1097_v61  ;;  %v1098_v2 = vld [vmem:[#allocation2 + $0x38] sm:$0xff] (!%p1396_p13) }
 0x161   : > { %v1121_v6 = vmul.f32 (!%p1396_p13), %v1397_v50, %v1098_v2 }
 0x162   : > { %v1065_v10 = vadd.f32 %v1033_v7, %v407_v4  ;;  %v1036_v11 = vadd.f32 %v1517_v8, %v1453_v5  ;;  %v1139_v4 = vadd.f32 (!%p1396_p13), %v1966_v51, %v1116_v57  ;;  %v1140_v5 = vadd.f32 (!%p1396_p13), %v1966_v51, %v1117_v58 }
 0x163   : > { %v1454_v12 = vpop.f32.mrb[24].mxu0  ;;  %v1099_v7 = vld [vmem:[#allocation2 + $0x40] sm:$0xff] (!%p1396_p13)  ;;  %v1153_v8 = vmax.f32 (!%p1396_p13), %v1137_v62, 0.0 }
 0x164   : > { %1081 = vst [vmem:[#allocation2 + $0x50] sm:$0xff] %v1065_v10  ;;  %v1066_v13 = vadd.f32 %v1036_v11, %v408_v9  ;;  %v1518_v14 = vpop.f32.mrb[24].mxu1  ;;  %v1455_v15 = vpop.f32.mrb[25].mxu0  ;;  %v1141_v9 = vadd.f32 (!%p1396_p13), %v1966_v51, %v1118_v63  ;;  %v1142_v10 = vadd.f32 (!%p1396_p13), %v1966_v51, %v1119_v0  ;;  %v1143_v11 = vadd.f32 (!%p1396_p13), %v1966_v51, %v1120_v1 }
 0x165   : > { %v1456_v16 = vadd.f32 %v1455_v15, %v1454_v12  ;;  %v1519_v17 = vpop.f32.mrb[25].mxu1  ;;  %v1457_v18 = vpop.f32.mrb[26].mxu0  ;;  %v1100_v12 = vld [vmem:[#allocation2 + $0x48] sm:$0xff] (!%p1396_p13)  ;;  %v1154_v15 = vmax.f32 (!%p1396_p13), %v1138_v3, 0.0  ;;  %1169 = vst [vmem:[%s1890_s8] sm:$0xff] (!%p1396_p13), %v1153_v8 }
 0x166   : > { %1082 = vst [vmem:[#allocation2 + $0x58] sm:$0xff] %v1066_v13  ;;  %v1520_v19 = vadd.f32 %v1519_v17, %v1518_v14  ;;  %v1521_v20 = vpop.f32.mrb[26].mxu1  ;;  %v1458_v21 = vpop.f32.mrb[27].mxu0  ;;  %v1156_v17 = vmax.f32 (!%p1396_p13), %v1140_v5, 0.0 }
 0x167   : > { %v1459_v23 = vadd.f32 %v1458_v21, %v1457_v18  ;;  %v1522_v24 = vpop.f32.mrb[27].mxu1  ;;  %v1144_v18 = vadd.f32 (!%p1396_p13), %v1966_v51, %v1121_v6  ;;  %1170 = vst [vmem:[%s1890_s8 + $0x8] sm:$0xff] (!%p1396_p13), %v1154_v15 }
 0x168   : > { %v1041_v25 = vadd.f32 %v1520_v19, %v1456_v16  ;;  %v1523_v26 = vadd.f32 %v1522_v24, %v1521_v20  ;;  %v1155_v16 = vmax.f32 (!%p1396_p13), %v1139_v4, 0.0  ;;  %v1159_v24 = vmax.f32 (!%p1396_p13), %v1143_v11, 0.0  ;;  %1172 = vst [vmem:[%s1890_s8 + $0x18] sm:$0xff] (!%p1396_p13), %v1156_v17 }
 0x16a   : > { %v1067_v28 = vadd.f32 %v1041_v25, %v409_v22  ;;  %v1044_v29 = vadd.f32 %v1523_v26, %v1459_v23  ;;  %v1157_v22 = vmax.f32 (!%p1396_p13), %v1141_v9, 0.0  ;;  %v1158_v23 = vmax.f32 (!%p1396_p13), %v1142_v10, 0.0  ;;  %1171 = vst [vmem:[%s1890_s8 + $0x10] sm:$0xff] (!%p1396_p13), %v1155_v16  ;;  %1175 = vst [vmem:[%s1890_s8 + $0x30] sm:$0xff] (!%p1396_p13), %v1159_v24 }
 0x16b   : > { %v1460_v30 = vpop.f32.mrb[28].mxu0  ;;  %v1101_v13 = vld [vmem:[#allocation2 + $0x50] sm:$0xff] (!%p1396_p13)  ;;  %v1122_v25 = vmul.f32 (!%p1396_p13), %v1397_v50, %v1099_v7 }
 0x16c   : > { %1083 = vst [vmem:[#allocation2 + $0x60] sm:$0xff] %v1067_v28  ;;  %v1068_v31 = vadd.f32 %v1044_v29, %v410_v27  ;;  %v1524_v32 = vpop.f32.mrb[28].mxu1  ;;  %v1461_v33 = vpop.f32.mrb[29].mxu0  ;;  %v1160_v27 = vmax.f32 (!%p1396_p13), %v1144_v18, 0.0  ;;  %v1123_v28 = vmul.f32 (!%p1396_p13), %v1397_v50, %v1100_v12  ;;  %v1124_v29 = vmul.f32 (!%p1396_p13), %v1397_v50, %v1101_v13  ;;  %1173 = vst [vmem:[%s1890_s8 + $0x20] sm:$0xff] (!%p1396_p13), %v1157_v22 }
 0x16d   : > { %v1462_v34 = vadd.f32 %v1461_v33, %v1460_v30  ;;  %v1525_v35 = vpop.f32.mrb[29].mxu1  ;;  %v1463_v36 = vpop.f32.mrb[30].mxu0  ;;  %v1102_v14 = vld [vmem:[#allocation2 + $0x58] sm:$0xff] (!%p1396_p13)  ;;  %1174 = vst [vmem:[%s1890_s8 + $0x28] sm:$0xff] (!%p1396_p13), %v1158_v23 }
 0x16e   : > { %1084 = vst [vmem:[#allocation2 + $0x68] sm:$0xff] %v1068_v31  ;;  %v1526_v37 = vadd.f32 %v1525_v35, %v1524_v32  ;;  %v1527_v38 = vpop.f32.mrb[30].mxu1  ;;  %v1464_v39 = vpop.f32.mrb[31].mxu0  ;;  %v1125_v30 = vmul.f32 (!%p1396_p13), %v1397_v50, %v1102_v14  ;;  %v1145_v31 = vadd.f32 (!%p1396_p13), %v1966_v51, %v1122_v25  ;;  %1176 = vst [vmem:[%s1890_s8 + $0x38] sm:$0xff] (!%p1396_p13), %v1160_v27 }
 0x16f   : > { %v1465_v41 = vadd.f32 %v1464_v39, %v1463_v36  ;;  %v1528_v42 = vpop.f32.mrb[31].mxu1  ;;  %v1146_v35 = vadd.f32 (!%p1396_p13), %v1966_v51, %v1123_v28  ;;  %v1147_v36 = vadd.f32 (!%p1396_p13), %v1966_v51, %v1124_v29 }
 0x170   : > { %v1049_v43 = vadd.f32 %v1526_v37, %v1462_v34  ;;  %v1529_v44 = vadd.f32 %v1528_v42, %v1527_v38  ;;  %1090 = sbr.rel (%p1396_p13) target bundleno = 389 (0x185), region = 67  ;;  %v1148_v37 = vadd.f32 (!%p1396_p13), %v1966_v51, %v1125_v30  ;;  %v1161_v39 = vmax.f32 (!%p1396_p13), %v1145_v31, 0.0 }
 0x172   : > { %v1069_v46 = vadd.f32 %v1049_v43, %v411_v40  ;;  %v1052_v47 = vadd.f32 %v1529_v44, %v1465_v41  ;;  %v1162_v43 = vmax.f32 (!%p1396_p13), %v1146_v35, 0.0  ;;  %v1163_v44 = vmax.f32 (!%p1396_p13), %v1147_v36, 0.0  ;;  %1177 = vst [vmem:[%s1890_s8 + $0x40] sm:$0xff] (!%p1396_p13), %v1161_v39 }
 0x173   : > { %v1103_v19 = vld [vmem:[#allocation2 + $0x60] sm:$0xff] (!%p1396_p13) }
 0x174   : > { %1085 = vst [vmem:[#allocation2 + $0x70] sm:$0xff] %v1069_v46  ;;  %v1070_v48 = vadd.f32 %v1052_v47, %v412_v45  ;;  %v1126_v32 = vmul.f32 (!%p1396_p13), %v1397_v50, %v1103_v19  ;;  %v1164_v45 = vmax.f32 (!%p1396_p13), %v1148_v37, 0.0  ;;  %1178 = vst [vmem:[%s1890_s8 + $0x48] sm:$0xff] (!%p1396_p13), %v1162_v43 }
 0x175   : > { %v1104_v20 = vld [vmem:[#allocation2 + $0x68] sm:$0xff] (!%p1396_p13)  ;;  %1179 = vst [vmem:[%s1890_s8 + $0x50] sm:$0xff] (!%p1396_p13), %v1163_v44 }
 0x176   : > { %1086 = vst [vmem:[#allocation2 + $0x78] sm:$0xff] %v1070_v48  ;;  %v1127_v33 = vmul.f32 (!%p1396_p13), %v1397_v50, %v1104_v20  ;;  %v1149_v40 = vadd.f32 (!%p1396_p13), %v1966_v51, %v1126_v32  ;;  %1180 = vst [vmem:[%s1890_s8 + $0x58] sm:$0xff] (!%p1396_p13), %v1164_v45 }
 0x178   : > { %v1150_v41 = vadd.f32 %v1966_v51, %v1127_v33  ;;  %v1165_v47 = vmax.f32 %v1149_v40, 0.0 }
 0x17a   : > { %v1166_v48 = vmax.f32 %v1150_v41, 0.0  ;;  %1181 = vst [vmem:[%s1890_s8 + $0x60] sm:$0xff] %v1165_v47 }
 0x17b   : > { %v1105_v21 = vld [vmem:[#allocation2 + $0x70] sm:$0xff] }
 0x17c   : > { %v1128_v34 = vmul.f32 %v1397_v50, %v1105_v21  ;;  %1182 = vst [vmem:[%s1890_s8 + $0x68] sm:$0xff] %v1166_v48 }
 0x17d   : > { %v1106_v26 = vld [vmem:[#allocation2 + $0x78] sm:$0xff] }
 0x17e   : > { %v1129_v38 = vmul.f32 %v1397_v50, %v1106_v26  ;;  %v1151_v42 = vadd.f32 %v1966_v51, %v1128_v34 }
 0x180   : > { %v1152_v46 = vadd.f32 %v1966_v51, %v1129_v38  ;;  %v1167_v49 = vmax.f32 %v1151_v42, 0.0 }
 0x182   : > { %v1168_v50 = vmax.f32 %v1152_v46, 0.0  ;;  %1183 = vst [vmem:[%s1890_s8 + $0x70] sm:$0xff] %v1167_v49 }
 0x184   : > { %1184 = vst [vmem:[%s1890_s8 + $0x78] sm:$0xff] %v1168_v50 }
 0x185 PF: > { %s14_s21 = sadd.s32 1, %s1721_s21   ;;  %s2026_s15 = smov %s1701_s16 }
 0x186   : > { %p11_p0 = scmp.ge.s32.totalorder %s14_s21, 14   ;;  %s2027_s16 = smov %s1800_s28 }
 0x187   : > { %s2028_s17 = smov %s1713_s19  ;;  %s2029_s18 = smov %s1717_s20 }
 0x188   : > { %s2030_s19 = smov %s2033_s22  ;;  %s2031_s20 = smov %s2037_s23 }
 0x189   :  { %13 = sbr.rel (!%p11_p0) target bundleno = 4 (0x4), region = 111 }

// kernel: fwd.32
= control target key start
LH: loop header
LB: loop body
LE: loop exit
PB: predicated region body
PF: predicated region fallthrough
CT: control target
= control target key end

     0   :  { %s2999_s0 = inlined_call_operand.vmem [shape: bf16[16,4608], index: 0, kind: input, shape index: {}]   ;;  %s3000_s1 = inlined_call_operand.vmem [shape: bf16[4608,2048], index: 1, kind: input, shape index: {}]   ;;  %s3001_s2 = inlined_call_operand.vmem [shape: f32[1,2048], index: 2, kind: input, shape index: {}]   ;;  %s3002_s3 = inlined_call_operand.vmem [shape: f32[1,2048], index: 3, kind: input, shape index: {}]   ;;  %s3003_s4 = inlined_call_operand.vmem [shape: f32[16,2048], index: 4, kind: output, shape index: {}]  }
   0x1   :  { %3006 = sst [smem:[#allocation8_spill]] %s2999_s0 }
   0x2   :  { %3007 = sst [smem:[#allocation9_spill]] %s3000_s1 }
   0x3   :  { %s2404_s15 = smov 0   ;;  %s2406_s16 = smov 0  }
   0x4   :  { %s2408_s17 = smov 0   ;;  %s2410_s18 = smov 0  }
   0x5   :  { %s2412_s19 = smov 0   ;;  %s2414_s20 = smov 0  }
   0x6   :  { %s2416_s21 = smov 0   ;;  %s2418_s22 = smov 0  }
   0x7   :  { %s2420_s23 = smov 0   ;;  %s2422_s24 = smov 0  }
   0x8   :  { %s2424_s25 = smov 0  }
   0x9 LB: > { %s1835_s26 = sadd.s32 4294967295, %s2376_s25   ;;  %s26_s27 = sadd.s32 1, %s2368_s23  ;;  %s2376_s25 = sphi %s2424_s25, %s14_s25   ;;  %s2372_s24 = sphi %s2422_s24, %s3026_s24   ;;  %s2368_s23 = sphi %s2420_s23, %s3025_s23   ;;  %s2364_s22 = sphi %s2418_s22, %s3024_s22   ;;  %s2360_s21 = sphi %s2416_s21, %s3023_s21   ;;  %s2356_s20 = sphi %s2414_s20, %s3022_s20   ;;  %s2352_s19 = sphi %s2412_s19, %s3021_s19   ;;  %s2348_s18 = sphi %s2410_s18, %s3020_s18   ;;  %s2344_s17 = sphi %s2408_s17, %s3019_s17   ;;  %s2340_s16 = sphi %s2406_s16, %s3018_s16   ;;  %s2336_s15 = sphi %s2404_s15, %s3017_s15  }
   0xa   : > { %p27_p0 = scmp.ge.s32.totalorder %s26_s27, 9  ;;  %s29_s28 = sadd.s32 1, %s2372_s24 }
   0xb   : > { %s42_s29 = sadd.s32 1, %s2356_s20  ;;  %p49_p1 = scmp.ne.s32.totalorder %s2356_s20, %s2352_s19 }
   0xc   : > { %s3028_s27 = smov (%p27_p0, %s26_s27), 0  ;;  %s3030_s28 = smov (!%p27_p0, %s29_s28), %s2372_s24 }
   0xd   : > { %3008 = sst [smem:[#allocation6_spill]] %s3028_s27  ;;  %s38_s30 = ssub.s32 %s2368_s23, %s3028_s27 }
   0xe   : > { %p50_p2 = scmp.eq.s32.totalorder %s2376_s25, 0  ;;  %p31_p3 = scmp.ge.s32.totalorder %s3030_s28, 4 }
   0xf   : > { %p40_p4 = scmp.eq.s32.totalorder %s38_s30, 0  ;;  %s70_s6 = sadd.s32 1, %s2348_s18 }
  0x10   : > { %p2471_p5 = por %p50_p2, %p49_p1  ;;  %s3032_s28 = smov (%p31_p3, %s3030_s28), 0 }
  0x11   : > { %3010 = sst [smem:[#allocation7_spill]] %s3032_s28  ;;  %s66_s8 = ssub.s32 %s2372_s24, %s3032_s28 }
  0x12   : > { %s2479_s7 = scalar_select %p40_p4, %s2356_s20, %s42_s29  }
  0x13   : > { %p77_p6 = scmp.ne.s32.totalorder %s2348_s18, %s2344_s17  ;;  %s67_s9 = sor.u32 %s66_s8, %s38_s30 }
  0x14   : > { %p148_p7 = scmp.eq.s32.totalorder %s66_s8, 0  ;;  %p68_p8 = scmp.eq.s32.totalorder %s67_s9, 0 }
  0x15   : > { %p2485_p9 = por %p77_p6, %p50_p2  ;;  %s150_s11 = sadd.s32 1, %s2340_s16 }
  0x16   : > { %p160_p10 = scmp.ne.s32.totalorder %s2340_s16, %s2336_s15  ;;  %p161_p11 = scmp.eq.s32.totalorder %s1835_s26, 35 }
  0x17   : > { %s2493_s12 = scalar_select %p68_p8, %s2348_s18, %s70_s6  }
  0x18   : > { %s2496_s13 = scalar_select %p148_p7, %s2340_s16, %s150_s11  }
  0x19   : > { %p2498_p12 = por %p161_p11, %p160_p10  ;;  %p1838_p13 = scmp.ge.s32.totalorder %s2376_s25, 36 }
  0x1b   : > { %183 = sbr.rel (%p1838_p13) target bundleno = 120 (0x78), region = 16 }
  0x22   : > { %186 = sbr.rel (!%p2471_p5) target bundleno = 46 (0x2e), region = 20  ;;  %s188_s29 = sand.u32 (%p2471_p5), 1, %s2356_s20  }
  0x23   : > { %s1992_s30 = sshll.u32 (%p2471_p5), %s2368_s23, 4  ;;  %s1839_s8 = sshll.u32 (%p2471_p5), %s188_s29, 5 }
  0x24   : > { %s3013_s0 = sld [smem:[#allocation8_spill]] (%p2471_p5)  ;;  %s190_s26 = scalar_lea.vmem (%p2471_p5), [#allocation3], %s1839_s8 }
  0x2a   : > { %s196_s11 = scalar_lea.vmem %s3013_s0, %s1992_s30 }
  0x2b   : > { %v209_v0 = vld [vmem:[%s196_s11] sm:$0xff]  ;;  %v211_v1 = vld [vmem:[%s196_s11 + $0x8] sm:$0xff]  ;;  %v213_v2 = vld [vmem:[%s196_s11 + $0x90] sm:$0xff] }
  0x2c   : > { %210 = vst [vmem:[%s190_s26] sm:$0xff] %v209_v0  ;;  %212 = vst [vmem:[%s190_s26 + $0x8] sm:$0xff] %v211_v1  ;;  %v215_v3 = vld [vmem:[%s196_s11 + $0x98] sm:$0xff] }
  0x2d   : > { %214 = vst [vmem:[%s190_s26 + $0x10] sm:$0xff] %v213_v2  ;;  %216 = vst [vmem:[%s190_s26 + $0x18] sm:$0xff] %v215_v3 }
  0x2e PF: > { %222 = sbr.rel (!%p2485_p9) target bundleno = 120 (0x78), region = 43  ;;  %s224_s5 = sand.u32 (%p2485_p9), 1, %s2348_s18  }
  0x2f   : > { %s1844_s29 = sshll.u32 (%p2485_p9), %s2372_s24, 2  ;;  %s1842_s6 = sshll.u32 (%p2485_p9), %s224_s5, 10 }
  0x30   : > { %s1993_s30 = sshll.u32 (%p2485_p9), %s2368_s23, 10  ;;  %s3014_s1 = sld [smem:[#allocation9_spill]] (%p2485_p9) }
  0x31   : > { %s230_s9 = sadd.s32 (%p2485_p9), %s1993_s30, %s1844_s29  ;;  %s2523_s10 = scalar_lea.vmem (%p2485_p9), [#allocation4], %s1842_s6 }
  0x32   : > { %s1846_s0 = sshll.u32 (%p2485_p9), %s230_s9, 2 }
  0x36   : > { %s2518_s27 = scalar_lea.vmem %s3014_s1, %s1846_s0 }
  0x37   : > { %v245_v4 = vld [vmem:[%s2518_s27] sm:$0xff]  ;;  %v247_v5 = vld [vmem:[%s2518_s27 + $0x8] sm:$0xff] }
  0x38   : > { %v249_v6 = vld [vmem:[%s2518_s27 + $0x40] sm:$0xff]  ;;  %246 = vst [vmem:[%s2523_s10] sm:$0xff] %v245_v4  ;;  %248 = vst [vmem:[%s2523_s10 + $0x8] sm:$0xff] %v247_v5  ;;  %v251_v7 = vld [vmem:[%s2518_s27 + $0x48] sm:$0xff] }
  0x39   : > { %250 = vst [vmem:[%s2523_s10 + $0x10] sm:$0xff] %v249_v6  ;;  %v253_v8 = vld [vmem:[%s2518_s27 + $0x80] sm:$0xff]  ;;  %v255_v9 = vld [vmem:[%s2518_s27 + $0x88] sm:$0xff]  ;;  %252 = vst [vmem:[%s2523_s10 + $0x18] sm:$0xff] %v251_v7 }
  0x3a   : > { %254 = vst [vmem:[%s2523_s10 + $0x20] sm:$0xff] %v253_v8  ;;  %256 = vst [vmem:[%s2523_s10 + $0x28] sm:$0xff] %v255_v9  ;;  %v257_v10 = vld [vmem:[%s2518_s27 + $0xc0] sm:$0xff]  ;;  %v259_v11 = vld [vmem:[%s2518_s27 + $0xc8] sm:$0xff] }
  0x3b   : > { %v261_v12 = vld [vmem:[%s2518_s27 + $0x100] sm:$0xff]  ;;  %258 = vst [vmem:[%s2523_s10 + $0x30] sm:$0xff] %v257_v10  ;;  %260 = vst [vmem:[%s2523_s10 + $0x38] sm:$0xff] %v259_v11  ;;  %v263_v13 = vld [vmem:[%s2518_s27 + $0x108] sm:$0xff] }
  0x3c   : > { %262 = vst [vmem:[%s2523_s10 + $0x40] sm:$0xff] %v261_v12  ;;  %v265_v14 = vld [vmem:[%s2518_s27 + $0x140] sm:$0xff]  ;;  %v267_v15 = vld [vmem:[%s2518_s27 + $0x148] sm:$0xff]  ;;  %264 = vst [vmem:[%s2523_s10 + $0x48] sm:$0xff] %v263_v13 }
  0x3d   : > { %266 = vst [vmem:[%s2523_s10 + $0x50] sm:$0xff] %v265_v14  ;;  %268 = vst [vmem:[%s2523_s10 + $0x58] sm:$0xff] %v267_v15  ;;  %v269_v16 = vld [vmem:[%s2518_s27 + $0x180] sm:$0xff]  ;;  %v271_v17 = vld [vmem:[%s2518_s27 + $0x188] sm:$0xff] }
  0x3e   : > { %v273_v18 = vld [vmem:[%s2518_s27 + $0x1c0] sm:$0xff]  ;;  %270 = vst [vmem:[%s2523_s10 + $0x60] sm:$0xff] %v269_v16  ;;  %272 = vst [vmem:[%s2523_s10 + $0x68] sm:$0xff] %v271_v17  ;;  %v275_v19 = vld [vmem:[%s2518_s27 + $0x1c8] sm:$0xff] }
  0x3f   : > { %274 = vst [vmem:[%s2523_s10 + $0x70] sm:$0xff] %v273_v18  ;;  %v277_v20 = vld [vmem:[%s2518_s27 + $0x200] sm:$0xff]  ;;  %v279_v21 = vld [vmem:[%s2518_s27 + $0x208] sm:$0xff]  ;;  %276 = vst [vmem:[%s2523_s10 + $0x78] sm:$0xff] %v275_v19 }
  0x40   : > { %278 = vst [vmem:[%s2523_s10 + $0x80] sm:$0xff] %v277_v20  ;;  %280 = vst [vmem:[%s2523_s10 + $0x88] sm:$0xff] %v279_v21  ;;  %v281_v22 = vld [vmem:[%s2518_s27 + $0x240] sm:$0xff]  ;;  %v283_v23 = vld [vmem:[%s2518_s27 + $0x248] sm:$0xff] }
  0x41   : > { %v285_v24 = vld [vmem:[%s2518_s27 + $0x280] sm:$0xff]  ;;  %282 = vst [vmem:[%s2523_s10 + $0x90] sm:$0xff] %v281_v22  ;;  %284 = vst [vmem:[%s2523_s10 + $0x98] sm:$0xff] %v283_v23  ;;  %v287_v25 = vld [vmem:[%s2518_s27 + $0x288] sm:$0xff] }
  0x42   : > { %286 = vst [vmem:[%s2523_s10 + $0xa0] sm:$0xff] %v285_v24  ;;  %v289_v26 = vld [vmem:[%s2518_s27 + $0x2c0] sm:$0xff]  ;;  %v291_v27 = vld [vmem:[%s2518_s27 + $0x2c8] sm:$0xff]  ;;  %288 = vst [vmem:[%s2523_s10 + $0xa8] sm:$0xff] %v287_v25 }
  0x43   : > { %290 = vst [vmem:[%s2523_s10 + $0xb0] sm:$0xff] %v289_v26  ;;  %292 = vst [vmem:[%s2523_s10 + $0xb8] sm:$0xff] %v291_v27  ;;  %v293_v28 = vld [vmem:[%s2518_s27 + $0x300] sm:$0xff]  ;;  %v295_v29 = vld [vmem:[%s2518_s27 + $0x308] sm:$0xff] }
  0x44   : > { %v297_v30 = vld [vmem:[%s2518_s27 + $0x340] sm:$0xff]  ;;  %294 = vst [vmem:[%s2523_s10 + $0xc0] sm:$0xff] %v293_v28  ;;  %296 = vst [vmem:[%s2523_s10 + $0xc8] sm:$0xff] %v295_v29  ;;  %v299_v31 = vld [vmem:[%s2518_s27 + $0x348] sm:$0xff] }
  0x45   : > { %298 = vst [vmem:[%s2523_s10 + $0xd0] sm:$0xff] %v297_v30  ;;  %v301_v32 = vld [vmem:[%s2518_s27 + $0x380] sm:$0xff]  ;;  %v303_v33 = vld [vmem:[%s2518_s27 + $0x388] sm:$0xff]  ;;  %300 = vst [vmem:[%s2523_s10 + $0xd8] sm:$0xff] %v299_v31 }
  0x46   : > { %302 = vst [vmem:[%s2523_s10 + $0xe0] sm:$0xff] %v301_v32  ;;  %304 = vst [vmem:[%s2523_s10 + $0xe8] sm:$0xff] %v303_v33  ;;  %v305_v34 = vld [vmem:[%s2518_s27 + $0x3c0] sm:$0xff]  ;;  %v307_v35 = vld [vmem:[%s2518_s27 + $0x3c8] sm:$0xff] }
  0x47   : > { %v309_v36 = vld [vmem:[%s2518_s27 + $0x400] sm:$0xff]  ;;  %306 = vst [vmem:[%s2523_s10 + $0xf0] sm:$0xff] %v305_v34  ;;  %308 = vst [vmem:[%s2523_s10 + $0xf8] sm:$0xff] %v307_v35  ;;  %v311_v37 = vld [vmem:[%s2518_s27 + $0x408] sm:$0xff] }
  0x48   : > { %310 = vst [vmem:[%s2523_s10 + $0x100] sm:$0xff] %v309_v36  ;;  %v313_v38 = vld [vmem:[%s2518_s27 + $0x440] sm:$0xff]  ;;  %v315_v39 = vld [vmem:[%s2518_s27 + $0x448] sm:$0xff]  ;;  %312 = vst [vmem:[%s2523_s10 + $0x108] sm:$0xff] %v311_v37 }
  0x49   : > { %314 = vst [vmem:[%s2523_s10 + $0x110] sm:$0xff] %v313_v38  ;;  %316 = vst [vmem:[%s2523_s10 + $0x118] sm:$0xff] %v315_v39  ;;  %v317_v40 = vld [vmem:[%s2518_s27 + $0x480] sm:$0xff]  ;;  %v319_v41 = vld [vmem:[%s2518_s27 + $0x488] sm:$0xff] }
  0x4a   : > { %v321_v42 = vld [vmem:[%s2518_s27 + $0x4c0] sm:$0xff]  ;;  %318 = vst [vmem:[%s2523_s10 + $0x120] sm:$0xff] %v317_v40  ;;  %320 = vst [vmem:[%s2523_s10 + $0x128] sm:$0xff] %v319_v41  ;;  %v323_v43 = vld [vmem:[%s2518_s27 + $0x4c8] sm:$0xff] }
  0x4b   : > { %322 = vst [vmem:[%s2523_s10 + $0x130] sm:$0xff] %v321_v42  ;;  %v325_v44 = vld [vmem:[%s2518_s27 + $0x500] sm:$0xff]  ;;  %v327_v45 = vld [vmem:[%s2518_s27 + $0x508] sm:$0xff]  ;;  %324 = vst [vmem:[%s2523_s10 + $0x138] sm:$0xff] %v323_v43 }
  0x4c   : > { %326 = vst [vmem:[%s2523_s10 + $0x140] sm:$0xff] %v325_v44  ;;  %328 = vst [vmem:[%s2523_s10 + $0x148] sm:$0xff] %v327_v45  ;;  %v329_v46 = vld [vmem:[%s2518_s27 + $0x540] sm:$0xff]  ;;  %v331_v47 = vld [vmem:[%s2518_s27 + $0x548] sm:$0xff] }
  0x4d   : > { %v333_v48 = vld [vmem:[%s2518_s27 + $0x580] sm:$0xff]  ;;  %330 = vst [vmem:[%s2523_s10 + $0x150] sm:$0xff] %v329_v46  ;;  %332 = vst [vmem:[%s2523_s10 + $0x158] sm:$0xff] %v331_v47  ;;  %v335_v49 = vld [vmem:[%s2518_s27 + $0x588] sm:$0xff] }
  0x4e   : > { %334 = vst [vmem:[%s2523_s10 + $0x160] sm:$0xff] %v333_v48  ;;  %v337_v50 = vld [vmem:[%s2518_s27 + $0x5c0] sm:$0xff]  ;;  %v339_v51 = vld [vmem:[%s2518_s27 + $0x5c8] sm:$0xff]  ;;  %336 = vst [vmem:[%s2523_s10 + $0x168] sm:$0xff] %v335_v49 }
  0x4f   : > { %338 = vst [vmem:[%s2523_s10 + $0x170] sm:$0xff] %v337_v50  ;;  %340 = vst [vmem:[%s2523_s10 + $0x178] sm:$0xff] %v339_v51  ;;  %v341_v52 = vld [vmem:[%s2518_s27 + $0x600] sm:$0xff]  ;;  %v343_v53 = vld [vmem:[%s2518_s27 + $0x608] sm:$0xff] }
  0x50   : > { %v345_v54 = vld [vmem:[%s2518_s27 + $0x640] sm:$0xff]  ;;  %342 = vst [vmem:[%s2523_s10 + $0x180] sm:$0xff] %v341_v52  ;;  %344 = vst [vmem:[%s2523_s10 + $0x188] sm:$0xff] %v343_v53  ;;  %v347_v55 = vld [vmem:[%s2518_s27 + $0x648] sm:$0xff] }
  0x51   : > { %346 = vst [vmem:[%s2523_s10 + $0x190] sm:$0xff] %v345_v54  ;;  %v349_v56 = vld [vmem:[%s2518_s27 + $0x680] sm:$0xff]  ;;  %v351_v57 = vld [vmem:[%s2518_s27 + $0x688] sm:$0xff]  ;;  %348 = vst [vmem:[%s2523_s10 + $0x198] sm:$0xff] %v347_v55 }
  0x52   : > { %350 = vst [vmem:[%s2523_s10 + $0x1a0] sm:$0xff] %v349_v56  ;;  %352 = vst [vmem:[%s2523_s10 + $0x1a8] sm:$0xff] %v351_v57  ;;  %v353_v58 = vld [vmem:[%s2518_s27 + $0x6c0] sm:$0xff]  ;;  %v355_v59 = vld [vmem:[%s2518_s27 + $0x6c8] sm:$0xff] }
  0x53   : > { %v357_v60 = vld [vmem:[%s2518_s27 + $0x700] sm:$0xff]  ;;  %354 = vst [vmem:[%s2523_s10 + $0x1b0] sm:$0xff] %v353_v58  ;;  %356 = vst [vmem:[%s2523_s10 + $0x1b8] sm:$0xff] %v355_v59  ;;  %v359_v61 = vld [vmem:[%s2518_s27 + $0x708] sm:$0xff] }
  0x54   : > { %358 = vst [vmem:[%s2523_s10 + $0x1c0] sm:$0xff] %v357_v60  ;;  %v361_v62 = vld [vmem:[%s2518_s27 + $0x740] sm:$0xff]  ;;  %v363_v63 = vld [vmem:[%s2518_s27 + $0x748] sm:$0xff]  ;;  %360 = vst [vmem:[%s2523_s10 + $0x1c8] sm:$0xff] %v359_v61 }
  0x55   : > { %362 = vst [vmem:[%s2523_s10 + $0x1d0] sm:$0xff] %v361_v62  ;;  %364 = vst [vmem:[%s2523_s10 + $0x1d8] sm:$0xff] %v363_v63  ;;  %v365_v0 = vld [vmem:[%s2518_s27 + $0x780] sm:$0xff]  ;;  %v367_v1 = vld [vmem:[%s2518_s27 + $0x788] sm:$0xff] }
  0x56   : > { %v369_v2 = vld [vmem:[%s2518_s27 + $0x7c0] sm:$0xff]  ;;  %366 = vst [vmem:[%s2523_s10 + $0x1e0] sm:$0xff] %v365_v0  ;;  %368 = vst [vmem:[%s2523_s10 + $0x1e8] sm:$0xff] %v367_v1  ;;  %v371_v3 = vld [vmem:[%s2518_s27 + $0x7c8] sm:$0xff] }
  0x57   : > { %370 = vst [vmem:[%s2523_s10 + $0x1f0] sm:$0xff] %v369_v2  ;;  %v373_v4 = vld [vmem:[%s2518_s27 + $0x800] sm:$0xff]  ;;  %v375_v5 = vld [vmem:[%s2518_s27 + $0x808] sm:$0xff]  ;;  %372 = vst [vmem:[%s2523_s10 + $0x1f8] sm:$0xff] %v371_v3 }
  0x58   : > { %374 = vst [vmem:[%s2523_s10 + $0x200] sm:$0xff] %v373_v4  ;;  %376 = vst [vmem:[%s2523_s10 + $0x208] sm:$0xff] %v375_v5  ;;  %v377_v6 = vld [vmem:[%s2518_s27 + $0x840] sm:$0xff]  ;;  %v379_v7 = vld [vmem:[%s2518_s27 + $0x848] sm:$0xff] }
  0x59   : > { %v381_v8 = vld [vmem:[%s2518_s27 + $0x880] sm:$0xff]  ;;  %378 = vst [vmem:[%s2523_s10 + $0x210] sm:$0xff] %v377_v6  ;;  %380 = vst [vmem:[%s2523_s10 + $0x218] sm:$0xff] %v379_v7  ;;  %v383_v9 = vld [vmem:[%s2518_s27 + $0x888] sm:$0xff] }
  0x5a   : > { %382 = vst [vmem:[%s2523_s10 + $0x220] sm:$0xff] %v381_v8  ;;  %v385_v10 = vld [vmem:[%s2518_s27 + $0x8c0] sm:$0xff]  ;;  %v387_v11 = vld [vmem:[%s2518_s27 + $0x8c8] sm:$0xff]  ;;  %384 = vst [vmem:[%s2523_s10 + $0x228] sm:$0xff] %v383_v9 }
  0x5b   : > { %386 = vst [vmem:[%s2523_s10 + $0x230] sm:$0xff] %v385_v10  ;;  %388 = vst [vmem:[%s2523_s10 + $0x238] sm:$0xff] %v387_v11  ;;  %v389_v12 = vld [vmem:[%s2518_s27 + $0x900] sm:$0xff]  ;;  %v391_v13 = vld [vmem:[%s2518_s27 + $0x908] sm:$0xff] }
  0x5c   : > { %v393_v14 = vld [vmem:[%s2518_s27 + $0x940] sm:$0xff]  ;;  %390 = vst [vmem:[%s2523_s10 + $0x240] sm:$0xff] %v389_v12  ;;  %392 = vst [vmem:[%s2523_s10 + $0x248] sm:$0xff] %v391_v13  ;;  %v395_v15 = vld [vmem:[%s2518_s27 + $0x948] sm:$0xff] }
  0x5d   : > { %394 = vst [vmem:[%s2523_s10 + $0x250] sm:$0xff] %v393_v14  ;;  %v397_v16 = vld [vmem:[%s2518_s27 + $0x980] sm:$0xff]  ;;  %v399_v17 = vld [vmem:[%s2518_s27 + $0x988] sm:$0xff]  ;;  %396 = vst [vmem:[%s2523_s10 + $0x258] sm:$0xff] %v395_v15 }
  0x5e   : > { %398 = vst [vmem:[%s2523_s10 + $0x260] sm:$0xff] %v397_v16  ;;  %400 = vst [vmem:[%s2523_s10 + $0x268] sm:$0xff] %v399_v17  ;;  %v401_v18 = vld [vmem:[%s2518_s27 + $0x9c0] sm:$0xff]  ;;  %v403_v19 = vld [vmem:[%s2518_s27 + $0x9c8] sm:$0xff] }
  0x5f   : > { %v405_v20 = vld [vmem:[%s2518_s27 + $0xa00] sm:$0xff]  ;;  %402 = vst [vmem:[%s2523_s10 + $0x270] sm:$0xff] %v401_v18  ;;  %404 = vst [vmem:[%s2523_s10 + $0x278] sm:$0xff] %v403_v19  ;;  %v407_v21 = vld [vmem:[%s2518_s27 + $0xa08] sm:$0xff] }
  0x60   : > { %406 = vst [vmem:[%s2523_s10 + $0x280] sm:$0xff] %v405_v20  ;;  %v409_v22 = vld [vmem:[%s2518_s27 + $0xa40] sm:$0xff]  ;;  %v411_v23 = vld [vmem:[%s2518_s27 + $0xa48] sm:$0xff]  ;;  %408 = vst [vmem:[%s2523_s10 + $0x288] sm:$0xff] %v407_v21 }
  0x61   : > { %410 = vst [vmem:[%s2523_s10 + $0x290] sm:$0xff] %v409_v22  ;;  %412 = vst [vmem:[%s2523_s10 + $0x298] sm:$0xff] %v411_v23  ;;  %v413_v24 = vld [vmem:[%s2518_s27 + $0xa80] sm:$0xff]  ;;  %v415_v25 = vld [vmem:[%s2518_s27 + $0xa88] sm:$0xff] }
  0x62   : > { %v417_v26 = vld [vmem:[%s2518_s27 + $0xac0] sm:$0xff]  ;;  %414 = vst [vmem:[%s2523_s10 + $0x2a0] sm:$0xff] %v413_v24  ;;  %416 = vst [vmem:[%s2523_s10 + $0x2a8] sm:$0xff] %v415_v25  ;;  %v419_v27 = vld [vmem:[%s2518_s27 + $0xac8] sm:$0xff] }
  0x63   : > { %418 = vst [vmem:[%s2523_s10 + $0x2b0] sm:$0xff] %v417_v26  ;;  %v421_v28 = vld [vmem:[%s2518_s27 + $0xb00] sm:$0xff]  ;;  %v423_v29 = vld [vmem:[%s2518_s27 + $0xb08] sm:$0xff]  ;;  %420 = vst [vmem:[%s2523_s10 + $0x2b8] sm:$0xff] %v419_v27 }
  0x64   : > { %422 = vst [vmem:[%s2523_s10 + $0x2c0] sm:$0xff] %v421_v28  ;;  %424 = vst [vmem:[%s2523_s10 + $0x2c8] sm:$0xff] %v423_v29  ;;  %v425_v30 = vld [vmem:[%s2518_s27 + $0xb40] sm:$0xff]  ;;  %v427_v31 = vld [vmem:[%s2518_s27 + $0xb48] sm:$0xff] }
  0x65   : > { %v429_v32 = vld [vmem:[%s2518_s27 + $0xb80] sm:$0xff]  ;;  %426 = vst [vmem:[%s2523_s10 + $0x2d0] sm:$0xff] %v425_v30  ;;  %428 = vst [vmem:[%s2523_s10 + $0x2d8] sm:$0xff] %v427_v31  ;;  %v431_v33 = vld [vmem:[%s2518_s27 + $0xb88] sm:$0xff] }
  0x66   : > { %430 = vst [vmem:[%s2523_s10 + $0x2e0] sm:$0xff] %v429_v32  ;;  %v433_v34 = vld [vmem:[%s2518_s27 + $0xbc0] sm:$0xff]  ;;  %v435_v35 = vld [vmem:[%s2518_s27 + $0xbc8] sm:$0xff]  ;;  %432 = vst [vmem:[%s2523_s10 + $0x2e8] sm:$0xff] %v431_v33 }
  0x67   : > { %434 = vst [vmem:[%s2523_s10 + $0x2f0] sm:$0xff] %v433_v34  ;;  %436 = vst [vmem:[%s2523_s10 + $0x2f8] sm:$0xff] %v435_v35  ;;  %v437_v36 = vld [vmem:[%s2518_s27 + $0xc00] sm:$0xff]  ;;  %v439_v37 = vld [vmem:[%s2518_s27 + $0xc08] sm:$0xff] }
  0x68   : > { %v441_v38 = vld [vmem:[%s2518_s27 + $0xc40] sm:$0xff]  ;;  %438 = vst [vmem:[%s2523_s10 + $0x300] sm:$0xff] %v437_v36  ;;  %440 = vst [vmem:[%s2523_s10 + $0x308] sm:$0xff] %v439_v37  ;;  %v443_v39 = vld [vmem:[%s2518_s27 + $0xc48] sm:$0xff] }
  0x69   : > { %442 = vst [vmem:[%s2523_s10 + $0x310] sm:$0xff] %v441_v38  ;;  %v445_v40 = vld [vmem:[%s2518_s27 + $0xc80] sm:$0xff]  ;;  %v447_v41 = vld [vmem:[%s2518_s27 + $0xc88] sm:$0xff]  ;;  %444 = vst [vmem:[%s2523_s10 + $0x318] sm:$0xff] %v443_v39 }
  0x6a   : > { %446 = vst [vmem:[%s2523_s10 + $0x320] sm:$0xff] %v445_v40  ;;  %448 = vst [vmem:[%s2523_s10 + $0x328] sm:$0xff] %v447_v41  ;;  %v449_v42 = vld [vmem:[%s2518_s27 + $0xcc0] sm:$0xff]  ;;  %v451_v43 = vld [vmem:[%s2518_s27 + $0xcc8] sm:$0xff] }
  0x6b   : > { %v453_v44 = vld [vmem:[%s2518_s27 + $0xd00] sm:$0xff]  ;;  %450 = vst [vmem:[%s2523_s10 + $0x330] sm:$0xff] %v449_v42  ;;  %452 = vst [vmem:[%s2523_s10 + $0x338] sm:$0xff] %v451_v43  ;;  %v455_v45 = vld [vmem:[%s2518_s27 + $0xd08] sm:$0xff] }
  0x6c   : > { %454 = vst [vmem:[%s2523_s10 + $0x340] sm:$0xff] %v453_v44  ;;  %v457_v46 = vld [vmem:[%s2518_s27 + $0xd40] sm:$0xff]  ;;  %v459_v47 = vld [vmem:[%s2518_s27 + $0xd48] sm:$0xff]  ;;  %456 = vst [vmem:[%s2523_s10 + $0x348] sm:$0xff] %v455_v45 }
  0x6d   : > { %458 = vst [vmem:[%s2523_s10 + $0x350] sm:$0xff] %v457_v46  ;;  %460 = vst [vmem:[%s2523_s10 + $0x358] sm:$0xff] %v459_v47  ;;  %v461_v48 = vld [vmem:[%s2518_s27 + $0xd80] sm:$0xff]  ;;  %v463_v49 = vld [vmem:[%s2518_s27 + $0xd88] sm:$0xff] }
  0x6e   : > { %v465_v50 = vld [vmem:[%s2518_s27 + $0xdc0] sm:$0xff]  ;;  %462 = vst [vmem:[%s2523_s10 + $0x360] sm:$0xff] %v461_v48  ;;  %464 = vst [vmem:[%s2523_s10 + $0x368] sm:$0xff] %v463_v49  ;;  %v467_v51 = vld [vmem:[%s2518_s27 + $0xdc8] sm:$0xff] }
  0x6f   : > { %466 = vst [vmem:[%s2523_s10 + $0x370] sm:$0xff] %v465_v50  ;;  %v469_v52 = vld [vmem:[%s2518_s27 + $0xe00] sm:$0xff]  ;;  %v471_v53 = vld [vmem:[%s2518_s27 + $0xe08] sm:$0xff]  ;;  %468 = vst [vmem:[%s2523_s10 + $0x378] sm:$0xff] %v467_v51 }
  0x70   : > { %470 = vst [vmem:[%s2523_s10 + $0x380] sm:$0xff] %v469_v52  ;;  %472 = vst [vmem:[%s2523_s10 + $0x388] sm:$0xff] %v471_v53  ;;  %v473_v54 = vld [vmem:[%s2518_s27 + $0xe40] sm:$0xff]  ;;  %v475_v55 = vld [vmem:[%s2518_s27 + $0xe48] sm:$0xff] }
  0x71   : > { %v477_v56 = vld [vmem:[%s2518_s27 + $0xe80] sm:$0xff]  ;;  %474 = vst [vmem:[%s2523_s10 + $0x390] sm:$0xff] %v473_v54  ;;  %476 = vst [vmem:[%s2523_s10 + $0x398] sm:$0xff] %v475_v55  ;;  %v479_v57 = vld [vmem:[%s2518_s27 + $0xe88] sm:$0xff] }
  0x72   : > { %478 = vst [vmem:[%s2523_s10 + $0x3a0] sm:$0xff] %v477_v56  ;;  %v481_v58 = vld [vmem:[%s2518_s27 + $0xec0] sm:$0xff]  ;;  %v483_v59 = vld [vmem:[%s2518_s27 + $0xec8] sm:$0xff]  ;;  %480 = vst [vmem:[%s2523_s10 + $0x3a8] sm:$0xff] %v479_v57 }
  0x73   : > { %482 = vst [vmem:[%s2523_s10 + $0x3b0] sm:$0xff] %v481_v58  ;;  %484 = vst [vmem:[%s2523_s10 + $0x3b8] sm:$0xff] %v483_v59  ;;  %v485_v60 = vld [vmem:[%s2518_s27 + $0xf00] sm:$0xff]  ;;  %v487_v61 = vld [vmem:[%s2518_s27 + $0xf08] sm:$0xff] }
  0x74   : > { %v489_v62 = vld [vmem:[%s2518_s27 + $0xf40] sm:$0xff]  ;;  %486 = vst [vmem:[%s2523_s10 + $0x3c0] sm:$0xff] %v485_v60  ;;  %488 = vst [vmem:[%s2523_s10 + $0x3c8] sm:$0xff] %v487_v61  ;;  %v491_v63 = vld [vmem:[%s2518_s27 + $0xf48] sm:$0xff] }
  0x75   : > { %490 = vst [vmem:[%s2523_s10 + $0x3d0] sm:$0xff] %v489_v62  ;;  %v493_v0 = vld [vmem:[%s2518_s27 + $0xf80] sm:$0xff]  ;;  %v495_v1 = vld [vmem:[%s2518_s27 + $0xf88] sm:$0xff]  ;;  %492 = vst [vmem:[%s2523_s10 + $0x3d8] sm:$0xff] %v491_v63 }
  0x76   : > { %494 = vst [vmem:[%s2523_s10 + $0x3e0] sm:$0xff] %v493_v0  ;;  %496 = vst [vmem:[%s2523_s10 + $0x3e8] sm:$0xff] %v495_v1  ;;  %v497_v2 = vld [vmem:[%s2518_s27 + $0xfc0] sm:$0xff]  ;;  %v499_v3 = vld [vmem:[%s2518_s27 + $0xfc8] sm:$0xff] }
  0x77   : > { %498 = vst [vmem:[%s2523_s10 + $0x3f0] sm:$0xff] %v497_v2  ;;  %500 = vst [vmem:[%s2523_s10 + $0x3f8] sm:$0xff] %v499_v3 }
  0x78 PF: > { %p1847_p0 = scmp.ge.s32.totalorder %s2376_s25, 1  ;;  %p521_p1 = scmp.lt.s32.totalorder %s2376_s25, 37 }
  0x7a   : > { %p522_p2 = pnand %p1847_p0, %p521_p1 }
  0x7b   : > { %s528_s0 = sand.u32 (!%p522_p2), 1, %s2352_s19   ;;  %s535_s28 = sand.u32 (!%p522_p2), 1, %s2344_s17  }
  0x7c   : > { %525 = sbr.rel (%p522_p2) target bundleno = 507 (0x1fb), region = 74  ;;  %s1848_s11 = sshll.u32 (!%p522_p2), %s528_s0, 5 }
  0x7d   : > { %s1849_s26 = sshll.u32 (!%p522_p2), %s535_s28, 10  ;;  %s568_s5 = sand.u32 (!%p522_p2), 1, %s2336_s15  }
  0x7e   : > { %s1851_s27 = sshll.u32 (!%p522_p2), %s2364_s22, 2  ;;  %s1850_s29 = sshll.u32 (!%p522_p2), %s568_s5, 6 }
  0x7f   : > { %p576_p3 = scmp.lt.s32.totalorder (!%p522_p2), %s1851_s27, 15  ;;  %s2794_s19 = scalar_lea.vmem (!%p522_p2), [#allocation3], %s1848_s11 }
  0x80   : > { %s2796_s17 = scalar_lea.vmem (!%p522_p2), [#allocation4], %s1849_s26  ;;  %s2798_s15 = scalar_lea.vmem (!%p522_p2), [#allocation5], %s1850_s29 }
  0x81   : > { %p1853_p4 = scmp.ne.s32.totalorder (!%p522_p2), %s2360_s21, 0 }
  0x83   : > { %s3034_s27 = smov (!%p576_p3, %s1851_s27), 15  ;;  %590 = sbr.rel (%p1853_p4) target bundleno = 138 (0x8a), region = 86 }
  0x84   : > { %s578_s9 = scalar_lea.vmem %s3001_s2, %s3034_s27  ;;  %s583_s1 = scalar_lea.vmem %s3002_s3, %s3034_s27  ;;  %v2378_v4 = vmov (!%p1853_p4), 0.0  }
  0x85   : > { %591 = vst [vmem:[#allocation2] sm:$0xff] (!%p1853_p4), %v2378_v4  ;;  %592 = vst [vmem:[#allocation2 + $0x8] sm:$0xff] (!%p1853_p4), %v2378_v4 }
  0x86   : > { %593 = vst [vmem:[#allocation2 + $0x10] sm:$0xff] (!%p1853_p4), %v2378_v4  ;;  %594 = vst [vmem:[#allocation2 + $0x18] sm:$0xff] (!%p1853_p4), %v2378_v4 }
  0x87   : > { %595 = vst [vmem:[#allocation2 + $0x20] sm:$0xff] (!%p1853_p4), %v2378_v4  ;;  %596 = vst [vmem:[#allocation2 + $0x28] sm:$0xff] (!%p1853_p4), %v2378_v4 }
  0x88   : > { %597 = vst [vmem:[#allocation2 + $0x30] sm:$0xff] (!%p1853_p4), %v2378_v4  ;;  %598 = vst [vmem:[#allocation2 + $0x38] sm:$0xff] (!%p1853_p4), %v2378_v4 }
  0x8a PF: > { %v2092_v5 = vld [vmem:[%s2796_s17 + $0x4] ss:$16 sps:$4 sm:$0xff]   ;;  %v2094_v6 = vld [vmem:[%s2796_s17 + $0xc] ss:$16 sps:$4 sm:$0xff]   ;;  %v2096_v7 = vld [vmem:[%s2796_s17] ss:$16 sps:$4 sm:$0xff]  }
  0x8b   : > { %1399 = vmatprep.subr.bf16.mxu0 %v2092_v5  ;;  %v2097_v8 = vld [vmem:[%s2796_s17 + $0x8] ss:$16 sps:$4 sm:$0xff]   ;;  %1485 = vmatprep.subr.bf16.mxu1 %v2094_v6  ;;  %v2098_v9 = vld [vmem:[%s2796_s17 + $0x24] ss:$16 sps:$4 sm:$0xff]   ;;  %v2100_v10 = vld [vmem:[%s2796_s17 + $0x2c] ss:$16 sps:$4 sm:$0xff]  }
  0x8c   : > { %1400 = vmatpush1.bf16.msra.mxu0 %v2096_v7  ;;  %1486 = vmatpush1.bf16.msra.mxu1 %v2097_v8  ;;  %v2102_v11 = vld [vmem:[%s2796_s17 + $0x20] ss:$16 sps:$4 sm:$0xff]   ;;  %v2103_v12 = vld [vmem:[%s2796_s17 + $0x28] ss:$16 sps:$4 sm:$0xff]   ;;  %v2104_v13 = vld [vmem:[%s2796_s17 + $0x44] ss:$16 sps:$4 sm:$0xff]  }
  0x8d   : > { %1401 = vmatprep.subr.bf16.mxu0 %v2098_v9  ;;  %1487 = vmatprep.subr.bf16.mxu1 %v2100_v10  ;;  %v2106_v14 = vld [vmem:[%s2796_s17 + $0x4c] ss:$16 sps:$4 sm:$0xff]   ;;  %v2108_v15 = vld [vmem:[%s2796_s17 + $0x40] ss:$16 sps:$4 sm:$0xff]   ;;  %v2109_v16 = vld [vmem:[%s2796_s17 + $0x48] ss:$16 sps:$4 sm:$0xff]  }
  0x8e   : > { %v2110_v17 = vld [vmem:[%s2796_s17 + $0x64] ss:$16 sps:$4 sm:$0xff]   ;;  %v2112_v18 = vld [vmem:[%s2796_s17 + $0x6c] ss:$16 sps:$4 sm:$0xff]   ;;  %v2114_v19 = vld [vmem:[%s2796_s17 + $0x60] ss:$16 sps:$4 sm:$0xff]  }
  0x8f   : > { %v2115_v20 = vld [vmem:[%s2796_s17 + $0x68] ss:$16 sps:$4 sm:$0xff]   ;;  %v2116_v21 = vld [vmem:[%s2796_s17 + $0x84] ss:$16 sps:$4 sm:$0xff]   ;;  %v2118_v22 = vld [vmem:[%s2796_s17 + $0x8c] ss:$16 sps:$4 sm:$0xff]  }
  0x90   : > { %1402 = vmatpush1.bf16.msra.mxu0 %v2102_v11  ;;  %1488 = vmatpush1.bf16.msra.mxu1 %v2103_v12  ;;  %v2120_v23 = vld [vmem:[%s2796_s17 + $0x80] ss:$16 sps:$4 sm:$0xff]   ;;  %v2121_v24 = vld [vmem:[%s2796_s17 + $0x88] ss:$16 sps:$4 sm:$0xff]   ;;  %v2122_v25 = vld [vmem:[%s2796_s17 + $0xa4] ss:$16 sps:$4 sm:$0xff]  }
  0x91   : > { %1403 = vmatprep.subr.bf16.mxu0 %v2104_v13  ;;  %1489 = vmatprep.subr.bf16.mxu1 %v2106_v14  ;;  %v2124_v26 = vld [vmem:[%s2796_s17 + $0xac] ss:$16 sps:$4 sm:$0xff]   ;;  %v2126_v27 = vld [vmem:[%s2796_s17 + $0xa0] ss:$16 sps:$4 sm:$0xff]   ;;  %v2127_v28 = vld [vmem:[%s2796_s17 + $0xa8] ss:$16 sps:$4 sm:$0xff]  }
  0x92   : > { %v2128_v29 = vld [vmem:[%s2796_s17 + $0xc4] ss:$16 sps:$4 sm:$0xff]   ;;  %v2130_v30 = vld [vmem:[%s2796_s17 + $0xcc] ss:$16 sps:$4 sm:$0xff]   ;;  %v2132_v31 = vld [vmem:[%s2796_s17 + $0xc0] ss:$16 sps:$4 sm:$0xff]  }
  0x93   : > { %v2133_v32 = vld [vmem:[%s2796_s17 + $0xc8] ss:$16 sps:$4 sm:$0xff]   ;;  %v2134_v33 = vld [vmem:[%s2796_s17 + $0xe4] ss:$16 sps:$4 sm:$0xff]   ;;  %v2136_v34 = vld [vmem:[%s2796_s17 + $0xec] ss:$16 sps:$4 sm:$0xff]  }
  0x94   : > { %1404 = vmatpush1.bf16.msra.mxu0 %v2108_v15  ;;  %1490 = vmatpush1.bf16.msra.mxu1 %v2109_v16  ;;  %v2138_v35 = vld [vmem:[%s2796_s17 + $0xe0] ss:$16 sps:$4 sm:$0xff]   ;;  %v2139_v36 = vld [vmem:[%s2796_s17 + $0xe8] ss:$16 sps:$4 sm:$0xff]   ;;  %v2140_v37 = vld [vmem:[%s2796_s17 + $0x104] ss:$16 sps:$4 sm:$0xff]  }
  0x95   : > { %1405 = vmatprep.subr.bf16.mxu0 %v2110_v17  ;;  %1491 = vmatprep.subr.bf16.mxu1 %v2112_v18  ;;  %v2142_v38 = vld [vmem:[%s2796_s17 + $0x10c] ss:$16 sps:$4 sm:$0xff]   ;;  %v2144_v39 = vld [vmem:[%s2796_s17 + $0x100] ss:$16 sps:$4 sm:$0xff]   ;;  %v2145_v40 = vld [vmem:[%s2796_s17 + $0x108] ss:$16 sps:$4 sm:$0xff]  }
  0x96   : > { %v2146_v41 = vld [vmem:[%s2796_s17 + $0x124] ss:$16 sps:$4 sm:$0xff]   ;;  %v2148_v42 = vld [vmem:[%s2796_s17 + $0x12c] ss:$16 sps:$4 sm:$0xff]   ;;  %v2150_v43 = vld [vmem:[%s2796_s17 + $0x120] ss:$16 sps:$4 sm:$0xff]  }
  0x97   : > { %v2151_v44 = vld [vmem:[%s2796_s17 + $0x128] ss:$16 sps:$4 sm:$0xff]   ;;  %v2152_v45 = vld [vmem:[%s2796_s17 + $0x144] ss:$16 sps:$4 sm:$0xff]   ;;  %v2154_v46 = vld [vmem:[%s2796_s17 + $0x14c] ss:$16 sps:$4 sm:$0xff]  }
  0x98   : > { %1406 = vmatpush1.bf16.msra.mxu0 %v2114_v19  ;;  %1492 = vmatpush1.bf16.msra.mxu1 %v2115_v20  ;;  %v2156_v47 = vld [vmem:[%s2796_s17 + $0x140] ss:$16 sps:$4 sm:$0xff]   ;;  %v2157_v48 = vld [vmem:[%s2796_s17 + $0x148] ss:$16 sps:$4 sm:$0xff]   ;;  %v2158_v49 = vld [vmem:[%s2796_s17 + $0x164] ss:$16 sps:$4 sm:$0xff]  }
  0x99   : > { %1407 = vmatprep.subr.bf16.mxu0 %v2116_v21  ;;  %1493 = vmatprep.subr.bf16.mxu1 %v2118_v22  ;;  %v2160_v50 = vld [vmem:[%s2796_s17 + $0x16c] ss:$16 sps:$4 sm:$0xff]   ;;  %v2162_v51 = vld [vmem:[%s2796_s17 + $0x160] ss:$16 sps:$4 sm:$0xff]   ;;  %v2163_v52 = vld [vmem:[%s2796_s17 + $0x168] ss:$16 sps:$4 sm:$0xff]  }
  0x9a   : > { %v2190_v53 = vld [vmem:[%s2794_s19 + $0x4] ss:$16 sps:$4 sm:$0xff]   ;;  %v2166_v55 = vld [vmem:[%s2796_s17 + $0x18c] ss:$16 sps:$4 sm:$0xff]   ;;  %v2168_v56 = vld [vmem:[%s2796_s17 + $0x180] ss:$16 sps:$4 sm:$0xff]  }
  0x9b   : > { %v2164_v54 = vld [vmem:[%s2796_s17 + $0x184] ss:$16 sps:$4 sm:$0xff]   ;;  %1431 = vmatprep.mubr.bf16.mxu0 %v2190_v53  ;;  %1517 = vmatprep.mubr.bf16.mxu1 %v2190_v53  ;;  %v2169_v57 = vld [vmem:[%s2796_s17 + $0x188] ss:$16 sps:$4 sm:$0xff]   ;;  %v2172_v59 = vld [vmem:[%s2796_s17 + $0x1ac] ss:$16 sps:$4 sm:$0xff]  }
  0x9c   : > { %1408 = vmatpush1.bf16.msra.mxu0 %v2120_v23  ;;  %1494 = vmatpush1.bf16.msra.mxu1 %v2121_v24  ;;  %v2170_v58 = vld [vmem:[%s2796_s17 + $0x1a4] ss:$16 sps:$4 sm:$0xff]   ;;  %v2174_v60 = vld [vmem:[%s2796_s17 + $0x1a0] ss:$16 sps:$4 sm:$0xff]   ;;  %v2175_v61 = vld [vmem:[%s2796_s17 + $0x1a8] ss:$16 sps:$4 sm:$0xff]  }
  0x9d   : > { %1409 = vmatprep.subr.bf16.mxu0 %v2122_v25  ;;  %1495 = vmatprep.subr.bf16.mxu1 %v2124_v26  ;;  %v2176_v62 = vld [vmem:[%s2796_s17 + $0x1c4] ss:$16 sps:$4 sm:$0xff]   ;;  %v2178_v63 = vld [vmem:[%s2796_s17 + $0x1cc] ss:$16 sps:$4 sm:$0xff]   ;;  %v2180_v0 = vld [vmem:[%s2796_s17 + $0x1c0] ss:$16 sps:$4 sm:$0xff]  }
  0x9e   : > { %v2181_v1 = vld [vmem:[%s2796_s17 + $0x1c8] ss:$16 sps:$4 sm:$0xff]   ;;  %v2182_v2 = vld [vmem:[%s2796_s17 + $0x1e4] ss:$16 sps:$4 sm:$0xff]   ;;  %v2184_v3 = vld [vmem:[%s2796_s17 + $0x1ec] ss:$16 sps:$4 sm:$0xff]  }
  0x9f   : > { %v2186_v4 = vld [vmem:[%s2796_s17 + $0x1e0] ss:$16 sps:$4 sm:$0xff]   ;;  %v2187_v5 = vld [vmem:[%s2796_s17 + $0x1e8] ss:$16 sps:$4 sm:$0xff]   ;;  %v2193_v6 = vld [vmem:[%s2796_s17 + $0x204] ss:$16 sps:$4 sm:$0xff]  }
  0xa0   : > { %1410 = vmatpush1.bf16.msra.mxu0 %v2126_v27  ;;  %1496 = vmatpush1.bf16.msra.mxu1 %v2127_v28  ;;  %v2196_v7 = vld [vmem:[%s2796_s17 + $0x20c] ss:$16 sps:$4 sm:$0xff]   ;;  %v2188_v8 = vld [vmem:[%s2794_s19] ss:$16 sps:$4 sm:$0xff]   ;;  %v2194_v10 = vld [vmem:[%s2796_s17 + $0x208] ss:$16 sps:$4 sm:$0xff]  }
  0xa1   : > { %1411 = vmatprep.subr.bf16.mxu0 %v2128_v29  ;;  %1497 = vmatprep.subr.bf16.mxu1 %v2130_v30  ;;  %v2191_v9 = vld [vmem:[%s2796_s17 + $0x200] ss:$16 sps:$4 sm:$0xff]   ;;  %v2199_v11 = vld [vmem:[%s2796_s17 + $0x224] ss:$16 sps:$4 sm:$0xff]   ;;  %v2202_v12 = vld [vmem:[%s2796_s17 + $0x22c] ss:$16 sps:$4 sm:$0xff]  }
  0xa2   : > { %v2197_v13 = vld [vmem:[%s2796_s17 + $0x220] ss:$16 sps:$4 sm:$0xff]   ;;  %v2200_v14 = vld [vmem:[%s2796_s17 + $0x228] ss:$16 sps:$4 sm:$0xff]   ;;  %v2205_v15 = vld [vmem:[%s2796_s17 + $0x244] ss:$16 sps:$4 sm:$0xff]  }
  0xa3   : > { %v2208_v16 = vld [vmem:[%s2796_s17 + $0x24c] ss:$16 sps:$4 sm:$0xff]   ;;  %v2203_v17 = vld [vmem:[%s2796_s17 + $0x240] ss:$16 sps:$4 sm:$0xff]   ;;  %v2206_v18 = vld [vmem:[%s2796_s17 + $0x248] ss:$16 sps:$4 sm:$0xff]  }
  0xa4   : > { %1412 = vmatpush1.bf16.msra.mxu0 %v2132_v31  ;;  %1498 = vmatpush1.bf16.msra.mxu1 %v2133_v32  ;;  %v2211_v19 = vld [vmem:[%s2796_s17 + $0x264] ss:$16 sps:$4 sm:$0xff]   ;;  %v2214_v20 = vld [vmem:[%s2796_s17 + $0x26c] ss:$16 sps:$4 sm:$0xff]   ;;  %v2209_v21 = vld [vmem:[%s2796_s17 + $0x260] ss:$16 sps:$4 sm:$0xff]  }
  0xa5   : > { %1413 = vmatprep.subr.bf16.mxu0 %v2134_v33  ;;  %1499 = vmatprep.subr.bf16.mxu1 %v2136_v34  ;;  %v2212_v22 = vld [vmem:[%s2796_s17 + $0x268] ss:$16 sps:$4 sm:$0xff]   ;;  %v2217_v23 = vld [vmem:[%s2796_s17 + $0x284] ss:$16 sps:$4 sm:$0xff]   ;;  %v2220_v24 = vld [vmem:[%s2796_s17 + $0x28c] ss:$16 sps:$4 sm:$0xff]  }
  0xa6   : > { %v2215_v25 = vld [vmem:[%s2796_s17 + $0x280] ss:$16 sps:$4 sm:$0xff]   ;;  %v2218_v26 = vld [vmem:[%s2796_s17 + $0x288] ss:$16 sps:$4 sm:$0xff]   ;;  %v2223_v27 = vld [vmem:[%s2796_s17 + $0x2a4] ss:$16 sps:$4 sm:$0xff]  }
  0xa7   : > { %v2226_v28 = vld [vmem:[%s2796_s17 + $0x2ac] ss:$16 sps:$4 sm:$0xff]   ;;  %v2221_v29 = vld [vmem:[%s2796_s17 + $0x2a0] ss:$16 sps:$4 sm:$0xff]   ;;  %v2224_v30 = vld [vmem:[%s2796_s17 + $0x2a8] ss:$16 sps:$4 sm:$0xff]  }
  0xa8   : > { %1414 = vmatpush1.bf16.msra.mxu0 %v2138_v35  ;;  %1500 = vmatpush1.bf16.msra.mxu1 %v2139_v36  ;;  %v2229_v31 = vld [vmem:[%s2796_s17 + $0x2c4] ss:$16 sps:$4 sm:$0xff]   ;;  %v2232_v32 = vld [vmem:[%s2796_s17 + $0x2cc] ss:$16 sps:$4 sm:$0xff]   ;;  %v2227_v34 = vld [vmem:[%s2796_s17 + $0x2c0] ss:$16 sps:$4 sm:$0xff]  }
  0xa9   : > { %1415 = vmatprep.subr.bf16.mxu0 %v2140_v37  ;;  %1501 = vmatprep.subr.bf16.mxu1 %v2142_v38  ;;  %v2289_v33 = vld [vmem:[%s2794_s19 + $0xc] ss:$16 sps:$4 sm:$0xff]   ;;  %v2230_v35 = vld [vmem:[%s2796_s17 + $0x2c8] ss:$16 sps:$4 sm:$0xff]   ;;  %v2235_v36 = vld [vmem:[%s2796_s17 + $0x2e4] ss:$16 sps:$4 sm:$0xff]  }
  0xaa   : > { %v2238_v37 = vld [vmem:[%s2796_s17 + $0x2ec] ss:$16 sps:$4 sm:$0xff]   ;;  %v2233_v38 = vld [vmem:[%s2796_s17 + $0x2e0] ss:$16 sps:$4 sm:$0xff]   ;;  %p1986_p5 = scmp.ne.s32.totalorder %s2360_s21, 8 }
  0xab   : > { %v2262_v53 = vld [vmem:[%s2796_s17 + $0x36c] ss:$16 sps:$4 sm:$0xff]  }
  0xac   : > { %1416 = vmatpush1.bf16.msra.mxu0 %v2144_v39  ;;  %1502 = vmatpush1.bf16.msra.mxu1 %v2145_v40  ;;  %v2236_v39 = vld [vmem:[%s2796_s17 + $0x2e8] ss:$16 sps:$4 sm:$0xff]   ;;  %v2241_v40 = vld [vmem:[%s2796_s17 + $0x304] ss:$16 sps:$4 sm:$0xff]  }
  0xad   : > { %1417 = vmatprep.subr.bf16.mxu0 %v2146_v41  ;;  %1503 = vmatprep.subr.bf16.mxu1 %v2148_v42  ;;  %v2244_v41 = vld [vmem:[%s2796_s17 + $0x30c] ss:$16 sps:$4 sm:$0xff]   ;;  %v2239_v42 = vld [vmem:[%s2796_s17 + $0x300] ss:$16 sps:$4 sm:$0xff]  }
  0xb0   : > { %1418 = vmatpush1.bf16.msra.mxu0 %v2150_v43  ;;  %1504 = vmatpush1.bf16.msra.mxu1 %v2151_v44  ;;  %v2242_v43 = vld [vmem:[%s2796_s17 + $0x308] ss:$16 sps:$4 sm:$0xff]   ;;  %v2247_v44 = vld [vmem:[%s2796_s17 + $0x324] ss:$16 sps:$4 sm:$0xff]  }
  0xb1   : > { %1419 = vmatprep.subr.bf16.mxu0 %v2152_v45  ;;  %1505 = vmatprep.subr.bf16.mxu1 %v2154_v46  ;;  %v2250_v45 = vld [vmem:[%s2796_s17 + $0x32c] ss:$16 sps:$4 sm:$0xff]   ;;  %v2245_v46 = vld [vmem:[%s2796_s17 + $0x320] ss:$16 sps:$4 sm:$0xff]  }
  0xb4   : > { %1420 = vmatpush1.bf16.msra.mxu0 %v2156_v47  ;;  %1506 = vmatpush1.bf16.msra.mxu1 %v2157_v48  ;;  %v2248_v47 = vld [vmem:[%s2796_s17 + $0x328] ss:$16 sps:$4 sm:$0xff]   ;;  %v2253_v48 = vld [vmem:[%s2796_s17 + $0x344] ss:$16 sps:$4 sm:$0xff]  }
  0xb5   : > { %1421 = vmatprep.subr.bf16.mxu0 %v2158_v49  ;;  %1507 = vmatprep.subr.bf16.mxu1 %v2160_v50  ;;  %v2256_v49 = vld [vmem:[%s2796_s17 + $0x34c] ss:$16 sps:$4 sm:$0xff]   ;;  %v2251_v50 = vld [vmem:[%s2796_s17 + $0x340] ss:$16 sps:$4 sm:$0xff]  }
  0xb8   : > { %1422 = vmatpush1.bf16.msra.mxu0 %v2162_v51  ;;  %1508 = vmatpush1.bf16.msra.mxu1 %v2163_v52  ;;  %v2254_v51 = vld [vmem:[%s2796_s17 + $0x348] ss:$16 sps:$4 sm:$0xff]   ;;  %v2259_v52 = vld [vmem:[%s2796_s17 + $0x364] ss:$16 sps:$4 sm:$0xff]  }
  0xb9   : > { %1423 = vmatprep.subr.bf16.mxu0 %v2164_v54  ;;  %1509 = vmatprep.subr.bf16.mxu1 %v2166_v55  ;;  %v2257_v54 = vld [vmem:[%s2796_s17 + $0x360] ss:$16 sps:$4 sm:$0xff]   ;;  %v2260_v55 = vld [vmem:[%s2796_s17 + $0x368] ss:$16 sps:$4 sm:$0xff]  }
  0xbc   : > { %1424 = vmatpush1.bf16.msra.mxu0 %v2168_v56  ;;  %1510 = vmatpush1.bf16.msra.mxu1 %v2169_v57  ;;  %v2265_v56 = vld [vmem:[%s2796_s17 + $0x384] ss:$16 sps:$4 sm:$0xff]   ;;  %v2268_v57 = vld [vmem:[%s2796_s17 + $0x38c] ss:$16 sps:$4 sm:$0xff]  }
  0xbd   : > { %1425 = vmatprep.subr.bf16.mxu0 %v2170_v58  ;;  %1511 = vmatprep.subr.bf16.mxu1 %v2172_v59  ;;  %v2263_v58 = vld [vmem:[%s2796_s17 + $0x380] ss:$16 sps:$4 sm:$0xff]   ;;  %v2266_v59 = vld [vmem:[%s2796_s17 + $0x388] ss:$16 sps:$4 sm:$0xff]  }
  0xc0   : > { %1426 = vmatpush1.bf16.msra.mxu0 %v2174_v60  ;;  %1512 = vmatpush1.bf16.msra.mxu1 %v2175_v61  ;;  %v2271_v60 = vld [vmem:[%s2796_s17 + $0x3a4] ss:$16 sps:$4 sm:$0xff]   ;;  %v2274_v61 = vld [vmem:[%s2796_s17 + $0x3ac] ss:$16 sps:$4 sm:$0xff]  }
  0xc1   : > { %1427 = vmatprep.subr.bf16.mxu0 %v2176_v62  ;;  %1513 = vmatprep.subr.bf16.mxu1 %v2178_v63  ;;  %v2269_v62 = vld [vmem:[%s2796_s17 + $0x3a0] ss:$16 sps:$4 sm:$0xff]   ;;  %v2272_v63 = vld [vmem:[%s2796_s17 + $0x3a8] ss:$16 sps:$4 sm:$0xff]  }
  0xc4   : > { %1428 = vmatpush1.bf16.msra.mxu0 %v2180_v0  ;;  %1514 = vmatpush1.bf16.msra.mxu1 %v2181_v1  ;;  %v2277_v0 = vld [vmem:[%s2796_s17 + $0x3c4] ss:$16 sps:$4 sm:$0xff]   ;;  %v2280_v1 = vld [vmem:[%s2796_s17 + $0x3cc] ss:$16 sps:$4 sm:$0xff]  }
  0xc5   : > { %1429 = vmatprep.subr.bf16.mxu0 %v2182_v2  ;;  %1515 = vmatprep.subr.bf16.mxu1 %v2184_v3  ;;  %v2275_v2 = vld [vmem:[%s2796_s17 + $0x3c0] ss:$16 sps:$4 sm:$0xff]   ;;  %v2278_v3 = vld [vmem:[%s2796_s17 + $0x3c8] ss:$16 sps:$4 sm:$0xff]  }
  0xc8   : > { %1430 = vmatpush1.bf16.msra.mxu0 %v2186_v4  ;;  %1516 = vmatpush1.bf16.msra.mxu1 %v2187_v5  ;;  %v2283_v4 = vld [vmem:[%s2796_s17 + $0x3e4] ss:$16 sps:$4 sm:$0xff]   ;;  %v2286_v5 = vld [vmem:[%s2796_s17 + $0x3ec] ss:$16 sps:$4 sm:$0xff]  }
  0xc9   : > { %1442 = vmatprep.subr.bf16.mxu0 %v2193_v6  ;;  %1528 = vmatprep.subr.bf16.mxu1 %v2196_v7  ;;  %v2281_v6 = vld [vmem:[%s2796_s17 + $0x3e0] ss:$16 sps:$4 sm:$0xff]   ;;  %v2284_v7 = vld [vmem:[%s2796_s17 + $0x3e8] ss:$16 sps:$4 sm:$0xff]  }
  0xcb   : > { %1432 = vmatmul.mubr.bf16.vlgmr.msra.gmra.mrb[0].mxu0 %v2188_v8  ;;  %1518 = vmatmul.mubr.bf16.vlgmr.msra.gmra.mrb[0].mxu1 %v2188_v8  ;;  %v2287_v8 = vld [vmem:[%s2794_s19 + $0x8] ss:$16 sps:$4 sm:$0xff]  }
  0xcc   : > { %1443 = vmatpush1.bf16.msra.mxu0 %v2191_v9  ;;  %1529 = vmatpush1.bf16.msra.mxu1 %v2194_v10  ;;  %v599_v9 = vld [vmem:[#allocation2] sm:$0xff]  ;;  %v601_v10 = vld [vmem:[#allocation2 + $0x10] sm:$0xff] }
  0xcd   : > { %1444 = vmatprep.subr.bf16.mxu0 %v2199_v11  ;;  %1530 = vmatprep.subr.bf16.mxu1 %v2202_v12  ;;  %v600_v11 = vld [vmem:[#allocation2 + $0x8] sm:$0xff]  ;;  %v602_v12 = vld [vmem:[#allocation2 + $0x18] sm:$0xff] }
  0xce   : > { %1474 = vmatprep.mubr.bf16.mxu0 %v2289_v33  ;;  %1560 = vmatprep.mubr.bf16.mxu1 %v2289_v33  ;;  %v1601_v33 = vlaneseq (!%p1986_p5) }
  0xd0   : > { %1445 = vmatpush1.bf16.msra.mxu0 %v2197_v13  ;;  %1531 = vmatpush1.bf16.msra.mxu1 %v2200_v14 }
  0xd1   : > { %1446 = vmatprep.subr.bf16.mxu0 %v2205_v15  ;;  %1532 = vmatprep.subr.bf16.mxu1 %v2208_v16  ;;  %v603_v15 = vld [vmem:[#allocation2 + $0x20] sm:$0xff]  ;;  %v605_v16 = vld [vmem:[#allocation2 + $0x30] sm:$0xff] }
  0xd4   : > { %1447 = vmatpush1.bf16.msra.mxu0 %v2203_v17  ;;  %1533 = vmatpush1.bf16.msra.mxu1 %v2206_v18 }
  0xd5   : > { %1448 = vmatprep.subr.bf16.mxu0 %v2211_v19  ;;  %1534 = vmatprep.subr.bf16.mxu1 %v2214_v20 }
  0xd8   : > { %1449 = vmatpush1.bf16.msra.mxu0 %v2209_v21  ;;  %1535 = vmatpush1.bf16.msra.mxu1 %v2212_v22  ;;  %v604_v21 = vld [vmem:[#allocation2 + $0x28] sm:$0xff]  ;;  %v606_v22 = vld [vmem:[#allocation2 + $0x38] sm:$0xff] }
  0xd9   : > { %1450 = vmatprep.subr.bf16.mxu0 %v2217_v23  ;;  %1536 = vmatprep.subr.bf16.mxu1 %v2220_v24 }
  0xdc   : > { %1451 = vmatpush1.bf16.msra.mxu0 %v2215_v25  ;;  %1537 = vmatpush1.bf16.msra.mxu1 %v2218_v26 }
  0xdd   : > { %1452 = vmatprep.subr.bf16.mxu0 %v2223_v27  ;;  %1538 = vmatprep.subr.bf16.mxu1 %v2226_v28 }
  0xe0   : > { %1453 = vmatpush1.bf16.msra.mxu0 %v2221_v29  ;;  %1539 = vmatpush1.bf16.msra.mxu1 %v2224_v30 }
  0xe1   : > { %1454 = vmatprep.subr.bf16.mxu0 %v2229_v31  ;;  %1540 = vmatprep.subr.bf16.mxu1 %v2232_v32 }
  0xe4   : > { %1455 = vmatpush1.bf16.msra.mxu0 %v2227_v34  ;;  %1541 = vmatpush1.bf16.msra.mxu1 %v2230_v35  ;;  %v1602_v34 = vshrl.u32 (!%p1986_p5), %v1601_v33, 7  ;;  %v1599_v35 = vld [vmem:[%s578_s9] sm:$0xf] (!%p1986_p5) }
  0xe5   : > { %1456 = vmatprep.subr.bf16.mxu0 %v2235_v36  ;;  %1542 = vmatprep.subr.bf16.mxu1 %v2238_v37  ;;  %v1629_v36 = vld [vmem:[%s583_s1] sm:$0xf] (!%p1986_p5) }
  0xe8   : > { %1457 = vmatpush1.bf16.msra.mxu0 %v2233_v38  ;;  %1543 = vmatpush1.bf16.msra.mxu1 %v2236_v39  ;;  %v1603_v38 = vsub.s32 (!%p1986_p5), 0, %v1602_v34 }
  0xe9   : > { %1458 = vmatprep.subr.bf16.mxu0 %v2241_v40  ;;  %1544 = vmatprep.subr.bf16.mxu1 %v2244_v41  ;;  %v1607_v40 = vsub.s32 (!%p1986_p5), 1, %v1602_v34  ;;  %v1611_v41 = vsub.s32 (!%p1986_p5), 2, %v1602_v34 }
  0xec   : > { %1459 = vmatpush1.bf16.msra.mxu0 %v2239_v42  ;;  %1545 = vmatpush1.bf16.msra.mxu1 %v2242_v43  ;;  %v1615_v42 = vsub.s32 (!%p1986_p5), 3, %v1602_v34 }
  0xed   : > { %1460 = vmatprep.subr.bf16.mxu0 %v2247_v44  ;;  %1546 = vmatprep.subr.bf16.mxu1 %v2250_v45 }
  0xf0   : > { %1461 = vmatpush1.bf16.msra.mxu0 %v2245_v46  ;;  %1547 = vmatpush1.bf16.msra.mxu1 %v2248_v47  ;;  %v1604_v46 = vrot.slane (!%p1986_p5), %v1599_v35, %v1603_v38  ;;  %v1634_v47 = vrot.slane (!%p1986_p5), %v1629_v36, %v1603_v38 }
  0xf1   : > { %1462 = vmatprep.subr.bf16.mxu0 %v2253_v48  ;;  %1548 = vmatprep.subr.bf16.mxu1 %v2256_v49  ;;  %v1608_v48 = vrot.slane (!%p1986_p5), %v1599_v35, %v1607_v40  ;;  %v1638_v49 = vrot.slane (!%p1986_p5), %v1629_v36, %v1607_v40 }
  0xf4   : > { %1463 = vmatpush1.bf16.msra.mxu0 %v2251_v50  ;;  %1549 = vmatpush1.bf16.msra.mxu1 %v2254_v51 }
  0xf5   : > { %1464 = vmatprep.subr.bf16.mxu0 %v2259_v52  ;;  %1550 = vmatprep.subr.bf16.mxu1 %v2262_v53  ;;  %v1612_v53 = vrot.slane (!%p1986_p5), %v1599_v35, %v1611_v41 }
  0xf8   : > { %1465 = vmatpush1.bf16.msra.mxu0 %v2257_v54  ;;  %1551 = vmatpush1.bf16.msra.mxu1 %v2260_v55  ;;  %v1642_v54 = vrot.slane (!%p1986_p5), %v1629_v36, %v1611_v41  ;;  %v1616_v55 = vrot.slane (!%p1986_p5), %v1599_v35, %v1615_v42 }
  0xf9   : > { %1466 = vmatprep.subr.bf16.mxu0 %v2265_v56  ;;  %1552 = vmatprep.subr.bf16.mxu1 %v2268_v57  ;;  %v1646_v56 = vrot.slane (!%p1986_p5), %v1629_v36, %v1615_v42 }
  0xfc   : > { %1467 = vmatpush1.bf16.msra.mxu0 %v2263_v58  ;;  %1553 = vmatpush1.bf16.msra.mxu1 %v2266_v59 }
  0xfd   : > { %1468 = vmatprep.subr.bf16.mxu0 %v2271_v60  ;;  %1554 = vmatprep.subr.bf16.mxu1 %v2274_v61 }
 0x100   : > { %1469 = vmatpush1.bf16.msra.mxu0 %v2269_v62  ;;  %1555 = vmatpush1.bf16.msra.mxu1 %v2272_v63 }
 0x101   : > { %1470 = vmatprep.subr.bf16.mxu0 %v2277_v0  ;;  %1556 = vmatprep.subr.bf16.mxu1 %v2280_v1 }
 0x104   : > { %1471 = vmatpush1.bf16.msra.mxu0 %v2275_v2  ;;  %1557 = vmatpush1.bf16.msra.mxu1 %v2278_v3 }
 0x105   : > { %1472 = vmatprep.subr.bf16.mxu0 %v2283_v4  ;;  %1558 = vmatprep.subr.bf16.mxu1 %v2286_v5 }
 0x108   : > { %1473 = vmatpush1.bf16.msra.mxu0 %v2281_v6  ;;  %1559 = vmatpush1.bf16.msra.mxu1 %v2284_v7 }
 0x10b   : > { %1475 = vmatmul.mubr.bf16.vlgmr.msra.gmra.mrb[0].mxu0 %v2287_v8  ;;  %1561 = vmatmul.mubr.bf16.vlgmr.msra.gmra.mrb[0].mxu1 %v2287_v8 }
 0x1de   : > { %v1476_v13 = vpop.f32.mrb[0].mxu0  ;;  %v1562_v14 = vpop.f32.mrb[0].mxu1  ;;  %1590 = sbr.rel (%p1986_p5) target bundleno = 499 (0x1f3), region = 90 }
 0x1df   : > { %v1571_v17 = vadd.f32 %v1476_v13, %v599_v9  ;;  %v1573_v18 = vadd.f32 %v1562_v14, %v601_v10  ;;  %v1478_v19 = vpop.f32.mrb[1].mxu0  ;;  %v1564_v20 = vpop.f32.mrb[1].mxu1 }
 0x1e0   : > { %v1572_v23 = vadd.f32 %v1478_v19, %v600_v11  ;;  %v1574_v24 = vadd.f32 %v1564_v20, %v602_v12  ;;  %v1480_v25 = vpop.f32.mrb[2].mxu0  ;;  %v1566_v26 = vpop.f32.mrb[2].mxu1 }
 0x1e1   : > { %1579 = vst [vmem:[#allocation2] sm:$0xff] %v1571_v17  ;;  %1581 = vst [vmem:[#allocation2 + $0x10] sm:$0xff] %v1573_v18  ;;  %v1575_v27 = vadd.f32 %v1480_v25, %v603_v15  ;;  %v1577_v28 = vadd.f32 %v1566_v26, %v605_v16  ;;  %v1482_v29 = vpop.f32.mrb[3].mxu0  ;;  %v1568_v30 = vpop.f32.mrb[3].mxu1 }
 0x1e2   : > { %1580 = vst [vmem:[#allocation2 + $0x8] sm:$0xff] %v1572_v23  ;;  %1582 = vst [vmem:[#allocation2 + $0x18] sm:$0xff] %v1574_v24  ;;  %v1576_v31 = vadd.f32 %v1482_v29, %v604_v21  ;;  %v1578_v32 = vadd.f32 %v1568_v30, %v606_v22 }
 0x1e3   : > { %1583 = vst [vmem:[#allocation2 + $0x20] sm:$0xff] %v1575_v27  ;;  %1585 = vst [vmem:[#allocation2 + $0x30] sm:$0xff] %v1577_v28 }
 0x1e4   : > { %1584 = vst [vmem:[#allocation2 + $0x28] sm:$0xff] %v1576_v31  ;;  %1586 = vst [vmem:[#allocation2 + $0x38] sm:$0xff] %v1578_v32 }
 0x1e8   : > { %v1591_v37 = vld [vmem:[#allocation2] sm:$0xff]  ;;  %v1593_v43 = vld [vmem:[#allocation2 + $0x10] sm:$0xff] }
 0x1e9   : > { %v1592_v39 = vld [vmem:[#allocation2 + $0x8] sm:$0xff]  ;;  %v1594_v50 = vld [vmem:[#allocation2 + $0x18] sm:$0xff]  ;;  %v1621_v57 = vmul.f32 %v1604_v46, %v1591_v37  ;;  %v1623_v61 = vmul.f32 %v1612_v53, %v1593_v43 }
 0x1ea   : > { %v1595_v44 = vld [vmem:[#allocation2 + $0x20] sm:$0xff]  ;;  %v1597_v51 = vld [vmem:[#allocation2 + $0x30] sm:$0xff]  ;;  %v1622_v58 = vmul.f32 %v1608_v48, %v1592_v39  ;;  %v1624_v62 = vmul.f32 %v1616_v55, %v1594_v50 }
 0x1eb   : > { %v1596_v45 = vld [vmem:[#allocation2 + $0x28] sm:$0xff]  ;;  %v1598_v52 = vld [vmem:[#allocation2 + $0x38] sm:$0xff]  ;;  %v1625_v59 = vmul.f32 %v1604_v46, %v1595_v44  ;;  %v1627_v63 = vmul.f32 %v1612_v53, %v1597_v51  ;;  %v1651_v1 = vadd.f32 %v1634_v47, %v1621_v57  ;;  %v1653_v5 = vadd.f32 %v1642_v54, %v1623_v61 }
 0x1ec   : > { %v1626_v60 = vmul.f32 %v1608_v48, %v1596_v45  ;;  %v1628_v0 = vmul.f32 %v1616_v55, %v1598_v52  ;;  %v1652_v2 = vadd.f32 %v1638_v49, %v1622_v58  ;;  %v1654_v6 = vadd.f32 %v1646_v56, %v1624_v62 }
 0x1ed   : > { %v1655_v3 = vadd.f32 %v1634_v47, %v1625_v59  ;;  %v1657_v7 = vadd.f32 %v1642_v54, %v1627_v63  ;;  %v1659_v9 = vmax.f32 %v1651_v1, 0.0  ;;  %v1661_v13 = vmax.f32 %v1653_v5, 0.0 }
 0x1ee   : > { %v1656_v4 = vadd.f32 %v1638_v49, %v1626_v60  ;;  %v1658_v8 = vadd.f32 %v1646_v56, %v1628_v0  ;;  %v1660_v10 = vmax.f32 %v1652_v2, 0.0  ;;  %v1662_v14 = vmax.f32 %v1654_v6, 0.0 }
 0x1ef   : > { %v1663_v11 = vmax.f32 %v1655_v3, 0.0  ;;  %v1665_v15 = vmax.f32 %v1657_v7, 0.0  ;;  %1667 = vst [vmem:[%s2798_s15] sm:$0xff] %v1659_v9  ;;  %1669 = vst [vmem:[%s2798_s15 + $0x10] sm:$0xff] %v1661_v13 }
 0x1f0   : > { %v1664_v12 = vmax.f32 %v1656_v4, 0.0  ;;  %v1666_v16 = vmax.f32 %v1658_v8, 0.0  ;;  %1668 = vst [vmem:[%s2798_s15 + $0x8] sm:$0xff] %v1660_v10  ;;  %1670 = vst [vmem:[%s2798_s15 + $0x18] sm:$0xff] %v1662_v14 }
 0x1f1   : > { %1671 = vst [vmem:[%s2798_s15 + $0x20] sm:$0xff] %v1663_v11  ;;  %1673 = vst [vmem:[%s2798_s15 + $0x30] sm:$0xff] %v1665_v15 }
 0x1f2   : > { %1672 = vst [vmem:[%s2798_s15 + $0x28] sm:$0xff] %v1664_v12  ;;  %1674 = vst [vmem:[%s2798_s15 + $0x38] sm:$0xff] %v1666_v16 }
 0x1f3 PF: > { %1681 = sbr.rel (!%p2498_p12) target bundleno = 507 (0x1fb), region = 94  ;;  %s1994_s1 = sshll.u32 (%p2498_p12), %s2364_s22, 5 }
 0x1f4   : > { %s1687_s27 = scalar_lea.vmem (%p2498_p12), %s3003_s4, %s1994_s1 }
 0x1f6   : > { %v1700_v17 = vld [vmem:[%s2798_s15] sm:$0xff] (%p2498_p12)  ;;  %v1704_v19 = vld [vmem:[%s2798_s15 + $0x10] sm:$0xff] (%p2498_p12) }
 0x1f7   : > { %v1702_v18 = vld [vmem:[%s2798_s15 + $0x8] sm:$0xff] (%p2498_p12)  ;;  %v1706_v20 = vld [vmem:[%s2798_s15 + $0x18] sm:$0xff] (%p2498_p12)  ;;  %1701 = vst [vmem:[%s1687_s27] sm:$0xff] (%p2498_p12), %v1700_v17  ;;  %1705 = vst [vmem:[%s1687_s27 + $0x10] sm:$0xff] (%p2498_p12), %v1704_v19 }
 0x1f8   : > { %v1708_v21 = vld [vmem:[%s2798_s15 + $0x20] sm:$0xff] (%p2498_p12)  ;;  %1703 = vst [vmem:[%s1687_s27 + $0x8] sm:$0xff] (%p2498_p12), %v1702_v18  ;;  %1707 = vst [vmem:[%s1687_s27 + $0x18] sm:$0xff] (%p2498_p12), %v1706_v20  ;;  %v1712_v23 = vld [vmem:[%s2798_s15 + $0x30] sm:$0xff] (%p2498_p12) }
 0x1f9   : > { %v1710_v22 = vld [vmem:[%s2798_s15 + $0x28] sm:$0xff] (%p2498_p12)  ;;  %1709 = vst [vmem:[%s1687_s27 + $0x80] sm:$0xff] (%p2498_p12), %v1708_v21  ;;  %v1714_v24 = vld [vmem:[%s2798_s15 + $0x38] sm:$0xff] (%p2498_p12)  ;;  %1713 = vst [vmem:[%s1687_s27 + $0x90] sm:$0xff] (%p2498_p12), %v1712_v23 }
 0x1fa   : > { %1711 = vst [vmem:[%s1687_s27 + $0x88] sm:$0xff] %v1710_v22  ;;  %1715 = vst [vmem:[%s1687_s27 + $0x98] sm:$0xff] %v1714_v24 }
 0x1fb PF: > { %s14_s25 = sadd.s32 1, %s2376_s25   ;;  %s3015_s14 = sld [smem:[#allocation6_spill]] }
 0x1fc   : > { %p11_p6 = scmp.ge.s32.totalorder %s14_s25, 38   ;;  %s3016_s29 = sld [smem:[#allocation7_spill]] }
 0x1fd   : > { %s3017_s15 = smov %s2340_s16  ;;  %s3018_s16 = smov %s2496_s13 }
 0x1fe   : > { %s3019_s17 = smov %s2348_s18  ;;  %s3020_s18 = smov %s2493_s12 }
 0x1ff   : > { %s3021_s19 = smov %s2356_s20  ;;  %s3022_s20 = smov %s2479_s7 }
 0x200   : > { %s3023_s21 = smov %s2368_s23  ;;  %s3024_s22 = smov %s2372_s24 }
 0x201   : > { %s3025_s23 = smov %s3015_s14  ;;  %13 = sbr.rel (!%p11_p6) target bundleno = 9 (0x9), region = 162 }
 0x202   : > { %s3026_s24 = smov %s3016_s29 }

// kernel: fwd.33
= control target key start
LH: loop header
LB: loop body
LE: loop exit
PB: predicated region body
PF: predicated region fallthrough
CT: control target
= control target key end

     0   :  { %s2999_s0 = inlined_call_operand.vmem [shape: bf16[16,2048], index: 0, kind: input, shape index: {}]   ;;  %s3000_s1 = inlined_call_operand.vmem [shape: bf16[2048,2048], index: 1, kind: input, shape index: {}]   ;;  %s3001_s2 = inlined_call_operand.vmem [shape: f32[1,2048], index: 2, kind: input, shape index: {}]   ;;  %s3002_s3 = inlined_call_operand.vmem [shape: f32[1,2048], index: 3, kind: input, shape index: {}]   ;;  %s3003_s4 = inlined_call_operand.vmem [shape: f32[16,2048], index: 4, kind: output, shape index: {}]  }
   0x1   :  { %3006 = sst [smem:[#allocation8_spill]] %s2999_s0 }
   0x2   :  { %3007 = sst [smem:[#allocation9_spill]] %s3000_s1 }
   0x3   :  { %s2404_s15 = smov 0   ;;  %s2406_s16 = smov 0  }
   0x4   :  { %s2408_s17 = smov 0   ;;  %s2410_s18 = smov 0  }
   0x5   :  { %s2412_s19 = smov 0   ;;  %s2414_s20 = smov 0  }
   0x6   :  { %s2416_s21 = smov 0   ;;  %s2418_s22 = smov 0  }
   0x7   :  { %s2420_s23 = smov 0   ;;  %s2422_s24 = smov 0  }
   0x8   :  { %s2424_s25 = smov 0  }
   0x9 LB: > { %s1835_s26 = sadd.s32 4294967295, %s2376_s25   ;;  %s26_s27 = sadd.s32 1, %s2368_s23  ;;  %s2376_s25 = sphi %s2424_s25, %s14_s25   ;;  %s2372_s24 = sphi %s2422_s24, %s3026_s24   ;;  %s2368_s23 = sphi %s2420_s23, %s3025_s23   ;;  %s2364_s22 = sphi %s2418_s22, %s3024_s22   ;;  %s2360_s21 = sphi %s2416_s21, %s3023_s21   ;;  %s2356_s20 = sphi %s2414_s20, %s3022_s20   ;;  %s2352_s19 = sphi %s2412_s19, %s3021_s19   ;;  %s2348_s18 = sphi %s2410_s18, %s3020_s18   ;;  %s2344_s17 = sphi %s2408_s17, %s3019_s17   ;;  %s2340_s16 = sphi %s2406_s16, %s3018_s16   ;;  %s2336_s15 = sphi %s2404_s15, %s3017_s15  }
   0xa   : > { %p27_p0 = scmp.ge.s32.totalorder %s26_s27, 4  ;;  %s29_s28 = sadd.s32 1, %s2372_s24 }
   0xb   : > { %s42_s29 = sadd.s32 1, %s2356_s20  ;;  %p49_p1 = scmp.ne.s32.totalorder %s2356_s20, %s2352_s19 }
   0xc   : > { %s3028_s27 = smov (%p27_p0, %s26_s27), 0  ;;  %s3030_s28 = smov (!%p27_p0, %s29_s28), %s2372_s24 }
   0xd   : > { %3008 = sst [smem:[#allocation6_spill]] %s3028_s27  ;;  %s38_s30 = ssub.s32 %s2368_s23, %s3028_s27 }
   0xe   : > { %p50_p2 = scmp.eq.s32.totalorder %s2376_s25, 0  ;;  %p31_p3 = scmp.ge.s32.totalorder %s3030_s28, 4 }
   0xf   : > { %p40_p4 = scmp.eq.s32.totalorder %s38_s30, 0  ;;  %s70_s6 = sadd.s32 1, %s2348_s18 }
  0x10   : > { %p2471_p5 = por %p50_p2, %p49_p1  ;;  %s3032_s28 = smov (%p31_p3, %s3030_s28), 0 }
  0x11   : > { %3010 = sst [smem:[#allocation7_spill]] %s3032_s28  ;;  %s66_s8 = ssub.s32 %s2372_s24, %s3032_s28 }
  0x12   : > { %s2479_s7 = scalar_select %p40_p4, %s2356_s20, %s42_s29  }
  0x13   : > { %p77_p6 = scmp.ne.s32.totalorder %s2348_s18, %s2344_s17  ;;  %s67_s9 = sor.u32 %s66_s8, %s38_s30 }
  0x14   : > { %p148_p7 = scmp.eq.s32.totalorder %s66_s8, 0  ;;  %p68_p8 = scmp.eq.s32.totalorder %s67_s9, 0 }
  0x15   : > { %p2485_p9 = por %p77_p6, %p50_p2  ;;  %s150_s11 = sadd.s32 1, %s2340_s16 }
  0x16   : > { %p160_p10 = scmp.ne.s32.totalorder %s2340_s16, %s2336_s15  ;;  %p161_p11 = scmp.eq.s32.totalorder %s1835_s26, 15 }
  0x17   : > { %s2493_s12 = scalar_select %p68_p8, %s2348_s18, %s70_s6  }
  0x18   : > { %s2496_s13 = scalar_select %p148_p7, %s2340_s16, %s150_s11  }
  0x19   : > { %p2498_p12 = por %p161_p11, %p160_p10  ;;  %p1838_p13 = scmp.ge.s32.totalorder %s2376_s25, 16 }
  0x1b   : > { %183 = sbr.rel (%p1838_p13) target bundleno = 120 (0x78), region = 16 }
  0x22   : > { %186 = sbr.rel (!%p2471_p5) target bundleno = 46 (0x2e), region = 20  ;;  %s188_s29 = sand.u32 (%p2471_p5), 1, %s2356_s20  }
  0x23   : > { %s1992_s30 = sshll.u32 (%p2471_p5), %s2368_s23, 4  ;;  %s1839_s8 = sshll.u32 (%p2471_p5), %s188_s29, 5 }
  0x24   : > { %s3013_s0 = sld [smem:[#allocation8_spill]] (%p2471_p5)  ;;  %s190_s26 = scalar_lea.vmem (%p2471_p5), [#allocation3], %s1839_s8 }
  0x2a   : > { %s196_s11 = scalar_lea.vmem %s3013_s0, %s1992_s30 }
  0x2b   : > { %v209_v0 = vld [vmem:[%s196_s11] sm:$0xff]  ;;  %v211_v1 = vld [vmem:[%s196_s11 + $0x8] sm:$0xff] }
  0x2c   : > { %v213_v2 = vld [vmem:[%s196_s11 + $0x40] sm:$0xff]  ;;  %210 = vst [vmem:[%s190_s26] sm:$0xff] %v209_v0  ;;  %212 = vst [vmem:[%s190_s26 + $0x8] sm:$0xff] %v211_v1  ;;  %v215_v3 = vld [vmem:[%s196_s11 + $0x48] sm:$0xff] }
  0x2d   : > { %214 = vst [vmem:[%s190_s26 + $0x10] sm:$0xff] %v213_v2  ;;  %216 = vst [vmem:[%s190_s26 + $0x18] sm:$0xff] %v215_v3 }
  0x2e PF: > { %222 = sbr.rel (!%p2485_p9) target bundleno = 120 (0x78), region = 43  ;;  %s224_s5 = sand.u32 (%p2485_p9), 1, %s2348_s18  }
  0x2f   : > { %s1844_s29 = sshll.u32 (%p2485_p9), %s2372_s24, 2  ;;  %s1842_s6 = sshll.u32 (%p2485_p9), %s224_s5, 10 }
  0x30   : > { %s1993_s30 = sshll.u32 (%p2485_p9), %s2368_s23, 10  ;;  %s3014_s1 = sld [smem:[#allocation9_spill]] (%p2485_p9) }
  0x31   : > { %s230_s9 = sadd.s32 (%p2485_p9), %s1993_s30, %s1844_s29  ;;  %s2523_s10 = scalar_lea.vmem (%p2485_p9), [#allocation4], %s1842_s6 }
  0x32   : > { %s1846_s0 = sshll.u32 (%p2485_p9), %s230_s9, 2 }
  0x36   : > { %s2518_s27 = scalar_lea.vmem %s3014_s1, %s1846_s0 }
  0x37   : > { %v245_v4 = vld [vmem:[%s2518_s27] sm:$0xff]  ;;  %v247_v5 = vld [vmem:[%s2518_s27 + $0x8] sm:$0xff] }
  0x38   : > { %v249_v6 = vld [vmem:[%s2518_s27 + $0x40] sm:$0xff]  ;;  %246 = vst [vmem:[%s2523_s10] sm:$0xff] %v245_v4  ;;  %248 = vst [vmem:[%s2523_s10 + $0x8] sm:$0xff] %v247_v5  ;;  %v251_v7 = vld [vmem:[%s2518_s27 + $0x48] sm:$0xff] }
  0x39   : > { %250 = vst [vmem:[%s2523_s10 + $0x10] sm:$0xff] %v249_v6  ;;  %v253_v8 = vld [vmem:[%s2518_s27 + $0x80] sm:$0xff]  ;;  %v255_v9 = vld [vmem:[%s2518_s27 + $0x88] sm:$0xff]  ;;  %252 = vst [vmem:[%s2523_s10 + $0x18] sm:$0xff] %v251_v7 }
  0x3a   : > { %254 = vst [vmem:[%s2523_s10 + $0x20] sm:$0xff] %v253_v8  ;;  %256 = vst [vmem:[%s2523_s10 + $0x28] sm:$0xff] %v255_v9  ;;  %v257_v10 = vld [vmem:[%s2518_s27 + $0xc0] sm:$0xff]  ;;  %v259_v11 = vld [vmem:[%s2518_s27 + $0xc8] sm:$0xff] }
  0x3b   : > { %v261_v12 = vld [vmem:[%s2518_s27 + $0x100] sm:$0xff]  ;;  %258 = vst [vmem:[%s2523_s10 + $0x30] sm:$0xff] %v257_v10  ;;  %260 = vst [vmem:[%s2523_s10 + $0x38] sm:$0xff] %v259_v11  ;;  %v263_v13 = vld [vmem:[%s2518_s27 + $0x108] sm:$0xff] }
  0x3c   : > { %262 = vst [vmem:[%s2523_s10 + $0x40] sm:$0xff] %v261_v12  ;;  %v265_v14 = vld [vmem:[%s2518_s27 + $0x140] sm:$0xff]  ;;  %v267_v15 = vld [vmem:[%s2518_s27 + $0x148] sm:$0xff]  ;;  %264 = vst [vmem:[%s2523_s10 + $0x48] sm:$0xff] %v263_v13 }
  0x3d   : > { %266 = vst [vmem:[%s2523_s10 + $0x50] sm:$0xff] %v265_v14  ;;  %268 = vst [vmem:[%s2523_s10 + $0x58] sm:$0xff] %v267_v15  ;;  %v269_v16 = vld [vmem:[%s2518_s27 + $0x180] sm:$0xff]  ;;  %v271_v17 = vld [vmem:[%s2518_s27 + $0x188] sm:$0xff] }
  0x3e   : > { %v273_v18 = vld [vmem:[%s2518_s27 + $0x1c0] sm:$0xff]  ;;  %270 = vst [vmem:[%s2523_s10 + $0x60] sm:$0xff] %v269_v16  ;;  %272 = vst [vmem:[%s2523_s10 + $0x68] sm:$0xff] %v271_v17  ;;  %v275_v19 = vld [vmem:[%s2518_s27 + $0x1c8] sm:$0xff] }
  0x3f   : > { %274 = vst [vmem:[%s2523_s10 + $0x70] sm:$0xff] %v273_v18  ;;  %v277_v20 = vld [vmem:[%s2518_s27 + $0x200] sm:$0xff]  ;;  %v279_v21 = vld [vmem:[%s2518_s27 + $0x208] sm:$0xff]  ;;  %276 = vst [vmem:[%s2523_s10 + $0x78] sm:$0xff] %v275_v19 }
  0x40   : > { %278 = vst [vmem:[%s2523_s10 + $0x80] sm:$0xff] %v277_v20  ;;  %280 = vst [vmem:[%s2523_s10 + $0x88] sm:$0xff] %v279_v21  ;;  %v281_v22 = vld [vmem:[%s2518_s27 + $0x240] sm:$0xff]  ;;  %v283_v23 = vld [vmem:[%s2518_s27 + $0x248] sm:$0xff] }
  0x41   : > { %v285_v24 = vld [vmem:[%s2518_s27 + $0x280] sm:$0xff]  ;;  %282 = vst [vmem:[%s2523_s10 + $0x90] sm:$0xff] %v281_v22  ;;  %284 = vst [vmem:[%s2523_s10 + $0x98] sm:$0xff] %v283_v23  ;;  %v287_v25 = vld [vmem:[%s2518_s27 + $0x288] sm:$0xff] }
  0x42   : > { %286 = vst [vmem:[%s2523_s10 + $0xa0] sm:$0xff] %v285_v24  ;;  %v289_v26 = vld [vmem:[%s2518_s27 + $0x2c0] sm:$0xff]  ;;  %v291_v27 = vld [vmem:[%s2518_s27 + $0x2c8] sm:$0xff]  ;;  %288 = vst [vmem:[%s2523_s10 + $0xa8] sm:$0xff] %v287_v25 }
  0x43   : > { %290 = vst [vmem:[%s2523_s10 + $0xb0] sm:$0xff] %v289_v26  ;;  %292 = vst [vmem:[%s2523_s10 + $0xb8] sm:$0xff] %v291_v27  ;;  %v293_v28 = vld [vmem:[%s2518_s27 + $0x300] sm:$0xff]  ;;  %v295_v29 = vld [vmem:[%s2518_s27 + $0x308] sm:$0xff] }
  0x44   : > { %v297_v30 = vld [vmem:[%s2518_s27 + $0x340] sm:$0xff]  ;;  %294 = vst [vmem:[%s2523_s10 + $0xc0] sm:$0xff] %v293_v28  ;;  %296 = vst [vmem:[%s2523_s10 + $0xc8] sm:$0xff] %v295_v29  ;;  %v299_v31 = vld [vmem:[%s2518_s27 + $0x348] sm:$0xff] }
  0x45   : > { %298 = vst [vmem:[%s2523_s10 + $0xd0] sm:$0xff] %v297_v30  ;;  %v301_v32 = vld [vmem:[%s2518_s27 + $0x380] sm:$0xff]  ;;  %v303_v33 = vld [vmem:[%s2518_s27 + $0x388] sm:$0xff]  ;;  %300 = vst [vmem:[%s2523_s10 + $0xd8] sm:$0xff] %v299_v31 }
  0x46   : > { %302 = vst [vmem:[%s2523_s10 + $0xe0] sm:$0xff] %v301_v32  ;;  %304 = vst [vmem:[%s2523_s10 + $0xe8] sm:$0xff] %v303_v33  ;;  %v305_v34 = vld [vmem:[%s2518_s27 + $0x3c0] sm:$0xff]  ;;  %v307_v35 = vld [vmem:[%s2518_s27 + $0x3c8] sm:$0xff] }
  0x47   : > { %v309_v36 = vld [vmem:[%s2518_s27 + $0x400] sm:$0xff]  ;;  %306 = vst [vmem:[%s2523_s10 + $0xf0] sm:$0xff] %v305_v34  ;;  %308 = vst [vmem:[%s2523_s10 + $0xf8] sm:$0xff] %v307_v35  ;;  %v311_v37 = vld [vmem:[%s2518_s27 + $0x408] sm:$0xff] }
  0x48   : > { %310 = vst [vmem:[%s2523_s10 + $0x100] sm:$0xff] %v309_v36  ;;  %v313_v38 = vld [vmem:[%s2518_s27 + $0x440] sm:$0xff]  ;;  %v315_v39 = vld [vmem:[%s2518_s27 + $0x448] sm:$0xff]  ;;  %312 = vst [vmem:[%s2523_s10 + $0x108] sm:$0xff] %v311_v37 }
  0x49   : > { %314 = vst [vmem:[%s2523_s10 + $0x110] sm:$0xff] %v313_v38  ;;  %316 = vst [vmem:[%s2523_s10 + $0x118] sm:$0xff] %v315_v39  ;;  %v317_v40 = vld [vmem:[%s2518_s27 + $0x480] sm:$0xff]  ;;  %v319_v41 = vld [vmem:[%s2518_s27 + $0x488] sm:$0xff] }
  0x4a   : > { %v321_v42 = vld [vmem:[%s2518_s27 + $0x4c0] sm:$0xff]  ;;  %318 = vst [vmem:[%s2523_s10 + $0x120] sm:$0xff] %v317_v40  ;;  %320 = vst [vmem:[%s2523_s10 + $0x128] sm:$0xff] %v319_v41  ;;  %v323_v43 = vld [vmem:[%s2518_s27 + $0x4c8] sm:$0xff] }
  0x4b   : > { %322 = vst [vmem:[%s2523_s10 + $0x130] sm:$0xff] %v321_v42  ;;  %v325_v44 = vld [vmem:[%s2518_s27 + $0x500] sm:$0xff]  ;;  %v327_v45 = vld [vmem:[%s2518_s27 + $0x508] sm:$0xff]  ;;  %324 = vst [vmem:[%s2523_s10 + $0x138] sm:$0xff] %v323_v43 }
  0x4c   : > { %326 = vst [vmem:[%s2523_s10 + $0x140] sm:$0xff] %v325_v44  ;;  %328 = vst [vmem:[%s2523_s10 + $0x148] sm:$0xff] %v327_v45  ;;  %v329_v46 = vld [vmem:[%s2518_s27 + $0x540] sm:$0xff]  ;;  %v331_v47 = vld [vmem:[%s2518_s27 + $0x548] sm:$0xff] }
  0x4d   : > { %v333_v48 = vld [vmem:[%s2518_s27 + $0x580] sm:$0xff]  ;;  %330 = vst [vmem:[%s2523_s10 + $0x150] sm:$0xff] %v329_v46  ;;  %332 = vst [vmem:[%s2523_s10 + $0x158] sm:$0xff] %v331_v47  ;;  %v335_v49 = vld [vmem:[%s2518_s27 + $0x588] sm:$0xff] }
  0x4e   : > { %334 = vst [vmem:[%s2523_s10 + $0x160] sm:$0xff] %v333_v48  ;;  %v337_v50 = vld [vmem:[%s2518_s27 + $0x5c0] sm:$0xff]  ;;  %v339_v51 = vld [vmem:[%s2518_s27 + $0x5c8] sm:$0xff]  ;;  %336 = vst [vmem:[%s2523_s10 + $0x168] sm:$0xff] %v335_v49 }
  0x4f   : > { %338 = vst [vmem:[%s2523_s10 + $0x170] sm:$0xff] %v337_v50  ;;  %340 = vst [vmem:[%s2523_s10 + $0x178] sm:$0xff] %v339_v51  ;;  %v341_v52 = vld [vmem:[%s2518_s27 + $0x600] sm:$0xff]  ;;  %v343_v53 = vld [vmem:[%s2518_s27 + $0x608] sm:$0xff] }
  0x50   : > { %v345_v54 = vld [vmem:[%s2518_s27 + $0x640] sm:$0xff]  ;;  %342 = vst [vmem:[%s2523_s10 + $0x180] sm:$0xff] %v341_v52  ;;  %344 = vst [vmem:[%s2523_s10 + $0x188] sm:$0xff] %v343_v53  ;;  %v347_v55 = vld [vmem:[%s2518_s27 + $0x648] sm:$0xff] }
  0x51   : > { %346 = vst [vmem:[%s2523_s10 + $0x190] sm:$0xff] %v345_v54  ;;  %v349_v56 = vld [vmem:[%s2518_s27 + $0x680] sm:$0xff]  ;;  %v351_v57 = vld [vmem:[%s2518_s27 + $0x688] sm:$0xff]  ;;  %348 = vst [vmem:[%s2523_s10 + $0x198] sm:$0xff] %v347_v55 }
  0x52   : > { %350 = vst [vmem:[%s2523_s10 + $0x1a0] sm:$0xff] %v349_v56  ;;  %352 = vst [vmem:[%s2523_s10 + $0x1a8] sm:$0xff] %v351_v57  ;;  %v353_v58 = vld [vmem:[%s2518_s27 + $0x6c0] sm:$0xff]  ;;  %v355_v59 = vld [vmem:[%s2518_s27 + $0x6c8] sm:$0xff] }
  0x53   : > { %v357_v60 = vld [vmem:[%s2518_s27 + $0x700] sm:$0xff]  ;;  %354 = vst [vmem:[%s2523_s10 + $0x1b0] sm:$0xff] %v353_v58  ;;  %356 = vst [vmem:[%s2523_s10 + $0x1b8] sm:$0xff] %v355_v59  ;;  %v359_v61 = vld [vmem:[%s2518_s27 + $0x708] sm:$0xff] }
  0x54   : > { %358 = vst [vmem:[%s2523_s10 + $0x1c0] sm:$0xff] %v357_v60  ;;  %v361_v62 = vld [vmem:[%s2518_s27 + $0x740] sm:$0xff]  ;;  %v363_v63 = vld [vmem:[%s2518_s27 + $0x748] sm:$0xff]  ;;  %360 = vst [vmem:[%s2523_s10 + $0x1c8] sm:$0xff] %v359_v61 }
  0x55   : > { %362 = vst [vmem:[%s2523_s10 + $0x1d0] sm:$0xff] %v361_v62  ;;  %364 = vst [vmem:[%s2523_s10 + $0x1d8] sm:$0xff] %v363_v63  ;;  %v365_v0 = vld [vmem:[%s2518_s27 + $0x780] sm:$0xff]  ;;  %v367_v1 = vld [vmem:[%s2518_s27 + $0x788] sm:$0xff] }
  0x56   : > { %v369_v2 = vld [vmem:[%s2518_s27 + $0x7c0] sm:$0xff]  ;;  %366 = vst [vmem:[%s2523_s10 + $0x1e0] sm:$0xff] %v365_v0  ;;  %368 = vst [vmem:[%s2523_s10 + $0x1e8] sm:$0xff] %v367_v1  ;;  %v371_v3 = vld [vmem:[%s2518_s27 + $0x7c8] sm:$0xff] }
  0x57   : > { %370 = vst [vmem:[%s2523_s10 + $0x1f0] sm:$0xff] %v369_v2  ;;  %v373_v4 = vld [vmem:[%s2518_s27 + $0x800] sm:$0xff]  ;;  %v375_v5 = vld [vmem:[%s2518_s27 + $0x808] sm:$0xff]  ;;  %372 = vst [vmem:[%s2523_s10 + $0x1f8] sm:$0xff] %v371_v3 }
  0x58   : > { %374 = vst [vmem:[%s2523_s10 + $0x200] sm:$0xff] %v373_v4  ;;  %376 = vst [vmem:[%s2523_s10 + $0x208] sm:$0xff] %v375_v5  ;;  %v377_v6 = vld [vmem:[%s2518_s27 + $0x840] sm:$0xff]  ;;  %v379_v7 = vld [vmem:[%s2518_s27 + $0x848] sm:$0xff] }
  0x59   : > { %v381_v8 = vld [vmem:[%s2518_s27 + $0x880] sm:$0xff]  ;;  %378 = vst [vmem:[%s2523_s10 + $0x210] sm:$0xff] %v377_v6  ;;  %380 = vst [vmem:[%s2523_s10 + $0x218] sm:$0xff] %v379_v7  ;;  %v383_v9 = vld [vmem:[%s2518_s27 + $0x888] sm:$0xff] }
  0x5a   : > { %382 = vst [vmem:[%s2523_s10 + $0x220] sm:$0xff] %v381_v8  ;;  %v385_v10 = vld [vmem:[%s2518_s27 + $0x8c0] sm:$0xff]  ;;  %v387_v11 = vld [vmem:[%s2518_s27 + $0x8c8] sm:$0xff]  ;;  %384 = vst [vmem:[%s2523_s10 + $0x228] sm:$0xff] %v383_v9 }
  0x5b   : > { %386 = vst [vmem:[%s2523_s10 + $0x230] sm:$0xff] %v385_v10  ;;  %388 = vst [vmem:[%s2523_s10 + $0x238] sm:$0xff] %v387_v11  ;;  %v389_v12 = vld [vmem:[%s2518_s27 + $0x900] sm:$0xff]  ;;  %v391_v13 = vld [vmem:[%s2518_s27 + $0x908] sm:$0xff] }
  0x5c   : > { %v393_v14 = vld [vmem:[%s2518_s27 + $0x940] sm:$0xff]  ;;  %390 = vst [vmem:[%s2523_s10 + $0x240] sm:$0xff] %v389_v12  ;;  %392 = vst [vmem:[%s2523_s10 + $0x248] sm:$0xff] %v391_v13  ;;  %v395_v15 = vld [vmem:[%s2518_s27 + $0x948] sm:$0xff] }
  0x5d   : > { %394 = vst [vmem:[%s2523_s10 + $0x250] sm:$0xff] %v393_v14  ;;  %v397_v16 = vld [vmem:[%s2518_s27 + $0x980] sm:$0xff]  ;;  %v399_v17 = vld [vmem:[%s2518_s27 + $0x988] sm:$0xff]  ;;  %396 = vst [vmem:[%s2523_s10 + $0x258] sm:$0xff] %v395_v15 }
  0x5e   : > { %398 = vst [vmem:[%s2523_s10 + $0x260] sm:$0xff] %v397_v16  ;;  %400 = vst [vmem:[%s2523_s10 + $0x268] sm:$0xff] %v399_v17  ;;  %v401_v18 = vld [vmem:[%s2518_s27 + $0x9c0] sm:$0xff]  ;;  %v403_v19 = vld [vmem:[%s2518_s27 + $0x9c8] sm:$0xff] }
  0x5f   : > { %v405_v20 = vld [vmem:[%s2518_s27 + $0xa00] sm:$0xff]  ;;  %402 = vst [vmem:[%s2523_s10 + $0x270] sm:$0xff] %v401_v18  ;;  %404 = vst [vmem:[%s2523_s10 + $0x278] sm:$0xff] %v403_v19  ;;  %v407_v21 = vld [vmem:[%s2518_s27 + $0xa08] sm:$0xff] }
  0x60   : > { %406 = vst [vmem:[%s2523_s10 + $0x280] sm:$0xff] %v405_v20  ;;  %v409_v22 = vld [vmem:[%s2518_s27 + $0xa40] sm:$0xff]  ;;  %v411_v23 = vld [vmem:[%s2518_s27 + $0xa48] sm:$0xff]  ;;  %408 = vst [vmem:[%s2523_s10 + $0x288] sm:$0xff] %v407_v21 }
  0x61   : > { %410 = vst [vmem:[%s2523_s10 + $0x290] sm:$0xff] %v409_v22  ;;  %412 = vst [vmem:[%s2523_s10 + $0x298] sm:$0xff] %v411_v23  ;;  %v413_v24 = vld [vmem:[%s2518_s27 + $0xa80] sm:$0xff]  ;;  %v415_v25 = vld [vmem:[%s2518_s27 + $0xa88] sm:$0xff] }
  0x62   : > { %v417_v26 = vld [vmem:[%s2518_s27 + $0xac0] sm:$0xff]  ;;  %414 = vst [vmem:[%s2523_s10 + $0x2a0] sm:$0xff] %v413_v24  ;;  %416 = vst [vmem:[%s2523_s10 + $0x2a8] sm:$0xff] %v415_v25  ;;  %v419_v27 = vld [vmem:[%s2518_s27 + $0xac8] sm:$0xff] }
  0x63   : > { %418 = vst [vmem:[%s2523_s10 + $0x2b0] sm:$0xff] %v417_v26  ;;  %v421_v28 = vld [vmem:[%s2518_s27 + $0xb00] sm:$0xff]  ;;  %v423_v29 = vld [vmem:[%s2518_s27 + $0xb08] sm:$0xff]  ;;  %420 = vst [vmem:[%s2523_s10 + $0x2b8] sm:$0xff] %v419_v27 }
  0x64   : > { %422 = vst [vmem:[%s2523_s10 + $0x2c0] sm:$0xff] %v421_v28  ;;  %424 = vst [vmem:[%s2523_s10 + $0x2c8] sm:$0xff] %v423_v29  ;;  %v425_v30 = vld [vmem:[%s2518_s27 + $0xb40] sm:$0xff]  ;;  %v427_v31 = vld [vmem:[%s2518_s27 + $0xb48] sm:$0xff] }
  0x65   : > { %v429_v32 = vld [vmem:[%s2518_s27 + $0xb80] sm:$0xff]  ;;  %426 = vst [vmem:[%s2523_s10 + $0x2d0] sm:$0xff] %v425_v30  ;;  %428 = vst [vmem:[%s2523_s10 + $0x2d8] sm:$0xff] %v427_v31  ;;  %v431_v33 = vld [vmem:[%s2518_s27 + $0xb88] sm:$0xff] }
  0x66   : > { %430 = vst [vmem:[%s2523_s10 + $0x2e0] sm:$0xff] %v429_v32  ;;  %v433_v34 = vld [vmem:[%s2518_s27 + $0xbc0] sm:$0xff]  ;;  %v435_v35 = vld [vmem:[%s2518_s27 + $0xbc8] sm:$0xff]  ;;  %432 = vst [vmem:[%s2523_s10 + $0x2e8] sm:$0xff] %v431_v33 }
  0x67   : > { %434 = vst [vmem:[%s2523_s10 + $0x2f0] sm:$0xff] %v433_v34  ;;  %436 = vst [vmem:[%s2523_s10 + $0x2f8] sm:$0xff] %v435_v35  ;;  %v437_v36 = vld [vmem:[%s2518_s27 + $0xc00] sm:$0xff]  ;;  %v439_v37 = vld [vmem:[%s2518_s27 + $0xc08] sm:$0xff] }
  0x68   : > { %v441_v38 = vld [vmem:[%s2518_s27 + $0xc40] sm:$0xff]  ;;  %438 = vst [vmem:[%s2523_s10 + $0x300] sm:$0xff] %v437_v36  ;;  %440 = vst [vmem:[%s2523_s10 + $0x308] sm:$0xff] %v439_v37  ;;  %v443_v39 = vld [vmem:[%s2518_s27 + $0xc48] sm:$0xff] }
  0x69   : > { %442 = vst [vmem:[%s2523_s10 + $0x310] sm:$0xff] %v441_v38  ;;  %v445_v40 = vld [vmem:[%s2518_s27 + $0xc80] sm:$0xff]  ;;  %v447_v41 = vld [vmem:[%s2518_s27 + $0xc88] sm:$0xff]  ;;  %444 = vst [vmem:[%s2523_s10 + $0x318] sm:$0xff] %v443_v39 }
  0x6a   : > { %446 = vst [vmem:[%s2523_s10 + $0x320] sm:$0xff] %v445_v40  ;;  %448 = vst [vmem:[%s2523_s10 + $0x328] sm:$0xff] %v447_v41  ;;  %v449_v42 = vld [vmem:[%s2518_s27 + $0xcc0] sm:$0xff]  ;;  %v451_v43 = vld [vmem:[%s2518_s27 + $0xcc8] sm:$0xff] }
  0x6b   : > { %v453_v44 = vld [vmem:[%s2518_s27 + $0xd00] sm:$0xff]  ;;  %450 = vst [vmem:[%s2523_s10 + $0x330] sm:$0xff] %v449_v42  ;;  %452 = vst [vmem:[%s2523_s10 + $0x338] sm:$0xff] %v451_v43  ;;  %v455_v45 = vld [vmem:[%s2518_s27 + $0xd08] sm:$0xff] }
  0x6c   : > { %454 = vst [vmem:[%s2523_s10 + $0x340] sm:$0xff] %v453_v44  ;;  %v457_v46 = vld [vmem:[%s2518_s27 + $0xd40] sm:$0xff]  ;;  %v459_v47 = vld [vmem:[%s2518_s27 + $0xd48] sm:$0xff]  ;;  %456 = vst [vmem:[%s2523_s10 + $0x348] sm:$0xff] %v455_v45 }
  0x6d   : > { %458 = vst [vmem:[%s2523_s10 + $0x350] sm:$0xff] %v457_v46  ;;  %460 = vst [vmem:[%s2523_s10 + $0x358] sm:$0xff] %v459_v47  ;;  %v461_v48 = vld [vmem:[%s2518_s27 + $0xd80] sm:$0xff]  ;;  %v463_v49 = vld [vmem:[%s2518_s27 + $0xd88] sm:$0xff] }
  0x6e   : > { %v465_v50 = vld [vmem:[%s2518_s27 + $0xdc0] sm:$0xff]  ;;  %462 = vst [vmem:[%s2523_s10 + $0x360] sm:$0xff] %v461_v48  ;;  %464 = vst [vmem:[%s2523_s10 + $0x368] sm:$0xff] %v463_v49  ;;  %v467_v51 = vld [vmem:[%s2518_s27 + $0xdc8] sm:$0xff] }
  0x6f   : > { %466 = vst [vmem:[%s2523_s10 + $0x370] sm:$0xff] %v465_v50  ;;  %v469_v52 = vld [vmem:[%s2518_s27 + $0xe00] sm:$0xff]  ;;  %v471_v53 = vld [vmem:[%s2518_s27 + $0xe08] sm:$0xff]  ;;  %468 = vst [vmem:[%s2523_s10 + $0x378] sm:$0xff] %v467_v51 }
  0x70   : > { %470 = vst [vmem:[%s2523_s10 + $0x380] sm:$0xff] %v469_v52  ;;  %472 = vst [vmem:[%s2523_s10 + $0x388] sm:$0xff] %v471_v53  ;;  %v473_v54 = vld [vmem:[%s2518_s27 + $0xe40] sm:$0xff]  ;;  %v475_v55 = vld [vmem:[%s2518_s27 + $0xe48] sm:$0xff] }
  0x71   : > { %v477_v56 = vld [vmem:[%s2518_s27 + $0xe80] sm:$0xff]  ;;  %474 = vst [vmem:[%s2523_s10 + $0x390] sm:$0xff] %v473_v54  ;;  %476 = vst [vmem:[%s2523_s10 + $0x398] sm:$0xff] %v475_v55  ;;  %v479_v57 = vld [vmem:[%s2518_s27 + $0xe88] sm:$0xff] }
  0x72   : > { %478 = vst [vmem:[%s2523_s10 + $0x3a0] sm:$0xff] %v477_v56  ;;  %v481_v58 = vld [vmem:[%s2518_s27 + $0xec0] sm:$0xff]  ;;  %v483_v59 = vld [vmem:[%s2518_s27 + $0xec8] sm:$0xff]  ;;  %480 = vst [vmem:[%s2523_s10 + $0x3a8] sm:$0xff] %v479_v57 }
  0x73   : > { %482 = vst [vmem:[%s2523_s10 + $0x3b0] sm:$0xff] %v481_v58  ;;  %484 = vst [vmem:[%s2523_s10 + $0x3b8] sm:$0xff] %v483_v59  ;;  %v485_v60 = vld [vmem:[%s2518_s27 + $0xf00] sm:$0xff]  ;;  %v487_v61 = vld [vmem:[%s2518_s27 + $0xf08] sm:$0xff] }
  0x74   : > { %v489_v62 = vld [vmem:[%s2518_s27 + $0xf40] sm:$0xff]  ;;  %486 = vst [vmem:[%s2523_s10 + $0x3c0] sm:$0xff] %v485_v60  ;;  %488 = vst [vmem:[%s2523_s10 + $0x3c8] sm:$0xff] %v487_v61  ;;  %v491_v63 = vld [vmem:[%s2518_s27 + $0xf48] sm:$0xff] }
  0x75   : > { %490 = vst [vmem:[%s2523_s10 + $0x3d0] sm:$0xff] %v489_v62  ;;  %v493_v0 = vld [vmem:[%s2518_s27 + $0xf80] sm:$0xff]  ;;  %v495_v1 = vld [vmem:[%s2518_s27 + $0xf88] sm:$0xff]  ;;  %492 = vst [vmem:[%s2523_s10 + $0x3d8] sm:$0xff] %v491_v63 }
  0x76   : > { %494 = vst [vmem:[%s2523_s10 + $0x3e0] sm:$0xff] %v493_v0  ;;  %496 = vst [vmem:[%s2523_s10 + $0x3e8] sm:$0xff] %v495_v1  ;;  %v497_v2 = vld [vmem:[%s2518_s27 + $0xfc0] sm:$0xff]  ;;  %v499_v3 = vld [vmem:[%s2518_s27 + $0xfc8] sm:$0xff] }
  0x77   : > { %498 = vst [vmem:[%s2523_s10 + $0x3f0] sm:$0xff] %v497_v2  ;;  %500 = vst [vmem:[%s2523_s10 + $0x3f8] sm:$0xff] %v499_v3 }
  0x78 PF: > { %p1847_p0 = scmp.ge.s32.totalorder %s2376_s25, 1  ;;  %p521_p1 = scmp.lt.s32.totalorder %s2376_s25, 17 }
  0x7a   : > { %p522_p2 = pnand %p1847_p0, %p521_p1 }
  0x7b   : > { %s528_s0 = sand.u32 (!%p522_p2), 1, %s2352_s19   ;;  %s535_s28 = sand.u32 (!%p522_p2), 1, %s2344_s17  }
  0x7c   : > { %525 = sbr.rel (%p522_p2) target bundleno = 507 (0x1fb), region = 74  ;;  %s1848_s11 = sshll.u32 (!%p522_p2), %s528_s0, 5 }
  0x7d   : > { %s1849_s26 = sshll.u32 (!%p522_p2), %s535_s28, 10  ;;  %s568_s5 = sand.u32 (!%p522_p2), 1, %s2336_s15  }
  0x7e   : > { %s1851_s27 = sshll.u32 (!%p522_p2), %s2364_s22, 2  ;;  %s1850_s29 = sshll.u32 (!%p522_p2), %s568_s5, 6 }
  0x7f   : > { %p576_p3 = scmp.lt.s32.totalorder (!%p522_p2), %s1851_s27, 15  ;;  %s2794_s19 = scalar_lea.vmem (!%p522_p2), [#allocation3], %s1848_s11 }
  0x80   : > { %s2796_s17 = scalar_lea.vmem (!%p522_p2), [#allocation4], %s1849_s26  ;;  %s2798_s15 = scalar_lea.vmem (!%p522_p2), [#allocation5], %s1850_s29 }
  0x81   : > { %p1853_p4 = scmp.ne.s32.totalorder (!%p522_p2), %s2360_s21, 0 }
  0x83   : > { %s3034_s27 = smov (!%p576_p3, %s1851_s27), 15  ;;  %590 = sbr.rel (%p1853_p4) target bundleno = 138 (0x8a), region = 86 }
  0x84   : > { %s578_s9 = scalar_lea.vmem %s3001_s2, %s3034_s27  ;;  %s583_s1 = scalar_lea.vmem %s3002_s3, %s3034_s27  ;;  %v2378_v4 = vmov (!%p1853_p4), 0.0  }
  0x85   : > { %591 = vst [vmem:[#allocation2] sm:$0xff] (!%p1853_p4), %v2378_v4  ;;  %592 = vst [vmem:[#allocation2 + $0x8] sm:$0xff] (!%p1853_p4), %v2378_v4 }
  0x86   : > { %593 = vst [vmem:[#allocation2 + $0x10] sm:$0xff] (!%p1853_p4), %v2378_v4  ;;  %594 = vst [vmem:[#allocation2 + $0x18] sm:$0xff] (!%p1853_p4), %v2378_v4 }
  0x87   : > { %595 = vst [vmem:[#allocation2 + $0x20] sm:$0xff] (!%p1853_p4), %v2378_v4  ;;  %596 = vst [vmem:[#allocation2 + $0x28] sm:$0xff] (!%p1853_p4), %v2378_v4 }
  0x88   : > { %597 = vst [vmem:[#allocation2 + $0x30] sm:$0xff] (!%p1853_p4), %v2378_v4  ;;  %598 = vst [vmem:[#allocation2 + $0x38] sm:$0xff] (!%p1853_p4), %v2378_v4 }
  0x8a PF: > { %v2092_v5 = vld [vmem:[%s2796_s17 + $0x4] ss:$16 sps:$4 sm:$0xff]   ;;  %v2094_v6 = vld [vmem:[%s2796_s17 + $0xc] ss:$16 sps:$4 sm:$0xff]   ;;  %v2096_v7 = vld [vmem:[%s2796_s17] ss:$16 sps:$4 sm:$0xff]  }
  0x8b   : > { %1399 = vmatprep.subr.bf16.mxu0 %v2092_v5  ;;  %v2097_v8 = vld [vmem:[%s2796_s17 + $0x8] ss:$16 sps:$4 sm:$0xff]   ;;  %1485 = vmatprep.subr.bf16.mxu1 %v2094_v6  ;;  %v2098_v9 = vld [vmem:[%s2796_s17 + $0x24] ss:$16 sps:$4 sm:$0xff]   ;;  %v2100_v10 = vld [vmem:[%s2796_s17 + $0x2c] ss:$16 sps:$4 sm:$0xff]  }
  0x8c   : > { %1400 = vmatpush1.bf16.msra.mxu0 %v2096_v7  ;;  %1486 = vmatpush1.bf16.msra.mxu1 %v2097_v8  ;;  %v2102_v11 = vld [vmem:[%s2796_s17 + $0x20] ss:$16 sps:$4 sm:$0xff]   ;;  %v2103_v12 = vld [vmem:[%s2796_s17 + $0x28] ss:$16 sps:$4 sm:$0xff]   ;;  %v2104_v13 = vld [vmem:[%s2796_s17 + $0x44] ss:$16 sps:$4 sm:$0xff]  }
  0x8d   : > { %1401 = vmatprep.subr.bf16.mxu0 %v2098_v9  ;;  %1487 = vmatprep.subr.bf16.mxu1 %v2100_v10  ;;  %v2106_v14 = vld [vmem:[%s2796_s17 + $0x4c] ss:$16 sps:$4 sm:$0xff]   ;;  %v2108_v15 = vld [vmem:[%s2796_s17 + $0x40] ss:$16 sps:$4 sm:$0xff]   ;;  %v2109_v16 = vld [vmem:[%s2796_s17 + $0x48] ss:$16 sps:$4 sm:$0xff]  }
  0x8e   : > { %v2110_v17 = vld [vmem:[%s2796_s17 + $0x64] ss:$16 sps:$4 sm:$0xff]   ;;  %v2112_v18 = vld [vmem:[%s2796_s17 + $0x6c] ss:$16 sps:$4 sm:$0xff]   ;;  %v2114_v19 = vld [vmem:[%s2796_s17 + $0x60] ss:$16 sps:$4 sm:$0xff]  }
  0x8f   : > { %v2115_v20 = vld [vmem:[%s2796_s17 + $0x68] ss:$16 sps:$4 sm:$0xff]   ;;  %v2116_v21 = vld [vmem:[%s2796_s17 + $0x84] ss:$16 sps:$4 sm:$0xff]   ;;  %v2118_v22 = vld [vmem:[%s2796_s17 + $0x8c] ss:$16 sps:$4 sm:$0xff]  }
  0x90   : > { %1402 = vmatpush1.bf16.msra.mxu0 %v2102_v11  ;;  %1488 = vmatpush1.bf16.msra.mxu1 %v2103_v12  ;;  %v2120_v23 = vld [vmem:[%s2796_s17 + $0x80] ss:$16 sps:$4 sm:$0xff]   ;;  %v2121_v24 = vld [vmem:[%s2796_s17 + $0x88] ss:$16 sps:$4 sm:$0xff]   ;;  %v2122_v25 = vld [vmem:[%s2796_s17 + $0xa4] ss:$16 sps:$4 sm:$0xff]  }
  0x91   : > { %1403 = vmatprep.subr.bf16.mxu0 %v2104_v13  ;;  %1489 = vmatprep.subr.bf16.mxu1 %v2106_v14  ;;  %v2124_v26 = vld [vmem:[%s2796_s17 + $0xac] ss:$16 sps:$4 sm:$0xff]   ;;  %v2126_v27 = vld [vmem:[%s2796_s17 + $0xa0] ss:$16 sps:$4 sm:$0xff]   ;;  %v2127_v28 = vld [vmem:[%s2796_s17 + $0xa8] ss:$16 sps:$4 sm:$0xff]  }
  0x92   : > { %v2128_v29 = vld [vmem:[%s2796_s17 + $0xc4] ss:$16 sps:$4 sm:$0xff]   ;;  %v2130_v30 = vld [vmem:[%s2796_s17 + $0xcc] ss:$16 sps:$4 sm:$0xff]   ;;  %v2132_v31 = vld [vmem:[%s2796_s17 + $0xc0] ss:$16 sps:$4 sm:$0xff]  }
  0x93   : > { %v2133_v32 = vld [vmem:[%s2796_s17 + $0xc8] ss:$16 sps:$4 sm:$0xff]   ;;  %v2134_v33 = vld [vmem:[%s2796_s17 + $0xe4] ss:$16 sps:$4 sm:$0xff]   ;;  %v2136_v34 = vld [vmem:[%s2796_s17 + $0xec] ss:$16 sps:$4 sm:$0xff]  }
  0x94   : > { %1404 = vmatpush1.bf16.msra.mxu0 %v2108_v15  ;;  %1490 = vmatpush1.bf16.msra.mxu1 %v2109_v16  ;;  %v2138_v35 = vld [vmem:[%s2796_s17 + $0xe0] ss:$16 sps:$4 sm:$0xff]   ;;  %v2139_v36 = vld [vmem:[%s2796_s17 + $0xe8] ss:$16 sps:$4 sm:$0xff]   ;;  %v2140_v37 = vld [vmem:[%s2796_s17 + $0x104] ss:$16 sps:$4 sm:$0xff]  }
  0x95   : > { %1405 = vmatprep.subr.bf16.mxu0 %v2110_v17  ;;  %1491 = vmatprep.subr.bf16.mxu1 %v2112_v18  ;;  %v2142_v38 = vld [vmem:[%s2796_s17 + $0x10c] ss:$16 sps:$4 sm:$0xff]   ;;  %v2144_v39 = vld [vmem:[%s2796_s17 + $0x100] ss:$16 sps:$4 sm:$0xff]   ;;  %v2145_v40 = vld [vmem:[%s2796_s17 + $0x108] ss:$16 sps:$4 sm:$0xff]  }
  0x96   : > { %v2146_v41 = vld [vmem:[%s2796_s17 + $0x124] ss:$16 sps:$4 sm:$0xff]   ;;  %v2148_v42 = vld [vmem:[%s2796_s17 + $0x12c] ss:$16 sps:$4 sm:$0xff]   ;;  %v2150_v43 = vld [vmem:[%s2796_s17 + $0x120] ss:$16 sps:$4 sm:$0xff]  }
  0x97   : > { %v2151_v44 = vld [vmem:[%s2796_s17 + $0x128] ss:$16 sps:$4 sm:$0xff]   ;;  %v2152_v45 = vld [vmem:[%s2796_s17 + $0x144] ss:$16 sps:$4 sm:$0xff]   ;;  %v2154_v46 = vld [vmem:[%s2796_s17 + $0x14c] ss:$16 sps:$4 sm:$0xff]  }
  0x98   : > { %1406 = vmatpush1.bf16.msra.mxu0 %v2114_v19  ;;  %1492 = vmatpush1.bf16.msra.mxu1 %v2115_v20  ;;  %v2156_v47 = vld [vmem:[%s2796_s17 + $0x140] ss:$16 sps:$4 sm:$0xff]   ;;  %v2157_v48 = vld [vmem:[%s2796_s17 + $0x148] ss:$16 sps:$4 sm:$0xff]   ;;  %v2158_v49 = vld [vmem:[%s2796_s17 + $0x164] ss:$16 sps:$4 sm:$0xff]  }
  0x99   : > { %1407 = vmatprep.subr.bf16.mxu0 %v2116_v21  ;;  %1493 = vmatprep.subr.bf16.mxu1 %v2118_v22  ;;  %v2160_v50 = vld [vmem:[%s2796_s17 + $0x16c] ss:$16 sps:$4 sm:$0xff]   ;;  %v2162_v51 = vld [vmem:[%s2796_s17 + $0x160] ss:$16 sps:$4 sm:$0xff]   ;;  %v2163_v52 = vld [vmem:[%s2796_s17 + $0x168] ss:$16 sps:$4 sm:$0xff]  }
  0x9a   : > { %v2190_v53 = vld [vmem:[%s2794_s19 + $0x4] ss:$16 sps:$4 sm:$0xff]   ;;  %v2166_v55 = vld [vmem:[%s2796_s17 + $0x18c] ss:$16 sps:$4 sm:$0xff]   ;;  %v2168_v56 = vld [vmem:[%s2796_s17 + $0x180] ss:$16 sps:$4 sm:$0xff]  }
  0x9b   : > { %v2164_v54 = vld [vmem:[%s2796_s17 + $0x184] ss:$16 sps:$4 sm:$0xff]   ;;  %1431 = vmatprep.mubr.bf16.mxu0 %v2190_v53  ;;  %1517 = vmatprep.mubr.bf16.mxu1 %v2190_v53  ;;  %v2169_v57 = vld [vmem:[%s2796_s17 + $0x188] ss:$16 sps:$4 sm:$0xff]   ;;  %v2172_v59 = vld [vmem:[%s2796_s17 + $0x1ac] ss:$16 sps:$4 sm:$0xff]  }
  0x9c   : > { %1408 = vmatpush1.bf16.msra.mxu0 %v2120_v23  ;;  %1494 = vmatpush1.bf16.msra.mxu1 %v2121_v24  ;;  %v2170_v58 = vld [vmem:[%s2796_s17 + $0x1a4] ss:$16 sps:$4 sm:$0xff]   ;;  %v2174_v60 = vld [vmem:[%s2796_s17 + $0x1a0] ss:$16 sps:$4 sm:$0xff]   ;;  %v2175_v61 = vld [vmem:[%s2796_s17 + $0x1a8] ss:$16 sps:$4 sm:$0xff]  }
  0x9d   : > { %1409 = vmatprep.subr.bf16.mxu0 %v2122_v25  ;;  %1495 = vmatprep.subr.bf16.mxu1 %v2124_v26  ;;  %v2176_v62 = vld [vmem:[%s2796_s17 + $0x1c4] ss:$16 sps:$4 sm:$0xff]   ;;  %v2178_v63 = vld [vmem:[%s2796_s17 + $0x1cc] ss:$16 sps:$4 sm:$0xff]   ;;  %v2180_v0 = vld [vmem:[%s2796_s17 + $0x1c0] ss:$16 sps:$4 sm:$0xff]  }
  0x9e   : > { %v2181_v1 = vld [vmem:[%s2796_s17 + $0x1c8] ss:$16 sps:$4 sm:$0xff]   ;;  %v2182_v2 = vld [vmem:[%s2796_s17 + $0x1e4] ss:$16 sps:$4 sm:$0xff]   ;;  %v2184_v3 = vld [vmem:[%s2796_s17 + $0x1ec] ss:$16 sps:$4 sm:$0xff]  }
  0x9f   : > { %v2186_v4 = vld [vmem:[%s2796_s17 + $0x1e0] ss:$16 sps:$4 sm:$0xff]   ;;  %v2187_v5 = vld [vmem:[%s2796_s17 + $0x1e8] ss:$16 sps:$4 sm:$0xff]   ;;  %v2193_v6 = vld [vmem:[%s2796_s17 + $0x204] ss:$16 sps:$4 sm:$0xff]  }
  0xa0   : > { %1410 = vmatpush1.bf16.msra.mxu0 %v2126_v27  ;;  %1496 = vmatpush1.bf16.msra.mxu1 %v2127_v28  ;;  %v2196_v7 = vld [vmem:[%s2796_s17 + $0x20c] ss:$16 sps:$4 sm:$0xff]   ;;  %v2188_v8 = vld [vmem:[%s2794_s19] ss:$16 sps:$4 sm:$0xff]   ;;  %v2194_v10 = vld [vmem:[%s2796_s17 + $0x208] ss:$16 sps:$4 sm:$0xff]  }
  0xa1   : > { %1411 = vmatprep.subr.bf16.mxu0 %v2128_v29  ;;  %1497 = vmatprep.subr.bf16.mxu1 %v2130_v30  ;;  %v2191_v9 = vld [vmem:[%s2796_s17 + $0x200] ss:$16 sps:$4 sm:$0xff]   ;;  %v2199_v11 = vld [vmem:[%s2796_s17 + $0x224] ss:$16 sps:$4 sm:$0xff]   ;;  %v2202_v12 = vld [vmem:[%s2796_s17 + $0x22c] ss:$16 sps:$4 sm:$0xff]  }
  0xa2   : > { %v2197_v13 = vld [vmem:[%s2796_s17 + $0x220] ss:$16 sps:$4 sm:$0xff]   ;;  %v2200_v14 = vld [vmem:[%s2796_s17 + $0x228] ss:$16 sps:$4 sm:$0xff]   ;;  %v2205_v15 = vld [vmem:[%s2796_s17 + $0x244] ss:$16 sps:$4 sm:$0xff]  }
  0xa3   : > { %v2208_v16 = vld [vmem:[%s2796_s17 + $0x24c] ss:$16 sps:$4 sm:$0xff]   ;;  %v2203_v17 = vld [vmem:[%s2796_s17 + $0x240] ss:$16 sps:$4 sm:$0xff]   ;;  %v2206_v18 = vld [vmem:[%s2796_s17 + $0x248] ss:$16 sps:$4 sm:$0xff]  }
  0xa4   : > { %1412 = vmatpush1.bf16.msra.mxu0 %v2132_v31  ;;  %1498 = vmatpush1.bf16.msra.mxu1 %v2133_v32  ;;  %v2211_v19 = vld [vmem:[%s2796_s17 + $0x264] ss:$16 sps:$4 sm:$0xff]   ;;  %v2214_v20 = vld [vmem:[%s2796_s17 + $0x26c] ss:$16 sps:$4 sm:$0xff]   ;;  %v2209_v21 = vld [vmem:[%s2796_s17 + $0x260] ss:$16 sps:$4 sm:$0xff]  }
  0xa5   : > { %1413 = vmatprep.subr.bf16.mxu0 %v2134_v33  ;;  %1499 = vmatprep.subr.bf16.mxu1 %v2136_v34  ;;  %v2212_v22 = vld [vmem:[%s2796_s17 + $0x268] ss:$16 sps:$4 sm:$0xff]   ;;  %v2217_v23 = vld [vmem:[%s2796_s17 + $0x284] ss:$16 sps:$4 sm:$0xff]   ;;  %v2220_v24 = vld [vmem:[%s2796_s17 + $0x28c] ss:$16 sps:$4 sm:$0xff]  }
  0xa6   : > { %v2215_v25 = vld [vmem:[%s2796_s17 + $0x280] ss:$16 sps:$4 sm:$0xff]   ;;  %v2218_v26 = vld [vmem:[%s2796_s17 + $0x288] ss:$16 sps:$4 sm:$0xff]   ;;  %v2223_v27 = vld [vmem:[%s2796_s17 + $0x2a4] ss:$16 sps:$4 sm:$0xff]  }
  0xa7   : > { %v2226_v28 = vld [vmem:[%s2796_s17 + $0x2ac] ss:$16 sps:$4 sm:$0xff]   ;;  %v2221_v29 = vld [vmem:[%s2796_s17 + $0x2a0] ss:$16 sps:$4 sm:$0xff]   ;;  %v2224_v30 = vld [vmem:[%s2796_s17 + $0x2a8] ss:$16 sps:$4 sm:$0xff]  }
  0xa8   : > { %1414 = vmatpush1.bf16.msra.mxu0 %v2138_v35  ;;  %1500 = vmatpush1.bf16.msra.mxu1 %v2139_v36  ;;  %v2229_v31 = vld [vmem:[%s2796_s17 + $0x2c4] ss:$16 sps:$4 sm:$0xff]   ;;  %v2232_v32 = vld [vmem:[%s2796_s17 + $0x2cc] ss:$16 sps:$4 sm:$0xff]   ;;  %v2227_v34 = vld [vmem:[%s2796_s17 + $0x2c0] ss:$16 sps:$4 sm:$0xff]  }
  0xa9   : > { %1415 = vmatprep.subr.bf16.mxu0 %v2140_v37  ;;  %1501 = vmatprep.subr.bf16.mxu1 %v2142_v38  ;;  %v2289_v33 = vld [vmem:[%s2794_s19 + $0xc] ss:$16 sps:$4 sm:$0xff]   ;;  %v2230_v35 = vld [vmem:[%s2796_s17 + $0x2c8] ss:$16 sps:$4 sm:$0xff]   ;;  %v2235_v36 = vld [vmem:[%s2796_s17 + $0x2e4] ss:$16 sps:$4 sm:$0xff]  }
  0xaa   : > { %v2238_v37 = vld [vmem:[%s2796_s17 + $0x2ec] ss:$16 sps:$4 sm:$0xff]   ;;  %v2233_v38 = vld [vmem:[%s2796_s17 + $0x2e0] ss:$16 sps:$4 sm:$0xff]   ;;  %p1986_p5 = scmp.ne.s32.totalorder %s2360_s21, 3 }
  0xab   : > { %v2262_v53 = vld [vmem:[%s2796_s17 + $0x36c] ss:$16 sps:$4 sm:$0xff]  }
  0xac   : > { %1416 = vmatpush1.bf16.msra.mxu0 %v2144_v39  ;;  %1502 = vmatpush1.bf16.msra.mxu1 %v2145_v40  ;;  %v2236_v39 = vld [vmem:[%s2796_s17 + $0x2e8] ss:$16 sps:$4 sm:$0xff]   ;;  %v2241_v40 = vld [vmem:[%s2796_s17 + $0x304] ss:$16 sps:$4 sm:$0xff]  }
  0xad   : > { %1417 = vmatprep.subr.bf16.mxu0 %v2146_v41  ;;  %1503 = vmatprep.subr.bf16.mxu1 %v2148_v42  ;;  %v2244_v41 = vld [vmem:[%s2796_s17 + $0x30c] ss:$16 sps:$4 sm:$0xff]   ;;  %v2239_v42 = vld [vmem:[%s2796_s17 + $0x300] ss:$16 sps:$4 sm:$0xff]  }
  0xb0   : > { %1418 = vmatpush1.bf16.msra.mxu0 %v2150_v43  ;;  %1504 = vmatpush1.bf16.msra.mxu1 %v2151_v44  ;;  %v2242_v43 = vld [vmem:[%s2796_s17 + $0x308] ss:$16 sps:$4 sm:$0xff]   ;;  %v2247_v44 = vld [vmem:[%s2796_s17 + $0x324] ss:$16 sps:$4 sm:$0xff]  }
  0xb1   : > { %1419 = vmatprep.subr.bf16.mxu0 %v2152_v45  ;;  %1505 = vmatprep.subr.bf16.mxu1 %v2154_v46  ;;  %v2250_v45 = vld [vmem:[%s2796_s17 + $0x32c] ss:$16 sps:$4 sm:$0xff]   ;;  %v2245_v46 = vld [vmem:[%s2796_s17 + $0x320] ss:$16 sps:$4 sm:$0xff]  }
  0xb4   : > { %1420 = vmatpush1.bf16.msra.mxu0 %v2156_v47  ;;  %1506 = vmatpush1.bf16.msra.mxu1 %v2157_v48  ;;  %v2248_v47 = vld [vmem:[%s2796_s17 + $0x328] ss:$16 sps:$4 sm:$0xff]   ;;  %v2253_v48 = vld [vmem:[%s2796_s17 + $0x344] ss:$16 sps:$4 sm:$0xff]  }
  0xb5   : > { %1421 = vmatprep.subr.bf16.mxu0 %v2158_v49  ;;  %1507 = vmatprep.subr.bf16.mxu1 %v2160_v50  ;;  %v2256_v49 = vld [vmem:[%s2796_s17 + $0x34c] ss:$16 sps:$4 sm:$0xff]   ;;  %v2251_v50 = vld [vmem:[%s2796_s17 + $0x340] ss:$16 sps:$4 sm:$0xff]  }
  0xb8   : > { %1422 = vmatpush1.bf16.msra.mxu0 %v2162_v51  ;;  %1508 = vmatpush1.bf16.msra.mxu1 %v2163_v52  ;;  %v2254_v51 = vld [vmem:[%s2796_s17 + $0x348] ss:$16 sps:$4 sm:$0xff]   ;;  %v2259_v52 = vld [vmem:[%s2796_s17 + $0x364] ss:$16 sps:$4 sm:$0xff]  }
  0xb9   : > { %1423 = vmatprep.subr.bf16.mxu0 %v2164_v54  ;;  %1509 = vmatprep.subr.bf16.mxu1 %v2166_v55  ;;  %v2257_v54 = vld [vmem:[%s2796_s17 + $0x360] ss:$16 sps:$4 sm:$0xff]   ;;  %v2260_v55 = vld [vmem:[%s2796_s17 + $0x368] ss:$16 sps:$4 sm:$0xff]  }
  0xbc   : > { %1424 = vmatpush1.bf16.msra.mxu0 %v2168_v56  ;;  %1510 = vmatpush1.bf16.msra.mxu1 %v2169_v57  ;;  %v2265_v56 = vld [vmem:[%s2796_s17 + $0x384] ss:$16 sps:$4 sm:$0xff]   ;;  %v2268_v57 = vld [vmem:[%s2796_s17 + $0x38c] ss:$16 sps:$4 sm:$0xff]  }
  0xbd   : > { %1425 = vmatprep.subr.bf16.mxu0 %v2170_v58  ;;  %1511 = vmatprep.subr.bf16.mxu1 %v2172_v59  ;;  %v2263_v58 = vld [vmem:[%s2796_s17 + $0x380] ss:$16 sps:$4 sm:$0xff]   ;;  %v2266_v59 = vld [vmem:[%s2796_s17 + $0x388] ss:$16 sps:$4 sm:$0xff]  }
  0xc0   : > { %1426 = vmatpush1.bf16.msra.mxu0 %v2174_v60  ;;  %1512 = vmatpush1.bf16.msra.mxu1 %v2175_v61  ;;  %v2271_v60 = vld [vmem:[%s2796_s17 + $0x3a4] ss:$16 sps:$4 sm:$0xff]   ;;  %v2274_v61 = vld [vmem:[%s2796_s17 + $0x3ac] ss:$16 sps:$4 sm:$0xff]  }
  0xc1   : > { %1427 = vmatprep.subr.bf16.mxu0 %v2176_v62  ;;  %1513 = vmatprep.subr.bf16.mxu1 %v2178_v63  ;;  %v2269_v62 = vld [vmem:[%s2796_s17 + $0x3a0] ss:$16 sps:$4 sm:$0xff]   ;;  %v2272_v63 = vld [vmem:[%s2796_s17 + $0x3a8] ss:$16 sps:$4 sm:$0xff]  }
  0xc4   : > { %1428 = vmatpush1.bf16.msra.mxu0 %v2180_v0  ;;  %1514 = vmatpush1.bf16.msra.mxu1 %v2181_v1  ;;  %v2277_v0 = vld [vmem:[%s2796_s17 + $0x3c4] ss:$16 sps:$4 sm:$0xff]   ;;  %v2280_v1 = vld [vmem:[%s2796_s17 + $0x3cc] ss:$16 sps:$4 sm:$0xff]  }
  0xc5   : > { %1429 = vmatprep.subr.bf16.mxu0 %v2182_v2  ;;  %1515 = vmatprep.subr.bf16.mxu1 %v2184_v3  ;;  %v2275_v2 = vld [vmem:[%s2796_s17 + $0x3c0] ss:$16 sps:$4 sm:$0xff]   ;;  %v2278_v3 = vld [vmem:[%s2796_s17 + $0x3c8] ss:$16 sps:$4 sm:$0xff]  }
  0xc8   : > { %1430 = vmatpush1.bf16.msra.mxu0 %v2186_v4  ;;  %1516 = vmatpush1.bf16.msra.mxu1 %v2187_v5  ;;  %v2283_v4 = vld [vmem:[%s2796_s17 + $0x3e4] ss:$16 sps:$4 sm:$0xff]   ;;  %v2286_v5 = vld [vmem:[%s2796_s17 + $0x3ec] ss:$16 sps:$4 sm:$0xff]  }
  0xc9   : > { %1442 = vmatprep.subr.bf16.mxu0 %v2193_v6  ;;  %1528 = vmatprep.subr.bf16.mxu1 %v2196_v7  ;;  %v2281_v6 = vld [vmem:[%s2796_s17 + $0x3e0] ss:$16 sps:$4 sm:$0xff]   ;;  %v2284_v7 = vld [vmem:[%s2796_s17 + $0x3e8] ss:$16 sps:$4 sm:$0xff]  }
  0xcb   : > { %1432 = vmatmul.mubr.bf16.vlgmr.msra.gmra.mrb[0].mxu0 %v2188_v8  ;;  %1518 = vmatmul.mubr.bf16.vlgmr.msra.gmra.mrb[0].mxu1 %v2188_v8  ;;  %v2287_v8 = vld [vmem:[%s2794_s19 + $0x8] ss:$16 sps:$4 sm:$0xff]  }
  0xcc   : > { %1443 = vmatpush1.bf16.msra.mxu0 %v2191_v9  ;;  %1529 = vmatpush1.bf16.msra.mxu1 %v2194_v10  ;;  %v599_v9 = vld [vmem:[#allocation2] sm:$0xff]  ;;  %v601_v10 = vld [vmem:[#allocation2 + $0x10] sm:$0xff] }
  0xcd   : > { %1444 = vmatprep.subr.bf16.mxu0 %v2199_v11  ;;  %1530 = vmatprep.subr.bf16.mxu1 %v2202_v12  ;;  %v600_v11 = vld [vmem:[#allocation2 + $0x8] sm:$0xff]  ;;  %v602_v12 = vld [vmem:[#allocation2 + $0x18] sm:$0xff] }
  0xce   : > { %1474 = vmatprep.mubr.bf16.mxu0 %v2289_v33  ;;  %1560 = vmatprep.mubr.bf16.mxu1 %v2289_v33  ;;  %v1601_v33 = vlaneseq (!%p1986_p5) }
  0xd0   : > { %1445 = vmatpush1.bf16.msra.mxu0 %v2197_v13  ;;  %1531 = vmatpush1.bf16.msra.mxu1 %v2200_v14 }
  0xd1   : > { %1446 = vmatprep.subr.bf16.mxu0 %v2205_v15  ;;  %1532 = vmatprep.subr.bf16.mxu1 %v2208_v16  ;;  %v603_v15 = vld [vmem:[#allocation2 + $0x20] sm:$0xff]  ;;  %v605_v16 = vld [vmem:[#allocation2 + $0x30] sm:$0xff] }
  0xd4   : > { %1447 = vmatpush1.bf16.msra.mxu0 %v2203_v17  ;;  %1533 = vmatpush1.bf16.msra.mxu1 %v2206_v18 }
  0xd5   : > { %1448 = vmatprep.subr.bf16.mxu0 %v2211_v19  ;;  %1534 = vmatprep.subr.bf16.mxu1 %v2214_v20 }
  0xd8   : > { %1449 = vmatpush1.bf16.msra.mxu0 %v2209_v21  ;;  %1535 = vmatpush1.bf16.msra.mxu1 %v2212_v22  ;;  %v604_v21 = vld [vmem:[#allocation2 + $0x28] sm:$0xff]  ;;  %v606_v22 = vld [vmem:[#allocation2 + $0x38] sm:$0xff] }
  0xd9   : > { %1450 = vmatprep.subr.bf16.mxu0 %v2217_v23  ;;  %1536 = vmatprep.subr.bf16.mxu1 %v2220_v24 }
  0xdc   : > { %1451 = vmatpush1.bf16.msra.mxu0 %v2215_v25  ;;  %1537 = vmatpush1.bf16.msra.mxu1 %v2218_v26 }
  0xdd   : > { %1452 = vmatprep.subr.bf16.mxu0 %v2223_v27  ;;  %1538 = vmatprep.subr.bf16.mxu1 %v2226_v28 }
  0xe0   : > { %1453 = vmatpush1.bf16.msra.mxu0 %v2221_v29  ;;  %1539 = vmatpush1.bf16.msra.mxu1 %v2224_v30 }
  0xe1   : > { %1454 = vmatprep.subr.bf16.mxu0 %v2229_v31  ;;  %1540 = vmatprep.subr.bf16.mxu1 %v2232_v32 }
  0xe4   : > { %1455 = vmatpush1.bf16.msra.mxu0 %v2227_v34  ;;  %1541 = vmatpush1.bf16.msra.mxu1 %v2230_v35  ;;  %v1602_v34 = vshrl.u32 (!%p1986_p5), %v1601_v33, 7  ;;  %v1599_v35 = vld [vmem:[%s578_s9] sm:$0xf] (!%p1986_p5) }
  0xe5   : > { %1456 = vmatprep.subr.bf16.mxu0 %v2235_v36  ;;  %1542 = vmatprep.subr.bf16.mxu1 %v2238_v37  ;;  %v1629_v36 = vld [vmem:[%s583_s1] sm:$0xf] (!%p1986_p5) }
  0xe8   : > { %1457 = vmatpush1.bf16.msra.mxu0 %v2233_v38  ;;  %1543 = vmatpush1.bf16.msra.mxu1 %v2236_v39  ;;  %v1603_v38 = vsub.s32 (!%p1986_p5), 0, %v1602_v34 }
  0xe9   : > { %1458 = vmatprep.subr.bf16.mxu0 %v2241_v40  ;;  %1544 = vmatprep.subr.bf16.mxu1 %v2244_v41  ;;  %v1607_v40 = vsub.s32 (!%p1986_p5), 1, %v1602_v34  ;;  %v1611_v41 = vsub.s32 (!%p1986_p5), 2, %v1602_v34 }
  0xec   : > { %1459 = vmatpush1.bf16.msra.mxu0 %v2239_v42  ;;  %1545 = vmatpush1.bf16.msra.mxu1 %v2242_v43  ;;  %v1615_v42 = vsub.s32 (!%p1986_p5), 3, %v1602_v34 }
  0xed   : > { %1460 = vmatprep.subr.bf16.mxu0 %v2247_v44  ;;  %1546 = vmatprep.subr.bf16.mxu1 %v2250_v45 }
  0xf0   : > { %1461 = vmatpush1.bf16.msra.mxu0 %v2245_v46  ;;  %1547 = vmatpush1.bf16.msra.mxu1 %v2248_v47  ;;  %v1604_v46 = vrot.slane (!%p1986_p5), %v1599_v35, %v1603_v38  ;;  %v1634_v47 = vrot.slane (!%p1986_p5), %v1629_v36, %v1603_v38 }
  0xf1   : > { %1462 = vmatprep.subr.bf16.mxu0 %v2253_v48  ;;  %1548 = vmatprep.subr.bf16.mxu1 %v2256_v49  ;;  %v1608_v48 = vrot.slane (!%p1986_p5), %v1599_v35, %v1607_v40  ;;  %v1638_v49 = vrot.slane (!%p1986_p5), %v1629_v36, %v1607_v40 }
  0xf4   : > { %1463 = vmatpush1.bf16.msra.mxu0 %v2251_v50  ;;  %1549 = vmatpush1.bf16.msra.mxu1 %v2254_v51 }
  0xf5   : > { %1464 = vmatprep.subr.bf16.mxu0 %v2259_v52  ;;  %1550 = vmatprep.subr.bf16.mxu1 %v2262_v53  ;;  %v1612_v53 = vrot.slane (!%p1986_p5), %v1599_v35, %v1611_v41 }
  0xf8   : > { %1465 = vmatpush1.bf16.msra.mxu0 %v2257_v54  ;;  %1551 = vmatpush1.bf16.msra.mxu1 %v2260_v55  ;;  %v1642_v54 = vrot.slane (!%p1986_p5), %v1629_v36, %v1611_v41  ;;  %v1616_v55 = vrot.slane (!%p1986_p5), %v1599_v35, %v1615_v42 }
  0xf9   : > { %1466 = vmatprep.subr.bf16.mxu0 %v2265_v56  ;;  %1552 = vmatprep.subr.bf16.mxu1 %v2268_v57  ;;  %v1646_v56 = vrot.slane (!%p1986_p5), %v1629_v36, %v1615_v42 }
  0xfc   : > { %1467 = vmatpush1.bf16.msra.mxu0 %v2263_v58  ;;  %1553 = vmatpush1.bf16.msra.mxu1 %v2266_v59 }
  0xfd   : > { %1468 = vmatprep.subr.bf16.mxu0 %v2271_v60  ;;  %1554 = vmatprep.subr.bf16.mxu1 %v2274_v61 }
 0x100   : > { %1469 = vmatpush1.bf16.msra.mxu0 %v2269_v62  ;;  %1555 = vmatpush1.bf16.msra.mxu1 %v2272_v63 }
 0x101   : > { %1470 = vmatprep.subr.bf16.mxu0 %v2277_v0  ;;  %1556 = vmatprep.subr.bf16.mxu1 %v2280_v1 }
 0x104   : > { %1471 = vmatpush1.bf16.msra.mxu0 %v2275_v2  ;;  %1557 = vmatpush1.bf16.msra.mxu1 %v2278_v3 }
 0x105   : > { %1472 = vmatprep.subr.bf16.mxu0 %v2283_v4  ;;  %1558 = vmatprep.subr.bf16.mxu1 %v2286_v5 }
 0x108   : > { %1473 = vmatpush1.bf16.msra.mxu0 %v2281_v6  ;;  %1559 = vmatpush1.bf16.msra.mxu1 %v2284_v7 }
 0x10b   : > { %1475 = vmatmul.mubr.bf16.vlgmr.msra.gmra.mrb[0].mxu0 %v2287_v8  ;;  %1561 = vmatmul.mubr.bf16.vlgmr.msra.gmra.mrb[0].mxu1 %v2287_v8 }
 0x1de   : > { %v1476_v13 = vpop.f32.mrb[0].mxu0  ;;  %v1562_v14 = vpop.f32.mrb[0].mxu1  ;;  %1590 = sbr.rel (%p1986_p5) target bundleno = 499 (0x1f3), region = 90 }
 0x1df   : > { %v1571_v17 = vadd.f32 %v1476_v13, %v599_v9  ;;  %v1573_v18 = vadd.f32 %v1562_v14, %v601_v10  ;;  %v1478_v19 = vpop.f32.mrb[1].mxu0  ;;  %v1564_v20 = vpop.f32.mrb[1].mxu1 }
 0x1e0   : > { %v1572_v23 = vadd.f32 %v1478_v19, %v600_v11  ;;  %v1574_v24 = vadd.f32 %v1564_v20, %v602_v12  ;;  %v1480_v25 = vpop.f32.mrb[2].mxu0  ;;  %v1566_v26 = vpop.f32.mrb[2].mxu1 }
 0x1e1   : > { %1579 = vst [vmem:[#allocation2] sm:$0xff] %v1571_v17  ;;  %1581 = vst [vmem:[#allocation2 + $0x10] sm:$0xff] %v1573_v18  ;;  %v1575_v27 = vadd.f32 %v1480_v25, %v603_v15  ;;  %v1577_v28 = vadd.f32 %v1566_v26, %v605_v16  ;;  %v1482_v29 = vpop.f32.mrb[3].mxu0  ;;  %v1568_v30 = vpop.f32.mrb[3].mxu1 }
 0x1e2   : > { %1580 = vst [vmem:[#allocation2 + $0x8] sm:$0xff] %v1572_v23  ;;  %1582 = vst [vmem:[#allocation2 + $0x18] sm:$0xff] %v1574_v24  ;;  %v1576_v31 = vadd.f32 %v1482_v29, %v604_v21  ;;  %v1578_v32 = vadd.f32 %v1568_v30, %v606_v22 }
 0x1e3   : > { %1583 = vst [vmem:[#allocation2 + $0x20] sm:$0xff] %v1575_v27  ;;  %1585 = vst [vmem:[#allocation2 + $0x30] sm:$0xff] %v1577_v28 }
 0x1e4   : > { %1584 = vst [vmem:[#allocation2 + $0x28] sm:$0xff] %v1576_v31  ;;  %1586 = vst [vmem:[#allocation2 + $0x38] sm:$0xff] %v1578_v32 }
 0x1e8   : > { %v1591_v37 = vld [vmem:[#allocation2] sm:$0xff]  ;;  %v1593_v43 = vld [vmem:[#allocation2 + $0x10] sm:$0xff] }
 0x1e9   : > { %v1592_v39 = vld [vmem:[#allocation2 + $0x8] sm:$0xff]  ;;  %v1594_v50 = vld [vmem:[#allocation2 + $0x18] sm:$0xff]  ;;  %v1621_v57 = vmul.f32 %v1604_v46, %v1591_v37  ;;  %v1623_v61 = vmul.f32 %v1612_v53, %v1593_v43 }
 0x1ea   : > { %v1595_v44 = vld [vmem:[#allocation2 + $0x20] sm:$0xff]  ;;  %v1597_v51 = vld [vmem:[#allocation2 + $0x30] sm:$0xff]  ;;  %v1622_v58 = vmul.f32 %v1608_v48, %v1592_v39  ;;  %v1624_v62 = vmul.f32 %v1616_v55, %v1594_v50 }
 0x1eb   : > { %v1596_v45 = vld [vmem:[#allocation2 + $0x28] sm:$0xff]  ;;  %v1598_v52 = vld [vmem:[#allocation2 + $0x38] sm:$0xff]  ;;  %v1625_v59 = vmul.f32 %v1604_v46, %v1595_v44  ;;  %v1627_v63 = vmul.f32 %v1612_v53, %v1597_v51  ;;  %v1651_v1 = vadd.f32 %v1634_v47, %v1621_v57  ;;  %v1653_v5 = vadd.f32 %v1642_v54, %v1623_v61 }
 0x1ec   : > { %v1626_v60 = vmul.f32 %v1608_v48, %v1596_v45  ;;  %v1628_v0 = vmul.f32 %v1616_v55, %v1598_v52  ;;  %v1652_v2 = vadd.f32 %v1638_v49, %v1622_v58  ;;  %v1654_v6 = vadd.f32 %v1646_v56, %v1624_v62 }
 0x1ed   : > { %v1655_v3 = vadd.f32 %v1634_v47, %v1625_v59  ;;  %v1657_v7 = vadd.f32 %v1642_v54, %v1627_v63  ;;  %v1659_v9 = vmax.f32 %v1651_v1, 0.0  ;;  %v1661_v13 = vmax.f32 %v1653_v5, 0.0 }
 0x1ee   : > { %v1656_v4 = vadd.f32 %v1638_v49, %v1626_v60  ;;  %v1658_v8 = vadd.f32 %v1646_v56, %v1628_v0  ;;  %v1660_v10 = vmax.f32 %v1652_v2, 0.0  ;;  %v1662_v14 = vmax.f32 %v1654_v6, 0.0 }
 0x1ef   : > { %v1663_v11 = vmax.f32 %v1655_v3, 0.0  ;;  %v1665_v15 = vmax.f32 %v1657_v7, 0.0  ;;  %1667 = vst [vmem:[%s2798_s15] sm:$0xff] %v1659_v9  ;;  %1669 = vst [vmem:[%s2798_s15 + $0x10] sm:$0xff] %v1661_v13 }
 0x1f0   : > { %v1664_v12 = vmax.f32 %v1656_v4, 0.0  ;;  %v1666_v16 = vmax.f32 %v1658_v8, 0.0  ;;  %1668 = vst [vmem:[%s2798_s15 + $0x8] sm:$0xff] %v1660_v10  ;;  %1670 = vst [vmem:[%s2798_s15 + $0x18] sm:$0xff] %v1662_v14 }
 0x1f1   : > { %1671 = vst [vmem:[%s2798_s15 + $0x20] sm:$0xff] %v1663_v11  ;;  %1673 = vst [vmem:[%s2798_s15 + $0x30] sm:$0xff] %v1665_v15 }
 0x1f2   : > { %1672 = vst [vmem:[%s2798_s15 + $0x28] sm:$0xff] %v1664_v12  ;;  %1674 = vst [vmem:[%s2798_s15 + $0x38] sm:$0xff] %v1666_v16 }
 0x1f3 PF: > { %1681 = sbr.rel (!%p2498_p12) target bundleno = 507 (0x1fb), region = 94  ;;  %s1994_s1 = sshll.u32 (%p2498_p12), %s2364_s22, 5 }
 0x1f4   : > { %s1687_s27 = scalar_lea.vmem (%p2498_p12), %s3003_s4, %s1994_s1 }
 0x1f6   : > { %v1700_v17 = vld [vmem:[%s2798_s15] sm:$0xff] (%p2498_p12)  ;;  %v1704_v19 = vld [vmem:[%s2798_s15 + $0x10] sm:$0xff] (%p2498_p12) }
 0x1f7   : > { %v1702_v18 = vld [vmem:[%s2798_s15 + $0x8] sm:$0xff] (%p2498_p12)  ;;  %v1706_v20 = vld [vmem:[%s2798_s15 + $0x18] sm:$0xff] (%p2498_p12)  ;;  %1701 = vst [vmem:[%s1687_s27] sm:$0xff] (%p2498_p12), %v1700_v17  ;;  %1705 = vst [vmem:[%s1687_s27 + $0x10] sm:$0xff] (%p2498_p12), %v1704_v19 }
 0x1f8   : > { %v1708_v21 = vld [vmem:[%s2798_s15 + $0x20] sm:$0xff] (%p2498_p12)  ;;  %1703 = vst [vmem:[%s1687_s27 + $0x8] sm:$0xff] (%p2498_p12), %v1702_v18  ;;  %1707 = vst [vmem:[%s1687_s27 + $0x18] sm:$0xff] (%p2498_p12), %v1706_v20  ;;  %v1712_v23 = vld [vmem:[%s2798_s15 + $0x30] sm:$0xff] (%p2498_p12) }
 0x1f9   : > { %v1710_v22 = vld [vmem:[%s2798_s15 + $0x28] sm:$0xff] (%p2498_p12)  ;;  %1709 = vst [vmem:[%s1687_s27 + $0x80] sm:$0xff] (%p2498_p12), %v1708_v21  ;;  %v1714_v24 = vld [vmem:[%s2798_s15 + $0x38] sm:$0xff] (%p2498_p12)  ;;  %1713 = vst [vmem:[%s1687_s27 + $0x90] sm:$0xff] (%p2498_p12), %v1712_v23 }
 0x1fa   : > { %1711 = vst [vmem:[%s1687_s27 + $0x88] sm:$0xff] %v1710_v22  ;;  %1715 = vst [vmem:[%s1687_s27 + $0x98] sm:$0xff] %v1714_v24 }
 0x1fb PF: > { %s14_s25 = sadd.s32 1, %s2376_s25   ;;  %s3015_s14 = sld [smem:[#allocation6_spill]] }
 0x1fc   : > { %p11_p6 = scmp.ge.s32.totalorder %s14_s25, 18   ;;  %s3016_s29 = sld [smem:[#allocation7_spill]] }
 0x1fd   : > { %s3017_s15 = smov %s2340_s16  ;;  %s3018_s16 = smov %s2496_s13 }
 0x1fe   : > { %s3019_s17 = smov %s2348_s18  ;;  %s3020_s18 = smov %s2493_s12 }
 0x1ff   : > { %s3021_s19 = smov %s2356_s20  ;;  %s3022_s20 = smov %s2479_s7 }
 0x200   : > { %s3023_s21 = smov %s2368_s23  ;;  %s3024_s22 = smov %s2372_s24 }
 0x201   : > { %s3025_s23 = smov %s3015_s14  ;;  %13 = sbr.rel (!%p11_p6) target bundleno = 9 (0x9), region = 162 }
 0x202   : > { %s3026_s24 = smov %s3016_s29 }

// kernel: fwd.25
= control target key start
LH: loop header
LB: loop body
LE: loop exit
PB: predicated region body
PF: predicated region fallthrough
CT: control target
= control target key end

     0   :  { %s1090_s15 = smov 0   ;;  %s1092_s16 = smov 0   ;;  %s1209_s0 = inlined_call_operand.vmem [shape: bf16[16,2048], index: 0, kind: input, shape index: {}]   ;;  %s1210_s1 = inlined_call_operand.vmem [shape: bf16[2048,128], index: 1, kind: input, shape index: {}]   ;;  %s1211_s2 = inlined_call_operand.vmem [shape: f32[1,128], index: 2, kind: input, shape index: {}]   ;;  %s1212_s3 = inlined_call_operand.vmem [shape: f32[1,128], index: 3, kind: input, shape index: {}]   ;;  %s1213_s4 = inlined_call_operand.vmem [shape: f32[16,128], index: 4, kind: output, shape index: {}]  }
   0x1   :  { %s1094_s17 = smov 0   ;;  %s1096_s18 = smov 0  }
   0x2   :  { %s1098_s19 = smov 0  }
   0x3 LB: > { %s26_s20 = sadd.s32 1, %s1058_s18  ;;  %p49_p1 = scmp.ne.s32.totalorder %s1050_s16, %s1046_s15  ;;  %s1062_s19 = sphi %s1098_s19, %s14_s19   ;;  %s1058_s18 = sphi %s1096_s18, %s1217_s18   ;;  %s1054_s17 = sphi %s1094_s17, %s1216_s17   ;;  %s1050_s16 = sphi %s1092_s16, %s1215_s16   ;;  %s1046_s15 = sphi %s1090_s15, %s1214_s15  }
   0x4   : > { %p27_p0 = scmp.ge.s32.totalorder %s26_s20, 4  ;;  %p50_p2 = scmp.eq.s32.totalorder %s1062_s19, 0 }
   0x5   : > { %s42_s22 = sadd.s32 1, %s1050_s16  ;;  %p848_p5 = scmp.ge.s32.totalorder %s1062_s19, 4 }
   0x6   : > { %s1219_s20 = smov (%p27_p0, %s26_s20), 0  ;;  %p51_p3 = por %p50_p2, %p49_p1 }
   0x7   : > { %s38_s21 = ssub.s32 %s1058_s18, %s1219_s20  ;;  %195 = sbr.rel (%p848_p5) target bundleno = 21 (0x15), region = 24 }
   0x8   : > { %p40_p4 = scmp.eq.s32.totalorder %s38_s21, 0 }
   0xa   : > { %s1125_s23 = scalar_select %p40_p4, %s1050_s16, %s42_s22  }
   0xe   : > { %198 = sbr.rel (!%p51_p3) target bundleno = 21 (0x15), region = 28  ;;  %s200_s24 = sand.u32 (%p51_p3), 1, %s1050_s16  }
   0xf   : > { %s900_s25 = sshll.u32 (%p51_p3), %s1058_s18, 4  ;;  %s849_s26 = sshll.u32 (%p51_p3), %s200_s24, 5 }
  0x10   : > { %s208_s29 = scalar_lea.vmem (%p51_p3), %s1209_s0, %s900_s25  ;;  %s202_s30 = scalar_lea.vmem (%p51_p3), [#allocation3], %s849_s26 }
  0x11   : > { %v221_v0 = vld [vmem:[%s208_s29] sm:$0xff] (%p51_p3)  ;;  %v223_v1 = vld [vmem:[%s208_s29 + $0x8] sm:$0xff] (%p51_p3) }
  0x12   : > { %v225_v2 = vld [vmem:[%s208_s29 + $0x40] sm:$0xff] (%p51_p3)  ;;  %222 = vst [vmem:[%s202_s30] sm:$0xff] (%p51_p3), %v221_v0  ;;  %224 = vst [vmem:[%s202_s30 + $0x8] sm:$0xff] (%p51_p3), %v223_v1  ;;  %v227_v3 = vld [vmem:[%s208_s29 + $0x48] sm:$0xff] (%p51_p3) }
  0x13   : > { %226 = vst [vmem:[%s202_s30 + $0x10] sm:$0xff] (%p51_p3), %v225_v2  ;;  %228 = vst [vmem:[%s202_s30 + $0x18] sm:$0xff] (%p51_p3), %v227_v3 }
  0x15 PF: > { %p852_p6 = scmp.ge.s32.totalorder %s1062_s19, 1  ;;  %p245_p7 = scmp.lt.s32.totalorder %s1062_s19, 5 }
  0x17   : > { %p246_p8 = pnand %p852_p6, %p245_p7 }
  0x18   : > { %s252_s5 = sand.u32 (!%p246_p8), 1, %s1046_s15   ;;  %s854_s6 = sshll.u32 (!%p246_p8), %s1054_s17, 6 }
  0x19   : > { %249 = sbr.rel (%p246_p8) target bundleno = 308 (0x134), region = 55  ;;  %s853_s7 = sshll.u32 (!%p246_p8), %s252_s5, 5 }
  0x1a   : > { %p297_p9 = scmp.lt.s32.totalorder (!%p246_p8), %s854_s6, 255  ;;  %s1142_s12 = scalar_lea.vmem (!%p246_p8), [#allocation3], %s853_s7 }
  0x1b   : > { %p856_p10 = scmp.ne.s32.totalorder (!%p246_p8), %s1054_s17, 0 }
  0x20   : > { %s1221_s6 = smov (!%p297_p9, %s854_s6), 255  ;;  %324 = sbr.rel (%p856_p10) target bundleno = 39 (0x27), region = 63 }
  0x21   : > { %s855_s8 = sshll.u32 %s1221_s6, 2  ;;  %v1064_v4 = vmov (!%p856_p10), 0.0  }
  0x22   : > { %s1140_s11 = scalar_lea.vmem %s1210_s1, %s855_s8  ;;  %325 = vst [vmem:[#allocation2] sm:$0xff] (!%p856_p10), %v1064_v4  ;;  %326 = vst [vmem:[#allocation2 + $0x8] sm:$0xff] (!%p856_p10), %v1064_v4 }
  0x27 PF: > { %v986_v5 = vld [vmem:[%s1140_s11 + $0x40] sm:$0xff]   ;;  %v990_v9 = vld [vmem:[%s1140_s11 + $0x48] sm:$0xff]   ;;  %v994_v13 = vld [vmem:[%s1140_s11 + $0x50] sm:$0xff]   ;;  %p893_p11 = scmp.ne.s32.totalorder %s1054_s17, 3 }
  0x28   : > { %v987_v6 = vld [vmem:[%s1140_s11 + $0xc0] sm:$0xff]   ;;  %901 = vmatprep.subr.bf16.mxu0 %v986_v5  ;;  %v991_v10 = vld [vmem:[%s1140_s11 + $0xc8] sm:$0xff]   ;;  %v995_v14 = vld [vmem:[%s1140_s11 + $0xd0] sm:$0xff]  }
  0x29   : > { %v988_v7 = vld [vmem:[%s1140_s11] sm:$0xff]   ;;  %923 = vmatprep.subr.bf16.mxu1 %v987_v6  ;;  %v992_v11 = vld [vmem:[%s1140_s11 + $0x8] sm:$0xff]   ;;  %v996_v15 = vld [vmem:[%s1140_s11 + $0x10] sm:$0xff]  }
  0x2a   : > { %v989_v8 = vld [vmem:[%s1140_s11 + $0x80] sm:$0xff]   ;;  %902 = vmatpush3.bf16.msra.mxu0 %v988_v7  ;;  %v993_v12 = vld [vmem:[%s1140_s11 + $0x88] sm:$0xff]   ;;  %v997_v16 = vld [vmem:[%s1140_s11 + $0x90] sm:$0xff]  }
  0x2b   : > { %924 = vmatpush3.bf16.msra.mxu1 %v989_v8  ;;  %903 = vmatprep.subr.bf16.mxu0 %v990_v9  ;;  %v998_v17 = vld [vmem:[%s1140_s11 + $0x58] sm:$0xff]   ;;  %v1002_v21 = vld [vmem:[%s1140_s11 + $0x60] sm:$0xff]   ;;  %v1006_v25 = vld [vmem:[%s1140_s11 + $0x68] sm:$0xff]  }
  0x2c   : > { %925 = vmatprep.subr.bf16.mxu1 %v991_v10  ;;  %v999_v18 = vld [vmem:[%s1140_s11 + $0xd8] sm:$0xff]   ;;  %v1003_v22 = vld [vmem:[%s1140_s11 + $0xe0] sm:$0xff]   ;;  %v1007_v26 = vld [vmem:[%s1140_s11 + $0xe8] sm:$0xff]  }
  0x2d   : > { %v1000_v19 = vld [vmem:[%s1140_s11 + $0x18] sm:$0xff]   ;;  %v1004_v23 = vld [vmem:[%s1140_s11 + $0x20] sm:$0xff]   ;;  %v1008_v27 = vld [vmem:[%s1140_s11 + $0x28] sm:$0xff]  }
  0x2e   : > { %904 = vmatpush3.bf16.msra.mxu0 %v992_v11  ;;  %v1001_v20 = vld [vmem:[%s1140_s11 + $0x98] sm:$0xff]   ;;  %v1005_v24 = vld [vmem:[%s1140_s11 + $0xa0] sm:$0xff]   ;;  %v1009_v28 = vld [vmem:[%s1140_s11 + $0xa8] sm:$0xff]  }
  0x2f   : > { %926 = vmatpush3.bf16.msra.mxu1 %v993_v12  ;;  %905 = vmatprep.subr.bf16.mxu0 %v994_v13  ;;  %v1010_v29 = vld [vmem:[%s1140_s11 + $0x70] sm:$0xff]   ;;  %v1014_v33 = vld [vmem:[%s1140_s11 + $0x78] sm:$0xff]   ;;  %v327_v50 = vld [vmem:[#allocation2] sm:$0xff] }
  0x30   : > { %927 = vmatprep.subr.bf16.mxu1 %v995_v14  ;;  %v1011_v30 = vld [vmem:[%s1140_s11 + $0xf0] sm:$0xff]   ;;  %v1015_v34 = vld [vmem:[%s1140_s11 + $0xf8] sm:$0xff]   ;;  %v328_v55 = vld [vmem:[#allocation2 + $0x8] sm:$0xff] }
  0x31   : > { %v1012_v31 = vld [vmem:[%s1140_s11 + $0x30] sm:$0xff]   ;;  %v1016_v35 = vld [vmem:[%s1140_s11 + $0x38] sm:$0xff]   ;;  %v894_v60 = vld [vmem:[%s1211_s2] ss:$0 sm:$0xff] (!%p893_p11) }
  0x32   : > { %906 = vmatpush3.bf16.msra.mxu0 %v996_v15  ;;  %v1013_v32 = vld [vmem:[%s1140_s11 + $0xb0] sm:$0xff]   ;;  %v1017_v36 = vld [vmem:[%s1140_s11 + $0xb8] sm:$0xff]   ;;  %v895_v61 = vld [vmem:[%s1212_s3] ss:$0 sm:$0xff] (!%p893_p11) }
  0x33   : > { %928 = vmatpush3.bf16.msra.mxu1 %v997_v16  ;;  %907 = vmatprep.subr.bf16.mxu0 %v998_v17  ;;  %v1018_v37 = vld [vmem:[%s1142_s12] ss:$16 sps:$4 sm:$0xff]   ;;  %v1020_v38 = vld [vmem:[%s1142_s12 + $0x4] ss:$16 sps:$4 sm:$0xff]   ;;  %v1021_v39 = vld [vmem:[%s1142_s12 + $0x8] ss:$16 sps:$4 sm:$0xff]  }
  0x34   : > { %929 = vmatprep.subr.bf16.mxu1 %v999_v18  ;;  %v1023_v40 = vld [vmem:[%s1142_s12 + $0xc] ss:$16 sps:$4 sm:$0xff]   ;;  %641 = vmatprep.mubr.bf16.mxu0 %v1020_v38 }
  0x35   : > { %682 = vmatprep.mubr.bf16.mxu1 %v1023_v40 }
  0x36   : > { %908 = vmatpush3.bf16.msra.mxu0 %v1000_v19 }
  0x37   : > { %930 = vmatpush3.bf16.msra.mxu1 %v1001_v20  ;;  %909 = vmatprep.subr.bf16.mxu0 %v1002_v21 }
  0x38   : > { %931 = vmatprep.subr.bf16.mxu1 %v1003_v22 }
  0x3a   : > { %910 = vmatpush3.bf16.msra.mxu0 %v1004_v23 }
  0x3b   : > { %932 = vmatpush3.bf16.msra.mxu1 %v1005_v24  ;;  %911 = vmatprep.subr.bf16.mxu0 %v1006_v25 }
  0x3c   : > { %933 = vmatprep.subr.bf16.mxu1 %v1007_v26 }
  0x3e   : > { %912 = vmatpush3.bf16.msra.mxu0 %v1008_v27 }
  0x3f   : > { %934 = vmatpush3.bf16.msra.mxu1 %v1009_v28  ;;  %913 = vmatprep.subr.bf16.mxu0 %v1010_v29 }
  0x40   : > { %935 = vmatprep.subr.bf16.mxu1 %v1011_v30 }
  0x42   : > { %914 = vmatpush3.bf16.msra.mxu0 %v1012_v31 }
  0x43   : > { %936 = vmatpush3.bf16.msra.mxu1 %v1013_v32  ;;  %915 = vmatprep.subr.bf16.mxu0 %v1014_v33 }
  0x44   : > { %937 = vmatprep.subr.bf16.mxu1 %v1015_v34 }
  0x46   : > { %916 = vmatpush3.bf16.msra.mxu0 %v1016_v35 }
  0x47   : > { %938 = vmatpush3.bf16.msra.mxu1 %v1017_v36 }
  0x49   : > { %642 = vmatmul.mubr.bf16.vlgmr.msra.gmra.mrb[0].mxu0 %v1018_v37 }
  0x4a   : > { %683 = vmatmul.mubr.bf16.vlgmr.msra.gmra.mrb[0].mxu1 %v1021_v39 }
 0x11c   : > { %v917_v41 = vpop.f32.mrb[0].mxu0 }
 0x11d   : > { %v939_v42 = vpop.f32.mrb[0].mxu1  ;;  %v918_v43 = vpop.f32.mrb[1].mxu0 }
 0x11e   : > { %v919_v44 = vadd.f32 %v918_v43, %v917_v41  ;;  %v940_v45 = vpop.f32.mrb[1].mxu1  ;;  %v920_v46 = vpop.f32.mrb[2].mxu0 }
 0x11f   : > { %v941_v47 = vadd.f32 %v940_v45, %v939_v42  ;;  %v942_v48 = vpop.f32.mrb[2].mxu1  ;;  %v921_v49 = vpop.f32.mrb[3].mxu0 }
 0x120   : > { %v922_v51 = vadd.f32 %v921_v49, %v920_v46  ;;  %v943_v52 = vpop.f32.mrb[3].mxu1 }
 0x121   : > { %v685_v53 = vadd.f32 %v941_v47, %v919_v44  ;;  %v944_v54 = vadd.f32 %v943_v52, %v942_v48  ;;  %698 = sbr.rel (%p893_p11) target bundleno = 308 (0x134), region = 67 }
 0x123   : > { %v691_v56 = vadd.f32 %v685_v53, %v327_v50  ;;  %v688_v57 = vadd.f32 %v944_v54, %v922_v51 }
 0x125   : > { %693 = vst [vmem:[#allocation2] sm:$0xff] %v691_v56  ;;  %v692_v58 = vadd.f32 %v688_v57, %v328_v55 }
 0x127   : > { %694 = vst [vmem:[#allocation2 + $0x8] sm:$0xff] %v692_v58 }
 0x12c   : > { %v699_v59 = vld [vmem:[#allocation2] sm:$0xff] }
 0x12d   : > { %v708_v62 = vmul.f32 %v894_v60, %v699_v59 }
 0x12e   : > { %v700_v63 = vld [vmem:[#allocation2 + $0x8] sm:$0xff] }
 0x12f   : > { %v709_v0 = vmul.f32 %v894_v60, %v700_v63  ;;  %v717_v1 = vadd.f32 %v895_v61, %v708_v62 }
 0x131   : > { %v718_v2 = vadd.f32 %v895_v61, %v709_v0  ;;  %719 = vst [vmem:[%s1213_s4] sm:$0xff] %v717_v1 }
 0x133   : > { %720 = vst [vmem:[%s1213_s4 + $0x8] sm:$0xff] %v718_v2 }
 0x134 PF: > { %s14_s19 = sadd.s32 1, %s1062_s19   ;;  %s1214_s15 = smov %s1050_s16 }
 0x135   : > { %p11_p12 = scmp.ge.s32.totalorder %s14_s19, 6   ;;  %s1215_s16 = smov %s1125_s23 }
 0x136   : > { %s1216_s17 = smov %s1058_s18  ;;  %s1217_s18 = smov %s1219_s20 }
 0x137   :  { %13 = sbr.rel (!%p11_p12) target bundleno = 3 (0x3), region = 111 }

// kernel: fwd.26
= control target key start
LH: loop header
LB: loop body
LE: loop exit
PB: predicated region body
PF: predicated region fallthrough
CT: control target
= control target key end

     0   :  { %vm11_vm0 = vcmask 1041408   ;;  %s85_s0 = inlined_call_operand.vmem [shape: f32[2,128], index: 0, kind: input, shape index: {}]   ;;  %s86_s1 = inlined_call_operand.hbm [shape: f32[2,128], index: 1, kind: output, shape index: {}]  }
   0x1   :  { %v9_v0 = vld [vmem:[%s85_s0] sm:$0x3] }
   0x2   :  { %6 = vsyncpa [#allocation3], 0  ;;  %v10_v1 = vmul.f32 %v9_v0, %v9_v0  ;;  %s59_s8 = smov [#allocation2]  }
   0x3   :  { %s24_s9 = sshll.u32 %s59_s8, 4  ;;  %s25_s9 = int_to_ptr.vmem [resolvable:$true] %s24_s9 }
   0x4   :  { %v12_v2 = vsel %vm11_vm0, %v10_v1, 0.0  ;;  %s35_s10 = scalar_lea.vmem %s25_s9, 32  ;;  %p40_p1 = scmp.lt.s32.totalorder %s25_s9, %s25_s9 }
   0x5   :  { %13 = vadd.xlane.f32.xlu0 %v12_v2  ;;  %p36_p0 = scmp.ne.s32.totalorder %s25_s9, %s35_s10  ;;  %p41_p2 = scmp.lt.s32.totalorder %s35_s10, %s35_s10 }
   0x7   :  { %p42_p3 = por %p41_p2, %p40_p1 }
   0x9   :  { %p43_p4 = pnand %p42_p3, %p36_p0 }
  0x92   :  { %v14_v3 = vpop.xlane.xlu0 %13 }
  0x93   :  { %33 = vrsqrt.f32 %v14_v3 }
  0x9d   :  { %v34_v4 = vpop.eup %33 }
  0x9e   :  { %v16_v5 = vmul.f32 %v34_v4, %v9_v0 }
  0xa0   :  { %17 = vst [vmem:[#allocation2] sm:$0x3] %v16_v5 }
  0xa1   :  { %46 = shalt.err (!%p43_p4)
}
  0xa2   :  { %s47_s12 = scalar_lea.hbm %s86_s1, 32 }
  0xa3   :  { %p48_p5 = scmp.ne.s32.totalorder %s86_s1, %s47_s12  ;;  %p51_p6 = scmp.lt.u32.totalorder %s47_s12, %s86_s1 }
  0xa5   :  { %p53_p7 = pnand %p51_p6, %p48_p5 }
  0xa7   :  { %56 = shalt.err (!%p53_p7)
}
  0xa8   :  { %27 = dma.vmem_to_hbm [thread:$0]  %s25_s9, 32, %s86_s1, [#allocation3]  }
  0xa9   :  { %57 = dma.done.wait [#allocation3], 32  }
  0xaa   :  { %58 = vsyncadd [#allocation3], 4294967264 }
  0xab   :  { %31 = vsyncpa [#allocation3], 1 }

</bundles_post_ra>
